<compile_context>
chip_gen: v5e
topology: v5e:2x2
jax: 0.10.0
libtpu: 0.0.40
codegen_flags: <defaults>
</compile_context>

<pallas_src>
import functools

import jax
import jax.numpy as jnp
from jax.experimental import pallas as pl
from jax.experimental.pallas import tpu as pltpu


# ---------------------------------------------------------------------------
# Pallas kernel: fused (conv3x3 SAME + BN(folded) + ReLU) x 2
# ---------------------------------------------------------------------------
def _vgg_block_kernel(H, W, RB, x_ref, w1_ref, b1_ref, w2_ref, b2_ref,
                      o_ref, mid_ref):
    """One batch element per grid step.

    x_ref  : (1, H+2, W+2, Cin)   bf16  spatially pre-padded input
    w1_ref : (9, Cin,  Cmid)      bf16  BN-scale-folded taps (kh*3+kw major)
    b1_ref : (1, Cmid)            f32   folded BN bias
    w2_ref : (9, Cmid, Cout)      bf16
    b2_ref : (1, Cout)            f32
    o_ref  : (1, H, W, Cout)      f32
    mid_ref: (H+2, W+2, Cmid)     bf16  VMEM scratch (padded mid activation)
    """
    Cin = x_ref.shape[3]
    Cmid = w1_ref.shape[2]
    Cout = w2_ref.shape[2]
    nblk = H // RB

    # Zero the padded mid-activation scratch so conv2's SAME border reads 0.
    # (Re-zeroed every grid step: safe under "parallel" batch sharding.)
    mid_ref[...] = jnp.zeros(mid_ref.shape, mid_ref.dtype)

    b1 = b1_ref[...]                      # (1, Cmid) f32
    b2 = b2_ref[...]                      # (1, Cout) f32

    def conv3x3(load_patch, w_ref, bias, cout):
        """9 accumulated MXU matmuls over a row block; f32 acc + bias + ReLU."""
        acc = jnp.zeros((RB * W, cout), jnp.float32)
        for kh in range(3):               # static: fully unrolled taps
            for kw in range(3):
                patch = load_patch(kh, kw)                    # (RB, W, cin) bf16
                patch = patch.reshape(RB * W, patch.shape[-1])
                acc = acc + jnp.dot(patch, w_ref[kh * 3 + kw],
                                    preferred_element_type=jnp.float32)
        return jnp.maximum(acc + bias, 0.0)                   # f32 epilogue

    # ---- conv1 + bn1 + relu : write interior of the padded VMEM scratch ----
    def conv1_body(rb, carry):
        r0 = rb * RB
        y = conv3x3(
            lambda kh, kw: x_ref[0, pl.ds(r0 + kh, RB), pl.ds(kw, W), :],
            w1_ref, b1, Cmid)
        mid_ref[pl.ds(r0 + 1, RB), pl.ds(1, W), :] = (
            y.astype(mid_ref.dtype).reshape(RB, W, Cmid))
        return carry

    jax.lax.fori_loop(0, nblk, conv1_body, 0)

    # ---- conv2 + bn2 + relu : read VMEM scratch, write output block ----
    def conv2_body(rb, carry):
        r0 = rb * RB
        y = conv3x3(
            lambda kh, kw: mid_ref[pl.ds(r0 + kh, RB), pl.ds(kw, W), :],
            w2_ref, b2, Cout)
        o_ref[0, pl.ds(r0, RB), :, :] = (
            y.astype(o_ref.dtype).reshape(RB, W, Cout))
        return carry

    jax.lax.fori_loop(0, nblk, conv2_body, 0)


def _pick_row_block(H, W, target_rows=512):
    """Largest divisor RB of H with RB*W <= target_rows (>=1)."""
    best = 1
    for rb in range(1, H + 1):
        if H % rb == 0 and rb * W <= target_rows:
            best = rb
    return best


def vgg_block_same(x_nchw, w1_taps, b1, w2_taps, b2):
    """PyTorch VGGBlock_same.forward (eval mode), NCHW in / NCHW out."""
    N, Cin, H, W = x_nchw.shape
    Cmid = w1_taps.shape[2]
    Cout = w2_taps.shape[2]
    # NCHW -> NHWC, zero SAME-pad spatially, bf16 for the MXU.
    x = jnp.transpose(x_nchw, (0, 2, 3, 1)).astype(jnp.bfloat16)
    x = jnp.pad(x, ((0, 0), (1, 1), (1, 1), (0, 0)))
    RB = _pick_row_block(H, W)

    kernel = functools.partial(_vgg_block_kernel, H, W, RB)
    out_nhwc = pl.pallas_call(
        kernel,
        out_shape=jax.ShapeDtypeStruct((N, H, W, Cout), jnp.float32),
        grid=(N,),
        in_specs=[
            pl.BlockSpec((1, H + 2, W + 2, Cin), lambda n: (n, 0, 0, 0)),
            pl.BlockSpec((9, Cin, Cmid), lambda n: (0, 0, 0)),
            pl.BlockSpec((1, Cmid), lambda n: (0, 0)),
            pl.BlockSpec((9, Cmid, Cout), lambda n: (0, 0, 0)),
            pl.BlockSpec((1, Cout), lambda n: (0, 0)),
        ],
        out_specs=pl.BlockSpec((1, H, W, Cout), lambda n: (n, 0, 0, 0)),
        scratch_shapes=[pltpu.VMEM((H + 2, W + 2, Cmid), jnp.bfloat16)],
        compiler_params=pltpu.CompilerParams(
            dimension_semantics=("parallel",),   # batch across cores on v7x
        ),
    )(x, w1_taps, b1, w2_taps, b2)
    return jnp.transpose(out_nhwc, (0, 3, 1, 2))   # back to NCHW


# ---------------------------------------------------------------------------
# Parameter prep: fold eval-mode BatchNorm into the conv weights / bias
# ---------------------------------------------------------------------------
def fold_conv_bn(w, b, gamma, beta, mean, var, eps=1e-5):
    """w: (Cout, Cin, 3, 3) torch layout -> (9, Cin, Cout) bf16 taps, f32 bias."""
    cout, cin = w.shape[0], w.shape[1]
    scale = gamma * jax.lax.rsqrt(var + eps)                       # (Cout,)
    w_f = w * scale[:, None, None, None]                           # scale folded
    b_f = (b - mean) * scale + beta                                # folded bias
    w_taps = jnp.transpose(w_f, (2, 3, 1, 0)).reshape(9, cin, cout)
    return w_taps.astype(jnp.bfloat16), b_f.reshape(1, cout).astype(jnp.float32)


# ---------------------------------------------------------------------------
# Pure-JAX reference (same bf16 weights/activations, f32 accumulation)
# ---------------------------------------------------------------------------
def reference_forward(x_nchw, w1_taps, b1, w2_taps, b2):
    x = jnp.transpose(x_nchw, (0, 2, 3, 1)).astype(jnp.bfloat16)

    def conv_bn_relu(h, w_taps, bias):
        cin, cout = w_taps.shape[1], w_taps.shape[2]
        w_hwio = w_taps.reshape(3, 3, cin, cout)
        y = jax.lax.conv_general_dilated(
            h, w_hwio, window_strides=(1, 1), padding="SAME",
            dimension_numbers=("NHWC", "HWIO", "NHWC"),
            preferred_element_type=jnp.float32)
        return jnp.maximum(y + bias.reshape(1, 1, 1, cout), 0.0)

    y1 = conv_bn_relu(x, w1_taps, b1).astype(jnp.bfloat16)
    y2 = conv_bn_relu(y1, w2_taps, b2)
    return jnp.transpose(y2, (0, 3, 1, 2))


# ---------------------------------------------------------------------------
if __name__ == "__main__":
    key = jax.random.PRNGKey(0)
    N, Cin, Cmid, Cout, H, W = 2, 16, 32, 64, 16, 16
    ks = jax.random.split(key, 13)

    x = jax.random.normal(ks[0], (N, Cin, H, W), jnp.float32)

    # conv1 + bn1 (eval-mode running stats)
    w1 = jax.random.normal(ks[1], (Cmid, Cin, 3, 3), jnp.float32) * (2.0 / (Cin * 9)) ** 0.5
    b1c = 0.01 * jax.random.normal(ks[2], (Cmid,), jnp.float32)
    g1 = 1.0 + 0.05 * jax.random.normal(ks[3], (Cmid,), jnp.float32)
    be1 = 0.05 * jax.random.normal(ks[4], (Cmid,), jnp.float32)
    m1 = 0.05 * jax.random.normal(ks[5], (Cmid,), jnp.float32)
    v1 = 1.0 + 0.1 * jnp.abs(jax.random.normal(ks[6], (Cmid,), jnp.float32))

    # conv2 + bn2
    w2 = jax.random.normal(ks[7], (Cout, Cmid, 3, 3), jnp.float32) * (2.0 / (Cmid * 9)) ** 0.5
    b2c = 0.01 * jax.random.normal(ks[8], (Cout,), jnp.float32)
    g2 = 1.0 + 0.05 * jax.random.normal(ks[9], (Cout,), jnp.float32)
    be2 = 0.05 * jax.random.normal(ks[10], (Cout,), jnp.float32)
    m2 = 0.05 * jax.random.normal(ks[11], (Cout,), jnp.float32)
    v2 = 1.0 + 0.1 * jnp.abs(jax.random.normal(ks[12], (Cout,), jnp.float32))

    w1_taps, b1 = fold_conv_bn(w1, b1c, g1, be1, m1, v1)
    w2_taps, b2 = fold_conv_bn(w2, b2c, g2, be2, m2, v2)

    fwd = jax.jit(vgg_block_same)
    out = jax.block_until_ready(fwd(x, w1_taps, b1, w2_taps, b2))

    ref = jax.block_until_ready(
        jax.jit(reference_forward)(x, w1_taps, b1, w2_taps, b2))

    assert out.shape == (N, Cout, H, W), out.shape
    assert bool(jnp.all(jnp.isfinite(out)))
    assert bool(jnp.allclose(out, ref, atol=2e-2, rtol=2e-2)), \
        float(jnp.max(jnp.abs(out - ref)))
    print("KERNEL_OK")
</pallas_src>

<mosaic_0001>
module attributes {stable_mosaic.version = 11 : i64} {
  func.func @_vgg_block_kernel(%arg0: i32, %arg1: memref<1x18x18x16xbf16, #tpu.memory_space<vmem>>, %arg2: memref<9x16x32xbf16, #tpu.memory_space<vmem>>, %arg3: memref<1x32xf32, #tpu.memory_space<vmem>>, %arg4: memref<9x32x64xbf16, #tpu.memory_space<vmem>>, %arg5: memref<1x64xf32, #tpu.memory_space<vmem>>, %arg6: memref<1x16x16x64xf32, #tpu.memory_space<vmem>>, %arg7: memref<18x18x32xbf16, #tpu.memory_space<vmem>>) attributes {dimension_semantics = [#tpu.dimension_semantics<parallel>], iteration_bounds = array<i64: 2>, scalar_prefetch = 0 : i64, scratch_operands = 1 : i64, tpu.core_type = #tpu.core_type<tc>, window_params = [{transform_indices = @transform_0, window_bounds = array<i64: 1, 18, 18, 16>}, {pipeline_mode = #tpu.pipeline_mode<synchronous>, transform_indices = @transform_1, window_bounds = array<i64: 9, 16, 32>}, {pipeline_mode = #tpu.pipeline_mode<synchronous>, transform_indices = @transform_2, window_bounds = array<i64: 1, 32>}, {pipeline_mode = #tpu.pipeline_mode<synchronous>, transform_indices = @transform_3, window_bounds = array<i64: 9, 32, 64>}, {pipeline_mode = #tpu.pipeline_mode<synchronous>, transform_indices = @transform_4, window_bounds = array<i64: 1, 64>}, {transform_indices = @transform_5, window_bounds = array<i64: 1, 16, 16, 64>}]} {
    %cst = arith.constant 0.000000e+00 : bf16
    %0 = vector.broadcast %cst : bf16 to vector<18x18x32xbf16>
    %c0 = arith.constant 0 : index
    %c0_0 = arith.constant 0 : index
    %c0_1 = arith.constant 0 : index
    %1 = vector.load %arg7[%c0, %c0_0, %c0_1] : memref<18x18x32xbf16, #tpu.memory_space<vmem>>, vector<18x18x32xbf16>
    tpu.vector_store %arg7[%c0, %c0_0, %c0_1], %0 {strides = array<i32>} : memref<18x18x32xbf16, #tpu.memory_space<vmem>>, vector<18x18x32xbf16>,
    %c0_2 = arith.constant 0 : index
    %c0_3 = arith.constant 0 : index
    %2 = vector.load %arg3[%c0_2, %c0_3] : memref<1x32xf32, #tpu.memory_space<vmem>>, vector<1x32xf32>
    %c0_4 = arith.constant 0 : index
    %c0_5 = arith.constant 0 : index
    %3 = vector.load %arg5[%c0_4, %c0_5] : memref<1x64xf32, #tpu.memory_space<vmem>>, vector<1x64xf32>
    %c0_i32 = arith.constant 0 : i32
    %c16_i32 = arith.constant 16 : i32
    %4 = arith.muli %c0_i32, %c16_i32 : i32
    %cst_6 = arith.constant 0.000000e+00 : f32
    %5 = vector.broadcast %cst_6 : f32 to vector<256x32xf32>
    %c0_i32_7 = arith.constant 0 : i32
    %6 = arith.addi %4, %c0_i32_7 : i32
    %c0_8 = arith.constant 0 : index
    %7 = arith.index_cast %6 : i32 to index
    %c0_9 = arith.constant 0 : index
    %c0_10 = arith.constant 0 : index
    %8 = vector.load %arg1[%c0_8, %7, %c0_9, %c0_10] : memref<1x18x18x16xbf16, #tpu.memory_space<vmem>>, vector<1x16x16x16xbf16>
    %9 = vector.shape_cast %8 : vector<1x16x16x16xbf16> to vector<16x16x16xbf16>
    %10 = vector.shape_cast %9 : vector<16x16x16xbf16> to vector<256x16xbf16>
    %c0_11 = arith.constant 0 : index
    %c0_12 = arith.constant 0 : index
    %c0_13 = arith.constant 0 : index
    %11 = vector.load %arg2[%c0_11, %c0_12, %c0_13] : memref<9x16x32xbf16, #tpu.memory_space<vmem>>, vector<1x16x32xbf16>
    %12 = vector.shape_cast %11 : vector<1x16x32xbf16> to vector<16x32xbf16>
    %cst_14 = arith.constant dense<0.000000e+00> : vector<256x32xf32>
    %13 = tpu.matmul %10, %12, %cst_14 {dimension_numbers = #tpu.dot_dimension_numbers<[1], [0], [0], [1], [0, 0, 1, 1], [], []>} : vector<256x16xbf16>, vector<16x32xbf16>, vector<256x32xf32> -> vector<256x32xf32>
    %14 = arith.addf %5, %13 : vector<256x32xf32>
    %c0_i32_15 = arith.constant 0 : i32
    %15 = arith.addi %4, %c0_i32_15 : i32
    %c0_16 = arith.constant 0 : index
    %16 = arith.index_cast %15 : i32 to index
    %c1 = arith.constant 1 : index
    %c0_17 = arith.constant 0 : index
    %17 = vector.load %arg1[%c0_16, %16, %c1, %c0_17] : memref<1x18x18x16xbf16, #tpu.memory_space<vmem>>, vector<1x16x16x16xbf16>
    %18 = vector.shape_cast %17 : vector<1x16x16x16xbf16> to vector<16x16x16xbf16>
    %19 = vector.shape_cast %18 : vector<16x16x16xbf16> to vector<256x16xbf16>
    %c1_18 = arith.constant 1 : index
    %c0_19 = arith.constant 0 : index
    %c0_20 = arith.constant 0 : index
    %20 = vector.load %arg2[%c1_18, %c0_19, %c0_20] : memref<9x16x32xbf16, #tpu.memory_space<vmem>>, vector<1x16x32xbf16>
    %21 = vector.shape_cast %20 : vector<1x16x32xbf16> to vector<16x32xbf16>
    %cst_21 = arith.constant dense<0.000000e+00> : vector<256x32xf32>
    %22 = tpu.matmul %19, %21, %cst_21 {dimension_numbers = #tpu.dot_dimension_numbers<[1], [0], [0], [1], [0, 0, 1, 1], [], []>} : vector<256x16xbf16>, vector<16x32xbf16>, vector<256x32xf32> -> vector<256x32xf32>
    %23 = arith.addf %14, %22 : vector<256x32xf32>
    %c0_i32_22 = arith.constant 0 : i32
    %24 = arith.addi %4, %c0_i32_22 : i32
    %c0_23 = arith.constant 0 : index
    %25 = arith.index_cast %24 : i32 to index
    %c2 = arith.constant 2 : index
    %c0_24 = arith.constant 0 : index
    %26 = vector.load %arg1[%c0_23, %25, %c2, %c0_24] : memref<1x18x18x16xbf16, #tpu.memory_space<vmem>>, vector<1x16x16x16xbf16>
    %27 = vector.shape_cast %26 : vector<1x16x16x16xbf16> to vector<16x16x16xbf16>
    %28 = vector.shape_cast %27 : vector<16x16x16xbf16> to vector<256x16xbf16>
    %c2_25 = arith.constant 2 : index
    %c0_26 = arith.constant 0 : index
    %c0_27 = arith.constant 0 : index
    %29 = vector.load %arg2[%c2_25, %c0_26, %c0_27] : memref<9x16x32xbf16, #tpu.memory_space<vmem>>, vector<1x16x32xbf16>
    %30 = vector.shape_cast %29 : vector<1x16x32xbf16> to vector<16x32xbf16>
    %cst_28 = arith.constant dense<0.000000e+00> : vector<256x32xf32>
    %31 = tpu.matmul %28, %30, %cst_28 {dimension_numbers = #tpu.dot_dimension_numbers<[1], [0], [0], [1], [0, 0, 1, 1], [], []>} : vector<256x16xbf16>, vector<16x32xbf16>, vector<256x32xf32> -> vector<256x32xf32>
    %32 = arith.addf %23, %31 : vector<256x32xf32>
    %c1_i32 = arith.constant 1 : i32
    %33 = arith.addi %4, %c1_i32 : i32
    %c0_29 = arith.constant 0 : index
    %34 = arith.index_cast %33 : i32 to index
    %c0_30 = arith.constant 0 : index
    %c0_31 = arith.constant 0 : index
    %35 = vector.load %arg1[%c0_29, %34, %c0_30, %c0_31] : memref<1x18x18x16xbf16, #tpu.memory_space<vmem>>, vector<1x16x16x16xbf16>
    %36 = vector.shape_cast %35 : vector<1x16x16x16xbf16> to vector<16x16x16xbf16>
    %37 = vector.shape_cast %36 : vector<16x16x16xbf16> to vector<256x16xbf16>
    %c3 = arith.constant 3 : index
    %c0_32 = arith.constant 0 : index
    %c0_33 = arith.constant 0 : index
    %38 = vector.load %arg2[%c3, %c0_32, %c0_33] : memref<9x16x32xbf16, #tpu.memory_space<vmem>>, vector<1x16x32xbf16>
    %39 = vector.shape_cast %38 : vector<1x16x32xbf16> to vector<16x32xbf16>
    %cst_34 = arith.constant dense<0.000000e+00> : vector<256x32xf32>
    %40 = tpu.matmul %37, %39, %cst_34 {dimension_numbers = #tpu.dot_dimension_numbers<[1], [0], [0], [1], [0, 0, 1, 1], [], []>} : vector<256x16xbf16>, vector<16x32xbf16>, vector<256x32xf32> -> vector<256x32xf32>
    %41 = arith.addf %32, %40 : vector<256x32xf32>
    %c1_i32_35 = arith.constant 1 : i32
    %42 = arith.addi %4, %c1_i32_35 : i32
    %c0_36 = arith.constant 0 : index
    %43 = arith.index_cast %42 : i32 to index
    %c1_37 = arith.constant 1 : index
    %c0_38 = arith.constant 0 : index
    %44 = vector.load %arg1[%c0_36, %43, %c1_37, %c0_38] : memref<1x18x18x16xbf16, #tpu.memory_space<vmem>>, vector<1x16x16x16xbf16>
    %45 = vector.shape_cast %44 : vector<1x16x16x16xbf16> to vector<16x16x16xbf16>
    %46 = vector.shape_cast %45 : vector<16x16x16xbf16> to vector<256x16xbf16>
    %c4 = arith.constant 4 : index
    %c0_39 = arith.constant 0 : index
    %c0_40 = arith.constant 0 : index
    %47 = vector.load %arg2[%c4, %c0_39, %c0_40] : memref<9x16x32xbf16, #tpu.memory_space<vmem>>, vector<1x16x32xbf16>
    %48 = vector.shape_cast %47 : vector<1x16x32xbf16> to vector<16x32xbf16>
    %cst_41 = arith.constant dense<0.000000e+00> : vector<256x32xf32>
    %49 = tpu.matmul %46, %48, %cst_41 {dimension_numbers = #tpu.dot_dimension_numbers<[1], [0], [0], [1], [0, 0, 1, 1], [], []>} : vector<256x16xbf16>, vector<16x32xbf16>, vector<256x32xf32> -> vector<256x32xf32>
    %50 = arith.addf %41, %49 : vector<256x32xf32>
    %c1_i32_42 = arith.constant 1 : i32
    %51 = arith.addi %4, %c1_i32_42 : i32
    %c0_43 = arith.constant 0 : index
    %52 = arith.index_cast %51 : i32 to index
    %c2_44 = arith.constant 2 : index
    %c0_45 = arith.constant 0 : index
    %53 = vector.load %arg1[%c0_43, %52, %c2_44, %c0_45] : memref<1x18x18x16xbf16, #tpu.memory_space<vmem>>, vector<1x16x16x16xbf16>
    %54 = vector.shape_cast %53 : vector<1x16x16x16xbf16> to vector<16x16x16xbf16>
    %55 = vector.shape_cast %54 : vector<16x16x16xbf16> to vector<256x16xbf16>
    %c5 = arith.constant 5 : index
    %c0_46 = arith.constant 0 : index
    %c0_47 = arith.constant 0 : index
    %56 = vector.load %arg2[%c5, %c0_46, %c0_47] : memref<9x16x32xbf16, #tpu.memory_space<vmem>>, vector<1x16x32xbf16>
    %57 = vector.shape_cast %56 : vector<1x16x32xbf16> to vector<16x32xbf16>
    %cst_48 = arith.constant dense<0.000000e+00> : vector<256x32xf32>
    %58 = tpu.matmul %55, %57, %cst_48 {dimension_numbers = #tpu.dot_dimension_numbers<[1], [0], [0], [1], [0, 0, 1, 1], [], []>} : vector<256x16xbf16>, vector<16x32xbf16>, vector<256x32xf32> -> vector<256x32xf32>
    %59 = arith.addf %50, %58 : vector<256x32xf32>
    %c2_i32 = arith.constant 2 : i32
    %60 = arith.addi %4, %c2_i32 : i32
    %c0_49 = arith.constant 0 : index
    %61 = arith.index_cast %60 : i32 to index
    %c0_50 = arith.constant 0 : index
    %c0_51 = arith.constant 0 : index
    %62 = vector.load %arg1[%c0_49, %61, %c0_50, %c0_51] : memref<1x18x18x16xbf16, #tpu.memory_space<vmem>>, vector<1x16x16x16xbf16>
    %63 = vector.shape_cast %62 : vector<1x16x16x16xbf16> to vector<16x16x16xbf16>
    %64 = vector.shape_cast %63 : vector<16x16x16xbf16> to vector<256x16xbf16>
    %c6 = arith.constant 6 : index
    %c0_52 = arith.constant 0 : index
    %c0_53 = arith.constant 0 : index
    %65 = vector.load %arg2[%c6, %c0_52, %c0_53] : memref<9x16x32xbf16, #tpu.memory_space<vmem>>, vector<1x16x32xbf16>
    %66 = vector.shape_cast %65 : vector<1x16x32xbf16> to vector<16x32xbf16>
    %cst_54 = arith.constant dense<0.000000e+00> : vector<256x32xf32>
    %67 = tpu.matmul %64, %66, %cst_54 {dimension_numbers = #tpu.dot_dimension_numbers<[1], [0], [0], [1], [0, 0, 1, 1], [], []>} : vector<256x16xbf16>, vector<16x32xbf16>, vector<256x32xf32> -> vector<256x32xf32>
    %68 = arith.addf %59, %67 : vector<256x32xf32>
    %c2_i32_55 = arith.constant 2 : i32
    %69 = arith.addi %4, %c2_i32_55 : i32
    %c0_56 = arith.constant 0 : index
    %70 = arith.index_cast %69 : i32 to index
    %c1_57 = arith.constant 1 : index
    %c0_58 = arith.constant 0 : index
    %71 = vector.load %arg1[%c0_56, %70, %c1_57, %c0_58] : memref<1x18x18x16xbf16, #tpu.memory_space<vmem>>, vector<1x16x16x16xbf16>
    %72 = vector.shape_cast %71 : vector<1x16x16x16xbf16> to vector<16x16x16xbf16>
    %73 = vector.shape_cast %72 : vector<16x16x16xbf16> to vector<256x16xbf16>
    %c7 = arith.constant 7 : index
    %c0_59 = arith.constant 0 : index
    %c0_60 = arith.constant 0 : index
    %74 = vector.load %arg2[%c7, %c0_59, %c0_60] : memref<9x16x32xbf16, #tpu.memory_space<vmem>>, vector<1x16x32xbf16>
    %75 = vector.shape_cast %74 : vector<1x16x32xbf16> to vector<16x32xbf16>
    %cst_61 = arith.constant dense<0.000000e+00> : vector<256x32xf32>
    %76 = tpu.matmul %73, %75, %cst_61 {dimension_numbers = #tpu.dot_dimension_numbers<[1], [0], [0], [1], [0, 0, 1, 1], [], []>} : vector<256x16xbf16>, vector<16x32xbf16>, vector<256x32xf32> -> vector<256x32xf32>
    %77 = arith.addf %68, %76 : vector<256x32xf32>
    %c2_i32_62 = arith.constant 2 : i32
    %78 = arith.addi %4, %c2_i32_62 : i32
    %c0_63 = arith.constant 0 : index
    %79 = arith.index_cast %78 : i32 to index
    %c2_64 = arith.constant 2 : index
    %c0_65 = arith.constant 0 : index
    %80 = vector.load %arg1[%c0_63, %79, %c2_64, %c0_65] : memref<1x18x18x16xbf16, #tpu.memory_space<vmem>>, vector<1x16x16x16xbf16>
    %81 = vector.shape_cast %80 : vector<1x16x16x16xbf16> to vector<16x16x16xbf16>
    %82 = vector.shape_cast %81 : vector<16x16x16xbf16> to vector<256x16xbf16>
    %c8 = arith.constant 8 : index
    %c0_66 = arith.constant 0 : index
    %c0_67 = arith.constant 0 : index
    %83 = vector.load %arg2[%c8, %c0_66, %c0_67] : memref<9x16x32xbf16, #tpu.memory_space<vmem>>, vector<1x16x32xbf16>
    %84 = vector.shape_cast %83 : vector<1x16x32xbf16> to vector<16x32xbf16>
    %cst_68 = arith.constant dense<0.000000e+00> : vector<256x32xf32>
    %85 = tpu.matmul %82, %84, %cst_68 {dimension_numbers = #tpu.dot_dimension_numbers<[1], [0], [0], [1], [0, 0, 1, 1], [], []>} : vector<256x16xbf16>, vector<16x32xbf16>, vector<256x32xf32> -> vector<256x32xf32>
    %86 = arith.addf %77, %85 : vector<256x32xf32>
    %87 = vector.broadcast %2 : vector<1x32xf32> to vector<256x32xf32>
    %88 = arith.addf %86, %87 : vector<256x32xf32>
    %cst_69 = arith.constant 0.000000e+00 : f32
    %89 = vector.broadcast %cst_69 : f32 to vector<256x32xf32>
    %90 = arith.maximumf %88, %89 : vector<256x32xf32>
    %91 = arith.truncf %90 : vector<256x32xf32> to vector<256x32xbf16>
    %92 = vector.shape_cast %91 : vector<256x32xbf16> to vector<16x16x32xbf16>
    %c1_i32_70 = arith.constant 1 : i32
    %93 = arith.addi %4, %c1_i32_70 : i32
    %94 = arith.index_cast %93 : i32 to index
    %c1_71 = arith.constant 1 : index
    %c0_72 = arith.constant 0 : index
    %95 = vector.load %arg7[%94, %c1_71, %c0_72] : memref<18x18x32xbf16, #tpu.memory_space<vmem>>, vector<16x16x32xbf16>
    tpu.vector_store %arg7[%94, %c1_71, %c0_72], %92 {strides = array<i32>} : memref<18x18x32xbf16, #tpu.memory_space<vmem>>, vector<16x16x32xbf16>,
    %c1_i32_73 = arith.constant 1 : i32
    %c0_i32_74 = arith.constant 0 : i32
    %c16_i32_75 = arith.constant 16 : i32
    %96 = arith.muli %c0_i32_74, %c16_i32_75 : i32
    %cst_76 = arith.constant 0.000000e+00 : f32
    %97 = vector.broadcast %cst_76 : f32 to vector<256x64xf32>
    %c0_i32_77 = arith.constant 0 : i32
    %98 = arith.addi %96, %c0_i32_77 : i32
    %99 = arith.index_cast %98 : i32 to index
    %c0_78 = arith.constant 0 : index
    %c0_79 = arith.constant 0 : index
    %100 = vector.load %arg7[%99, %c0_78, %c0_79] : memref<18x18x32xbf16, #tpu.memory_space<vmem>>, vector<16x16x32xbf16>
    %101 = vector.shape_cast %100 : vector<16x16x32xbf16> to vector<256x32xbf16>
    %c0_80 = arith.constant 0 : index
    %c0_81 = arith.constant 0 : index
    %c0_82 = arith.constant 0 : index
    %102 = vector.load %arg4[%c0_80, %c0_81, %c0_82] : memref<9x32x64xbf16, #tpu.memory_space<vmem>>, vector<1x32x64xbf16>
    %103 = vector.shape_cast %102 : vector<1x32x64xbf16> to vector<32x64xbf16>
    %cst_83 = arith.constant dense<0.000000e+00> : vector<256x64xf32>
    %104 = tpu.matmul %101, %103, %cst_83 {dimension_numbers = #tpu.dot_dimension_numbers<[1], [0], [0], [1], [0, 0, 1, 1], [], []>} : vector<256x32xbf16>, vector<32x64xbf16>, vector<256x64xf32> -> vector<256x64xf32>
    %105 = arith.addf %97, %104 : vector<256x64xf32>
    %c0_i32_84 = arith.constant 0 : i32
    %106 = arith.addi %96, %c0_i32_84 : i32
    %107 = arith.index_cast %106 : i32 to index
    %c1_85 = arith.constant 1 : index
    %c0_86 = arith.constant 0 : index
    %108 = vector.load %arg7[%107, %c1_85, %c0_86] : memref<18x18x32xbf16, #tpu.memory_space<vmem>>, vector<16x16x32xbf16>
    %109 = vector.shape_cast %108 : vector<16x16x32xbf16> to vector<256x32xbf16>
    %c1_87 = arith.constant 1 : index
    %c0_88 = arith.constant 0 : index
    %c0_89 = arith.constant 0 : index
    %110 = vector.load %arg4[%c1_87, %c0_88, %c0_89] : memref<9x32x64xbf16, #tpu.memory_space<vmem>>, vector<1x32x64xbf16>
    %111 = vector.shape_cast %110 : vector<1x32x64xbf16> to vector<32x64xbf16>
    %cst_90 = arith.constant dense<0.000000e+00> : vector<256x64xf32>
    %112 = tpu.matmul %109, %111, %cst_90 {dimension_numbers = #tpu.dot_dimension_numbers<[1], [0], [0], [1], [0, 0, 1, 1], [], []>} : vector<256x32xbf16>, vector<32x64xbf16>, vector<256x64xf32> -> vector<256x64xf32>
    %113 = arith.addf %105, %112 : vector<256x64xf32>
    %c0_i32_91 = arith.constant 0 : i32
    %114 = arith.addi %96, %c0_i32_91 : i32
    %115 = arith.index_cast %114 : i32 to index
    %c2_92 = arith.constant 2 : index
    %c0_93 = arith.constant 0 : index
    %116 = vector.load %arg7[%115, %c2_92, %c0_93] : memref<18x18x32xbf16, #tpu.memory_space<vmem>>, vector<16x16x32xbf16>
    %117 = vector.shape_cast %116 : vector<16x16x32xbf16> to vector<256x32xbf16>
    %c2_94 = arith.constant 2 : index
    %c0_95 = arith.constant 0 : index
    %c0_96 = arith.constant 0 : index
    %118 = vector.load %arg4[%c2_94, %c0_95, %c0_96] : memref<9x32x64xbf16, #tpu.memory_space<vmem>>, vector<1x32x64xbf16>
    %119 = vector.shape_cast %118 : vector<1x32x64xbf16> to vector<32x64xbf16>
    %cst_97 = arith.constant dense<0.000000e+00> : vector<256x64xf32>
    %120 = tpu.matmul %117, %119, %cst_97 {dimension_numbers = #tpu.dot_dimension_numbers<[1], [0], [0], [1], [0, 0, 1, 1], [], []>} : vector<256x32xbf16>, vector<32x64xbf16>, vector<256x64xf32> -> vector<256x64xf32>
    %121 = arith.addf %113, %120 : vector<256x64xf32>
    %c1_i32_98 = arith.constant 1 : i32
    %122 = arith.addi %96, %c1_i32_98 : i32
    %123 = arith.index_cast %122 : i32 to index
    %c0_99 = arith.constant 0 : index
    %c0_100 = arith.constant 0 : index
    %124 = vector.load %arg7[%123, %c0_99, %c0_100] : memref<18x18x32xbf16, #tpu.memory_space<vmem>>, vector<16x16x32xbf16>
    %125 = vector.shape_cast %124 : vector<16x16x32xbf16> to vector<256x32xbf16>
    %c3_101 = arith.constant 3 : index
    %c0_102 = arith.constant 0 : index
    %c0_103 = arith.constant 0 : index
    %126 = vector.load %arg4[%c3_101, %c0_102, %c0_103] : memref<9x32x64xbf16, #tpu.memory_space<vmem>>, vector<1x32x64xbf16>
    %127 = vector.shape_cast %126 : vector<1x32x64xbf16> to vector<32x64xbf16>
    %cst_104 = arith.constant dense<0.000000e+00> : vector<256x64xf32>
    %128 = tpu.matmul %125, %127, %cst_104 {dimension_numbers = #tpu.dot_dimension_numbers<[1], [0], [0], [1], [0, 0, 1, 1], [], []>} : vector<256x32xbf16>, vector<32x64xbf16>, vector<256x64xf32> -> vector<256x64xf32>
    %129 = arith.addf %121, %128 : vector<256x64xf32>
    %c1_i32_105 = arith.constant 1 : i32
    %130 = arith.addi %96, %c1_i32_105 : i32
    %131 = arith.index_cast %130 : i32 to index
    %c1_106 = arith.constant 1 : index
    %c0_107 = arith.constant 0 : index
    %132 = vector.load %arg7[%131, %c1_106, %c0_107] : memref<18x18x32xbf16, #tpu.memory_space<vmem>>, vector<16x16x32xbf16>
    %133 = vector.shape_cast %132 : vector<16x16x32xbf16> to vector<256x32xbf16>
    %c4_108 = arith.constant 4 : index
    %c0_109 = arith.constant 0 : index
    %c0_110 = arith.constant 0 : index
    %134 = vector.load %arg4[%c4_108, %c0_109, %c0_110] : memref<9x32x64xbf16, #tpu.memory_space<vmem>>, vector<1x32x64xbf16>
    %135 = vector.shape_cast %134 : vector<1x32x64xbf16> to vector<32x64xbf16>
    %cst_111 = arith.constant dense<0.000000e+00> : vector<256x64xf32>
    %136 = tpu.matmul %133, %135, %cst_111 {dimension_numbers = #tpu.dot_dimension_numbers<[1], [0], [0], [1], [0, 0, 1, 1], [], []>} : vector<256x32xbf16>, vector<32x64xbf16>, vector<256x64xf32> -> vector<256x64xf32>
    %137 = arith.addf %129, %136 : vector<256x64xf32>
    %c1_i32_112 = arith.constant 1 : i32
    %138 = arith.addi %96, %c1_i32_112 : i32
    %139 = arith.index_cast %138 : i32 to index
    %c2_113 = arith.constant 2 : index
    %c0_114 = arith.constant 0 : index
    %140 = vector.load %arg7[%139, %c2_113, %c0_114] : memref<18x18x32xbf16, #tpu.memory_space<vmem>>, vector<16x16x32xbf16>
    %141 = vector.shape_cast %140 : vector<16x16x32xbf16> to vector<256x32xbf16>
    %c5_115 = arith.constant 5 : index
    %c0_116 = arith.constant 0 : index
    %c0_117 = arith.constant 0 : index
    %142 = vector.load %arg4[%c5_115, %c0_116, %c0_117] : memref<9x32x64xbf16, #tpu.memory_space<vmem>>, vector<1x32x64xbf16>
    %143 = vector.shape_cast %142 : vector<1x32x64xbf16> to vector<32x64xbf16>
    %cst_118 = arith.constant dense<0.000000e+00> : vector<256x64xf32>
    %144 = tpu.matmul %141, %143, %cst_118 {dimension_numbers = #tpu.dot_dimension_numbers<[1], [0], [0], [1], [0, 0, 1, 1], [], []>} : vector<256x32xbf16>, vector<32x64xbf16>, vector<256x64xf32> -> vector<256x64xf32>
    %145 = arith.addf %137, %144 : vector<256x64xf32>
    %c2_i32_119 = arith.constant 2 : i32
    %146 = arith.addi %96, %c2_i32_119 : i32
    %147 = arith.index_cast %146 : i32 to index
    %c0_120 = arith.constant 0 : index
    %c0_121 = arith.constant 0 : index
    %148 = vector.load %arg7[%147, %c0_120, %c0_121] : memref<18x18x32xbf16, #tpu.memory_space<vmem>>, vector<16x16x32xbf16>
    %149 = vector.shape_cast %148 : vector<16x16x32xbf16> to vector<256x32xbf16>
    %c6_122 = arith.constant 6 : index
    %c0_123 = arith.constant 0 : index
    %c0_124 = arith.constant 0 : index
    %150 = vector.load %arg4[%c6_122, %c0_123, %c0_124] : memref<9x32x64xbf16, #tpu.memory_space<vmem>>, vector<1x32x64xbf16>
    %151 = vector.shape_cast %150 : vector<1x32x64xbf16> to vector<32x64xbf16>
    %cst_125 = arith.constant dense<0.000000e+00> : vector<256x64xf32>
    %152 = tpu.matmul %149, %151, %cst_125 {dimension_numbers = #tpu.dot_dimension_numbers<[1], [0], [0], [1], [0, 0, 1, 1], [], []>} : vector<256x32xbf16>, vector<32x64xbf16>, vector<256x64xf32> -> vector<256x64xf32>
    %153 = arith.addf %145, %152 : vector<256x64xf32>
    %c2_i32_126 = arith.constant 2 : i32
    %154 = arith.addi %96, %c2_i32_126 : i32
    %155 = arith.index_cast %154 : i32 to index
    %c1_127 = arith.constant 1 : index
    %c0_128 = arith.constant 0 : index
    %156 = vector.load %arg7[%155, %c1_127, %c0_128] : memref<18x18x32xbf16, #tpu.memory_space<vmem>>, vector<16x16x32xbf16>
    %157 = vector.shape_cast %156 : vector<16x16x32xbf16> to vector<256x32xbf16>
    %c7_129 = arith.constant 7 : index
    %c0_130 = arith.constant 0 : index
    %c0_131 = arith.constant 0 : index
    %158 = vector.load %arg4[%c7_129, %c0_130, %c0_131] : memref<9x32x64xbf16, #tpu.memory_space<vmem>>, vector<1x32x64xbf16>
    %159 = vector.shape_cast %158 : vector<1x32x64xbf16> to vector<32x64xbf16>
    %cst_132 = arith.constant dense<0.000000e+00> : vector<256x64xf32>
    %160 = tpu.matmul %157, %159, %cst_132 {dimension_numbers = #tpu.dot_dimension_numbers<[1], [0], [0], [1], [0, 0, 1, 1], [], []>} : vector<256x32xbf16>, vector<32x64xbf16>, vector<256x64xf32> -> vector<256x64xf32>
    %161 = arith.addf %153, %160 : vector<256x64xf32>
    %c2_i32_133 = arith.constant 2 : i32
    %162 = arith.addi %96, %c2_i32_133 : i32
    %163 = arith.index_cast %162 : i32 to index
    %c2_134 = arith.constant 2 : index
    %c0_135 = arith.constant 0 : index
    %164 = vector.load %arg7[%163, %c2_134, %c0_135] : memref<18x18x32xbf16, #tpu.memory_space<vmem>>, vector<16x16x32xbf16>
    %165 = vector.shape_cast %164 : vector<16x16x32xbf16> to vector<256x32xbf16>
    %c8_136 = arith.constant 8 : index
    %c0_137 = arith.constant 0 : index
    %c0_138 = arith.constant 0 : index
    %166 = vector.load %arg4[%c8_136, %c0_137, %c0_138] : memref<9x32x64xbf16, #tpu.memory_space<vmem>>, vector<1x32x64xbf16>
    %167 = vector.shape_cast %166 : vector<1x32x64xbf16> to vector<32x64xbf16>
    %cst_139 = arith.constant dense<0.000000e+00> : vector<256x64xf32>
    %168 = tpu.matmul %165, %167, %cst_139 {dimension_numbers = #tpu.dot_dimension_numbers<[1], [0], [0], [1], [0, 0, 1, 1], [], []>} : vector<256x32xbf16>, vector<32x64xbf16>, vector<256x64xf32> -> vector<256x64xf32>
    %169 = arith.addf %161, %168 : vector<256x64xf32>
    %170 = vector.broadcast %3 : vector<1x64xf32> to vector<256x64xf32>
    %171 = arith.addf %169, %170 : vector<256x64xf32>
    %cst_140 = arith.constant 0.000000e+00 : f32
    %172 = vector.broadcast %cst_140 : f32 to vector<256x64xf32>
    %173 = arith.maximumf %171, %172 : vector<256x64xf32>
    %174 = vector.shape_cast %173 : vector<256x64xf32> to vector<16x16x64xf32>
    %c0_141 = arith.constant 0 : index
    %175 = arith.index_cast %96 : i32 to index
    %c0_142 = arith.constant 0 : index
    %c0_143 = arith.constant 0 : index
    %176 = vector.load %arg6[%c0_141, %175, %c0_142, %c0_143] : memref<1x16x16x64xf32, #tpu.memory_space<vmem>>, vector<1x16x16x64xf32>
    %177 = vector.shape_cast %176 : vector<1x16x16x64xf32> to vector<16x16x64xf32>
    %178 = vector.shape_cast %174 : vector<16x16x64xf32> to vector<1x16x16x64xf32>
    tpu.vector_store %arg6[%c0_141, %175, %c0_142, %c0_143], %178 {strides = array<i32>} : memref<1x16x16x64xf32, #tpu.memory_space<vmem>>, vector<1x16x16x64xf32>,
    %c1_i32_144 = arith.constant 1 : i32
    return
  }
  func.func @transform_0(%arg0: i32) -> (i32, i32, i32, i32) {
    %c0_i32 = arith.constant 0 : i32
    %c0_i32_0 = arith.constant 0 : i32
    %c0_i32_1 = arith.constant 0 : i32
    %c0_i32_2 = arith.constant 0 : i32
    return %arg0, %c0_i32, %c0_i32_0, %c0_i32_1 : i32, i32, i32, i32
  }
  func.func @transform_1(%arg0: i32) -> (i32, i32, i32) {
    %c0_i32 = arith.constant 0 : i32
    %c0_i32_0 = arith.constant 0 : i32
    %c0_i32_1 = arith.constant 0 : i32
    %c0_i32_2 = arith.constant 0 : i32
    return %c0_i32, %c0_i32_0, %c0_i32_1 : i32, i32, i32
  }
  func.func @transform_2(%arg0: i32) -> (i32, i32) {
    %c0_i32 = arith.constant 0 : i32
    %c0_i32_0 = arith.constant 0 : i32
    %c0_i32_1 = arith.constant 0 : i32
    return %c0_i32, %c0_i32_0 : i32, i32
  }
  func.func @transform_3(%arg0: i32) -> (i32, i32, i32) {
    %c0_i32 = arith.constant 0 : i32
    %c0_i32_0 = arith.constant 0 : i32
    %c0_i32_1 = arith.constant 0 : i32
    %c0_i32_2 = arith.constant 0 : i32
    return %c0_i32, %c0_i32_0, %c0_i32_1 : i32, i32, i32
  }
  func.func @transform_4(%arg0: i32) -> (i32, i32) {
    %c0_i32 = arith.constant 0 : i32
    %c0_i32_0 = arith.constant 0 : i32
    %c0_i32_1 = arith.constant 0 : i32
    return %c0_i32, %c0_i32_0 : i32, i32
  }
  func.func @transform_5(%arg0: i32) -> (i32, i32, i32, i32) {
    %c0_i32 = arith.constant 0 : i32
    %c0_i32_0 = arith.constant 0 : i32
    %c0_i32_1 = arith.constant 0 : i32
    %c0_i32_2 = arith.constant 0 : i32
    return %arg0, %c0_i32, %c0_i32_0, %c0_i32_1 : i32, i32, i32, i32
  }
}

</mosaic_0001>

<bundles_post_ra>
// kernel: vgg_block_same.1
= control target key start
LH: loop header
LB: loop body
LE: loop exit
PB: predicated region body
PF: predicated region fallthrough
CT: control target
= control target key end

     0   :  { %10 = vsyncpa [#allocation4], 0  ;;  %s14504_s0 = inlined_call_operand.vmem [shape: bf16[2,18,18,16], index: 0, kind: input, shape index: {}]   ;;  %s14505_s1 = inlined_call_operand.vmem [shape: bf16[9,16,32], index: 1, kind: input, shape index: {}]   ;;  %s14506_s2 = inlined_call_operand.vmem [shape: f32[1,32], index: 2, kind: input, shape index: {}]   ;;  %s14507_s3 = inlined_call_operand.vmem [shape: bf16[9,32,64], index: 3, kind: input, shape index: {}]   ;;  %s14508_s4 = inlined_call_operand.vmem [shape: f32[1,64], index: 4, kind: input, shape index: {}]   ;;  %s14509_s5 = inlined_call_operand.hbm [shape: f32[2,16,16,64], index: 5, kind: output, shape index: {}]  }
   0x1   :  { %12 = vsyncpa [#allocation4 + $0x1], 0  ;;  %s10371_s18 = smov 0   ;;  %s10373_s19 = smov 0  }
   0x2   :  { %s10375_s20 = smov 0   ;;  %s10377_s21 = smov 0  }
   0x3 LB: > { %s10392_s22 = sadd.s32 4294967295, %s10336_s21   ;;  %s8957_s23 = sadd.s32 4294967294, %s10336_s21   ;;  %s10336_s21 = sphi %s10377_s21, %s14755_s21   ;;  %s10332_s20 = sphi %s10375_s20, %s14754_s20   ;;  %s10328_s19 = sphi %s10373_s19, %s14753_s19   ;;  %s10324_s18 = sphi %s10371_s18, %s14752_s18  }
   0x4   : > { %s10396_s24 = sadd.s32 1, %s10336_s21   ;;  %s135_s25 = sadd.s32 1, %s10332_s20 }
   0x5   : > { %s132_s26 = ssub.s32 %s10336_s21, %s10396_s24  ;;  %p145_p0 = scmp.ne.s32.totalorder %s10332_s20, %s10328_s19 }
   0x6   : > { %p133_p1 = scmp.eq.s32.totalorder %s132_s26, 0  ;;  %p146_p2 = scmp.eq.s32.totalorder %s10392_s22, 1 }
   0x7   : > { %p151_p3 = scmp.ne.s32.totalorder %s10328_s19, %s10324_s18  ;;  %p152_p4 = scmp.eq.s32.totalorder %s8957_s23, 1 }
   0x8   : > { %s10407_s27 = scalar_select %p133_p1, %s10332_s20, %s135_s25  }
   0x9   : > { %p10409_p5 = por %p146_p2, %p145_p0  ;;  %p10413_p6 = por %p152_p4, %p151_p3 }
   0xa   : > { %p8960_p7 = scmp.ge.s32.totalorder %s10336_s21, 1  ;;  %p190_p8 = scmp.lt.s32.totalorder %s10336_s21, 3 }
   0xc   : > { %p191_p9 = pnand %p8960_p7, %p190_p8 }
   0xe   : > { %194 = sbr.rel (%p191_p9) target bundleno = 1491 (0x5d3), region = 40 }
  0x13   : > { %v10100_v0 = vld [vmem:[%s14505_s1] sm:$0xff]  ;;  %p218_p10 = scmp.lt.s32.totalorder %s10392_s22, 1  ;;  %v10101_v1 = vld [vmem:[%s14505_s1 + $0x8] sm:$0xff]  ;;  %v10102_v2 = vld [vmem:[%s14505_s1 + $0x10] sm:$0xff]  ;;  %vm776_vm0 = vcmask 130048   ;;  %vm1185_vm4 = vcmask 1042432  }
  0x14   : > { %v10119_v3 = vld [vmem:[%s14505_s1 + $0x18] sm:$0xff]  ;;  %v10120_v4 = vld [vmem:[%s14505_s1 + $0x20] sm:$0xff]  ;;  %10209 = vmatpush.bf16.msra.mxu3 %v10100_v0  ;;  %832 = vmatpush.bf16.msra.mxu0 %v10101_v1  ;;  %vm332_vm1 = vsmask.f32 3328  ;;  %vm333_vm2 = vsmask.f32 7440 }
  0x15   : > { %s219_s15 = scalar_select %p218_p10, %s10392_s22, 1  ;;  %10208 = vmatpush.bf16.msra.mxu2 %v10101_v1  ;;  %1055 = vmatpush.bf16.msra.mxu1 %v10100_v0  ;;  %vm10463_vm3 = vmor %vm332_vm1, %vm333_vm2  ;;  %vm1186_vm5 = vcmask 1046532   ;;  %vm224_vm7 = vcmask 257024   ;;  %vm227_vm8 = vcmask 253952   ;;  %vm4652_vm9 = vsmask.f32 7938 }
  0x16   : > { %vm10677_vm6 = vmor %vm1185_vm4, %vm1186_vm5  ;;  %vm4327_vm10 = vsmask.f32 256  ;;  %vm4328_vm11 = vsmask.f32 4368  ;;  %vm5269_vm12 = vcmask 261120   ;;  %s215_s7 = sand.u32 1, %s10328_s19  }
  0x17   : > { %s10210_s16 = smul.u32 216, %s219_s15  ;;  %vm11921_vm13 = vmand %vm224_vm7, %vm4652_vm9  ;;  %s8961_s10 = sshll.u32 %s215_s7, 8 }
  0x18   : > { %1703 = vmatpush.bf16.msrb.mxu3 %v10119_v3  ;;  %2361 = vmatpush.bf16.msrb.mxu0 %v10120_v4  ;;  %vm11981_vm14 = vmor %vm4327_vm10, %vm4328_vm11  ;;  %s14316_s11 = scalar_lea.vmem [#allocation3], %s8961_s10  ;;  %s10207_s12 = sshll.u32 %s10392_s22, 8 }
  0x19   : > { %1412 = vmatpush.bf16.msrb.mxu2 %v10102_v2  ;;  %s10439_s25 = scalar_lea.vmem %s14504_s0, %s10210_s16  ;;  %vm11989_vm15 = vmand %vm227_vm8, %vm4327_vm10  ;;  %s8891_s15 = scalar_lea.hbm %s14509_s5, %s10207_s12 }
  0x1a   : > { %v10092_v5 = vld [vmem:[%s10439_s25 + $0x60] sm:$0xff]  ;;  %v10447_v8 = vld [vmem:[%s10439_s25 + $0x8] sm:$0x1]  ;;  %v284_v30 = vld [vmem:[%s10439_s25 + $0xc] sm:$0xf]  ;;  %s8892_s16 = sshll.u32 %s14316_s11, 4  ;;  %s8893_s16 = int_to_ptr.vmem [resolvable:$true] %s8892_s16 }
  0x1b   : > { %v282_v6 = vld [vmem:[%s10439_s25] sm:$0xf]  ;;  %v10444_v7 = vld [vmem:[%s10439_s25 + $0x4] sm:$0xf]  ;;  %9061 = vmatmul.msk.bf16.vlgmr.msra.gmra.mxu3 %vm776_vm0, %v10092_v5  ;;  %v355_v13 = vshll.u32 %v10447_v8, 16  ;;  %v360_v41 = vshrl.u32 %v284_v30, 16 }
  0x1c   : > { %v336_v9 = vshrl.u32 %v282_v6, 16  ;;  %v339_v10 = vshll.u32 %v282_v6, 16  ;;  %v345_v11 = vshll.u32 %v10444_v7, 16  ;;  %v349_v12 = vshrl.u32 %v10444_v7, 16  ;;  %v298_v14 = vld [vmem:[%s10439_s25 + $0x60] sm:$0xf] }
  0x1d   : > { %v299_v15 = vld [vmem:[%s10439_s25 + $0x64] sm:$0xf]  ;;  %v324_v20 = vld [vmem:[%s10439_s25 + $0x68] sm:$0x1]  ;;  %v357_v21 = vrot.slane %v355_v13, 5  ;;  %v528_v22 = vshrl.u32 %v298_v14, 16 }
  0x1e   : > { %v338_v16 = vrot.slane %v336_v9, 4  ;;  %v341_v17 = vrot.slane %v339_v10, 5  ;;  %v347_v18 = vrot.slane %v345_v11, 5  ;;  %v351_v19 = vrot.slane %v349_v12, 4  ;;  %v10084_v25 = vld [vmem:[%s10439_s25] sm:$0xff]  ;;  %v10093_v5 = vld [vmem:[%s10439_s25 + $0x6c] sm:$0xff] }
  0x1f   : > { %v531_v23 = vshll.u32 %v298_v14, 16  ;;  %v537_v24 = vshll.u32 %v299_v15, 16  ;;  %v541_v28 = vshrl.u32 %v299_v15, 16  ;;  %v547_v29 = vshll.u32 %v324_v20, 16  ;;  %v10459_v31 = vld [vmem:[%s10439_s25 + $0x10] sm:$0xf]  ;;  %9053 = vmatmul.msk.bf16.vlgmr.msra.gmra.mxu1 %vm776_vm0, %v10084_v25 }
  0x20   : > { %v342_v26 = vor.u32 %v341_v17, %v338_v16  ;;  %v352_v27 = vor.u32 %v351_v19, %v347_v18  ;;  %v530_v33 = vrot.slane %v528_v22, 4  ;;  %v363_v42 = vshll.u32 %v284_v30, 16  ;;  %v10474_v47 = vld [vmem:[%s10439_s25 + $0x14] sm:$0x1]  ;;  %v300_v49 = vld [vmem:[%s10439_s25 + $0x6c] sm:$0xf] }
  0x21   : > { %v533_v34 = vrot.slane %v531_v23, 5  ;;  %v539_v35 = vrot.slane %v537_v24, 5  ;;  %v543_v38 = vrot.slane %v541_v28, 4  ;;  %v549_v39 = vrot.slane %v547_v29, 5  ;;  %v301_v61 = vld [vmem:[%s10439_s25 + $0x70] sm:$0xf] }
  0x22   : > { %v343_v36 = vrot.slane %v342_v26, 4  ;;  %v353_v37 = vrot.slane %v352_v27, 4  ;;  %v369_v43 = vshll.u32 %v10459_v31, 16  ;;  %v373_v48 = vshrl.u32 %v10459_v31, 16  ;;  %v325_v3 = vld [vmem:[%s10439_s25 + $0x74] sm:$0x1] }
  0x23   : > { %v534_v40 = vor.u32 %v533_v34, %v530_v33  ;;  %v544_v46 = vor.u32 %v543_v38, %v539_v35  ;;  %v362_v53 = vrot.slane %v360_v41, 4  ;;  %v365_v55 = vrot.slane %v363_v42, 5  ;;  %v10489_v19 = vld [vmem:[%s10439_s25 + $0x1c] sm:$0xf]  ;;  %v10085_v26 = vld [vmem:[%s10439_s25 + $0xc] sm:$0xff]  ;;  %s8894_s17 = sshll.u32 %s8891_s15, 4  ;;  %s8895_s17 = int_to_ptr.hbm [resolvable:$true] %s8894_s17 }
  0x24   : > { %v348_v44 = vsel %vm10463_vm3, %v343_v36, %v347_v18  ;;  %v358_v45 = vsel %vm10463_vm3, %v353_v37, %v357_v21  ;;  %v371_v56 = vrot.slane %v369_v43, 5  ;;  %v375_v57 = vrot.slane %v373_v48, 4  ;;  %v286_v18 = vld [vmem:[%s10439_s25 + $0x18] sm:$0xf]  ;;  %v303_v42 = vld [vmem:[%s10439_s25 + $0x7c] sm:$0xf] }
  0x25   : > { %v722_v50 = vunpack.c.l.b16 %v348_v44  ;;  %v723_v51 = vunpack.c.l.b16 %v358_v45  ;;  %v535_v52 = vrot.slane %v534_v40, 4  ;;  %v545_v54 = vrot.slane %v544_v46, 4  ;;  %v302_v33 = vld [vmem:[%s10439_s25 + $0x78] sm:$0xf]  ;;  %v10506_v44 = vld [vmem:[%s10439_s25 + $0x20] sm:$0x1] }
  0x26   : > { %v379_v60 = vshll.u32 %v10474_v47, 16  ;;  %v552_v62 = vshrl.u32 %v300_v49, 16  ;;  %v366_v1 = vor.u32 %v365_v55, %v362_v53  ;;  %v376_v2 = vor.u32 %v375_v57, %v371_v56  ;;  %s8880_s22 = scalar_lea.sflag [#allocation4], %s215_s7  ;;  %s10288_s23 = sshra.s32 %s8895_s17, 4  ;;  %s10289_s23 = int_to_ptr.hbm [resolvable:$true] %s10288_s23 }
  0x27   : > { %v754_v58 = vpack.c.b16 %v723_v51, %v722_v50  ;;  %v540_v59 = vsel %vm10463_vm3, %v535_v52, %v539_v35  ;;  %v550_v63 = vsel %vm10463_vm3, %v545_v54, %v549_v39  ;;  %v555_v10 = vshll.u32 %v300_v49, 16  ;;  %s10294_s6 = scalar_lea.hbm %s14509_s5, 512  ;;  %p10295_p0 = scmp.lt.s32.totalorder %s10289_s23, %s14509_s5 }
  0x28   : > { %v738_v0 = vunpack.c.l.b16 %v540_v59  ;;  %v739_v4 = vunpack.c.l.b16 %v550_v63  ;;  %v381_v6 = vrot.slane %v379_v60, 5  ;;  %v554_v9 = vrot.slane %v552_v62, 4 }
  0x29   : > { %8969 = vmatmul.msk.bf16.vlgmr.msra.gmra.mxu0 %vm776_vm0, %v754_v58  ;;  %v367_v11 = vrot.slane %v366_v1, 4  ;;  %v377_v12 = vrot.slane %v376_v2, 4  ;;  %v561_v13 = vshll.u32 %v301_v61, 16  ;;  %v565_v14 = vshrl.u32 %v301_v61, 16  ;;  %v326_v58 = vld [vmem:[%s10439_s25 + $0x80] sm:$0x1] }
  0x2a   : > { %v762_v15 = vpack.c.b16 %v739_v4, %v738_v0  ;;  %v557_v16 = vrot.slane %v555_v10, 5  ;;  %v571_v17 = vshll.u32 %v325_v3, 16  ;;  %v384_v28 = vshrl.u32 %v286_v18, 16  ;;  %v10094_v4 = vld [vmem:[%s10439_s25 + $0x78] sm:$0xff]  ;;  %v10516_v10 = vld [vmem:[%s10439_s25 + $0x28] sm:$0xf] }
  0x2b   : > { %v372_v20 = vsel %vm10463_vm3, %v367_v11, %v371_v56  ;;  %v382_v21 = vsel %vm10463_vm3, %v377_v12, %v381_v6  ;;  %v563_v22 = vrot.slane %v561_v13, 5  ;;  %v567_v23 = vrot.slane %v565_v14, 4  ;;  %9062 = vmatmul.msk.bf16.gmra.mxu3 %vm776_vm0, %v10093_v5 }
  0x2c   : > { %8977 = vmatmul.msk.bf16.vlgmr.msra.gmra.mxu2 %vm776_vm0, %v762_v15  ;;  %v558_v24 = vor.u32 %v557_v16, %v554_v9  ;;  %v573_v25 = vrot.slane %v571_v17, 5  ;;  %v387_v29 = vshll.u32 %v286_v18, 16  ;;  %v393_v30 = vshll.u32 %v10489_v19, 16  ;;  %v288_v9 = vld [vmem:[%s10439_s25 + $0x24] sm:$0xf]  ;;  %v10086_v18 = vld [vmem:[%s10439_s25 + $0x18] sm:$0xff] }
  0x2d   : > { %v568_v27 = vor.u32 %v567_v23, %v563_v22  ;;  %v724_v34 = vunpack.c.l.b16 %v372_v20  ;;  %v725_v35 = vunpack.c.l.b16 %v382_v21  ;;  %v397_v37 = vshrl.u32 %v10489_v19, 16  ;;  %v305_v23 = vld [vmem:[%s10439_s25 + $0x88] sm:$0xf] }
  0x2e   : > { %v559_v36 = vrot.slane %v558_v24, 4  ;;  %v386_v39 = vrot.slane %v384_v28, 4  ;;  %v389_v40 = vrot.slane %v387_v29, 5  ;;  %v395_v41 = vrot.slane %v393_v30, 5  ;;  %v10535_v30 = vld [vmem:[%s10439_s25 + $0x2c] sm:$0x1] }
  0x2f   : > { %v569_v38 = vrot.slane %v568_v27, 4  ;;  %9054 = vmatmul.msk.bf16.gmra.mxu1 %vm776_vm0, %v10085_v26  ;;  %v399_v45 = vrot.slane %v397_v37, 4  ;;  %v576_v46 = vshrl.u32 %v302_v33, 16  ;;  %v579_v49 = vshll.u32 %v302_v33, 16 }
  0x30   : > { %v564_v43 = vsel %vm10463_vm3, %v559_v36, %v563_v22  ;;  %v755_v50 = vpack.c.b16 %v725_v35, %v724_v34  ;;  %v390_v51 = vor.u32 %v389_v40, %v386_v39  ;;  %v585_v52 = vshll.u32 %v303_v42, 16  ;;  %v304_v22 = vld [vmem:[%s10439_s25 + $0x84] sm:$0xf] }
  0x31   : > { %v574_v48 = vsel %vm10463_vm3, %v569_v38, %v573_v25  ;;  %v740_v53 = vunpack.c.l.b16 %v564_v43  ;;  %v400_v54 = vor.u32 %v399_v45, %v395_v41  ;;  %v403_v55 = vshll.u32 %v10506_v44, 16 }
  0x32   : > { %v589_v56 = vshrl.u32 %v303_v42, 16  ;;  %v741_v57 = vunpack.c.l.b16 %v574_v48  ;;  %v578_v59 = vrot.slane %v576_v46, 4  ;;  %v581_v60 = vrot.slane %v579_v49, 5 }
  0x33   : > { %v587_v61 = vrot.slane %v585_v52, 5  ;;  %v391_v63 = vrot.slane %v390_v51, 4  ;;  %v401_v0 = vrot.slane %v400_v54, 4  ;;  %v405_v1 = vrot.slane %v403_v55, 5  ;;  %v327_v51 = vld [vmem:[%s10439_s25 + $0x8c] sm:$0x1] }
  0x34   : > { %v591_v62 = vrot.slane %v589_v56, 4  ;;  %v595_v2 = vshll.u32 %v326_v58, 16  ;;  %v763_v3 = vpack.c.b16 %v741_v57, %v740_v53  ;;  %v582_v5 = vor.u32 %v581_v60, %v578_v59  ;;  %v10095_v52 = vld [vmem:[%s10439_s25 + $0x84] sm:$0xff]  ;;  %v290_v56 = vld [vmem:[%s10439_s25 + $0x30] sm:$0xf] }
  0x35   : > { %v396_v11 = vsel %vm10463_vm3, %v391_v63, %v395_v41  ;;  %v406_v12 = vsel %vm10463_vm3, %v401_v0, %v405_v1  ;;  %v408_v14 = vshrl.u32 %v288_v9, 16  ;;  %v411_v15 = vshll.u32 %v288_v9, 16  ;;  %v10543_v57 = vld [vmem:[%s10439_s25 + $0x34] sm:$0xf] }
  0x36   : > { %v592_v6 = vor.u32 %v591_v62, %v587_v61  ;;  %v597_v13 = vrot.slane %v595_v2, 5  ;;  %v583_v16 = vrot.slane %v582_v5, 4  ;;  %v417_v20 = vshll.u32 %v10516_v10, 16  ;;  %v306_v2 = vld [vmem:[%s10439_s25 + $0x90] sm:$0xf] }
  0x37   : > { %v421_v21 = vshrl.u32 %v10516_v10, 16  ;;  %v726_v24 = vunpack.c.l.b16 %v396_v11  ;;  %v727_v25 = vunpack.c.l.b16 %v406_v12  ;;  %v410_v26 = vrot.slane %v408_v14, 4  ;;  %v307_v12 = vld [vmem:[%s10439_s25 + $0x94] sm:$0xf] }
  0x38   : > { %v593_v17 = vrot.slane %v592_v6, 4  ;;  %v413_v27 = vrot.slane %v411_v15, 5  ;;  %v588_v28 = vsel %vm10463_vm3, %v583_v16, %v587_v61  ;;  %v419_v33 = vrot.slane %v417_v20, 5 }
  0x39   : > { %8970 = vmatmul.msk.bf16.gmra.mxu0 %vm776_vm0, %v755_v50  ;;  %v423_v34 = vrot.slane %v421_v21, 4  ;;  %v600_v35 = vshrl.u32 %v304_v22, 16  ;;  %v603_v36 = vshll.u32 %v304_v22, 16  ;;  %v609_v37 = vshll.u32 %v305_v23, 16  ;;  %v10558_v22 = vld [vmem:[%s10439_s25 + $0x38] sm:$0x1] }
  0x3a   : > { %v598_v29 = vsel %vm10463_vm3, %v593_v17, %v597_v13  ;;  %v613_v38 = vshrl.u32 %v305_v23, 16  ;;  %v756_v39 = vpack.c.b16 %v727_v25, %v726_v24  ;;  %v427_v40 = vshll.u32 %v10535_v30, 16 }
  0x3b   : > { %9063 = vmatmul.msk.bf16.gmra.mxu3 %vm776_vm0, %v10094_v4  ;;  %v742_v41 = vunpack.c.l.b16 %v588_v28  ;;  %v743_v42 = vunpack.c.l.b16 %v598_v29  ;;  %v414_v43 = vor.u32 %v413_v27, %v410_v26  ;;  %v424_v45 = vor.u32 %v423_v34, %v419_v33  ;;  %v10087_v4 = vld [vmem:[%s10439_s25 + $0x24] sm:$0xff] }
  0x3c   : > { %8978 = vmatmul.msk.bf16.gmra.mxu2 %vm776_vm0, %v763_v3  ;;  %v602_v46 = vrot.slane %v600_v35, 4  ;;  %v605_v48 = vrot.slane %v603_v36, 5  ;;  %v611_v49 = vrot.slane %v609_v37, 5  ;;  %v615_v50 = vrot.slane %v613_v38, 4 }
  0x3d   : > { %v764_v53 = vpack.c.b16 %v743_v42, %v742_v41  ;;  %v415_v54 = vrot.slane %v414_v43, 4  ;;  %v429_v55 = vrot.slane %v427_v40, 5  ;;  %v425_v58 = vrot.slane %v424_v45, 4  ;;  %v328_v40 = vld [vmem:[%s10439_s25 + $0x98] sm:$0x1] }
  0x3e   : > { %v606_v59 = vor.u32 %v605_v48, %v602_v46  ;;  %v616_v60 = vor.u32 %v615_v50, %v611_v49  ;;  %v619_v61 = vshll.u32 %v327_v51, 16  ;;  %v432_v62 = vshrl.u32 %v290_v56, 16  ;;  %v10096_v48 = vld [vmem:[%s10439_s25 + $0x90] sm:$0xff] }
  0x3f   : > { %9055 = vmatmul.msk.bf16.gmra.mxu1 %vm776_vm0, %v10086_v18  ;;  %v435_v63 = vshll.u32 %v290_v56, 16  ;;  %v441_v0 = vshll.u32 %v10543_v57, 16  ;;  %v445_v1 = vshrl.u32 %v10543_v57, 16  ;;  %v420_v3 = vsel %vm10463_vm3, %v415_v54, %v419_v33  ;;  %v10088_v56 = vld [vmem:[%s10439_s25 + $0x30] sm:$0xff] }
  0x40   : > { %v430_v5 = vsel %vm10463_vm3, %v425_v58, %v429_v55  ;;  %v607_v6 = vrot.slane %v606_v59, 4  ;;  %v617_v9 = vrot.slane %v616_v60, 4  ;;  %v621_v11 = vrot.slane %v619_v61, 5 }
  0x41   : > { %v624_v13 = vshrl.u32 %v306_v2, 16  ;;  %v627_v14 = vshll.u32 %v306_v2, 16  ;;  %v434_v15 = vrot.slane %v432_v62, 4  ;;  %v437_v16 = vrot.slane %v435_v63, 5  ;;  %v308_v62 = vld [vmem:[%s10439_s25 + $0x9c] sm:$0xf] }
  0x42   : > { %v443_v17 = vrot.slane %v441_v0, 5  ;;  %v447_v18 = vrot.slane %v445_v1, 4  ;;  %v728_v20 = vunpack.c.l.b16 %v420_v3  ;;  %v729_v21 = vunpack.c.l.b16 %v430_v5  ;;  %v309_v63 = vld [vmem:[%s10439_s25 + $0xa0] sm:$0xf] }
  0x43   : > { %v612_v23 = vsel %vm10463_vm3, %v607_v6, %v611_v49  ;;  %v622_v24 = vsel %vm10463_vm3, %v617_v9, %v621_v11  ;;  %v633_v25 = vshll.u32 %v307_v12, 16  ;;  %v637_v26 = vshrl.u32 %v307_v12, 16  ;;  %v292_v49 = vld [vmem:[%s10439_s25 + $0x3c] sm:$0xf] }
  0x44   : > { %v626_v27 = vrot.slane %v624_v13, 4  ;;  %v629_v28 = vrot.slane %v627_v14, 5  ;;  %v438_v29 = vor.u32 %v437_v16, %v434_v15  ;;  %v448_v33 = vor.u32 %v447_v18, %v443_v17 }
  0x45   : > { %v451_v34 = vshll.u32 %v10558_v22, 16  ;;  %v757_v35 = vpack.c.b16 %v729_v21, %v728_v20  ;;  %v744_v36 = vunpack.c.l.b16 %v612_v23  ;;  %v745_v37 = vunpack.c.l.b16 %v622_v24 }
  0x46   : > { %v635_v38 = vrot.slane %v633_v25, 5  ;;  %v630_v41 = vor.u32 %v629_v28, %v626_v27  ;;  %v439_v42 = vrot.slane %v438_v29, 4  ;;  %v449_v43 = vrot.slane %v448_v33, 4  ;;  %v329_v33 = vld [vmem:[%s10439_s25 + $0xa4] sm:$0x1] }
  0x47   : > { %v453_v45 = vrot.slane %v451_v34, 5  ;;  %v765_v46 = vpack.c.b16 %v745_v37, %v744_v36  ;;  %v643_v51 = vshll.u32 %v328_v40, 16  ;;  %v456_v58 = vshrl.u32 %v292_v49, 16 }
  0x48   : > { %v444_v54 = vsel %vm10463_vm3, %v439_v42, %v443_v17  ;;  %v459_v59 = vshll.u32 %v292_v49, 16  ;;  %v648_v5 = vshrl.u32 %v308_v62, 16  ;;  %v651_v6 = vshll.u32 %v308_v62, 16  ;;  %v10589_v17 = vld [vmem:[%s10439_s25 + $0x44] sm:$0x1] }
  0x49   : > { %8971 = vmatmul.msk.bf16.gmra.mxu0 %vm776_vm0, %v756_v39  ;;  %v639_v39 = vrot.slane %v637_v26, 4  ;;  %v454_v55 = vsel %vm10463_vm3, %v449_v43, %v453_v45  ;;  %v645_v1 = vrot.slane %v643_v51, 5  ;;  %v730_v2 = vunpack.c.l.b16 %v444_v54  ;;  %v294_v42 = vld [vmem:[%s10439_s25 + $0x48] sm:$0xf]  ;;  %v10597_v43 = vld [vmem:[%s10439_s25 + $0x4c] sm:$0xf] }
  0x4a   : > { %v731_v3 = vunpack.c.l.b16 %v454_v55  ;;  %v657_v9 = vshll.u32 %v309_v63, 16  ;;  %v661_v11 = vshrl.u32 %v309_v63, 16  ;;  %v458_v12 = vrot.slane %v456_v58, 4  ;;  %v10089_v51 = vld [vmem:[%s10439_s25 + $0x3c] sm:$0xff]  ;;  %v310_v58 = vld [vmem:[%s10439_s25 + $0xa8] sm:$0xf] }
  0x4b   : > { %9064 = vmatmul.msk.bf16.gmra.mxu3 %vm776_vm0, %v10095_v52  ;;  %v640_v50 = vor.u32 %v639_v39, %v635_v38  ;;  %v10570_v52 = vld [vmem:[%s10439_s25 + $0x40] sm:$0xf]  ;;  %v461_v13 = vrot.slane %v459_v59, 5  ;;  %v650_v21 = vrot.slane %v648_v5, 4  ;;  %v653_v23 = vrot.slane %v651_v6, 5 }
  0x4c   : > { %8979 = vmatmul.msk.bf16.gmra.mxu2 %vm776_vm0, %v764_v53  ;;  %v631_v53 = vrot.slane %v630_v41, 4  ;;  %v465_v60 = vshll.u32 %v10570_v52, 16  ;;  %v469_v61 = vshrl.u32 %v10570_v52, 16  ;;  %v758_v18 = vpack.c.b16 %v731_v3, %v730_v2  ;;  %v311_v59 = vld [vmem:[%s10439_s25 + $0xac] sm:$0xf] }
  0x4d   : > { %v641_v0 = vrot.slane %v640_v50, 4  ;;  %v659_v24 = vrot.slane %v657_v9, 5  ;;  %v663_v25 = vrot.slane %v661_v11, 4  ;;  %v462_v27 = vor.u32 %v461_v13, %v458_v12  ;;  %v10616_v11 = vld [vmem:[%s10439_s25 + $0x50] sm:$0x1] }
  0x4e   : > { %v467_v14 = vrot.slane %v465_v60, 5  ;;  %v471_v15 = vrot.slane %v469_v61, 4  ;;  %v475_v29 = vshll.u32 %v10589_v17, 16  ;;  %v654_v34 = vor.u32 %v653_v23, %v650_v21 }
  0x4f   : > { %9056 = vmatmul.msk.bf16.gmra.mxu1 %vm776_vm0, %v10087_v4  ;;  %v636_v4 = vsel %vm10463_vm3, %v631_v53, %v635_v38  ;;  %v646_v16 = vsel %vm10463_vm3, %v641_v0, %v645_v1  ;;  %v667_v36 = vshll.u32 %v329_v33, 16  ;;  %v10097_v38 = vld [vmem:[%s10439_s25 + $0x9c] sm:$0xff]  ;;  %v463_v39 = vrot.slane %v462_v27, 4 }
  0x50   : > { %v746_v20 = vunpack.c.l.b16 %v636_v4  ;;  %v747_v26 = vunpack.c.l.b16 %v646_v16  ;;  %v472_v28 = vor.u32 %v471_v15, %v467_v14  ;;  %v477_v41 = vrot.slane %v475_v29, 5 }
  0x51   : > { %v655_v45 = vrot.slane %v654_v34, 4  ;;  %v468_v49 = vsel %vm10463_vm3, %v463_v39, %v467_v14  ;;  %v480_v53 = vshrl.u32 %v294_v42, 16  ;;  %v483_v54 = vshll.u32 %v294_v42, 16  ;;  %v10624_v34 = vld [vmem:[%s10439_s25 + $0x58] sm:$0xf] }
  0x52   : > { %v766_v37 = vpack.c.b16 %v747_v26, %v746_v20  ;;  %v473_v40 = vrot.slane %v472_v28, 4  ;;  %v489_v55 = vshll.u32 %v10597_v43, 16  ;;  %v732_v60 = vunpack.c.l.b16 %v468_v49  ;;  %v296_v26 = vld [vmem:[%s10439_s25 + $0x54] sm:$0xf]  ;;  %v10098_v28 = vld [vmem:[%s10439_s25 + $0xa8] sm:$0xff] }
  0x53   : > { %v660_v62 = vsel %vm10463_vm3, %v655_v45, %v659_v24  ;;  %v482_v0 = vrot.slane %v480_v53, 4  ;;  %v485_v1 = vrot.slane %v483_v54, 5  ;;  %v672_v2 = vshrl.u32 %v310_v58, 16  ;;  %v312_v45 = vld [vmem:[%s10439_s25 + $0xb4] sm:$0xf]  ;;  %v10090_v49 = vld [vmem:[%s10439_s25 + $0x48] sm:$0xff] }
  0x54   : > { %v478_v50 = vsel %vm10463_vm3, %v473_v40, %v477_v41  ;;  %v675_v3 = vshll.u32 %v310_v58, 16  ;;  %v491_v4 = vrot.slane %v489_v55, 5  ;;  %v681_v6 = vshll.u32 %v311_v59, 16  ;;  %v313_v54 = vld [vmem:[%s10439_s25 + $0xb8] sm:$0xf] }
  0x55   : > { %v733_v61 = vunpack.c.l.b16 %v478_v50  ;;  %v685_v9 = vshrl.u32 %v311_v59, 16  ;;  %v748_v13 = vunpack.c.l.b16 %v660_v62  ;;  %v486_v15 = vor.u32 %v485_v1, %v482_v0  ;;  %v10641_v1 = vld [vmem:[%s10439_s25 + $0x5c] sm:$0x1] }
  0x56   : > { %v674_v16 = vrot.slane %v672_v2, 4  ;;  %v499_v21 = vshll.u32 %v10616_v11, 16  ;;  %v683_v23 = vrot.slane %v681_v6, 5  ;;  %v504_v39 = vshrl.u32 %v296_v26, 16 }
  0x57   : > { %v759_v12 = vpack.c.b16 %v733_v61, %v732_v60  ;;  %v487_v29 = vrot.slane %v486_v15, 4  ;;  %v507_v40 = vshll.u32 %v296_v26, 16  ;;  %v513_v41 = vshll.u32 %v10624_v34, 16 }
  0x58   : > { %v517_v42 = vshrl.u32 %v10624_v34, 16  ;;  %v506_v55 = vrot.slane %v504_v39, 4  ;;  %v696_v58 = vshrl.u32 %v312_v45, 16  ;;  %v699_v59 = vshll.u32 %v312_v45, 16 }
  0x59   : > { %8972 = vmatmul.msk.bf16.gmra.mxu0 %vm776_vm0, %v757_v35  ;;  %v664_v35 = vor.u32 %v663_v25, %v659_v24  ;;  %v687_v24 = vrot.slane %v685_v9, 4  ;;  %v330_v25 = vld [vmem:[%s10439_s25 + $0xb0] sm:$0x1]  ;;  %v515_v61 = vrot.slane %v513_v41, 5  ;;  %v705_v2 = vshll.u32 %v313_v54, 16 }
  0x5a   : > { %v519_v62 = vrot.slane %v517_v42, 4  ;;  %v698_v6 = vrot.slane %v696_v58, 4  ;;  %v701_v9 = vrot.slane %v699_v59, 5 }
  0x5b   : > { %9065 = vmatmul.msk.bf16.gmra.mxu3 %vm776_vm0, %v10096_v48  ;;  %v669_v48 = vrot.slane %v667_v36, 5  ;;  %v501_v36 = vrot.slane %v499_v21, 5  ;;  %v331_v21 = vld [vmem:[%s10439_s25 + $0xbc] sm:$0x1] }
  0x5c   : > { %8980 = vmatmul.msk.bf16.gmra.mxu2 %vm776_vm0, %v765_v46  ;;  %v665_v46 = vrot.slane %v664_v35, 4 }
  0x5e   : > { %v670_v63 = vsel %vm10463_vm3, %v665_v46, %v669_v48  ;;  %v492_v46 = vsel %vm10463_vm3, %v487_v29, %v491_v4 }
  0x5f   : > { %9057 = vmatmul.msk.bf16.gmra.mxu1 %vm776_vm0, %v10088_v56  ;;  %v493_v56 = vshrl.u32 %v10597_v43, 16  ;;  %v749_v14 = vunpack.c.l.b16 %v670_v63  ;;  %v734_v60 = vunpack.c.l.b16 %v492_v46 }
  0x61   : > { %v495_v5 = vrot.slane %v493_v56, 4  ;;  %v767_v27 = vpack.c.b16 %v749_v14, %v748_v13  ;;  %v509_v56 = vrot.slane %v507_v40, 5  ;;  %v520_v13 = vor.u32 %v519_v62, %v515_v61 }
  0x62   : > { %v523_v14 = vshll.u32 %v10641_v1, 16 }
  0x63   : > { %v496_v20 = vor.u32 %v495_v5, %v491_v4  ;;  %v510_v5 = vor.u32 %v509_v56, %v506_v55  ;;  %v9227_v55 = vld [vmem:[%s10439_s25 + $0x14] sm:$0x1] }
  0x64   : > { %v525_v26 = vrot.slane %v523_v14, 5  ;;  %v14516_v14 = vmov 0 }
  0x65   : > { %v497_v35 = vrot.slane %v496_v20, 4  ;;  %v14517_v14 = vsel %vm10677_vm6, 4294967295, %v14516_v14 }
  0x66   : > { %14518 = vst [vmem:[#allocation6_spill] sm:$0xff] %v14517_v14 }
  0x67   : > { %v502_v50 = vsel %vm10463_vm3, %v497_v35, %v501_v36  ;;  %v9225_v35 = vld [vmem:[%s10439_s25 + $0xc] sm:$0xf]  ;;  %v9226_v36 = vld [vmem:[%s10439_s25 + $0x10] sm:$0xf] }
  0x68   : > { %v735_v63 = vunpack.c.l.b16 %v502_v50  ;;  %v1866_v40 = vshrl.u32 %v9225_v35, 16  ;;  %v1869_v41 = vshll.u32 %v9225_v35, 16  ;;  %v1875_v42 = vshll.u32 %v9226_v36, 16  ;;  %v10138_v50 = vld [vmem:[%s14505_s1 + $0x30] sm:$0xff] }
  0x69   : > { %8973 = vmatmul.msk.bf16.gmra.mxu0 %vm776_vm0, %v758_v18  ;;  %v677_v18 = vrot.slane %v675_v3, 5  ;;  %v709_v3 = vshrl.u32 %v313_v54, 16  ;;  %3054 = vmatpush.bf16.msra.mxu2 %v10138_v50 }
  0x6a   : > { %v760_v15 = vpack.c.b16 %v735_v63, %v734_v60  ;;  %v1868_v56 = vrot.slane %v1866_v40, 4  ;;  %v1871_v58 = vrot.slane %v1869_v41, 5  ;;  %v1877_v59 = vrot.slane %v1875_v42, 5 }
  0x6b   : > { %9066 = vmatmul.msk.bf16.gmra.mxu3 %vm776_vm0, %v10097_v38  ;;  %v678_v33 = vor.u32 %v677_v18, %v674_v16  ;;  %v691_v38 = vshll.u32 %v330_v25, 16  ;;  %v707_v18 = vrot.slane %v705_v2, 5  ;;  %v711_v20 = vrot.slane %v709_v3, 4  ;;  %v10140_v2 = vld [vmem:[%s14505_s1 + $0x40] sm:$0xff]  ;;  %v9295_v3 = vld [vmem:[%s10439_s25 + $0xc] sm:$0xe] }
  0x6c   : > { %8981 = vmatmul.msk.bf16.gmra.mxu2 %vm776_vm0, %v766_v37  ;;  %v688_v37 = vor.u32 %v687_v24, %v683_v23  ;;  %v702_v24 = vor.u32 %v701_v9, %v698_v6  ;;  %v521_v25 = vrot.slane %v520_v13, 4  ;;  %v2541_v60 = vrot.slane %v9226_v36, 5  ;;  %4114 = vmatpush.bf16.msra.mxu0 %v10140_v2 }
  0x6d   : > { %v679_v48 = vrot.slane %v678_v33, 4  ;;  %v693_v53 = vrot.slane %v691_v38, 5  ;;  %v712_v29 = vor.u32 %v711_v20, %v707_v18  ;;  %v715_v33 = vshll.u32 %v331_v21, 16 }
  0x6e   : > { %v703_v38 = vrot.slane %v702_v24, 4  ;;  %v526_v39 = vsel %vm10463_vm3, %v521_v25, %v525_v26  ;;  %v2544_v6 = vrot.slane %v9227_v55, 5  ;;  %v10103_v25 = vld [vmem:[%s10439_s25 + $0xc] sm:$0xff]  ;;  %v1137_v26 = vld [vmem:[%s10439_s25] sm:$0xe] }
  0x6f   : > { %9058 = vmatmul.msk.bf16.gmra.mxu1 %vm776_vm0, %v10089_v51  ;;  %v689_v51 = vrot.slane %v688_v37, 4  ;;  %v684_v0 = vsel %vm10463_vm3, %v679_v48, %v683_v23  ;;  %v511_v23 = vrot.slane %v510_v5, 4  ;;  %v713_v45 = vrot.slane %v712_v29, 4  ;;  %v10091_v48 = vld [vmem:[%s10439_s25 + $0x54] sm:$0xff] }
  0x70   : > { %v717_v46 = vrot.slane %v715_v33, 5  ;;  %v737_v54 = vunpack.c.l.b16 %v526_v39  ;;  %v2543_v5 = vrot.slane %v2541_v60, 4  ;;  %v9228_v29 = vld [vmem:[%s10439_s25 + $0x18] sm:$0xf]  ;;  %v9069_v39 = vrot.slane %v1137_v26, 9 }
  0x71   : > { %v694_v4 = vsel %vm10463_vm3, %v689_v51, %v693_v53  ;;  %v516_v37 = vsel %vm10463_vm3, %v511_v23, %v515_v61  ;;  %v10139_v51 = vld [vmem:[%s14505_s1 + $0x38] sm:$0xff]  ;;  %v708_v61 = vsel %vm10463_vm3, %v703_v38, %v707_v18  ;;  %v1885_v18 = vshll.u32 %v9227_v55, 16 }
  0x72   : > { %v751_v16 = vunpack.c.l.b16 %v694_v4  ;;  %v736_v53 = vunpack.c.l.b16 %v516_v37  ;;  %3712 = vmatpush.bf16.msra.mxu3 %v10139_v51  ;;  %v718_v62 = vsel %vm10463_vm3, %v713_v45, %v717_v46  ;;  %v9311_v4 = vrot.slane %v9295_v3, 9  ;;  %v9229_v37 = vld [vmem:[%s10439_s25 + $0x1c] sm:$0xf] }
  0x73   : > { %v753_v13 = vunpack.c.l.b16 %v718_v62  ;;  %v2545_v21 = vsel %vm10677_vm6, %v2543_v5, %v2544_v6  ;;  %v1190_v23 = vrot.slane %v10444_v7, 5  ;;  %v1193_v38 = vrot.slane %v10447_v8, 5  ;;  %v9296_v62 = vld [vmem:[%s10439_s25 + $0x18] sm:$0xe] }
  0x74   : > { %v761_v9 = vpack.c.b16 %v737_v54, %v736_v53  ;;  %v2542_v20 = vsel %vm10677_vm6, %v9311_v4, %v2541_v60  ;;  %v1890_v41 = vshrl.u32 %v9228_v29, 16  ;;  %v1893_v42 = vshll.u32 %v9228_v29, 16  ;;  %v9230_v60 = vld [vmem:[%s10439_s25 + $0x20] sm:$0x1] }
  0x75   : > { %v1192_v40 = vrot.slane %v1190_v23, 4  ;;  %v1899_v45 = vshll.u32 %v9229_v37, 16  ;;  %v1903_v8 = vshrl.u32 %v9229_v37, 16  ;;  %v1191_v51 = vsel %vm10677_vm6, %v9069_v39, %v1190_v23 }
  0x76   : > { %v1892_v54 = vrot.slane %v1890_v41, 4  ;;  %v2548_v55 = vrot.slane %v9229_v37, 5  ;;  %v2551_v3 = vrot.slane %v9230_v60, 5  ;;  %v1303_v4 = vunpack.c.l.b16 %v1191_v51 }
  0x77   : > { %v1194_v53 = vsel %vm10677_vm6, %v1192_v40, %v1193_v38  ;;  %v9232_v38 = vld [vmem:[%s10439_s25 + $0x28] sm:$0xf]  ;;  %v1200_v41 = vrot.slane %v10474_v47, 5 }
  0x78   : > { %v2550_v2 = vrot.slane %v2548_v55, 4  ;;  %v1304_v5 = vunpack.c.l.b16 %v1194_v53  ;;  %v1927_v51 = vshrl.u32 %v9232_v38, 16 }
  0x79   : > { %8974 = vmatmul.msk.bf16.gmra.mxu0 %vm776_vm0, %v759_v12  ;;  %v750_v12 = vunpack.c.l.b16 %v684_v0  ;;  %v10121_v0 = vld [vmem:[%s14505_s1 + $0x28] sm:$0xff] }
  0x7a   : > { %2763 = vmatpush.bf16.msrb.mxu1 %v10121_v0  ;;  %v9312_v0 = vrot.slane %v9296_v62, 9  ;;  %v1335_v26 = vpack.c.b16 %v1304_v5, %v1303_v4  ;;  %v1929_v4 = vrot.slane %v1927_v51, 4 }
  0x7b   : > { %9067 = vmatmul.msk.bf16.gmra.mxu3 %vm776_vm0, %v10098_v28  ;;  %v10099_v28 = vld [vmem:[%s10439_s25 + $0xb4] sm:$0xff] }
  0x7c   : > { %8982 = vmatmul.msk.bf16.gmra.mxu2 %vm776_vm0, %v767_v27  ;;  %v768_v27 = vpack.c.b16 %v751_v16, %v750_v12  ;;  %v752_v12 = vunpack.c.l.b16 %v708_v61  ;;  %v1895_v61 = vrot.slane %v1893_v42, 5 }
  0x7e   : > { %v769_v24 = vpack.c.b16 %v753_v13, %v752_v12 }
  0x7f   : > { %9059 = vmatmul.msk.bf16.gmra.mxu1 %vm776_vm0, %v10090_v49  ;;  %v1879_v49 = vshrl.u32 %v9226_v36, 16  ;;  %v1887_v36 = vrot.slane %v1885_v18, 5  ;;  %v2549_v18 = vsel %vm10677_vm6, %v9312_v0, %v2548_v55 }
  0x80   : > { %v2656_v29 = vunpack.c.l.b16 %v2549_v18 }
  0x81   : > { %v1881_v63 = vrot.slane %v1879_v49, 4 }
  0x83   : > { %v1882_v16 = vor.u32 %v1881_v63, %v1877_v59  ;;  %v1905_v63 = vrot.slane %v1903_v8, 4 }
  0x85   : > { %v1883_v35 = vrot.slane %v1882_v16, 4  ;;  %v1909_v16 = vshll.u32 %v9230_v60, 16 }
  0x87   : > { %v1888_v49 = vsel %vm10463_vm3, %v1883_v35, %v1887_v36  ;;  %v9231_v35 = vld [vmem:[%s10439_s25 + $0x24] sm:$0xf]  ;;  %v1911_v37 = vrot.slane %v1909_v16, 5 }
  0x89   : > { %8975 = vmatmul.msk.bf16.gmra.mxu0 %vm776_vm0, %v760_v15  ;;  %v1872_v15 = vor.u32 %v1871_v58, %v1868_v56  ;;  %v2253_v58 = vunpack.c.l.b16 %v1888_v49 }
  0x8b   : > { %9068 = vmatmul.msk.bf16.gmra.mxu3 %vm776_vm0, %v10099_v28  ;;  %v2655_v28 = vunpack.c.l.b16 %v2545_v21  ;;  %v1873_v33 = vrot.slane %v1872_v15, 4 }
  0x8c   : > { %8983 = vmatmul.msk.bf16.gmra.mxu2 %vm776_vm0, %v768_v27  ;;  %v2654_v27 = vunpack.c.l.b16 %v2542_v20  ;;  %v2552_v20 = vsel %vm10677_vm6, %v2550_v2, %v2551_v3  ;;  %v9297_v3 = vld [vmem:[%s10439_s25 + $0x24] sm:$0xe] }
  0x8d   : > { %v9313_v5 = vrot.slane %v9297_v3, 9 }
  0x8e   : > { %v2686_v7 = vpack.c.b16 %v2655_v28, %v2654_v27  ;;  %v10104_v27 = vld [vmem:[%s10439_s25 + $0x18] sm:$0xff] }
  0x8f   : > { %9060 = vmatmul.msk.bf16.gmra.mxu1 %vm776_vm0, %v10091_v48  ;;  %v1878_v48 = vsel %vm10463_vm3, %v1873_v33, %v1877_v59  ;;  %v1901_v59 = vrot.slane %v1899_v45, 5  ;;  %v2657_v33 = vunpack.c.l.b16 %v2552_v20  ;;  %v1917_v45 = vshll.u32 %v9231_v35, 16 }
  0x90   : > { %v2252_v56 = vunpack.c.l.b16 %v1878_v48 }
  0x91   : > { %v1906_v15 = vor.u32 %v1905_v63, %v1901_v59  ;;  %v2687_v42 = vpack.c.b16 %v2657_v33, %v2656_v29  ;;  %v9233_v63 = vld [vmem:[%s10439_s25 + $0x2c] sm:$0x1]  ;;  %v1919_v0 = vrot.slane %v1917_v45, 5  ;;  %v9235_v45 = vld [vmem:[%s10439_s25 + $0x34] sm:$0xf] }
  0x92   : > { %v2284_v6 = vpack.c.b16 %v2253_v58, %v2252_v56 }
  0x93   : > { %v1907_v36 = vrot.slane %v1906_v15, 4 }
  0x95   : > { %v1912_v8 = vsel %vm10463_vm3, %v1907_v36, %v1911_v37  ;;  %v1204_v36 = vrot.slane %v10489_v19, 5 }
  0x96   : > { %v2255_v62 = vunpack.c.l.b16 %v1912_v8 }
  0x99   : > { %8976 = vmatmul.msk.bf16.gmra.mxu0 %vm776_vm0, %v761_v9  ;;  %v1896_v9 = vor.u32 %v1895_v61, %v1892_v54  ;;  %v2555_v61 = vrot.slane %v9232_v38, 5 }
  0x9b   : > { %9209 = vmatmul.msk.bf16.vlgmr.msrb.gmra.mxu3 %vm776_vm0, %v10103_v25  ;;  %v1197_v25 = vrot.slane %v10459_v31, 5  ;;  %v1897_v28 = vrot.slane %v1896_v9, 4  ;;  %v2558_v9 = vrot.slane %v9233_v63, 5 }
  0x9c   : > { %8984 = vmatmul.msk.bf16.gmra.mxu2 %vm776_vm0, %v769_v24  ;;  %v1057_v46 = vpop.f32.mrf.mxu1  ;;  %v1138_v24 = vld [vmem:[%s10439_s25 + $0xc] sm:$0xe] }
  0x9d   : > { %v9070_v39 = vrot.slane %v1138_v24, 9  ;;  %v1199_v40 = vrot.slane %v1197_v25, 4  ;;  %v1902_v31 = vsel %vm10463_vm3, %v1897_v28, %v1901_v59  ;;  %v1933_v24 = vshll.u32 %v9233_v63, 16 }
  0x9e   : > { %v1097_v50 = vpop.f32.mrf.mxu3  ;;  %v2254_v58 = vunpack.c.l.b16 %v1902_v31 }
  0x9f   : > { %9333 = vmatmul.msk.bf16.vlgmr.msrb.gmra.mxu1 %vm776_vm0, %v2686_v7  ;;  %v1914_v7 = vshrl.u32 %v9231_v35, 16  ;;  %v1198_v53 = vsel %vm10677_vm6, %v9070_v39, %v1197_v25  ;;  %v1201_v56 = vsel %vm10677_vm6, %v1199_v40, %v1200_v41  ;;  %v2556_v25 = vsel %vm10677_vm6, %v9313_v5, %v2555_v61  ;;  %v1139_v35 = vld [vmem:[%s10439_s25 + $0x18] sm:$0xe] }
  0xa0   : > { %v2285_v15 = vpack.c.b16 %v2255_v62, %v2254_v58  ;;  %v2658_v40 = vunpack.c.l.b16 %v2556_v25 }
  0xa1   : > { %v1916_v60 = vrot.slane %v1914_v7, 4  ;;  %v9234_v7 = vld [vmem:[%s10439_s25 + $0x30] sm:$0xf] }
  0xa2   : > { %v1938_v8 = vshrl.u32 %v9234_v7, 16  ;;  %v1941_v51 = vshll.u32 %v9234_v7, 16 }
  0xa3   : > { %v1920_v16 = vor.u32 %v1919_v0, %v1916_v60  ;;  %v1951_v60 = vshrl.u32 %v9235_v45, 16 }
  0xa4   : > { %v1059_v13 = vpop.f32.mrf.mxu1  ;;  %v1940_v3 = vrot.slane %v1938_v8, 4 }
  0xa5   : > { %v1921_v39 = vrot.slane %v1920_v16, 4  ;;  %v1953_v16 = vrot.slane %v1951_v60, 4  ;;  %v1214_v60 = vrot.slane %v10535_v30, 5 }
  0xa6   : > { %v834_v12 = vpop.f32.mrf.mxu0  ;;  %v1099_v23 = vpop.f32.mrf.mxu3 }
  0xa7   : > { %v10709_v21 = vadd.f32 %v1057_v46, %v834_v12  ;;  %v1923_v46 = vshll.u32 %v9232_v38, 16  ;;  %v1305_v12 = vunpack.c.l.b16 %v1198_v53  ;;  %v10105_v38 = vld [vmem:[%s10439_s25 + $0x24] sm:$0xff]  ;;  %v1947_v53 = vshll.u32 %v9235_v45, 16 }
  0xa9   : > { %9279 = vmatmul.msk.bf16.vlgmr.msrb.gmra.mxu0 %vm776_vm0, %v2284_v6  ;;  %v1925_v2 = vrot.slane %v1923_v46, 5  ;;  %v2557_v6 = vrot.slane %v2555_v61, 4  ;;  %v9071_v46 = vrot.slane %v1139_v35, 9 }
  0xab   : > { %9210 = vmatmul.msk.bf16.gmra.mxu3 %vm776_vm0, %v10104_v27  ;;  %v1930_v20 = vor.u32 %v1929_v4, %v1925_v2  ;;  %v1926_v19 = vsel %vm10463_vm3, %v1921_v39, %v1925_v2  ;;  %v1205_v61 = vsel %vm10677_vm6, %v9071_v46, %v1204_v36  ;;  %v2562_v4 = vrot.slane %v9235_v45, 5 }
  0xac   : > { %9091 = vmatmul.msk.bf16.vlgmr.msrb.gmra.mxu2 %vm776_vm0, %v1335_v26  ;;  %v1062_v49 = vpop.f32.mrf.mxu1  ;;  %v2559_v26 = vsel %vm10677_vm6, %v2557_v6, %v2558_v9  ;;  %v2256_v2 = vunpack.c.l.b16 %v1926_v19  ;;  %v9236_v9 = vld [vmem:[%s10439_s25 + $0x38] sm:$0x1]  ;;  %v1211_v45 = vrot.slane %v10516_v10, 5 }
  0xad   : > { %v2659_v41 = vunpack.c.l.b16 %v2559_v26  ;;  %v1931_v31 = vrot.slane %v1930_v20, 4  ;;  %v2565_v20 = vrot.slane %v9236_v9, 5 }
  0xae   : > { %v836_v48 = vpop.f32.mrf.mxu0  ;;  %v10728_v55 = vpop.f32.mrf.mxu3 }
  0xaf   : > { %v10724_v47 = vadd.f32 %v1059_v13, %v836_v48  ;;  %v874_v54 = vpop.f32.mrf.mxu2  ;;  %9334 = vmatmul.msk.bf16.gmra.mxu1 %vm776_vm0, %v2687_v42  ;;  %v1306_v13 = vunpack.c.l.b16 %v1201_v56  ;;  %v1935_v42 = vrot.slane %v1933_v24, 5  ;;  %v1206_v48 = vrot.slane %v1204_v36, 4 }
  0xb0   : > { %v10732_v59 = vadd.f32 %v1097_v50, %v874_v54  ;;  %v1307_v24 = vunpack.c.l.b16 %v1205_v61  ;;  %v1957_v36 = vshll.u32 %v9236_v9, 16 }
  0xb1   : > { %v1336_v33 = vpack.c.b16 %v1306_v13, %v1305_v12  ;;  %v1936_v58 = vsel %vm10463_vm3, %v1931_v31, %v1935_v42  ;;  %v1943_v12 = vrot.slane %v1941_v51, 5  ;;  %v1949_v13 = vrot.slane %v1947_v53, 5  ;;  %v1140_v42 = vld [vmem:[%s10439_s25 + $0x24] sm:$0xe] }
  0xb2   : > { %v2257_v6 = vunpack.c.l.b16 %v1936_v58  ;;  %v1959_v53 = vrot.slane %v1957_v36, 5  ;;  %v1213_v58 = vrot.slane %v1211_v45, 4 }
  0xb3   : > { %v1954_v35 = vor.u32 %v1953_v16, %v1949_v13 }
  0xb4   : > { %v1064_v50 = vpop.f32.mrf.mxu1  ;;  %v2286_v26 = vpack.c.b16 %v2257_v6, %v2256_v2 }
  0xb5   : > { %v1955_v51 = vrot.slane %v1954_v35, 4 }
  0xb6   : > { %v839_v18 = vpop.f32.mrf.mxu0  ;;  %v10743_v29 = vpop.f32.mrf.mxu3 }
  0xb7   : > { %v10741_v27 = vadd.f32 %v1062_v49, %v839_v18  ;;  %v876_v28 = vpop.f32.mrf.mxu2  ;;  %v1207_v49 = vrot.slane %v10506_v44, 5 }
  0xb8   : > { %v10747_v37 = vadd.f32 %v1099_v23, %v876_v28  ;;  %v2688_v23 = vpack.c.b16 %v2659_v41, %v2658_v40  ;;  %v1944_v28 = vor.u32 %v1943_v12, %v1940_v3 }
  0xb9   : > { %9280 = vmatmul.msk.bf16.gmra.mxu0 %vm776_vm0, %v2285_v15  ;;  %v1208_v0 = vsel %vm10677_vm6, %v1206_v48, %v1207_v49  ;;  %v9298_v15 = vld [vmem:[%s10439_s25 + $0x30] sm:$0xe] }
  0xba   : > { %v9314_v18 = vrot.slane %v9298_v15, 9  ;;  %v1308_v25 = vunpack.c.l.b16 %v1208_v0  ;;  %v10106_v48 = vld [vmem:[%s10439_s25 + $0x30] sm:$0xff]  ;;  %v1945_v49 = vrot.slane %v1944_v28, 4 }
  0xbb   : > { %9211 = vmatmul.msk.bf16.gmra.mxu3 %vm776_vm0, %v10105_v38 }
  0xbc   : > { %9092 = vmatmul.msk.bf16.gmra.mxu2 %vm776_vm0, %v1336_v33  ;;  %v1067_v56 = vpop.f32.mrf.mxu1  ;;  %v2563_v38 = vsel %vm10677_vm6, %v9314_v18, %v2562_v4  ;;  %v1337_v31 = vpack.c.b16 %v1308_v25, %v1307_v24  ;;  %v1950_v10 = vsel %vm10463_vm3, %v1945_v49, %v1949_v13  ;;  %v1215_v13 = vsel %vm10677_vm6, %v1213_v58, %v1214_v60  ;;  %v9239_v25 = vld [vmem:[%s10439_s25 + $0x44] sm:$0x1] }
  0xbd   : > { %v2660_v8 = vunpack.c.l.b16 %v2563_v38  ;;  %v2258_v16 = vunpack.c.l.b16 %v1950_v10  ;;  %v2572_v38 = vrot.slane %v9239_v25, 5  ;;  %v1981_v49 = vshll.u32 %v9239_v25, 16 }
  0xbe   : > { %v841_v54 = vpop.f32.mrf.mxu0  ;;  %v10764_v63 = vpop.f32.mrf.mxu3  ;;  %v1218_v58 = vrot.slane %v10543_v57, 5 }
  0xbf   : > { %v10760_v44 = vadd.f32 %v1064_v50, %v841_v54  ;;  %v879_v62 = vpop.f32.mrf.mxu2  ;;  %9335 = vmatmul.msk.bf16.gmra.mxu1 %vm776_vm0, %v2688_v23  ;;  %v2564_v50 = vrot.slane %v2562_v4, 4  ;;  %v9237_v23 = vld [vmem:[%s10439_s25 + $0x3c] sm:$0xf]  ;;  %v9238_v54 = vld [vmem:[%s10439_s25 + $0x40] sm:$0xf]  ;;  %v1960_v4 = vsel %vm10463_vm3, %v1955_v51, %v1959_v53 }
  0xc0   : > { %v10769_v5 = vadd.f32 %v10728_v55, %v879_v62  ;;  %v1962_v61 = vshrl.u32 %v9237_v23, 16  ;;  %v1965_v62 = vshll.u32 %v9237_v23, 16  ;;  %v1971_v0 = vshll.u32 %v9238_v54, 16 }
  0xc1   : > { %v2566_v39 = vsel %vm10677_vm6, %v2564_v50, %v2565_v20  ;;  %v1975_v6 = vshrl.u32 %v9238_v54, 16  ;;  %v2569_v50 = vrot.slane %v9238_v54, 5  ;;  %v2259_v24 = vunpack.c.l.b16 %v1960_v4  ;;  %v9241_v4 = vld [vmem:[%s10439_s25 + $0x4c] sm:$0xf] }
  0xc2   : > { %v2661_v19 = vunpack.c.l.b16 %v2566_v39  ;;  %v1964_v18 = vrot.slane %v1962_v61, 4  ;;  %v1973_v28 = vrot.slane %v1971_v0, 5  ;;  %v10107_v61 = vld [vmem:[%s10439_s25 + $0x3c] sm:$0xff]  ;;  %v9240_v0 = vld [vmem:[%s10439_s25 + $0x48] sm:$0xf] }
  0xc3   : > { %v2571_v36 = vrot.slane %v2569_v50, 4 }
  0xc4   : > { %v1069_v55 = vpop.f32.mrf.mxu1 }
  0xc6   : > { %v844_v33 = vpop.f32.mrf.mxu0  ;;  %v10780_v7 = vpop.f32.mrf.mxu3 }
  0xc7   : > { %v10778_v40 = vadd.f32 %v1067_v56, %v844_v33  ;;  %v881_v41 = vpop.f32.mrf.mxu2  ;;  %v9072_v56 = vrot.slane %v1140_v42, 9  ;;  %v9299_v33 = vld [vmem:[%s10439_s25 + $0x3c] sm:$0xe] }
  0xc8   : > { %v10785_v46 = vadd.f32 %v10743_v29, %v881_v41  ;;  %v2689_v29 = vpack.c.b16 %v2661_v19, %v2660_v8  ;;  %v9315_v35 = vrot.slane %v9299_v33, 9  ;;  %v1310_v41 = vunpack.c.l.b16 %v1215_v13 }
  0xc9   : > { %9281 = vmatmul.msk.bf16.gmra.mxu0 %vm776_vm0, %v2286_v26  ;;  %v1212_v9 = vsel %vm10677_vm6, %v9072_v56, %v1211_v45  ;;  %v1967_v26 = vrot.slane %v1965_v62, 5  ;;  %v2573_v19 = vsel %vm10677_vm6, %v2571_v36, %v2572_v38  ;;  %v1141_v56 = vld [vmem:[%s10439_s25 + $0x30] sm:$0xe]  ;;  %v1986_v13 = vshrl.u32 %v9240_v0, 16 }
  0xca   : > { %v1309_v39 = vunpack.c.l.b16 %v1212_v9  ;;  %v2570_v8 = vsel %vm10677_vm6, %v9315_v35, %v2569_v50  ;;  %v2663_v62 = vunpack.c.l.b16 %v2573_v19  ;;  %v1221_v9 = vrot.slane %v10558_v22, 5 }
  0xcb   : > { %9212 = vmatmul.msk.bf16.gmra.mxu3 %vm776_vm0, %v10106_v48  ;;  %v1968_v42 = vor.u32 %v1967_v26, %v1964_v18  ;;  %v1995_v18 = vshll.u32 %v9241_v4, 16  ;;  %v1999_v22 = vshrl.u32 %v9241_v4, 16  ;;  %v1988_v38 = vrot.slane %v1986_v13, 4 }
  0xcc   : > { %9093 = vmatmul.msk.bf16.gmra.mxu2 %vm776_vm0, %v1337_v31  ;;  %v1072_v3 = vpop.f32.mrf.mxu1  ;;  %v2287_v31 = vpack.c.b16 %v2259_v24, %v2258_v16  ;;  %v1338_v54 = vpack.c.b16 %v1310_v41, %v1309_v39  ;;  %v1989_v16 = vshll.u32 %v9240_v0, 16  ;;  %v2576_v39 = vrot.slane %v9241_v4, 5 }
  0xcd   : > { %v1969_v10 = vrot.slane %v1968_v42, 4  ;;  %v9242_v42 = vld [vmem:[%s10439_s25 + $0x50] sm:$0x1]  ;;  %v1225_v13 = vrot.slane %v10570_v52, 5 }
  0xce   : > { %v846_v2 = vpop.f32.mrf.mxu0  ;;  %v10802_v15 = vpop.f32.mrf.mxu3  ;;  %v2578_v19 = vrot.slane %v2576_v39, 4 }
  0xcf   : > { %v10798_v30 = vadd.f32 %v1069_v55, %v846_v2  ;;  %v884_v12 = vpop.f32.mrf.mxu2  ;;  %9336 = vmatmul.msk.bf16.gmra.mxu1 %vm776_vm0, %v2689_v29  ;;  %v1977_v55 = vrot.slane %v1975_v6, 4  ;;  %v2662_v29 = vunpack.c.l.b16 %v2570_v8  ;;  %v9073_v6 = vrot.slane %v1141_v56, 9 }
  0xd0   : > { %v10807_v20 = vadd.f32 %v10764_v63, %v884_v12  ;;  %v1220_v12 = vrot.slane %v1218_v58, 4  ;;  %v1974_v57 = vsel %vm10463_vm3, %v1969_v10, %v1973_v28 }
  0xd1   : > { %v1978_v48 = vor.u32 %v1977_v55, %v1973_v28  ;;  %v1219_v33 = vsel %vm10677_vm6, %v9073_v6, %v1218_v58  ;;  %v2260_v36 = vunpack.c.l.b16 %v1974_v57 }
  0xd2   : > { %v1222_v28 = vsel %vm10677_vm6, %v1220_v12, %v1221_v9  ;;  %v1142_v12 = vld [vmem:[%s10439_s25 + $0x3c] sm:$0xe] }
  0xd3   : > { %v1979_v2 = vrot.slane %v1978_v48, 4  ;;  %v9300_v48 = vld [vmem:[%s10439_s25 + $0x48] sm:$0xe]  ;;  %v1312_v56 = vunpack.c.l.b16 %v1222_v28  ;;  %v1228_v28 = vrot.slane %v10589_v17, 5 }
  0xd4   : > { %v1074_v63 = vpop.f32.mrf.mxu1  ;;  %v9316_v8 = vrot.slane %v9300_v48, 9 }
  0xd6   : > { %v849_v45 = vpop.f32.mrf.mxu0  ;;  %v10818_v53 = vpop.f32.mrf.mxu3  ;;  %v2577_v0 = vsel %vm10677_vm6, %v9316_v8, %v2576_v39 }
  0xd7   : > { %v10816_v23 = vadd.f32 %v1072_v3, %v849_v45  ;;  %v886_v51 = vpop.f32.mrf.mxu2  ;;  %v1983_v3 = vrot.slane %v1981_v49, 5  ;;  %v1991_v45 = vrot.slane %v1989_v16, 5  ;;  %v2001_v49 = vrot.slane %v1999_v22, 4 }
  0xd8   : > { %v10823_v60 = vadd.f32 %v10780_v7, %v886_v51  ;;  %v2690_v7 = vpack.c.b16 %v2663_v62, %v2662_v29  ;;  %v2579_v51 = vrot.slane %v9242_v42, 5  ;;  %v2005_v62 = vshll.u32 %v9242_v42, 16 }
  0xd9   : > { %9282 = vmatmul.msk.bf16.gmra.mxu0 %vm776_vm0, %v2287_v31  ;;  %v1984_v25 = vsel %vm10463_vm3, %v1979_v2, %v1983_v3 }
  0xda   : > { %v2261_v31 = vunpack.c.l.b16 %v1984_v25  ;;  %v2580_v2 = vsel %vm10677_vm6, %v2578_v19, %v2579_v51  ;;  %v9243_v25 = vld [vmem:[%s10439_s25 + $0x54] sm:$0xf] }
  0xdb   : > { %9213 = vmatmul.msk.bf16.gmra.mxu3 %vm776_vm0, %v10107_v61  ;;  %v1992_v61 = vor.u32 %v1991_v45, %v1988_v38  ;;  %v2010_v38 = vshrl.u32 %v9243_v25, 16  ;;  %v2013_v39 = vshll.u32 %v9243_v25, 16 }
  0xdc   : > { %9094 = vmatmul.msk.bf16.gmra.mxu2 %vm776_vm0, %v1338_v54  ;;  %v1077_v24 = vpop.f32.mrf.mxu1  ;;  %v1311_v54 = vunpack.c.l.b16 %v1219_v33  ;;  %v2288_v58 = vpack.c.b16 %v2261_v31, %v2260_v36  ;;  %v9244_v33 = vld [vmem:[%s10439_s25 + $0x58] sm:$0xf]  ;;  %v1227_v36 = vrot.slane %v1225_v13, 4 }
  0xdd   : > { %v1993_v16 = vrot.slane %v1992_v61, 4  ;;  %v2019_v31 = vshll.u32 %v9244_v33, 16  ;;  %v2023_v17 = vshrl.u32 %v9244_v33, 16 }
  0xde   : > { %v851_v50 = vpop.f32.mrf.mxu0  ;;  %v10840_v35 = vpop.f32.mrf.mxu3  ;;  %v1339_v9 = vpack.c.b16 %v1312_v56, %v1311_v54  ;;  %v2012_v56 = vrot.slane %v2010_v38, 4 }
  0xdf   : > { %v10836_v26 = vadd.f32 %v1074_v63, %v851_v50  ;;  %v889_v55 = vpop.f32.mrf.mxu2  ;;  %9337 = vmatmul.msk.bf16.gmra.mxu1 %vm776_vm0, %v2690_v7  ;;  %v1997_v63 = vrot.slane %v1995_v18, 5  ;;  %v10108_v7 = vld [vmem:[%s10439_s25 + $0x48] sm:$0xff]  ;;  %v2664_v18 = vunpack.c.l.b16 %v2577_v0  ;;  %v2665_v50 = vunpack.c.l.b16 %v2580_v2  ;;  %v9301_v0 = vld [vmem:[%s10439_s25 + $0x54] sm:$0xe] }
  0xe0   : > { %v10845_v41 = vadd.f32 %v10802_v15, %v889_v55  ;;  %v9074_v55 = vrot.slane %v1142_v12, 9  ;;  %v2025_v2 = vrot.slane %v2023_v17, 4 }
  0xe1   : > { %v2002_v29 = vor.u32 %v2001_v49, %v1997_v63  ;;  %v1998_v52 = vsel %vm10463_vm3, %v1993_v16, %v1997_v63  ;;  %v1229_v63 = vsel %vm10677_vm6, %v1227_v36, %v1228_v28 }
  0xe2   : > { %v1226_v8 = vsel %vm10677_vm6, %v9074_v55, %v1225_v13  ;;  %v2262_v54 = vunpack.c.l.b16 %v1998_v52  ;;  %v1143_v52 = vld [vmem:[%s10439_s25 + $0x48] sm:$0xe] }
  0xe3   : > { %v2003_v22 = vrot.slane %v2002_v29, 4  ;;  %v2015_v29 = vrot.slane %v2013_v39, 5  ;;  %v1313_v13 = vunpack.c.l.b16 %v1226_v8  ;;  %v9246_v8 = vld [vmem:[%s10439_s25 + $0x60] sm:$0xf] }
  0xe4   : > { %v1079_v15 = vpop.f32.mrf.mxu1 }
  0xe6   : > { %v854_v10 = vpop.f32.mrf.mxu0  ;;  %v10856_v6 = vpop.f32.mrf.mxu3 }
  0xe7   : > { %v10854_v3 = vadd.f32 %v1077_v24, %v854_v10  ;;  %v891_v4 = vpop.f32.mrf.mxu2  ;;  %v2007_v24 = vrot.slane %v2005_v62, 5  ;;  %v2021_v62 = vrot.slane %v2019_v31, 5  ;;  %v10109_v31 = vld [vmem:[%s10439_s25 + $0x54] sm:$0xff] }
  0xe8   : > { %v10861_v57 = vadd.f32 %v10818_v53, %v891_v4  ;;  %v2691_v53 = vpack.c.b16 %v2665_v50, %v2664_v18  ;;  %v9317_v4 = vrot.slane %v9301_v0, 9  ;;  %v2016_v18 = vor.u32 %v2015_v29, %v2012_v56 }
  0xe9   : > { %9283 = vmatmul.msk.bf16.gmra.mxu0 %vm776_vm0, %v2288_v58  ;;  %v2008_v48 = vsel %vm10463_vm3, %v2003_v22, %v2007_v24  ;;  %v2583_v58 = vrot.slane %v9244_v33, 5  ;;  %v2026_v25 = vor.u32 %v2025_v2, %v2021_v62  ;;  %v1235_v56 = vrot.slane %v10616_v11, 5 }
  0xea   : > { %v2263_v10 = vunpack.c.l.b16 %v2008_v48 }
  0xeb   : > { %9214 = vmatmul.msk.bf16.gmra.mxu3 %vm776_vm0, %v10108_v7  ;;  %v1314_v7 = vunpack.c.l.b16 %v1229_v63  ;;  %v2584_v24 = vsel %vm10677_vm6, %v9317_v4, %v2583_v58  ;;  %v9247_v63 = vld [vmem:[%s10439_s25 + $0x64] sm:$0xf] }
  0xec   : > { %9095 = vmatmul.msk.bf16.gmra.mxu2 %vm776_vm0, %v1339_v9  ;;  %v1082_v45 = vpop.f32.mrf.mxu1  ;;  %v2585_v9 = vrot.slane %v2583_v58, 4  ;;  %v2289_v16 = vpack.c.b16 %v2263_v10, %v2262_v54  ;;  %v2666_v48 = vunpack.c.l.b16 %v2584_v24  ;;  %v9075_v54 = vrot.slane %v1143_v52, 9 }
  0xed   : > { %v1340_v38 = vpack.c.b16 %v1314_v7, %v1313_v13  ;;  %v2034_v10 = vshrl.u32 %v9246_v8, 16  ;;  %v2043_v29 = vshll.u32 %v9247_v63, 16  ;;  %v2047_v11 = vshrl.u32 %v9247_v63, 16 }
  0xee   : > { %v856_v42 = vpop.f32.mrf.mxu0  ;;  %v10878_v51 = vpop.f32.mrf.mxu3 }
  0xef   : > { %v10874_v49 = vadd.f32 %v1079_v15, %v856_v42  ;;  %v894_v19 = vpop.f32.mrf.mxu2  ;;  %9338 = vmatmul.msk.bf16.gmra.mxu1 %vm776_vm0, %v2691_v53  ;;  %v9245_v15 = vld [vmem:[%s10439_s25 + $0x5c] sm:$0x1]  ;;  %v1232_v53 = vrot.slane %v10597_v43, 5  ;;  %v2017_v42 = vrot.slane %v2016_v18, 4  ;;  %v2036_v18 = vrot.slane %v2034_v10, 4 }
  0xf0   : > { %v10883_v61 = vadd.f32 %v10840_v35, %v894_v19  ;;  %v2586_v12 = vrot.slane %v9245_v15, 5  ;;  %v2029_v22 = vshll.u32 %v9245_v15, 16  ;;  %v2027_v19 = vrot.slane %v2026_v25, 4 }
  0xf1   : > { %v1234_v58 = vrot.slane %v1232_v53, 4  ;;  %v2022_v43 = vsel %vm10463_vm3, %v2017_v42, %v2021_v62  ;;  %v2037_v15 = vshll.u32 %v9246_v8, 16 }
  0xf2   : > { %v2587_v33 = vsel %vm10677_vm6, %v2585_v9, %v2586_v12  ;;  %v1233_v12 = vsel %vm10677_vm6, %v9075_v54, %v1232_v53 }
  0xf3   : > { %v2667_v17 = vunpack.c.l.b16 %v2587_v33  ;;  %v1236_v62 = vsel %vm10677_vm6, %v1234_v58, %v1235_v56  ;;  %v2039_v24 = vrot.slane %v2037_v15, 5  ;;  %v2045_v33 = vrot.slane %v2043_v29, 5  ;;  %v1144_v15 = vld [vmem:[%s10439_s25 + $0x54] sm:$0xe] }
  0xf4   : > { %v1084_v35 = vpop.f32.mrf.mxu1  ;;  %v1315_v42 = vunpack.c.l.b16 %v1233_v12  ;;  %v1239_v29 = vrot.slane %v10624_v34, 5 }
  0xf5   : > { %v2040_v8 = vor.u32 %v2039_v24, %v2036_v18  ;;  %v9250_v18 = vld [vmem:[%s10439_s25 + $0x70] sm:$0xf] }
  0xf6   : > { %v859_v50 = vpop.f32.mrf.mxu0  ;;  %v10894_v36 = vpop.f32.mrf.mxu3 }
  0xf7   : > { %v10892_v55 = vadd.f32 %v1082_v45, %v859_v50  ;;  %v896_v28 = vpop.f32.mrf.mxu2  ;;  %v2031_v45 = vrot.slane %v2029_v22, 5  ;;  %v2590_v50 = vrot.slane %v9247_v63, 5 }
  0xf8   : > { %v10899_v39 = vadd.f32 %v10856_v6, %v896_v28  ;;  %v2692_v6 = vpack.c.b16 %v2667_v17, %v2666_v48  ;;  %v9302_v28 = vld [vmem:[%s10439_s25 + $0x60] sm:$0xe]  ;;  %v1316_v48 = vunpack.c.l.b16 %v1236_v62  ;;  %v9249_v62 = vld [vmem:[%s10439_s25 + $0x6c] sm:$0xf] }
  0xf9   : > { %9284 = vmatmul.msk.bf16.gmra.mxu0 %vm776_vm0, %v2289_v16  ;;  %v2032_v4 = vsel %vm10463_vm3, %v2027_v19, %v2031_v45  ;;  %v2264_v16 = vunpack.c.l.b16 %v2022_v43  ;;  %v9318_v52 = vrot.slane %v9302_v28, 9  ;;  %v2592_v53 = vrot.slane %v2590_v50, 4 }
  0xfa   : > { %v2265_v22 = vunpack.c.l.b16 %v2032_v4  ;;  %v10110_v4 = vld [vmem:[%s10439_s25 + $0x60] sm:$0xff]  ;;  %v2058_v24 = vshrl.u32 %v9249_v62, 16  ;;  %v2061_v28 = vshll.u32 %v9249_v62, 16 }
  0xfb   : > { %9215 = vmatmul.msk.bf16.gmra.mxu3 %vm776_vm0, %v10109_v31  ;;  %v2591_v54 = vsel %vm10677_vm6, %v9318_v52, %v2590_v50  ;;  %v9076_v50 = vrot.slane %v1144_v15, 9  ;;  %v9303_v15 = vld [vmem:[%s10439_s25 + $0x6c] sm:$0xe] }
  0xfc   : > { %9096 = vmatmul.msk.bf16.gmra.mxu2 %vm776_vm0, %v1340_v38  ;;  %v1087_v2 = vpop.f32.mrf.mxu1  ;;  %v2049_v38 = vrot.slane %v2047_v11, 4  ;;  %v2290_v17 = vpack.c.b16 %v2265_v22, %v2264_v16  ;;  %v2041_v11 = vrot.slane %v2040_v8, 4  ;;  %v2668_v12 = vunpack.c.l.b16 %v2591_v54 }
  0xfd   : > { %v1242_v22 = vrot.slane %v10641_v1, 5  ;;  %v2071_v1 = vshrl.u32 %v9250_v18, 16 }
  0xfe   : > { %v861_v0 = vpop.f32.mrf.mxu0  ;;  %v10916_v7 = vpop.f32.mrf.mxu3  ;;  %v2050_v45 = vor.u32 %v2049_v38, %v2045_v33  ;;  %v2046_v34 = vsel %vm10463_vm3, %v2041_v11, %v2045_v33  ;;  %v2067_v38 = vshll.u32 %v9250_v18, 16 }
  0xff   : > { %v10912_v9 = vadd.f32 %v1084_v35, %v861_v0  ;;  %v899_v13 = vpop.f32.mrf.mxu2  ;;  %9339 = vmatmul.msk.bf16.gmra.mxu1 %vm776_vm0, %v2692_v6  ;;  %v9248_v35 = vld [vmem:[%s10439_s25 + $0x68] sm:$0x1]  ;;  %v1341_v6 = vpack.c.b16 %v1316_v48, %v1315_v42  ;;  %v1240_v48 = vsel %vm10677_vm6, %v9076_v50, %v1239_v29 }
 0x100   : > { %v10921_v25 = vadd.f32 %v10878_v51, %v899_v13  ;;  %v2593_v31 = vrot.slane %v9248_v35, 5  ;;  %v2053_v63 = vshll.u32 %v9248_v35, 16  ;;  %v2051_v16 = vrot.slane %v2050_v45, 4 }
 0x101   : > { %v1241_v35 = vrot.slane %v1239_v29, 4  ;;  %v2060_v45 = vrot.slane %v2058_v24, 4  ;;  %v2073_v29 = vrot.slane %v2071_v1, 4 }
 0x102   : > { %v2594_v56 = vsel %vm10677_vm6, %v2592_v53, %v2593_v31 }
 0x103   : > { %v2669_v13 = vunpack.c.l.b16 %v2594_v56  ;;  %v1243_v33 = vsel %vm10677_vm6, %v1241_v35, %v1242_v22 }
 0x104   : > { %v1089_v51 = vpop.f32.mrf.mxu1  ;;  %v1318_v62 = vunpack.c.l.b16 %v1243_v33 }
 0x106   : > { %v864_v19 = vpop.f32.mrf.mxu0  ;;  %v10932_v43 = vpop.f32.mrf.mxu3 }
 0x107   : > { %v10930_v58 = vadd.f32 %v1087_v2, %v864_v19  ;;  %v901_v10 = vpop.f32.mrf.mxu2  ;;  %v2055_v2 = vrot.slane %v2053_v63, 5  ;;  %v2266_v19 = vunpack.c.l.b16 %v2046_v34  ;;  %v2597_v63 = vrot.slane %v9250_v18, 5 }
 0x108   : > { %v10937_v0 = vadd.f32 %v10894_v36, %v901_v10  ;;  %v2693_v36 = vpack.c.b16 %v2669_v13, %v2668_v12  ;;  %v2063_v10 = vrot.slane %v2061_v28, 5  ;;  %v1317_v13 = vunpack.c.l.b16 %v1240_v48 }
 0x109   : > { %9285 = vmatmul.msk.bf16.gmra.mxu0 %vm776_vm0, %v2290_v17  ;;  %v2056_v31 = vsel %vm10463_vm3, %v2051_v16, %v2055_v2  ;;  %v2599_v11 = vrot.slane %v2597_v63, 4 }
 0x10a   : > { %14519 = vst [vmem:[#allocation7_spill] sm:$0xff] %v10937_v0  ;;  %v2267_v56 = vunpack.c.l.b16 %v2056_v31  ;;  %v2064_v2 = vor.u32 %v2063_v10, %v2060_v45  ;;  %v10255_v31 = vld [vmem:[%s10439_s25 + $0x64] sm:$0xf] }
 0x10b   : > { %9216 = vmatmul.msk.bf16.gmra.mxu3 %vm776_vm0, %v10110_v4  ;;  %v9319_v4 = vrot.slane %v9303_v15, 9  ;;  %v1246_v1 = vrot.slane %v10255_v31, 5  ;;  %v10256_v15 = vld [vmem:[%s10439_s25 + $0x68] sm:$0x1] }
 0x10c   : > { %9097 = vmatmul.msk.bf16.gmra.mxu2 %vm776_vm0, %v1341_v6  ;;  %v1092_v53 = vpop.f32.mrf.mxu1  ;;  %v2069_v6 = vrot.slane %v2067_v38, 5  ;;  %v2291_v16 = vpack.c.b16 %v2267_v56, %v2266_v19  ;;  %v1342_v38 = vpack.c.b16 %v1318_v62, %v1317_v13  ;;  %v2065_v33 = vrot.slane %v2064_v2, 4 }
 0x10d   : > { %v2598_v35 = vsel %vm10677_vm6, %v9319_v4, %v2597_v63  ;;  %v1248_v4 = vrot.slane %v1246_v1, 4 }
 0x10e   : > { %v866_v52 = vpop.f32.mrf.mxu0  ;;  %v10954_v8 = vpop.f32.mrf.mxu3  ;;  %v2074_v50 = vor.u32 %v2073_v29, %v2069_v6  ;;  %v2670_v19 = vunpack.c.l.b16 %v2598_v35  ;;  %v1249_v29 = vrot.slane %v10256_v15, 5 }
 0x10f   : > { %v10950_v42 = vadd.f32 %v1089_v51, %v866_v52  ;;  %v904_v17 = vpop.f32.mrf.mxu2  ;;  %9340 = vmatmul.msk.bf16.gmra.mxu1 %vm776_vm0, %v2693_v36  ;;  %v9251_v51 = vld [vmem:[%s10439_s25 + $0x74] sm:$0x1]  ;;  %v1145_v52 = vld [vmem:[%s10439_s25 + $0x60] sm:$0xe] }
 0x110   : > { %v10959_v54 = vadd.f32 %v10916_v7, %v904_v17  ;;  %v2600_v12 = vrot.slane %v9251_v51, 5  ;;  %v2077_v22 = vshll.u32 %v9251_v51, 16  ;;  %v10111_v17 = vld [vmem:[%s10439_s25 + $0x6c] sm:$0xff]  ;;  %v2075_v63 = vrot.slane %v2074_v50, 4  ;;  %v9253_v51 = vld [vmem:[%s10439_s25 + $0x7c] sm:$0xf] }
 0x111   : > { %v9077_v10 = vrot.slane %v1145_v52, 9  ;;  %v2091_v62 = vshll.u32 %v9253_v51, 16  ;;  %v2095_v50 = vshrl.u32 %v9253_v51, 16  ;;  %v2604_v31 = vrot.slane %v9253_v51, 5 }
 0x112   : > { %14520 = vst [vmem:[#allocation8_spill] sm:$0xff] %v10959_v54  ;;  %v2601_v24 = vsel %vm10677_vm6, %v2599_v11, %v2600_v12  ;;  %v2079_v56 = vrot.slane %v2077_v22, 5 }
 0x113   : > { %v2671_v45 = vunpack.c.l.b16 %v2601_v24  ;;  %v1247_v35 = vsel %vm10677_vm6, %v9077_v10, %v1246_v1  ;;  %v2097_v1 = vrot.slane %v2095_v50, 4  ;;  %v1146_v50 = vld [vmem:[%s10439_s25 + $0x6c] sm:$0xe] }
 0x114   : > { %v1094_v18 = vpop.f32.mrf.mxu1  ;;  %v2080_v2 = vsel %vm10463_vm3, %v2075_v63, %v2079_v56  ;;  %v2606_v56 = vrot.slane %v2604_v31, 4  ;;  %v1319_v15 = vunpack.c.l.b16 %v1247_v35  ;;  %v10257_v35 = vld [vmem:[%s10439_s25 + $0x70] sm:$0xf] }
 0x115   : > { %v2694_v12 = vpack.c.b16 %v2671_v45, %v2670_v19  ;;  %v2093_v45 = vrot.slane %v2091_v62, 5 }
 0x116   : > { %v869_v7 = vpop.f32.mrf.mxu0  ;;  %v10970_v28 = vpop.f32.mrf.mxu3 }
 0x117   : > { %v10968_v34 = vadd.f32 %v1092_v53, %v869_v7  ;;  %v906_v36 = vpop.f32.mrf.mxu2  ;;  %v9252_v53 = vld [vmem:[%s10439_s25 + $0x78] sm:$0xf] }
 0x118   : > { %v10975_v48 = vadd.f32 %v10932_v43, %v906_v36  ;;  %v2082_v11 = vshrl.u32 %v9252_v53, 16  ;;  %v2070_v43 = vsel %vm10463_vm3, %v2065_v33, %v2069_v6  ;;  %v2085_v13 = vshll.u32 %v9252_v53, 16  ;;  %v9304_v53 = vld [vmem:[%s10439_s25 + $0x78] sm:$0xe] }
 0x119   : > { %9286 = vmatmul.msk.bf16.gmra.mxu0 %vm776_vm0, %v2291_v16  ;;  %v1250_v6 = vsel %vm10677_vm6, %v1248_v4, %v1249_v29  ;;  %v2269_v33 = vunpack.c.l.b16 %v2080_v2  ;;  %v9320_v63 = vrot.slane %v9304_v53, 9 }
 0x11a   : > { %14521 = vst [vmem:[#allocation9_spill] sm:$0xff] %v10975_v48  ;;  %v2084_v52 = vrot.slane %v2082_v11, 4  ;;  %v2087_v19 = vrot.slane %v2085_v13, 5  ;;  %v1320_v29 = vunpack.c.l.b16 %v1250_v6 }
 0x11b   : > { %9217 = vmatmul.msk.bf16.gmra.mxu3 %vm776_vm0, %v10111_v17  ;;  %v2605_v13 = vsel %vm10677_vm6, %v9320_v63, %v2604_v31  ;;  %v9256_v63 = vld [vmem:[%s10439_s25 + $0x88] sm:$0xf] }
 0x11c   : > { %9098 = vmatmul.msk.bf16.gmra.mxu2 %vm776_vm0, %v1342_v38  ;;  %v10988_v7 = vpop.f32.mrf.mxu1  ;;  %v2268_v38 = vunpack.c.l.b16 %v2070_v43  ;;  %v2088_v11 = vor.u32 %v2087_v19, %v2084_v52  ;;  %v2098_v43 = vor.u32 %v2097_v1, %v2093_v45  ;;  %v10112_v52 = vld [vmem:[%s10439_s25 + $0x78] sm:$0xff] }
 0x11e   : > { %v871_v16 = vpop.f32.mrf.mxu0  ;;  %v10994_v36 = vpop.f32.mrf.mxu3  ;;  %v2292_v4 = vpack.c.b16 %v2269_v33, %v2268_v38  ;;  %v1343_v38 = vpack.c.b16 %v1320_v29, %v1319_v15  ;;  %v2672_v33 = vunpack.c.l.b16 %v2605_v13  ;;  %v2089_v19 = vrot.slane %v2088_v11, 4 }
 0x11f   : > { %v10990_v22 = vadd.f32 %v1094_v18, %v871_v16  ;;  %v909_v24 = vpop.f32.mrf.mxu2  ;;  %9341 = vmatmul.msk.bf16.gmra.mxu1 %vm776_vm0, %v2694_v12  ;;  %v9254_v18 = vld [vmem:[%s10439_s25 + $0x80] sm:$0x1]  ;;  %v2099_v53 = vrot.slane %v2098_v43, 4  ;;  %v2115_v15 = vshll.u32 %v9256_v63, 16  ;;  %v2119_v43 = vshrl.u32 %v9256_v63, 16 }
 0x120   : > { %v10999_v17 = vadd.f32 %v10954_v8, %v909_v24  ;;  %v2607_v10 = vrot.slane %v9254_v18, 5  ;;  %v2101_v51 = vshll.u32 %v9254_v18, 16  ;;  %v1253_v24 = vrot.slane %v10257_v35, 5  ;;  %v9255_v18 = vld [vmem:[%s10439_s25 + $0x84] sm:$0xf] }
 0x121   : > { %v2106_v54 = vshrl.u32 %v9255_v18, 16  ;;  %v2109_v35 = vshll.u32 %v9255_v18, 16 }
 0x122   : > { %14522 = vst [vmem:[#allocation10_spill] sm:$0xff] %v10999_v17  ;;  %v2608_v62 = vsel %vm10677_vm6, %v2606_v56, %v2607_v10  ;;  %v2103_v1 = vrot.slane %v2101_v51, 5  ;;  %v9078_v56 = vrot.slane %v1146_v50, 9  ;;  %v10258_v10 = vld [vmem:[%s10439_s25 + $0x74] sm:$0x1]  ;;  %v1255_v48 = vrot.slane %v1253_v24, 4 }
 0x123   : > { %v2673_v31 = vunpack.c.l.b16 %v2608_v62  ;;  %v1256_v17 = vrot.slane %v10258_v10, 5  ;;  %v2121_v10 = vrot.slane %v2119_v43, 4 }
 0x124   : > { %v11004_v12 = vpop.f32.mrf.mxu1  ;;  %v2104_v51 = vsel %vm10463_vm3, %v2099_v53, %v2103_v1  ;;  %v1254_v13 = vsel %vm10677_vm6, %v9078_v56, %v1253_v24  ;;  %v2117_v53 = vrot.slane %v2115_v15, 5  ;;  %v9305_v1 = vld [vmem:[%s10439_s25 + $0x84] sm:$0xe] }
 0x125   : > { %v1257_v50 = vsel %vm10677_vm6, %v1255_v48, %v1256_v17  ;;  %v2271_v18 = vunpack.c.l.b16 %v2104_v51  ;;  %v9321_v24 = vrot.slane %v9305_v1, 9  ;;  %v1321_v17 = vunpack.c.l.b16 %v1254_v13  ;;  %v1147_v13 = vld [vmem:[%s10439_s25 + $0x78] sm:$0xe] }
 0x126   : > { %v2363_v8 = vpop.f32.mrf.mxu0  ;;  %v11010_v2 = vpop.f32.mrf.mxu3  ;;  %v2122_v15 = vor.u32 %v2121_v10, %v2117_v53  ;;  %v9259_v10 = vld [vmem:[%s10439_s25 + $0x94] sm:$0xf] }
 0x127   : > { %v911_v16 = vpop.f32.mrf.mxu2 }
 0x128   : > { %v11015_v6 = vadd.f32 %v10970_v28, %v911_v16  ;;  %v2695_v28 = vpack.c.b16 %v2673_v31, %v2672_v33  ;;  %v2611_v33 = vrot.slane %v9256_v63, 5  ;;  %v1322_v63 = vunpack.c.l.b16 %v1257_v50  ;;  %v10259_v50 = vld [vmem:[%s10439_s25 + $0x7c] sm:$0xf] }
 0x129   : > { %9287 = vmatmul.msk.bf16.gmra.mxu0 %vm776_vm0, %v2292_v4  ;;  %v2094_v4 = vsel %vm10463_vm3, %v2089_v19, %v2093_v45  ;;  %v9257_v19 = vld [vmem:[%s10439_s25 + $0x8c] sm:$0x1] }
 0x12a   : > { %14523 = vst [vmem:[#allocation11_spill] sm:$0xff] %v11015_v6  ;;  %v2270_v31 = vunpack.c.l.b16 %v2094_v4  ;;  %v2613_v56 = vrot.slane %v2611_v33, 4  ;;  %v2614_v6 = vrot.slane %v9257_v19, 5  ;;  %v2125_v4 = vshll.u32 %v9257_v19, 16  ;;  %v9258_v19 = vld [vmem:[%s10439_s25 + $0x90] sm:$0xf] }
 0x12b   : > { %9218 = vmatmul.msk.bf16.gmra.mxu3 %vm776_vm0, %v10112_v52  ;;  %v2111_v52 = vrot.slane %v2109_v35, 5 }
 0x12c   : > { %9099 = vmatmul.msk.bf16.gmra.mxu2 %vm776_vm0, %v1343_v38  ;;  %v11028_v11 = vpop.f32.mrf.mxu1  ;;  %v2108_v38 = vrot.slane %v2106_v54, 4  ;;  %v10160_v54 = vld [vmem:[%s14507_s3 + $0x18] sm:$0xff]  ;;  %v2293_v35 = vpack.c.b16 %v2271_v18, %v2270_v31  ;;  %v2615_v43 = vsel %vm10677_vm6, %v2613_v56, %v2614_v6  ;;  %v1344_v31 = vpack.c.b16 %v1322_v63, %v1321_v17 }
 0x12d   : > { %5324 = vmatpush.bf16.msra.mxu1 %v10160_v54  ;;  %v2675_v6 = vunpack.c.l.b16 %v2615_v43  ;;  %v2127_v1 = vrot.slane %v2125_v4, 5  ;;  %v9079_v56 = vrot.slane %v1147_v13, 9  ;;  %v10260_v54 = vld [vmem:[%s10439_s25 + $0x80] sm:$0x1]  ;;  %v2143_v43 = vshrl.u32 %v9259_v10, 16 }
 0x12e   : > { %v2365_v29 = vpop.f32.mrf.mxu0  ;;  %v11032_v16 = vpop.f32.mrf.mxu3  ;;  %v2112_v48 = vor.u32 %v2111_v52, %v2108_v38  ;;  %v1260_v38 = vrot.slane %v10259_v50, 5 }
 0x12f   : > { %v1414_v62 = vpop.f32.mrf.mxu2  ;;  %9342 = vmatmul.msk.bf16.gmra.mxu1 %vm776_vm0, %v2695_v28 }
 0x130   : > { %v1494_v45 = vadd.f32 %v1414_v62, %v10709_v21  ;;  %v2113_v52 = vrot.slane %v2112_v48, 4 }
 0x132   : > { %v1785_v0 = vadd.f32 %v10994_v36, %v1494_v45  ;;  %v2612_v36 = vsel %vm10677_vm6, %v9321_v24, %v2611_v33  ;;  %v10113_v33 = vld [vmem:[%s10439_s25 + $0x84] sm:$0xff]  ;;  %v2118_v48 = vsel %vm10463_vm3, %v2113_v52, %v2117_v53 }
 0x133   : > { %v2674_v18 = vunpack.c.l.b16 %v2612_v36  ;;  %v2272_v52 = vunpack.c.l.b16 %v2118_v48 }
 0x134   : > { %v2443_v21 = vadd.f32 %v2363_v8, %v1785_v0  ;;  %v11044_v51 = vpop.f32.mrf.mxu1 }
 0x135   : > { %v2696_v63 = vpack.c.b16 %v2675_v6, %v2674_v18  ;;  %v9260_v6 = vld [vmem:[%s10439_s25 + $0x98] sm:$0x1] }
 0x136   : > { %v2368_v28 = vpop.f32.mrf.mxu0  ;;  %v11051_v62 = vadd.f32 %v10988_v7, %v2443_v21  ;;  %v11053_v8 = vpop.f32.mrf.mxu3  ;;  %v2123_v7 = vrot.slane %v2122_v15, 4  ;;  %v1263_v21 = vrot.slane %v10260_v54, 5  ;;  %v2139_v15 = vshll.u32 %v9259_v10, 16 }
 0x137   : > { %v1416_v0 = vpop.f32.mrf.mxu2 }
 0x138   : > { %14524 = vst [vmem:[#allocation12_spill] sm:$0xff] %v11051_v62  ;;  %v1495_v45 = vadd.f32 %v1416_v0, %v10724_v47  ;;  %v1262_v62 = vrot.slane %v1260_v38, 4  ;;  %v2130_v47 = vshrl.u32 %v9258_v19, 16 }
 0x139   : > { %9288 = vmatmul.msk.bf16.gmra.mxu0 %vm776_vm0, %v2293_v35  ;;  %v2133_v35 = vshll.u32 %v9258_v19, 16  ;;  %v2141_v19 = vrot.slane %v2139_v15, 5 }
 0x13a   : > { %v1786_v24 = vadd.f32 %v11010_v2, %v1495_v45  ;;  %v2128_v2 = vsel %vm10463_vm3, %v2123_v7, %v2127_v1  ;;  %v1264_v50 = vsel %vm10677_vm6, %v1262_v62, %v1263_v21  ;;  %v2132_v45 = vrot.slane %v2130_v47, 4  ;;  %v9306_v7 = vld [vmem:[%s10439_s25 + $0x90] sm:$0xe] }
 0x13b   : > { %9219 = vmatmul.msk.bf16.gmra.mxu3 %vm776_vm0, %v10113_v33  ;;  %v2273_v18 = vunpack.c.l.b16 %v2128_v2  ;;  %v2145_v1 = vrot.slane %v2143_v43, 4 }
 0x13c   : > { %9100 = vmatmul.msk.bf16.gmra.mxu2 %vm776_vm0, %v1344_v31  ;;  %v2444_v17 = vadd.f32 %v2365_v29, %v1786_v24  ;;  %v11070_v36 = vpop.f32.mrf.mxu1  ;;  %v1261_v29 = vsel %vm10677_vm6, %v9079_v56, %v1260_v38  ;;  %v2618_v31 = vrot.slane %v9259_v10, 5  ;;  %v9322_v38 = vrot.slane %v9306_v7, 9 }
 0x13d   : > { %v2621_v56 = vrot.slane %v9260_v6, 5  ;;  %v1323_v62 = vunpack.c.l.b16 %v1261_v29  ;;  %v1324_v10 = vunpack.c.l.b16 %v1264_v50  ;;  %v2294_v48 = vpack.c.b16 %v2273_v18, %v2272_v52  ;;  %v1148_v29 = vld [vmem:[%s10439_s25 + $0x84] sm:$0xe] }
 0x13e   : > { %v2370_v4 = vpop.f32.mrf.mxu0  ;;  %v11073_v53 = vadd.f32 %v11004_v12, %v2444_v17  ;;  %v11077_v13 = vpop.f32.mrf.mxu3  ;;  %v2135_v12 = vrot.slane %v2133_v35, 5  ;;  %v2620_v24 = vrot.slane %v2618_v31, 4  ;;  %v2619_v15 = vsel %vm10677_vm6, %v9322_v38, %v2618_v31  ;;  %v10114_v31 = vld [vmem:[%s10439_s25 + $0x90] sm:$0xff] }
 0x13f   : > { %v1419_v0 = vpop.f32.mrf.mxu2  ;;  %9343 = vmatmul.msk.bf16.gmra.mxu1 %vm776_vm0, %v2696_v63  ;;  %v2146_v63 = vor.u32 %v2145_v1, %v2141_v19  ;;  %v9262_v1 = vld [vmem:[%s10439_s25 + $0xa0] sm:$0xf] }
 0x140   : > { %v1496_v33 = vadd.f32 %v1419_v0, %v10741_v27  ;;  %v2149_v27 = vshll.u32 %v9260_v6, 16  ;;  %v2136_v17 = vor.u32 %v2135_v12, %v2132_v45  ;;  %v2622_v2 = vsel %vm10677_vm6, %v2620_v24, %v2621_v56  ;;  %v10261_v0 = vld [vmem:[%s10439_s25 + $0x88] sm:$0xf]  ;;  %v9261_v6 = vld [vmem:[%s10439_s25 + $0x9c] sm:$0xf] }
 0x141   : > { %v1267_v50 = vrot.slane %v10261_v0, 5  ;;  %v1345_v45 = vpack.c.b16 %v1324_v10, %v1323_v62  ;;  %v2677_v18 = vunpack.c.l.b16 %v2622_v2  ;;  %v9080_v24 = vrot.slane %v1148_v29, 9  ;;  %v10262_v56 = vld [vmem:[%s10439_s25 + $0x8c] sm:$0x1] }
 0x142   : > { %v1787_v54 = vadd.f32 %v11032_v16, %v1496_v33  ;;  %v2676_v33 = vunpack.c.l.b16 %v2619_v15  ;;  %v2137_v12 = vrot.slane %v2136_v17, 4  ;;  %v2151_v7 = vrot.slane %v2149_v27, 5 }
 0x143   : > { %v2154_v0 = vshrl.u32 %v9261_v6, 16  ;;  %v2163_v10 = vshll.u32 %v9262_v1, 16 }
 0x144   : > { %v2445_v21 = vadd.f32 %v2368_v28, %v1787_v54  ;;  %v11086_v35 = vpop.f32.mrf.mxu1  ;;  %v1270_v54 = vrot.slane %v10262_v56, 5  ;;  %v2697_v62 = vpack.c.b16 %v2677_v18, %v2676_v33  ;;  %v2142_v27 = vsel %vm10463_vm3, %v2137_v12, %v2141_v19  ;;  %v9307_v12 = vld [vmem:[%s10439_s25 + $0x9c] sm:$0xe] }
 0x145   : > { %v2156_v29 = vrot.slane %v2154_v0, 4  ;;  %v2274_v33 = vunpack.c.l.b16 %v2142_v27 }
 0x146   : > { %v2373_v47 = vpop.f32.mrf.mxu0  ;;  %v11093_v16 = vadd.f32 %v11028_v11, %v2445_v21  ;;  %v11095_v43 = vpop.f32.mrf.mxu3  ;;  %v2147_v11 = vrot.slane %v2146_v63, 4  ;;  %v1269_v21 = vrot.slane %v1267_v50, 4  ;;  %v2167_v63 = vshrl.u32 %v9262_v1, 16 }
 0x147   : > { %v1421_v28 = vpop.f32.mrf.mxu2 }
 0x148   : > { %14525 = vst [vmem:[#allocation13_spill] sm:$0xff] %v11093_v16  ;;  %v1497_v52 = vadd.f32 %v1421_v28, %v10760_v44  ;;  %v2157_v16 = vshll.u32 %v9261_v6, 16  ;;  %v1271_v19 = vsel %vm10677_vm6, %v1269_v21, %v1270_v54  ;;  %v2165_v6 = vrot.slane %v2163_v10, 5 }
 0x149   : > { %9289 = vmatmul.msk.bf16.gmra.mxu0 %vm776_vm0, %v2294_v48  ;;  %v1326_v54 = vunpack.c.l.b16 %v1271_v19 }
 0x14a   : > { %v1788_v38 = vadd.f32 %v11053_v8, %v1497_v52  ;;  %v2152_v8 = vsel %vm10463_vm3, %v2147_v11, %v2151_v7  ;;  %v2159_v52 = vrot.slane %v2157_v16, 5  ;;  %v2169_v11 = vrot.slane %v2167_v63, 4  ;;  %v1149_v63 = vld [vmem:[%s10439_s25 + $0x90] sm:$0xe] }
 0x14b   : > { %9220 = vmatmul.msk.bf16.gmra.mxu3 %vm776_vm0, %v10114_v31  ;;  %v2275_v18 = vunpack.c.l.b16 %v2152_v8 }
 0x14c   : > { %9101 = vmatmul.msk.bf16.gmra.mxu2 %vm776_vm0, %v1345_v45  ;;  %v2446_v44 = vadd.f32 %v2370_v4, %v1788_v38  ;;  %v11112_v17 = vpop.f32.mrf.mxu1  ;;  %v1268_v4 = vsel %vm10677_vm6, %v9080_v24, %v1267_v50  ;;  %v2625_v45 = vrot.slane %v9262_v1, 5  ;;  %v9323_v50 = vrot.slane %v9307_v12, 9  ;;  %v9265_v12 = vld [vmem:[%s10439_s25 + $0xac] sm:$0xf] }
 0x14d   : > { %v2160_v56 = vor.u32 %v2159_v52, %v2156_v29  ;;  %v1325_v1 = vunpack.c.l.b16 %v1268_v4  ;;  %v2170_v0 = vor.u32 %v2169_v11, %v2165_v6  ;;  %v10263_v4 = vld [vmem:[%s10439_s25 + $0x94] sm:$0xf] }
 0x14e   : > { %v2375_v48 = vpop.f32.mrf.mxu0  ;;  %v11115_v15 = vadd.f32 %v11044_v51, %v2446_v44  ;;  %v11119_v28 = vpop.f32.mrf.mxu3  ;;  %v9263_v51 = vld [vmem:[%s10439_s25 + $0xa4] sm:$0x1]  ;;  %v2627_v7 = vrot.slane %v2625_v45, 4  ;;  %v2626_v10 = vsel %vm10677_vm6, %v9323_v50, %v2625_v45  ;;  %v10115_v45 = vld [vmem:[%s10439_s25 + $0x9c] sm:$0xff]  ;;  %v9081_v50 = vrot.slane %v1149_v63, 9 }
 0x14f   : > { %v1424_v2 = vpop.f32.mrf.mxu2  ;;  %9344 = vmatmul.msk.bf16.gmra.mxu1 %vm776_vm0, %v2697_v62  ;;  %v2628_v38 = vrot.slane %v9263_v51, 5  ;;  %v2173_v44 = vshll.u32 %v9263_v51, 16  ;;  %v2161_v19 = vrot.slane %v2160_v56, 4  ;;  %v1346_v52 = vpack.c.b16 %v1326_v54, %v1325_v1 }
 0x150   : > { %v1498_v31 = vadd.f32 %v1424_v2, %v10778_v40  ;;  %v2295_v40 = vpack.c.b16 %v2275_v18, %v2274_v33  ;;  %v1274_v2 = vrot.slane %v10263_v4, 5  ;;  %v9264_v18 = vld [vmem:[%s10439_s25 + $0xa8] sm:$0xf] }
 0x151   : > { %v2629_v27 = vsel %vm10677_vm6, %v2627_v7, %v2628_v38  ;;  %v2175_v51 = vrot.slane %v2173_v44, 5  ;;  %v10264_v7 = vld [vmem:[%s10439_s25 + $0x98] sm:$0x1]  ;;  %v2166_v56 = vsel %vm10463_vm3, %v2161_v19, %v2165_v6  ;;  %v2181_v54 = vshll.u32 %v9264_v18, 16 }
 0x152   : > { %v1789_v24 = vadd.f32 %v11077_v13, %v1498_v31  ;;  %v2678_v31 = vunpack.c.l.b16 %v2626_v10  ;;  %v2679_v33 = vunpack.c.l.b16 %v2629_v27  ;;  %v1277_v38 = vrot.slane %v10264_v7, 5 }
 0x153   : > { %v2191_v10 = vshrl.u32 %v9265_v12, 16  ;;  %v2276_v4 = vunpack.c.l.b16 %v2166_v56 }
 0x154   : > { %v2447_v16 = vadd.f32 %v2373_v47, %v1789_v24  ;;  %v11128_v62 = vpop.f32.mrf.mxu1  ;;  %v1276_v24 = vrot.slane %v1274_v2, 4  ;;  %v2698_v1 = vpack.c.b16 %v2679_v33, %v2678_v31  ;;  %v9266_v31 = vld [vmem:[%s10439_s25 + $0xb0] sm:$0x1] }
 0x156   : > { %v2378_v21 = vpop.f32.mrf.mxu0  ;;  %v11135_v13 = vadd.f32 %v11070_v36, %v2447_v16  ;;  %v11137_v8 = vpop.f32.mrf.mxu3  ;;  %v2171_v36 = vrot.slane %v2170_v0, 4  ;;  %v1278_v63 = vsel %vm10677_vm6, %v1276_v24, %v1277_v38  ;;  %v2197_v24 = vshll.u32 %v9266_v31, 16 }
 0x157   : > { %v1426_v47 = vpop.f32.mrf.mxu2 }
 0x158   : > { %v1499_v29 = vadd.f32 %v1426_v47, %v10798_v30  ;;  %v2178_v30 = vshrl.u32 %v9264_v18, 16  ;;  %v9308_v18 = vld [vmem:[%s10439_s25 + $0xa8] sm:$0xe] }
 0x159   : > { %9290 = vmatmul.msk.bf16.gmra.mxu0 %vm776_vm0, %v2295_v40  ;;  %v2187_v40 = vshll.u32 %v9265_v12, 16 }
 0x15a   : > { %v1790_v11 = vadd.f32 %v11095_v43, %v1499_v29  ;;  %v2176_v43 = vsel %vm10463_vm3, %v2171_v36, %v2175_v51  ;;  %v2180_v19 = vrot.slane %v2178_v30, 4  ;;  %v2632_v29 = vrot.slane %v9265_v12, 5 }
 0x15b   : > { %9221 = vmatmul.msk.bf16.gmra.mxu3 %vm776_vm0, %v10115_v45  ;;  %v2277_v45 = vunpack.c.l.b16 %v2176_v43  ;;  %v11168_v33 = vrot.slane %v2187_v40, 5  ;;  %v9324_v36 = vrot.slane %v9308_v18, 9  ;;  %v1328_v12 = vunpack.c.l.b16 %v1278_v63  ;;  %v10116_v63 = vld [vmem:[%s10439_s25 + $0xa8] sm:$0xff] }
 0x15c   : > { %9102 = vmatmul.msk.bf16.gmra.mxu2 %vm776_vm0, %v1346_v52  ;;  %v2448_v16 = vadd.f32 %v2375_v48, %v1790_v11  ;;  %v11154_v44 = vpop.f32.mrf.mxu1  ;;  %v1275_v48 = vsel %vm10677_vm6, %v9081_v50, %v1274_v2  ;;  %v2193_v2 = vrot.slane %v2191_v10, 4  ;;  %v2634_v51 = vrot.slane %v2632_v29, 4  ;;  %v9267_v10 = vld [vmem:[%s10439_s25 + $0xb4] sm:$0xf] }
 0x15d   : > { %v2635_v11 = vrot.slane %v9266_v31, 5  ;;  %v1327_v7 = vunpack.c.l.b16 %v1275_v48  ;;  %v2199_v18 = vrot.slane %v2197_v24, 5 }
 0x15e   : > { %v2380_v0 = vpop.f32.mrf.mxu0  ;;  %v11157_v6 = vadd.f32 %v11086_v35, %v2448_v16  ;;  %v11161_v47 = vpop.f32.mrf.mxu3  ;;  %v2183_v35 = vrot.slane %v2181_v54, 5  ;;  %v2194_v16 = vor.u32 %v2193_v2, %v11168_v33  ;;  %v2633_v54 = vsel %vm10677_vm6, %v9324_v36, %v2632_v29  ;;  %v1150_v29 = vld [vmem:[%s10439_s25 + $0x9c] sm:$0xe] }
 0x15f   : > { %v1429_v27 = vpop.f32.mrf.mxu2  ;;  %9345 = vmatmul.msk.bf16.gmra.mxu1 %vm776_vm0, %v2698_v1  ;;  %v2202_v36 = vshrl.u32 %v9267_v10, 16 }
 0x160   : > { %v1500_v52 = vadd.f32 %v1429_v27, %v10816_v23  ;;  %v2296_v23 = vpack.c.b16 %v2277_v45, %v2276_v4  ;;  %v2184_v30 = vor.u32 %v2183_v35, %v2180_v19  ;;  %v1347_v27 = vpack.c.b16 %v1328_v12, %v1327_v7  ;;  %v10265_v45 = vld [vmem:[%s10439_s25 + $0xa0] sm:$0xf]  ;;  %v10266_v12 = vld [vmem:[%s10439_s25 + $0xa4] sm:$0x1] }
 0x161   : > { %v2680_v4 = vunpack.c.l.b16 %v2633_v54  ;;  %v1281_v31 = vrot.slane %v10265_v45, 5  ;;  %v9082_v7 = vrot.slane %v1150_v29, 9 }
 0x162   : > { %v1791_v50 = vadd.f32 %v11119_v28, %v1500_v52  ;;  %v2636_v28 = vsel %vm10677_vm6, %v2634_v51, %v2635_v11  ;;  %v9268_v52 = vld [vmem:[%s10439_s25 + $0xb8] sm:$0xf]  ;;  %v2185_v35 = vrot.slane %v2184_v30, 4  ;;  %v2205_v51 = vshll.u32 %v9267_v10, 16 }
 0x163   : > { %v2681_v19 = vunpack.c.l.b16 %v2636_v28  ;;  %v2211_v11 = vshll.u32 %v9268_v52, 16  ;;  %v1283_v30 = vrot.slane %v1281_v31, 4  ;;  %v2204_v28 = vrot.slane %v2202_v36, 4 }
 0x164   : > { %v2449_v38 = vadd.f32 %v2378_v21, %v1791_v50  ;;  %v11175_v1 = vpop.f32.mrf.mxu1 }
 0x166   : > { %v11172_v56 = vpop.f32.mrf.mxu0  ;;  %v11182_v21 = vadd.f32 %v11112_v17, %v2449_v38  ;;  %v11184_v43 = vpop.f32.mrf.mxu3  ;;  %v2195_v17 = vrot.slane %v2194_v16, 4  ;;  %v2699_v38 = vpack.c.b16 %v2681_v19, %v2680_v4  ;;  %v2639_v4 = vrot.slane %v9268_v52, 5 }
 0x167   : > { %v1431_v40 = vpop.f32.mrf.mxu2  ;;  %v1282_v19 = vsel %vm10677_vm6, %v9082_v7, %v1281_v31 }
 0x168   : > { %v1501_v48 = vadd.f32 %v1431_v40, %v10836_v26  ;;  %v2215_v26 = vshrl.u32 %v9268_v52, 16  ;;  %v2200_v24 = vsel %vm10463_vm3, %v2195_v17, %v2199_v18  ;;  %v2207_v40 = vrot.slane %v2205_v51, 5 }
 0x169   : > { %9291 = vmatmul.msk.bf16.gmra.mxu0 %vm776_vm0, %v2296_v23  ;;  %v1284_v23 = vrot.slane %v10266_v12, 5  ;;  %v2279_v45 = vunpack.c.l.b16 %v2200_v24 }
 0x16a   : > { %v1792_v2 = vadd.f32 %v11137_v8, %v1501_v48  ;;  %v2190_v8 = vsel %vm10463_vm3, %v2185_v35, %v11168_v33  ;;  %v9309_v35 = vld [vmem:[%s10439_s25 + $0xb4] sm:$0xe] }
 0x16b   : > { %9222 = vmatmul.msk.bf16.gmra.mxu3 %vm776_vm0, %v10116_v63  ;;  %v2217_v63 = vrot.slane %v2215_v26, 4  ;;  %v2278_v29 = vunpack.c.l.b16 %v2190_v8  ;;  %v1285_v17 = vsel %vm10677_vm6, %v1283_v30, %v1284_v23  ;;  %v9325_v18 = vrot.slane %v9309_v35, 9  ;;  %v10267_v8 = vld [vmem:[%s10439_s25 + $0xac] sm:$0xf]  ;;  %v9271_v35 = vld [vmem:[%s10439_s25 + $0xc4] sm:$0xf] }
 0x16c   : > { %9103 = vmatmul.msk.bf16.gmra.mxu2 %vm776_vm0, %v1347_v27  ;;  %v2450_v50 = vadd.f32 %v2380_v0, %v1792_v2  ;;  %v11204_v16 = vpop.f32.mrf.mxu1  ;;  %v11211_v27 = vrot.slane %v2211_v11, 5  ;;  %v2641_v2 = vrot.slane %v2639_v4, 4  ;;  %v1329_v26 = vunpack.c.l.b16 %v1282_v19  ;;  %v9270_v19 = vld [vmem:[%s10439_s25 + $0xc0] sm:$0xf] }
 0x16d   : > { %v2297_v7 = vpack.c.b16 %v2279_v45, %v2278_v29  ;;  %v2640_v23 = vsel %vm10677_vm6, %v9325_v18, %v2639_v4  ;;  %v1288_v24 = vrot.slane %v10267_v8, 5  ;;  %v10117_v45 = vld [vmem:[%s10439_s25 + $0xb4] sm:$0xff] }
 0x16e   : > { %v11197_v54 = vpop.f32.mrf.mxu0  ;;  %v11207_v0 = vadd.f32 %v11128_v62, %v2450_v50  ;;  %v11209_v48 = vpop.f32.mrf.mxu3  ;;  %v9269_v62 = vld [vmem:[%s10439_s25 + $0xbc] sm:$0x1]  ;;  %v2218_v51 = vor.u32 %v2217_v63, %v11211_v27  ;;  %v1330_v50 = vunpack.c.l.b16 %v1285_v17  ;;  %v10268_v17 = vld [vmem:[%s10439_s25 + $0xb0] sm:$0x1] }
 0x16f   : > { %v1434_v10 = vpop.f32.mrf.mxu2  ;;  %9346 = vmatmul.msk.bf16.gmra.mxu1 %vm776_vm0, %v2699_v38  ;;  %v2642_v36 = vrot.slane %v9269_v62, 5  ;;  %v2221_v31 = vshll.u32 %v9269_v62, 16  ;;  %v1291_v18 = vrot.slane %v10268_v17, 5 }
 0x170   : > { %14526 = vst [vmem:[#allocation14_spill] sm:$0xff] %v11207_v0  ;;  %v1502_v33 = vadd.f32 %v1434_v10, %v10854_v3  ;;  %v2208_v3 = vor.u32 %v2207_v40, %v2204_v28  ;;  %v2219_v63 = vrot.slane %v2218_v51, 4  ;;  %v1348_v29 = vpack.c.b16 %v1330_v50, %v1329_v26 }
 0x171   : > { %v2239_v26 = vshrl.u32 %v9271_v35, 16 }
 0x172   : > { %v1793_v52 = vadd.f32 %v11161_v47, %v1502_v33  ;;  %v2643_v47 = vsel %vm10677_vm6, %v2641_v2, %v2642_v36  ;;  %v2209_v28 = vrot.slane %v2208_v3, 4  ;;  %v2223_v33 = vrot.slane %v2221_v31, 5 }
 0x173   : > { %v2683_v62 = vunpack.c.l.b16 %v2643_v47  ;;  %v2229_v31 = vshll.u32 %v9270_v19, 16  ;;  %v9467_v47 = vld [vmem:[%s10439_s25 + $0x18] sm:$0xf] }
 0x174   : > { %v2451_v11 = vadd.f32 %v11172_v56, %v1793_v52  ;;  %v11226_v12 = vpop.f32.mrf.mxu1  ;;  %v1151_v56 = vld [vmem:[%s10439_s25 + $0xa8] sm:$0xe]  ;;  %v1290_v52 = vrot.slane %v1288_v24, 4  ;;  %v2214_v3 = vsel %vm10463_vm3, %v2209_v28, %v11211_v27  ;;  %v2224_v51 = vsel %vm10463_vm3, %v2219_v63, %v2223_v33 }
 0x175   : > { %v9083_v2 = vrot.slane %v1151_v56, 9  ;;  %v11264_v56 = vld [vmem:[%s10439_s25 + $0x1c] sm:$0xf]  ;;  %v2280_v28 = vunpack.c.l.b16 %v2214_v3  ;;  %v3220_v17 = vshll.u32 %v9467_v47, 16 }
 0x176   : > { %v11224_v38 = vpop.f32.mrf.mxu0  ;;  %v11233_v30 = vadd.f32 %v11154_v44, %v2451_v11  ;;  %v11237_v10 = vpop.f32.mrf.mxu3  ;;  %v2682_v44 = vunpack.c.l.b16 %v2640_v23  ;;  %v2235_v11 = vshll.u32 %v9271_v35, 16  ;;  %v1292_v8 = vsel %vm10677_vm6, %v1290_v52, %v1291_v18 }
 0x177   : > { %v1436_v40 = vpop.f32.mrf.mxu2  ;;  %v1289_v27 = vsel %vm10677_vm6, %v9083_v2, %v1288_v24  ;;  %v2241_v24 = vrot.slane %v2239_v26, 4  ;;  %v3226_v18 = vshll.u32 %v11264_v56, 16  ;;  %v9310_v2 = vld [vmem:[%s10439_s25 + $0xc0] sm:$0xe] }
 0x178   : > { %14527 = vst [vmem:[#allocation15_spill] sm:$0xff] %v11233_v30  ;;  %v1503_v4 = vadd.f32 %v1436_v40, %v10874_v49  ;;  %v2226_v49 = vshrl.u32 %v9270_v19, 16  ;;  %v9272_v19 = vld [vmem:[%s10439_s25 + $0xc8] sm:$0x1]  ;;  %v9326_v52 = vrot.slane %v9310_v2, 9  ;;  %v3222_v30 = vrot.slane %v3220_v17, 5 }
 0x179   : > { %9292 = vmatmul.msk.bf16.gmra.mxu0 %vm776_vm0, %v2297_v7  ;;  %v2245_v26 = vshll.u32 %v9272_v19, 16 }
 0x17a   : > { %v1794_v36 = vadd.f32 %v11184_v43, %v1503_v4  ;;  %v2700_v43 = vpack.c.b16 %v2683_v62, %v2682_v44  ;;  %v2228_v40 = vrot.slane %v2226_v49, 4  ;;  %v2231_v4 = vrot.slane %v2229_v31, 5 }
 0x17b   : > { %9223 = vmatmul.msk.bf16.gmra.mxu3 %vm776_vm0, %v10117_v45  ;;  %v2646_v45 = vrot.slane %v9271_v35, 5  ;;  %v3217_v62 = vshrl.u32 %v9467_v47, 16  ;;  %v2649_v49 = vrot.slane %v9272_v19, 5  ;;  %v1331_v31 = vunpack.c.l.b16 %v1289_v27  ;;  %v11296_v19 = vld [vmem:[%s10439_s25 + $0x20] sm:$0x1] }
 0x17c   : > { %9104 = vmatmul.msk.bf16.gmra.mxu2 %vm776_vm0, %v1348_v29  ;;  %v11253_v50 = vadd.f32 %v11197_v54, %v1794_v36  ;;  %v11260_v23 = vpop.f32.mrf.mxu1  ;;  %v2281_v54 = vunpack.c.l.b16 %v2224_v51  ;;  %v11271_v29 = vrot.slane %v2235_v11, 5  ;;  %v3230_v36 = vshrl.u32 %v11264_v56, 16 }
 0x17d   : > { %v2648_v3 = vrot.slane %v2646_v45, 4  ;;  %v1332_v11 = vunpack.c.l.b16 %v1292_v8  ;;  %v2647_v8 = vsel %vm10677_vm6, %v9326_v52, %v2646_v45  ;;  %v2247_v17 = vrot.slane %v2245_v26, 5  ;;  %v10118_v45 = vld [vmem:[%s10439_s25 + $0xc0] sm:$0xff] }
 0x17e   : > { %v11256_v7 = vpop.f32.mrf.mxu0  ;;  %v11268_v33 = vpop.f32.mrf.mxu3  ;;  %v2298_v35 = vpack.c.b16 %v2281_v54, %v2280_v28  ;;  %v2242_v47 = vor.u32 %v2241_v24, %v11271_v29  ;;  %v3232_v27 = vrot.slane %v3230_v36, 4  ;;  %v10269_v54 = vld [vmem:[%s10439_s25 + $0xb8] sm:$0xf]  ;;  %v2684_v52 = vunpack.c.l.b16 %v2647_v8 }
 0x17f   : > { %v1439_v63 = vpop.f32.mrf.mxu2  ;;  %9347 = vmatmul.msk.bf16.gmra.mxu1 %vm776_vm0, %v2700_v43  ;;  %v2650_v28 = vsel %vm10677_vm6, %v2648_v3, %v2649_v49  ;;  %v1349_v24 = vpack.c.b16 %v1332_v11, %v1331_v31  ;;  %v3236_v31 = vshll.u32 %v11296_v19, 16  ;;  %v10270_v11 = vld [vmem:[%s10439_s25 + $0xbc] sm:$0x1] }
 0x180   : > { %v1504_v44 = vadd.f32 %v1439_v63, %v10892_v55  ;;  %v2232_v55 = vor.u32 %v2231_v4, %v2228_v40  ;;  %v3219_v63 = vrot.slane %v3217_v62, 4  ;;  %v1295_v40 = vrot.slane %v10269_v54, 5  ;;  %v1152_v62 = vld [vmem:[%s10439_s25 + $0xb4] sm:$0xe] }
 0x181   : > { %v2243_v3 = vrot.slane %v2242_v47, 4  ;;  %v9084_v54 = vrot.slane %v1152_v62, 9  ;;  %v9470_v47 = vld [vmem:[%s10439_s25 + $0x24] sm:$0xf] }
 0x182   : > { %v1795_v51 = vadd.f32 %v11209_v48, %v1504_v44  ;;  %v11285_v48 = vrot.slane %v3226_v18, 5  ;;  %v2233_v36 = vrot.slane %v2232_v55, 4  ;;  %v3223_v49 = vor.u32 %v3222_v30, %v3219_v63  ;;  %v11318_v63 = vld [vmem:[%s10439_s25 + $0x28] sm:$0xf] }
 0x184   : > { %v2453_v43 = vadd.f32 %v11224_v38, %v1795_v51  ;;  %v11283_v2 = vpop.f32.mrf.mxu1  ;;  %v3233_v51 = vor.u32 %v3232_v27, %v11285_v48  ;;  %v2238_v30 = vsel %vm10463_vm3, %v2233_v36, %v11271_v29  ;;  %v3224_v8 = vrot.slane %v3223_v49, 4 }
 0x185   : > { %v3244_v36 = vshll.u32 %v9470_v47, 16 }
 0x186   : > { %v11281_v0 = vpop.f32.mrf.mxu0  ;;  %v11292_v38 = vadd.f32 %v11204_v16, %v2453_v43  ;;  %v11298_v44 = vpop.f32.mrf.mxu3  ;;  %v2685_v16 = vunpack.c.l.b16 %v2650_v28  ;;  %v1298_v43 = vrot.slane %v10270_v11, 5  ;;  %v3234_v28 = vrot.slane %v3233_v51, 4 }
 0x187   : > { %v1441_v4 = vpop.f32.mrf.mxu2 }
 0x188   : > { %14528 = vst [vmem:[#allocation16_spill] sm:$0xff] %v11292_v38  ;;  %v1505_v18 = vadd.f32 %v1441_v4, %v10912_v9  ;;  %v1297_v9 = vrot.slane %v1295_v40, 4  ;;  %v2701_v55 = vpack.c.b16 %v2685_v16, %v2684_v52  ;;  %v3238_v4 = vrot.slane %v3236_v31, 5 }
 0x189   : > { %9293 = vmatmul.msk.bf16.gmra.mxu0 %vm776_vm0, %v2298_v35  ;;  %v3250_v52 = vshll.u32 %v11318_v63, 16 }
 0x18a   : > { %v1796_v26 = vadd.f32 %v11237_v10, %v1505_v18  ;;  %v2248_v10 = vsel %vm10463_vm3, %v2243_v3, %v2247_v17  ;;  %v1299_v62 = vsel %vm10677_vm6, %v1297_v9, %v1298_v43  ;;  %v3254_v17 = vshrl.u32 %v11318_v63, 16 }
 0x18b   : > { %9224 = vmatmul.msk.bf16.gmra.mxu3 %vm776_vm0, %v10118_v45  ;;  %v3241_v45 = vshrl.u32 %v9470_v47, 16  ;;  %v2282_v3 = vunpack.c.l.b16 %v2238_v30  ;;  %v2283_v49 = vunpack.c.l.b16 %v2248_v10  ;;  %v3239_v51 = vsel %vm10463_vm3, %v3234_v28, %v3238_v4 }
 0x18c   : > { %9105 = vmatmul.msk.bf16.gmra.mxu2 %vm776_vm0, %v1349_v24  ;;  %v11310_v35 = vadd.f32 %v11256_v7, %v1796_v26  ;;  %v11322_v24 = vpop.f32.mrf.mxu1  ;;  %v1296_v7 = vsel %vm10677_vm6, %v9084_v54, %v1295_v40  ;;  %v3229_v40 = vsel %vm10463_vm3, %v3224_v8, %v11285_v48  ;;  %v1334_v43 = vunpack.c.l.b16 %v1299_v62  ;;  %v9537_v54 = vld [vmem:[%s10439_s25 + $0x18] sm:$0xe]  ;;  %v11344_v48 = vld [vmem:[%s10439_s25 + $0x2c] sm:$0x1] }
 0x18d   : > { %v1333_v11 = vunpack.c.l.b16 %v1296_v7  ;;  %v3892_v26 = vrot.slane %v11264_v56, 5  ;;  %v3246_v9 = vrot.slane %v3244_v36, 5  ;;  %v3252_v30 = vrot.slane %v3250_v52, 5 }
 0x18e   : > { %v2395_v27 = vpop.f32.mrf.mxu0  ;;  %v11328_v18 = vpop.f32.mrf.mxu3  ;;  %v3256_v47 = vrot.slane %v3254_v17, 4  ;;  %v2299_v10 = vpack.c.b16 %v2283_v49, %v2282_v3  ;;  %v3604_v38 = vunpack.c.l.b16 %v3239_v51  ;;  %v9553_v4 = vrot.slane %v9537_v54, 9 }
 0x18f   : > { %v1444_v29 = vpop.f32.mrf.mxu2  ;;  %9348 = vmatmul.msk.bf16.gmra.mxu1 %vm776_vm0, %v2701_v55  ;;  %v3894_v56 = vrot.slane %v3892_v26, 4  ;;  %v3260_v52 = vshll.u32 %v11344_v48, 16 }
 0x190   : > { %v1506_v16 = vadd.f32 %v1444_v29, %v10930_v58  ;;  %v3243_v58 = vrot.slane %v3241_v45, 4  ;;  %v3603_v29 = vunpack.c.l.b16 %v3229_v40  ;;  %v3895_v45 = vrot.slane %v11296_v19, 5 }
 0x191   : > { %v3893_v49 = vsel %vm10677_vm6, %v9553_v4, %v3892_v26 }
 0x192   : > { %v1797_v31 = vadd.f32 %v11268_v33, %v1506_v16  ;;  %v3247_v36 = vor.u32 %v3246_v9, %v3243_v58  ;;  %v1350_v16 = vpack.c.b16 %v1334_v43, %v1333_v11  ;;  %v3635_v3 = vpack.c.b16 %v3604_v38, %v3603_v29 }
 0x193   : > { %v3896_v19 = vsel %vm10677_vm6, %v3894_v56, %v3895_v45  ;;  %v4005_v43 = vunpack.c.l.b16 %v3893_v49 }
 0x194   : > { %v2455_v55 = vadd.f32 %v11281_v0, %v1797_v31  ;;  %v11346_v28 = vpop.f32.mrf.mxu1  ;;  %v3257_v0 = vor.u32 %v3256_v47, %v3252_v30  ;;  %v3248_v40 = vrot.slane %v3247_v36, 4  ;;  %v3262_v31 = vrot.slane %v3260_v52, 5 }
 0x195   : > { %v4006_v26 = vunpack.c.l.b16 %v3896_v19  ;;  %v3899_v52 = vrot.slane %v11318_v63, 5 }
 0x196   : > { %v2398_v8 = vpop.f32.mrf.mxu0  ;;  %v11349_v33 = vadd.f32 %v11260_v23, %v2455_v55  ;;  %v1742_v62 = vpop.f32.mrf.mxu3  ;;  %v3258_v51 = vrot.slane %v3257_v0, 4  ;;  %v3253_v47 = vsel %vm10463_vm3, %v3248_v40, %v3252_v30  ;;  %v11383_v40 = vld [vmem:[%s10439_s25 + $0x38] sm:$0x1] }
 0x197   : > { %v1446_v7 = vpop.f32.mrf.mxu2  ;;  %v4037_v45 = vpack.c.b16 %v4006_v26, %v4005_v43  ;;  %v3605_v36 = vunpack.c.l.b16 %v3253_v47  ;;  %v3901_v43 = vrot.slane %v3899_v52, 4 }
 0x198   : > { %v1507_v17 = vadd.f32 %v1446_v7, %v10950_v42  ;;  %v9473_v42 = vld [vmem:[%s10439_s25 + $0x30] sm:$0xf] }
 0x199   : > { %9294 = vmatmul.msk.bf16.gmra.mxu0 %vm776_vm0, %v2299_v10  ;;  %v3265_v55 = vshrl.u32 %v9473_v42, 16  ;;  %v3268_v29 = vshll.u32 %v9473_v42, 16 }
 0x19a   : > { %v1798_v23 = vadd.f32 %v11298_v44, %v1507_v17  ;;  %v11368_v44 = vld [vmem:[%s10439_s25 + $0x34] sm:$0xf] }
 0x19b   : > { %9521 = vmatmul.msk.bf16.vlgmr.msra.gmra.mxu3 %vm776_vm0, %v3635_v3  ;;  %v3274_v4 = vshll.u32 %v11368_v44, 16  ;;  %v3278_v56 = vshrl.u32 %v11368_v44, 16  ;;  %v3267_v30 = vrot.slane %v3265_v55, 4  ;;  %v3270_v3 = vrot.slane %v3268_v29, 5 }
 0x19c   : > { %9106 = vmatmul.msk.bf16.gmra.mxu2 %vm776_vm0, %v1350_v16  ;;  %v11361_v54 = vadd.f32 %v2395_v27, %v1798_v23  ;;  %v11365_v38 = vpop.f32.mrf.mxu1  ;;  %v3263_v27 = vsel %vm10463_vm3, %v3258_v51, %v3262_v31  ;;  %v9538_v16 = vld [vmem:[%s10439_s25 + $0x24] sm:$0xe] }
 0x19d   : > { %v3606_v0 = vunpack.c.l.b16 %v3263_v27  ;;  %v3276_v23 = vrot.slane %v3274_v4, 5  ;;  %v9554_v63 = vrot.slane %v9538_v16, 9  ;;  %v3271_v47 = vor.u32 %v3270_v3, %v3267_v30 }
 0x19e   : > { %v2400_v11 = vpop.f32.mrf.mxu0  ;;  %v1745_v9 = vpop.f32.mrf.mxu3 }
 0x19f   : > { %v1449_v58 = vpop.f32.mrf.mxu2  ;;  %v3636_v42 = vpack.c.b16 %v3606_v0, %v3605_v36  ;;  %v9476_v36 = vld [vmem:[%s10439_s25 + $0x3c] sm:$0xf] }
 0x1a0   : > { %v1508_v10 = vadd.f32 %v1449_v58, %v10968_v34  ;;  %v3280_v34 = vrot.slane %v3278_v56, 4  ;;  %v10122_v58 = vld [vmem:[%s10439_s25 + $0x18] sm:$0xff] }
 0x1a2   : > { %v1799_v7 = vadd.f32 %v11328_v18, %v1508_v10  ;;  %v3281_v27 = vor.u32 %v3280_v34, %v3276_v23  ;;  %v3900_v10 = vsel %vm10677_vm6, %v9554_v63, %v3899_v52  ;;  %v3289_v34 = vshrl.u32 %v9476_v36, 16 }
 0x1a3   : > { %v4007_v30 = vunpack.c.l.b16 %v3900_v10 }
 0x1a4   : > { %v2457_v17 = vadd.f32 %v2398_v8, %v1799_v7  ;;  %v11380_v19 = vpop.f32.mrf.mxu1  ;;  %v3902_v8 = vrot.slane %v11344_v48, 5  ;;  %v3282_v4 = vrot.slane %v3281_v27, 4  ;;  %v3291_v10 = vrot.slane %v3289_v34, 4 }
 0x1a6   : > { %v2403_v49 = vpop.f32.mrf.mxu0  ;;  %v11386_v51 = vadd.f32 %v11322_v24, %v2457_v17  ;;  %v11388_v31 = vpop.f32.mrf.mxu3  ;;  %v3284_v24 = vshll.u32 %v11383_v40, 16  ;;  %v3903_v29 = vsel %vm10677_vm6, %v3901_v43, %v3902_v8  ;;  %v10159_v8 = vld [vmem:[%s14507_s3 + $0x10] sm:$0xff] }
 0x1a7   : > { %v1451_v18 = vpop.f32.mrf.mxu2  ;;  %v4008_v17 = vunpack.c.l.b16 %v3903_v29  ;;  %5325 = vmatpush.bf16.msra.mxu1 %v10159_v8 }
 0x1a8   : > { %v1509_v26 = vadd.f32 %v1451_v18, %v10990_v22  ;;  %v3272_v22 = vrot.slane %v3271_v47, 4  ;;  %v3286_v56 = vrot.slane %v3284_v24, 5  ;;  %v3292_v18 = vshll.u32 %v9476_v36, 16  ;;  %v9539_v24 = vld [vmem:[%s10439_s25 + $0x30] sm:$0xe] }
 0x1a9   : > { %9575 = vmatmul.msk.bf16.vlgmr.msra.gmra.mxu0 %vm776_vm0, %v4037_v45  ;;  %v3906_v47 = vrot.slane %v11368_v44, 5  ;;  %v10123_v44 = vld [vmem:[%s10439_s25 + $0x24] sm:$0xff] }
 0x1aa   : > { %v1800_v55 = vadd.f32 %v1742_v62, %v1509_v26  ;;  %v11407_v62 = vld [vmem:[%s10439_s25 + $0x40] sm:$0xf]  ;;  %v3287_v3 = vsel %vm10463_vm3, %v3282_v4, %v3286_v56  ;;  %v3294_v29 = vrot.slane %v3292_v18, 5  ;;  %v11429_v56 = vld [vmem:[%s10439_s25 + $0x44] sm:$0x1] }
 0x1ab   : > { %9522 = vmatmul.msk.bf16.gmra.mxu3 %vm776_vm0, %v3636_v42  ;;  %v3298_v42 = vshll.u32 %v11407_v62, 16  ;;  %v3302_v63 = vshrl.u32 %v11407_v62, 16 }
 0x1ac   : > { %9451 = vmatmul.msk.bf16.vlgmr.msra.gmra.mxu2 %vm776_vm0, %v10122_v58  ;;  %v11400_v48 = vadd.f32 %v2400_v11, %v1800_v55  ;;  %v11403_v45 = vpop.f32.mrf.mxu1  ;;  %v3277_v11 = vsel %vm10463_vm3, %v3272_v22, %v3276_v23  ;;  %v3608_v23 = vunpack.c.l.b16 %v3287_v3  ;;  %v3295_v3 = vor.u32 %v3294_v29, %v3291_v10 }
 0x1ad   : > { %v3607_v58 = vunpack.c.l.b16 %v3277_v11  ;;  %v3304_v22 = vrot.slane %v3302_v63, 4  ;;  %v3909_v11 = vrot.slane %v11383_v40, 5  ;;  %v9479_v63 = vld [vmem:[%s10439_s25 + $0x48] sm:$0xf] }
 0x1ae   : > { %v2405_v7 = vpop.f32.mrf.mxu0  ;;  %v11409_v52 = vpop.f32.mrf.mxu3  ;;  %v3316_v10 = vshll.u32 %v9479_v63, 16 }
 0x1af   : > { %v1454_v0 = vpop.f32.mrf.mxu2 }
 0x1b0   : > { %v1510_v16 = vadd.f32 %v1454_v0, %v10732_v59  ;;  %v4038_v59 = vpack.c.b16 %v4008_v17, %v4007_v30  ;;  %v3637_v30 = vpack.c.b16 %v3608_v23, %v3607_v58  ;;  %v9555_v17 = vrot.slane %v9539_v24, 9 }
 0x1b1   : > { %v3313_v24 = vshrl.u32 %v9479_v63, 16 }
 0x1b2   : > { %v1801_v43 = vadd.f32 %v1745_v9, %v1510_v16  ;;  %v3300_v9 = vrot.slane %v3298_v42, 5  ;;  %v3908_v16 = vrot.slane %v3906_v47, 4 }
 0x1b4   : > { %v2459_v26 = vadd.f32 %v2403_v49, %v1801_v43  ;;  %v11423_v55 = vpop.f32.mrf.mxu1  ;;  %v3305_v34 = vor.u32 %v3304_v22, %v3300_v9  ;;  %v11445_v43 = vld [vmem:[%s10439_s25 + $0x4c] sm:$0xf]  ;;  %v3910_v40 = vsel %vm10677_vm6, %v3908_v16, %v3909_v11  ;;  %v3913_v16 = vrot.slane %v11407_v62, 5  ;;  %v9540_v11 = vld [vmem:[%s10439_s25 + $0x3c] sm:$0xe] }
 0x1b5   : > { %14529 = vst [vmem:[#allocation17_spill] sm:$0xff] %v11423_v55  ;;  %v3322_v29 = vshll.u32 %v11445_v43, 16 }
 0x1b6   : > { %v2408_v27 = vpop.f32.mrf.mxu0  ;;  %v11426_v4 = vadd.f32 %v11365_v38, %v2459_v26  ;;  %v1752_v36 = vpop.f32.mrf.mxu3  ;;  %v3308_v38 = vshll.u32 %v11429_v56, 16  ;;  %v3306_v26 = vrot.slane %v3305_v34, 4  ;;  %v3318_v34 = vrot.slane %v3316_v10, 5 }
 0x1b7   : > { %v1456_v49 = vpop.f32.mrf.mxu2 }
 0x1b8   : > { %v1511_v0 = vadd.f32 %v1456_v49, %v10747_v37  ;;  %v3907_v37 = vsel %vm10677_vm6, %v9555_v17, %v3906_v47  ;;  %v3326_v47 = vshrl.u32 %v11445_v43, 16 }
 0x1b9   : > { %9576 = vmatmul.msk.bf16.gmra.mxu0 %vm776_vm0, %v4038_v59  ;;  %v3296_v59 = vrot.slane %v3295_v3, 4  ;;  %v4009_v49 = vunpack.c.l.b16 %v3907_v37  ;;  %v3315_v3 = vrot.slane %v3313_v24, 4  ;;  %v3916_v24 = vrot.slane %v11429_v56, 5 }
 0x1ba   : > { %v1802_v18 = vadd.f32 %v11388_v31, %v1511_v0  ;;  %v3310_v31 = vrot.slane %v3308_v38, 5  ;;  %v4010_v0 = vunpack.c.l.b16 %v3910_v40  ;;  %v3324_v38 = vrot.slane %v3322_v29, 5 }
 0x1bb   : > { %9523 = vmatmul.msk.bf16.gmra.mxu3 %vm776_vm0, %v3637_v30  ;;  %v3319_v10 = vor.u32 %v3318_v34, %v3315_v3  ;;  %v9482_v3 = vld [vmem:[%s10439_s25 + $0x54] sm:$0xf] }
 0x1bc   : > { %9452 = vmatmul.msk.bf16.gmra.mxu2 %vm776_vm0, %v10123_v44  ;;  %v11438_v42 = vadd.f32 %v2405_v7, %v1802_v18  ;;  %v11449_v58 = vpop.f32.mrf.mxu1  ;;  %v3301_v44 = vsel %vm10463_vm3, %v3296_v59, %v3300_v9  ;;  %v3311_v30 = vsel %vm10463_vm3, %v3306_v26, %v3310_v31  ;;  %v3328_v18 = vrot.slane %v3326_v47, 4 }
 0x1bd   : > { %v3609_v37 = vunpack.c.l.b16 %v3301_v44  ;;  %v3610_v40 = vunpack.c.l.b16 %v3311_v30  ;;  %v9556_v26 = vrot.slane %v9540_v11, 9  ;;  %v3320_v30 = vrot.slane %v3319_v10, 4 }
 0x1be   : > { %v2410_v8 = vpop.f32.mrf.mxu0  ;;  %v1755_v23 = vpop.f32.mrf.mxu3  ;;  %v3329_v29 = vor.u32 %v3328_v18, %v3324_v38  ;;  %v11484_v18 = vld [vmem:[%s10439_s25 + $0x58] sm:$0xf] }
 0x1bf   : > { %v1459_v7 = vpop.f32.mrf.mxu2  ;;  %v3914_v44 = vsel %vm10677_vm6, %v9556_v26, %v3913_v16  ;;  %v3337_v26 = vshrl.u32 %v9482_v3, 16 }
 0x1c0   : > { %v1512_v22 = vadd.f32 %v1459_v7, %v10769_v5  ;;  %v4039_v5 = vpack.c.b16 %v4010_v0, %v4009_v49  ;;  %v11462_v7 = vld [vmem:[%s10439_s25 + $0x50] sm:$0x1]  ;;  %v3638_v49 = vpack.c.b16 %v3610_v40, %v3609_v37  ;;  %v3325_v37 = vsel %vm10463_vm3, %v3320_v30, %v3324_v38 }
 0x1c1   : > { %v3339_v38 = vrot.slane %v3337_v26, 4 }
 0x1c2   : > { %v1803_v17 = vadd.f32 %v11409_v52, %v1512_v22  ;;  %v3915_v52 = vrot.slane %v3913_v16, 4  ;;  %v10124_v22 = vld [vmem:[%s10439_s25 + $0x30] sm:$0xff] }
 0x1c4   : > { %v2461_v63 = vadd.f32 %v2408_v27, %v1803_v17  ;;  %v3332_v27 = vshll.u32 %v11462_v7, 16  ;;  %v3917_v56 = vsel %vm10677_vm6, %v3915_v52, %v3916_v24  ;;  %v3330_v17 = vrot.slane %v3329_v29, 4 }
 0x1c5   : > { %v3340_v52 = vshll.u32 %v9482_v3, 16  ;;  %v3350_v24 = vshrl.u32 %v11484_v18, 16 }
 0x1c6   : > { %v2413_v9 = vpop.f32.mrf.mxu0  ;;  %v11465_v59 = vadd.f32 %v11403_v45, %v2461_v63  ;;  %v1757_v62 = vpop.f32.mrf.mxu3  ;;  %v3334_v11 = vrot.slane %v3332_v27, 5  ;;  %v4012_v63 = vunpack.c.l.b16 %v3917_v56 }
 0x1c7   : > { %v1461_v31 = vpop.f32.mrf.mxu2  ;;  %v11472_v45 = vpop.f32.mrf.mxu1  ;;  %v3342_v56 = vrot.slane %v3340_v52, 5 }
 0x1c8   : > { %v1513_v47 = vadd.f32 %v1461_v31, %v10785_v46  ;;  %14530 = vst [vmem:[#allocation18_spill] sm:$0xff] %v11472_v45  ;;  %v3335_v40 = vsel %vm10463_vm3, %v3330_v17, %v3334_v11  ;;  %v3346_v31 = vshll.u32 %v11484_v18, 16  ;;  %v11496_v11 = vld [vmem:[%s10439_s25 + $0x5c] sm:$0x1] }
 0x1c9   : > { %9577 = vmatmul.msk.bf16.gmra.mxu0 %vm776_vm0, %v4039_v5  ;;  %v3343_v26 = vor.u32 %v3342_v56, %v3339_v38  ;;  %v3356_v52 = vshll.u32 %v11496_v11, 16  ;;  %v9485_v38 = vld [vmem:[%s10439_s25 + $0x60] sm:$0xf]  ;;  %v14560_v45 = vld [vmem:[#allocation14_spill] sm:$0xff] }
 0x1ca   : > { %v1804_v0 = vadd.f32 %v1752_v36, %v1513_v47  ;;  %v4011_v36 = vunpack.c.l.b16 %v3914_v44  ;;  %v3611_v47 = vunpack.c.l.b16 %v3325_v37  ;;  %v9541_v44 = vld [vmem:[%s10439_s25 + $0x48] sm:$0xe]  ;;  %v3348_v30 = vrot.slane %v3346_v31, 5 }
 0x1cb   : > { %9524 = vmatmul.msk.bf16.gmra.mxu3 %vm776_vm0, %v3638_v49  ;;  %v3920_v49 = vrot.slane %v11445_v43, 5  ;;  %v3923_v43 = vrot.slane %v11462_v7, 5 }
 0x1cc   : > { %9453 = vmatmul.msk.bf16.gmra.mxu2 %vm776_vm0, %v10124_v22  ;;  %v11479_v46 = vadd.f32 %v2410_v8, %v1804_v0  ;;  %v4040_v29 = vpack.c.b16 %v4012_v63, %v4011_v36  ;;  %v3612_v22 = vunpack.c.l.b16 %v3335_v40 }
 0x1cd   : > { %v3922_v37 = vrot.slane %v3920_v49, 4 }
 0x1ce   : > { %v2415_v34 = vpop.f32.mrf.mxu0  ;;  %v1760_v16 = vpop.f32.mrf.mxu3  ;;  %v3639_v63 = vpack.c.b16 %v3612_v22, %v3611_v47  ;;  %v3358_v47 = vrot.slane %v3356_v52, 5 }
 0x1cf   : > { %v1464_v5 = vpop.f32.mrf.mxu2  ;;  %v2820_v27 = vpop.f32.mrf.mxu1 }
 0x1d0   : > { %v1514_v8 = vadd.f32 %v1464_v5, %v10807_v20  ;;  %v3352_v20 = vrot.slane %v3350_v24, 4  ;;  %v9557_v5 = vrot.slane %v9541_v44, 9  ;;  %v3924_v24 = vsel %vm10677_vm6, %v3922_v37, %v3923_v43 }
 0x1d1   : > { %v4014_v56 = vunpack.c.l.b16 %v3924_v24 }
 0x1d2   : > { %v1805_v10 = vadd.f32 %v1755_v23, %v1514_v8  ;;  %v3353_v8 = vor.u32 %v3352_v20, %v3348_v30  ;;  %v3921_v31 = vsel %vm10677_vm6, %v9557_v5, %v3920_v49  ;;  %v3364_v5 = vshll.u32 %v9485_v38, 16 }
 0x1d3   : > { %v4013_v44 = vunpack.c.l.b16 %v3921_v31 }
 0x1d4   : > { %v2463_v0 = vadd.f32 %v2413_v9, %v1805_v10  ;;  %v10125_v9 = vld [vmem:[%s10439_s25 + $0x3c] sm:$0xff]  ;;  %v3344_v10 = vrot.slane %v3343_v26, 4  ;;  %v3366_v24 = vrot.slane %v3364_v5, 5 }
 0x1d6   : > { %v2418_v17 = vpop.f32.mrf.mxu0  ;;  %v11499_v3 = vadd.f32 %v11449_v58, %v2463_v0  ;;  %v1762_v36 = vpop.f32.mrf.mxu3 }
 0x1d7   : > { %v1466_v23 = vpop.f32.mrf.mxu2 }
 0x1d8   : > { %14531 = vst [vmem:[#allocation19_spill] sm:$0xff] %v11499_v3  ;;  %v1515_v40 = vadd.f32 %v1466_v23, %v10823_v60  ;;  %v11514_v60 = vpop.f32.mrf.mxu1 }
 0x1d9   : > { %9578 = vmatmul.msk.bf16.gmra.mxu0 %vm776_vm0, %v4040_v29  ;;  %14533 = vst [vmem:[#allocation21_spill] sm:$0xff] %v11514_v60  ;;  %v3354_v29 = vrot.slane %v3353_v8, 4 }
 0x1da   : > { %v1806_v58 = vadd.f32 %v1757_v62, %v1515_v40  ;;  %v11518_v62 = vld [vmem:[%s10439_s25 + $0x64] sm:$0xf] }
 0x1db   : > { %9525 = vmatmul.msk.bf16.gmra.mxu3 %vm776_vm0, %v3639_v63  ;;  %v3359_v23 = vsel %vm10463_vm3, %v3354_v29, %v3358_v47  ;;  %v3361_v63 = vshrl.u32 %v9485_v38, 16  ;;  %v3370_v37 = vshll.u32 %v11518_v62, 16  ;;  %v3374_v43 = vshrl.u32 %v11518_v62, 16 }
 0x1dc   : > { %9454 = vmatmul.msk.bf16.gmra.mxu2 %vm776_vm0, %v10125_v9  ;;  %v11511_v7 = vadd.f32 %v2415_v34, %v1806_v58  ;;  %v3349_v34 = vsel %vm10463_vm3, %v3344_v10, %v3348_v30  ;;  %v4041_v9 = vpack.c.b16 %v4014_v56, %v4013_v44  ;;  %v3614_v52 = vunpack.c.l.b16 %v3359_v23  ;;  %v9542_v30 = vld [vmem:[%s10439_s25 + $0x54] sm:$0xe]  ;;  %v10126_v44 = vld [vmem:[%s10439_s25 + $0x48] sm:$0xff] }
 0x1dd   : > { %v3613_v8 = vunpack.c.l.b16 %v3349_v34  ;;  %v3363_v31 = vrot.slane %v3361_v63, 4  ;;  %v3372_v10 = vrot.slane %v3370_v37, 5  ;;  %v3376_v29 = vrot.slane %v3374_v43, 4  ;;  %v11547_v43 = vld [vmem:[%s10439_s25 + $0x70] sm:$0xf] }
 0x1de   : > { %14532 = vst [vmem:[#allocation20_spill] sm:$0xff] %v11511_v7  ;;  %v2420_v22 = vpop.f32.mrf.mxu0  ;;  %v1765_v49 = vpop.f32.mrf.mxu3  ;;  %v9558_v56 = vrot.slane %v9542_v30, 9  ;;  %v3930_v34 = vrot.slane %v11496_v11, 5 }
 0x1df   : > { %v1469_v0 = vpop.f32.mrf.mxu2  ;;  %v3367_v23 = vor.u32 %v3366_v24, %v3363_v31  ;;  %v3394_v31 = vshll.u32 %v11547_v43, 16  ;;  %v3398_v24 = vshrl.u32 %v11547_v43, 16 }
 0x1e0   : > { %v1516_v20 = vadd.f32 %v1469_v0, %v10845_v41  ;;  %v3927_v41 = vrot.slane %v11484_v18, 5  ;;  %v2825_v38 = vpop.f32.mrf.mxu1  ;;  %v11532_v0 = vld [vmem:[%s10439_s25 + $0x68] sm:$0x1]  ;;  %v3640_v18 = vpack.c.b16 %v3614_v52, %v3613_v8 }
 0x1e1   : > { %v3380_v63 = vshll.u32 %v11532_v0, 16 }
 0x1e2   : > { %v1807_v40 = vadd.f32 %v1760_v16, %v1516_v20  ;;  %v3929_v20 = vrot.slane %v3927_v41, 4 }
 0x1e4   : > { %v2465_v26 = vadd.f32 %v2418_v17, %v1807_v40  ;;  %v3931_v11 = vsel %vm10677_vm6, %v3929_v20, %v3930_v34  ;;  %v3934_v34 = vrot.slane %v11518_v62, 5  ;;  %v3937_v62 = vrot.slane %v11532_v0, 5 }
 0x1e6   : > { %v2423_v58 = vpop.f32.mrf.mxu0  ;;  %v11529_v47 = vadd.f32 %v2820_v27, %v2465_v26  ;;  %v1767_v16 = vpop.f32.mrf.mxu3  ;;  %v3377_v27 = vor.u32 %v3376_v29, %v3372_v10 }
 0x1e7   : > { %v1471_v60 = vpop.f32.mrf.mxu2 }
 0x1e8   : > { %14534 = vst [vmem:[#allocation22_spill] sm:$0xff] %v11529_v47  ;;  %v1517_v17 = vadd.f32 %v1471_v60, %v10861_v57  ;;  %v3928_v57 = vsel %vm10677_vm6, %v9558_v56, %v3927_v41  ;;  %v9488_v60 = vld [vmem:[%s10439_s25 + $0x6c] sm:$0xf]  ;;  %v3378_v26 = vrot.slane %v3377_v27, 4 }
 0x1e9   : > { %9579 = vmatmul.msk.bf16.gmra.mxu0 %vm776_vm0, %v4041_v9  ;;  %v3368_v9 = vrot.slane %v3367_v23, 4  ;;  %v3388_v30 = vshll.u32 %v9488_v60, 16  ;;  %v4015_v29 = vunpack.c.l.b16 %v3928_v57  ;;  %v9543_v23 = vld [vmem:[%s10439_s25 + $0x60] sm:$0xe] }
 0x1ea   : > { %v1808_v5 = vadd.f32 %v1762_v36, %v1517_v17  ;;  %v3382_v36 = vrot.slane %v3380_v63, 5  ;;  %v4016_v17 = vunpack.c.l.b16 %v3931_v11 }
 0x1eb   : > { %9526 = vmatmul.msk.bf16.gmra.mxu3 %vm776_vm0, %v3640_v18  ;;  %v3373_v18 = vsel %vm10463_vm3, %v3368_v9, %v3372_v10  ;;  %v3390_v63 = vrot.slane %v3388_v30, 5  ;;  %v9559_v9 = vrot.slane %v9543_v23, 9 }
 0x1ec   : > { %9455 = vmatmul.msk.bf16.gmra.mxu2 %vm776_vm0, %v10126_v44  ;;  %v11540_v37 = vadd.f32 %v2420_v22, %v1808_v5  ;;  %v3385_v22 = vshrl.u32 %v9488_v60, 16  ;;  %v11554_v44 = vpop.f32.mrf.mxu1  ;;  %v3383_v56 = vsel %vm10463_vm3, %v3378_v26, %v3382_v36  ;;  %v3396_v5 = vrot.slane %v3394_v31, 5 }
 0x1ed   : > { %14536 = vst [vmem:[#allocation24_spill] sm:$0xff] %v11554_v44  ;;  %v3400_v60 = vrot.slane %v3398_v24, 4  ;;  %v4042_v57 = vpack.c.b16 %v4016_v17, %v4015_v29  ;;  %v3615_v11 = vunpack.c.l.b16 %v3373_v18  ;;  %v11563_v44 = vld [vmem:[%s10439_s25 + $0x74] sm:$0x1]  ;;  %v3936_v26 = vrot.slane %v3934_v34, 4 }
 0x1ee   : > { %14535 = vst [vmem:[#allocation23_spill] sm:$0xff] %v11540_v37  ;;  %v2425_v40 = vpop.f32.mrf.mxu0  ;;  %v1770_v52 = vpop.f32.mrf.mxu3  ;;  %v3387_v27 = vrot.slane %v3385_v22, 4  ;;  %v10127_v24 = vld [vmem:[%s10439_s25 + $0x54] sm:$0xff]  ;;  %v3935_v17 = vsel %vm10677_vm6, %v9559_v9, %v3934_v34 }
 0x1ef   : > { %v1474_v8 = vpop.f32.mrf.mxu2  ;;  %v3401_v30 = vor.u32 %v3400_v60, %v3396_v5  ;;  %v3938_v0 = vsel %vm10677_vm6, %v3936_v26, %v3937_v62 }
 0x1f0   : > { %v1518_v41 = vadd.f32 %v1474_v8, %v10883_v61  ;;  %v3616_v8 = vunpack.c.l.b16 %v3383_v56  ;;  %v3391_v22 = vor.u32 %v3390_v63, %v3387_v27  ;;  %v11582_v63 = vld [vmem:[%s10439_s25 + $0x7c] sm:$0xf]  ;;  %v4018_v60 = vunpack.c.l.b16 %v3938_v0 }
 0x1f1   : > { %v3402_v56 = vrot.slane %v3401_v30, 4  ;;  %v3418_v26 = vshll.u32 %v11582_v63, 16 }
 0x1f2   : > { %v1809_v20 = vadd.f32 %v1765_v49, %v1518_v41  ;;  %v3641_v41 = vpack.c.b16 %v3616_v8, %v3615_v11  ;;  %v3392_v18 = vrot.slane %v3391_v22, 4 }
 0x1f4   : > { %v2467_v61 = vadd.f32 %v2423_v58, %v1809_v20  ;;  %v3404_v58 = vshll.u32 %v11563_v44, 16  ;;  %v2830_v29 = vpop.f32.mrf.mxu1 }
 0x1f6   : > { %v2428_v37 = vpop.f32.mrf.mxu0  ;;  %v11565_v10 = vadd.f32 %v2825_v38, %v2467_v61  ;;  %v1772_v36 = vpop.f32.mrf.mxu3  ;;  %v3406_v20 = vrot.slane %v3404_v58, 5 }
 0x1f7   : > { %v1476_v49 = vpop.f32.mrf.mxu2 }
 0x1f8   : > { %14537 = vst [vmem:[#allocation25_spill] sm:$0xff] %v11565_v10  ;;  %v1519_v31 = vadd.f32 %v1476_v49, %v10899_v39  ;;  %v9491_v39 = vld [vmem:[%s10439_s25 + $0x78] sm:$0xf]  ;;  %v3407_v11 = vsel %vm10463_vm3, %v3402_v56, %v3406_v20  ;;  %v3422_v49 = vshrl.u32 %v11582_v63, 16  ;;  %v11598_v56 = vld [vmem:[%s10439_s25 + $0x80] sm:$0x1] }
 0x1f9   : > { %9580 = vmatmul.msk.bf16.gmra.mxu0 %vm776_vm0, %v4042_v57  ;;  %v3397_v57 = vsel %vm10463_vm3, %v3392_v18, %v3396_v5  ;;  %v3412_v9 = vshll.u32 %v9491_v39, 16  ;;  %v3618_v58 = vunpack.c.l.b16 %v3407_v11  ;;  %v10128_v11 = vld [vmem:[%s10439_s25 + $0x60] sm:$0xff] }
 0x1fa   : > { %v1810_v38 = vadd.f32 %v1767_v16, %v1519_v31  ;;  %v4017_v16 = vunpack.c.l.b16 %v3935_v17  ;;  %v3617_v30 = vunpack.c.l.b16 %v3397_v57  ;;  %v3941_v31 = vrot.slane %v11547_v43, 5 }
 0x1fb   : > { %9527 = vmatmul.msk.bf16.gmra.mxu3 %vm776_vm0, %v3641_v41  ;;  %v3414_v17 = vrot.slane %v3412_v9, 5  ;;  %v3424_v0 = vrot.slane %v3422_v49, 4 }
 0x1fc   : > { %9456 = vmatmul.msk.bf16.gmra.mxu2 %vm776_vm0, %v10127_v24  ;;  %v11577_v23 = vadd.f32 %v2425_v40, %v1810_v38  ;;  %v3409_v40 = vshrl.u32 %v9491_v39, 16  ;;  %v4043_v22 = vpack.c.b16 %v4018_v60, %v4017_v16  ;;  %v11594_v41 = vpop.f32.mrf.mxu1  ;;  %v9544_v38 = vld [vmem:[%s10439_s25 + $0x6c] sm:$0xe]  ;;  %v3642_v16 = vpack.c.b16 %v3618_v58, %v3617_v30 }
 0x1fd   : > { %14539 = vst [vmem:[#allocation27_spill] sm:$0xff] %v11594_v41  ;;  %v9560_v60 = vrot.slane %v9544_v38, 9  ;;  %v3943_v43 = vrot.slane %v3941_v31, 4 }
 0x1fe   : > { %14538 = vst [vmem:[#allocation26_spill] sm:$0xff] %v11577_v23  ;;  %v2430_v27 = vpop.f32.mrf.mxu0  ;;  %v11584_v34 = vpop.f32.mrf.mxu3  ;;  %v3411_v24 = vrot.slane %v3409_v40, 4  ;;  %v14555_v23 = vld [vmem:[#allocation13_spill] sm:$0xff] }
 0x1ff   : > { %v1479_v61 = vpop.f32.mrf.mxu2 }
 0x200   : > { %v1520_v8 = vadd.f32 %v1479_v61, %v10921_v25  ;;  %v3420_v25 = vrot.slane %v3418_v26, 5  ;;  %v14541_v61 = vld [vmem:[#allocation7_spill] sm:$0xff]  ;;  %v3415_v40 = vor.u32 %v3414_v17, %v3411_v24  ;;  %v3942_v26 = vsel %vm10677_vm6, %v9560_v60, %v3941_v31 }
 0x201   : > { %v4019_v17 = vunpack.c.l.b16 %v3942_v26  ;;  %v9545_v26 = vld [vmem:[%s10439_s25 + $0x78] sm:$0xe] }
 0x202   : > { %v1811_v62 = vadd.f32 %v1770_v52, %v1520_v8  ;;  %v3425_v8 = vor.u32 %v3424_v0, %v3420_v25 }
 0x204   : > { %v2469_v5 = vadd.f32 %v2428_v37, %v1811_v62  ;;  %v3944_v37 = vrot.slane %v11563_v44, 5  ;;  %v3416_v62 = vrot.slane %v3415_v40, 4  ;;  %v2835_v24 = vpop.f32.mrf.mxu1 }
 0x206   : > { %v2433_v18 = vpop.f32.mrf.mxu0  ;;  %v11600_v20 = vadd.f32 %v2830_v29, %v2469_v5  ;;  %v11602_v39 = vpop.f32.mrf.mxu3  ;;  %v3428_v29 = vshll.u32 %v11598_v56, 16  ;;  %v3945_v49 = vsel %vm10677_vm6, %v3943_v43, %v3944_v37  ;;  %v11621_v5 = vld [vmem:[%s10439_s25 + $0x88] sm:$0xf]  ;;  %v3421_v60 = vsel %vm10463_vm3, %v3416_v62, %v3420_v25 }
 0x207   : > { %v1481_v52 = vpop.f32.mrf.mxu2  ;;  %v4020_v0 = vunpack.c.l.b16 %v3945_v49  ;;  %v3948_v49 = vrot.slane %v11582_v63, 5  ;;  %v11658_v63 = vld [vmem:[%s10439_s25 + $0x8c] sm:$0x1] }
 0x208   : > { %14540 = vst [vmem:[#allocation28_spill] sm:$0xff] %v11600_v20  ;;  %v1521_v57 = vadd.f32 %v1481_v52, %v14541_v61  ;;  %v3430_v30 = vrot.slane %v3428_v29, 5  ;;  %v10338_v52 = vmov 0   ;;  %v3619_v29 = vunpack.c.l.b16 %v3421_v60 }
 0x209   : > { %9581 = vmatmul.msk.bf16.gmra.mxu0 %vm776_vm0, %v4043_v22  ;;  %v3426_v22 = vrot.slane %v3425_v8, 4  ;;  %229 = vst.msk [vmem:[#allocation2 + $0xc] sm:$0xf] %vm224_vm7, %v10338_v52  ;;  %v4044_v25 = vpack.c.b16 %v4020_v0, %v4019_v17  ;;  %v10129_v0 = vld [vmem:[%s10439_s25 + $0x6c] sm:$0xff] }
 0x20a   : > { %v1812_v9 = vadd.f32 %v1772_v36, %v1521_v57  ;;  %v9494_v36 = vld [vmem:[%s10439_s25 + $0x84] sm:$0xf]  ;;  %225 = vst.msk [vmem:[#allocation2] sm:$0xf] %vm224_vm7, %v10338_v52  ;;  %v3442_v57 = vshll.u32 %v11621_v5, 16 }
 0x20b   : > { %9528 = vmatmul.msk.bf16.gmra.mxu3 %vm776_vm0, %v3642_v16  ;;  %v3431_v43 = vsel %vm10463_vm3, %v3426_v22, %v3430_v30  ;;  %226 = vst.msk [vmem:[#allocation2 + $0x4] sm:$0xf] %vm224_vm7, %v10338_v52  ;;  %v3433_v37 = vshrl.u32 %v9494_v36, 16  ;;  %v3436_v61 = vshll.u32 %v9494_v36, 16 }
 0x20c   : > { %9457 = vmatmul.msk.bf16.gmra.mxu2 %vm776_vm0, %v10128_v11  ;;  %v11614_v44 = vadd.f32 %v2430_v27, %v1812_v9  ;;  %v14543_v27 = vld [vmem:[#allocation8_spill] sm:$0xff]  ;;  %v3446_v11 = vshrl.u32 %v11621_v5, 16  ;;  %230 = vst.msk [vmem:[#allocation2 + $0x10] sm:$0xf] %vm224_vm7, %v10338_v52  ;;  %v3620_v9 = vunpack.c.l.b16 %v3431_v43  ;;  %v11651_v30 = vrot.slane %v3442_v57, 5 }
 0x20d   : > { %232 = vst.msk [vmem:[#allocation2 + $0x18] sm:$0xf] %vm224_vm7, %v10338_v52  ;;  %v3438_v22 = vrot.slane %v3436_v61, 5  ;;  %v3950_v43 = vrot.slane %v3948_v49, 4  ;;  %v11670_v61 = vpop.f32.mrf.mxu1  ;;  %v3951_v57 = vrot.slane %v11598_v56, 5 }
 0x20e   : > { %14542 = vst [vmem:[#allocation7_spill] sm:$0xff] %v11614_v44  ;;  %v11617_v58 = vpop.f32.mrf.mxu0  ;;  %v11623_v38 = vpop.f32.mrf.mxu3  ;;  %v3643_v60 = vpack.c.b16 %v3620_v9, %v3619_v29  ;;  %v11683_v29 = vld [vmem:[%s10439_s25 + $0x94] sm:$0xf] }
 0x20f   : > { %v1484_v31 = vpop.f32.mrf.mxu2  ;;  %233 = vst.msk [vmem:[#allocation2 + $0x1c] sm:$0xf] %vm224_vm7, %v10338_v52 }
 0x210   : > { %v1522_v16 = vadd.f32 %v1484_v31, %v14543_v27  ;;  %235 = vst.msk [vmem:[#allocation2 + $0x24] sm:$0xf] %vm224_vm7, %v10338_v52  ;;  %v14545_v27 = vld [vmem:[#allocation9_spill] sm:$0xff] }
 0x211   : > { %236 = vst.msk [vmem:[#allocation2 + $0x28] sm:$0xf] %vm224_vm7, %v10338_v52 }
 0x212   : > { %v1813_v40 = vadd.f32 %v11584_v34, %v1522_v16  ;;  %v3435_v34 = vrot.slane %v3433_v37, 4  ;;  %238 = vst.msk [vmem:[#allocation2 + $0x30] sm:$0xf] %vm224_vm7, %v10338_v52  ;;  %v9497_v37 = vld [vmem:[%s10439_s25 + $0x90] sm:$0xf] }
 0x213   : > { %239 = vst.msk [vmem:[#allocation2 + $0x34] sm:$0xf] %vm224_vm7, %v10338_v52  ;;  %v3457_v9 = vshrl.u32 %v9497_v37, 16  ;;  %v3460_v56 = vshll.u32 %v9497_v37, 16 }
 0x214   : > { %v2471_v8 = vadd.f32 %v2433_v18, %v1813_v40  ;;  %v3448_v18 = vrot.slane %v3446_v11, 4  ;;  %14546 = vst [vmem:[#allocation9_spill] sm:$0xff] %v11670_v61  ;;  %v3439_v11 = vor.u32 %v3438_v22, %v3435_v34  ;;  %v3952_v22 = vsel %vm10677_vm6, %v3950_v43, %v3951_v57  ;;  %v14548_v43 = vld [vmem:[#allocation10_spill] sm:$0xff] }
 0x215   : > { %241 = vst.msk [vmem:[#allocation2 + $0x3c] sm:$0xf] %vm224_vm7, %v10338_v52 }
 0x216   : > { %v11647_v62 = vpop.f32.mrf.mxu0  ;;  %v11653_v36 = vadd.f32 %v2835_v24, %v2471_v8  ;;  %v11660_v17 = vpop.f32.mrf.mxu3  ;;  %v9561_v24 = vrot.slane %v9545_v26, 9  ;;  %v3449_v40 = vor.u32 %v3448_v18, %v11651_v30  ;;  %v3452_v8 = vshll.u32 %v11658_v63, 16  ;;  %242 = vst.msk [vmem:[#allocation2 + $0x40] sm:$0xf] %vm224_vm7, %v10338_v52 }
 0x217   : > { %v1486_v31 = vpop.f32.mrf.mxu2  ;;  %244 = vst.msk [vmem:[#allocation2 + $0x48] sm:$0xf] %vm224_vm7, %v10338_v52  ;;  %v3440_v18 = vrot.slane %v3439_v11, 4  ;;  %v4022_v11 = vunpack.c.l.b16 %v3952_v22  ;;  %v4768_v22 = vld [vmem:[#allocation2] sm:$0xf] }
 0x218   : > { %14544 = vst [vmem:[#allocation8_spill] sm:$0xff] %v11653_v36  ;;  %v1523_v16 = vadd.f32 %v1486_v31, %v14545_v27  ;;  %v3450_v31 = vrot.slane %v3449_v40, 4 }
 0x219   : > { %9582 = vmatmul.msk.bf16.gmra.mxu0 %vm776_vm0, %v4044_v25  ;;  %245 = vst.msk [vmem:[#allocation2 + $0x4c] sm:$0xf] %vm224_vm7, %v10338_v52  ;;  %v3445_v40 = vsel %vm10463_vm3, %v3440_v18, %v11651_v30  ;;  %v11728_v30 = vld [vmem:[%s10439_s25 + $0x98] sm:$0x1] }
 0x21a   : > { %v1814_v25 = vadd.f32 %v11602_v39, %v1523_v16  ;;  %v3949_v39 = vsel %vm10677_vm6, %v9561_v24, %v3948_v49  ;;  %247 = vst.msk [vmem:[#allocation2 + $0x54] sm:$0xf] %vm224_vm7, %v10338_v52  ;;  %v3470_v49 = vshrl.u32 %v11683_v29, 16  ;;  %v3462_v24 = vrot.slane %v3460_v56, 5 }
 0x21b   : > { %9529 = vmatmul.msk.bf16.gmra.mxu3 %vm776_vm0, %v3643_v60  ;;  %248 = vst.msk [vmem:[#allocation2 + $0x58] sm:$0xf] %vm224_vm7, %v10338_v52  ;;  %v3459_v60 = vrot.slane %v3457_v9, 4  ;;  %v4021_v57 = vunpack.c.l.b16 %v3949_v39 }
 0x21c   : > { %9458 = vmatmul.msk.bf16.gmra.mxu2 %vm776_vm0, %v10129_v0  ;;  %v11687_v26 = vadd.f32 %v11617_v58, %v1814_v25  ;;  %v3454_v58 = vrot.slane %v3452_v8, 5  ;;  %v3466_v0 = vshll.u32 %v11683_v29, 16  ;;  %250 = vst.msk [vmem:[#allocation2 + $0x60] sm:$0xf] %vm224_vm7, %v10338_v52  ;;  %v3955_v25 = vrot.slane %v11621_v5, 5 }
 0x21d   : > { %251 = vst.msk [vmem:[#allocation2 + $0x64] sm:$0xf] %vm224_vm7, %v10338_v52  ;;  %v3472_v39 = vrot.slane %v3470_v49, 4  ;;  %v3463_v18 = vor.u32 %v3462_v24, %v3459_v60  ;;  %v4045_v5 = vpack.c.b16 %v4022_v11, %v4021_v57  ;;  %v4821_v49 = vshrl.u32 %v4768_v22, 16  ;;  %v4769_v57 = vld [vmem:[#allocation2 + $0x4] sm:$0xf] }
 0x21e   : > { %14547 = vst [vmem:[#allocation29_spill] sm:$0xff] %v11687_v26  ;;  %v11694_v34 = vpop.f32.mrf.mxu0  ;;  %v11704_v16 = vpop.f32.mrf.mxu3  ;;  %v3455_v8 = vsel %vm10463_vm3, %v3450_v31, %v3454_v58  ;;  %v11722_v56 = vrot.slane %v3466_v0, 5  ;;  %v3476_v24 = vshll.u32 %v11728_v30, 16  ;;  %v11755_v26 = vld [vmem:[%s10439_s25 + $0xa0] sm:$0xf]  ;;  %v4830_v44 = vshll.u32 %v4769_v57, 16 }
 0x21f   : > { %v1489_v27 = vpop.f32.mrf.mxu2  ;;  %253 = vst.msk [vmem:[#allocation2 + $0x6c] sm:$0xf] %vm224_vm7, %v10338_v52  ;;  %v3622_v58 = vunpack.c.l.b16 %v3455_v8  ;;  %v4823_v36 = vrot.slane %v4821_v49, 4  ;;  %v4834_v20 = vshrl.u32 %v4769_v57, 16  ;;  %v3490_v49 = vshll.u32 %v11755_v26, 16 }
 0x220   : > { %v1524_v37 = vadd.f32 %v1489_v27, %v14548_v43  ;;  %254 = vst.msk [vmem:[#allocation2 + $0x70] sm:$0xf] %vm224_vm7, %v10338_v52  ;;  %v2840_v27 = vpop.f32.mrf.mxu1  ;;  %v9546_v43 = vld [vmem:[%s10439_s25 + $0x84] sm:$0xe]  ;;  %v3473_v60 = vor.u32 %v3472_v39, %v11722_v56  ;;  %v3962_v57 = vrot.slane %v11683_v29, 5  ;;  %v14552_v29 = vld [vmem:[#allocation12_spill] sm:$0xff] }
 0x221   : > { %256 = vst.msk [vmem:[#allocation2 + $0x78] sm:$0xf] %vm224_vm7, %v10338_v52 }
 0x222   : > { %v1815_v9 = vadd.f32 %v11623_v38, %v1524_v37  ;;  %257 = vst.msk [vmem:[#allocation2 + $0x7c] sm:$0xf] %vm224_vm7, %v10338_v52  ;;  %v3621_v38 = vunpack.c.l.b16 %v3445_v40  ;;  %v4824_v37 = vshll.u32 %v4768_v22, 16  ;;  %v10130_v40 = vld [vmem:[%s10439_s25 + $0x78] sm:$0xff]  ;;  %v3958_v22 = vrot.slane %v11658_v63, 5 }
 0x223   : > { %259 = vst.msk [vmem:[#allocation2 + $0x84] sm:$0xf] %vm224_vm7, %v10338_v52 }
 0x224   : > { %v2473_v31 = vadd.f32 %v11647_v62, %v1815_v9  ;;  %260 = vst.msk [vmem:[#allocation2 + $0x88] sm:$0xf] %vm224_vm7, %v10338_v52  ;;  %v9562_v62 = vrot.slane %v9546_v43, 9  ;;  %v3957_v9 = vrot.slane %v3955_v25, 4  ;;  %v3644_v39 = vpack.c.b16 %v3622_v58, %v3621_v38  ;;  %v9500_v43 = vld [vmem:[%s10439_s25 + $0x9c] sm:$0xf] }
 0x225   : > { %262 = vst.msk [vmem:[#allocation2 + $0x90] sm:$0xf] %vm224_vm7, %v10338_v52  ;;  %v4826_v41 = vrot.slane %v4824_v37, 5  ;;  %v3478_v38 = vrot.slane %v3476_v24, 5  ;;  %v3481_v58 = vshrl.u32 %v9500_v43, 16  ;;  %v3494_v37 = vshrl.u32 %v11755_v26, 16 }
 0x226   : > { %v11733_v0 = vpop.f32.mrf.mxu0  ;;  %v11737_v61 = vadd.f32 %v2840_v27, %v2473_v31  ;;  %v11744_v8 = vpop.f32.mrf.mxu3  ;;  %v3464_v27 = vrot.slane %v3463_v18, 4  ;;  %v14550_v31 = vld [vmem:[#allocation11_spill] sm:$0xff]  ;;  %263 = vst.msk [vmem:[#allocation2 + $0x94] sm:$0xf] %vm224_vm7, %v10338_v52  ;;  %v3956_v18 = vsel %vm10677_vm6, %v9562_v62, %v3955_v25  ;;  %v4836_v24 = vrot.slane %v4834_v20, 4 }
 0x227   : > { %v1491_v11 = vpop.f32.mrf.mxu2  ;;  %265 = vst.msk [vmem:[#allocation2 + $0x9c] sm:$0xf] %vm224_vm7, %v10338_v52  ;;  %v11799_v20 = vrot.slane %v3490_v49, 5 }
 0x228   : > { %14549 = vst [vmem:[#allocation10_spill] sm:$0xff] %v11737_v61  ;;  %v1525_v61 = vadd.f32 %v1491_v11, %v14550_v31  ;;  %v3484_v11 = vshll.u32 %v9500_v43, 16  ;;  %v3469_v25 = vsel %vm10463_vm3, %v3464_v27, %v11722_v56 }
 0x229   : > { %9583 = vmatmul.msk.bf16.gmra.mxu0 %vm776_vm0, %v4045_v5  ;;  %266 = vst.msk [vmem:[#allocation2 + $0xa0] sm:$0xf] %vm224_vm7, %v10338_v52  ;;  %v3474_v5 = vrot.slane %v3473_v60, 4  ;;  %v11784_v60 = vrot.slane %v4830_v44, 5 }
 0x22a   : > { %v1816_v63 = vadd.f32 %v11660_v17, %v1525_v61  ;;  %268 = vst.msk [vmem:[#allocation2 + $0xa8] sm:$0xf] %vm224_vm7, %v10338_v52  ;;  %v3959_v61 = vsel %vm10677_vm6, %v3957_v9, %v3958_v22  ;;  %v9547_v9 = vld [vmem:[%s10439_s25 + $0x90] sm:$0xe]  ;;  %v11793_v22 = vld [vmem:[%s10439_s25 + $0xa4] sm:$0x1] }
 0x22b   : > { %269 = vst.msk [vmem:[#allocation2 + $0xac] sm:$0xf] %vm224_vm7, %v10338_v52  ;;  %9530 = vmatmul.msk.bf16.gmra.mxu3 %vm776_vm0, %v3644_v39  ;;  %v3486_v44 = vrot.slane %v3484_v11, 5  ;;  %v4023_v39 = vunpack.c.l.b16 %v3956_v18  ;;  %v4024_v43 = vunpack.c.l.b16 %v3959_v61  ;;  %v4837_v11 = vor.u32 %v4836_v24, %v11784_v60 }
 0x22c   : > { %9459 = vmatmul.msk.bf16.gmra.mxu2 %vm776_vm0, %v10130_v40  ;;  %v11770_v17 = vadd.f32 %v11694_v34, %v1816_v63  ;;  %271 = vst.msk [vmem:[#allocation2 + $0xb4] sm:$0xf] %vm224_vm7, %v10338_v52  ;;  %v4827_v34 = vor.u32 %v4826_v41, %v4823_v36  ;;  %v3479_v40 = vsel %vm10463_vm3, %v3474_v5, %v3478_v38  ;;  %v3483_v41 = vrot.slane %v3481_v58, 4  ;;  %v11809_v5 = vld [vmem:[%s14506_s2] ss:$0 sm:$0xff] }
 0x22d   : > { %272 = vst.msk [vmem:[#allocation2 + $0xb8] sm:$0xf] %vm224_vm7, %v10338_v52  ;;  %v3496_v36 = vrot.slane %v3494_v37, 4  ;;  %v11804_v63 = vunpack.c.l.b16 %v3469_v25  ;;  %v11813_v38 = vunpack.c.l.b16 %v3479_v40  ;;  %v9563_v49 = vrot.slane %v9547_v9, 9  ;;  %v9503_v9 = vld [vmem:[%s10439_s25 + $0xa8] sm:$0xf] }
 0x22e   : > { %14551 = vst [vmem:[#allocation11_spill] sm:$0xff] %v11770_v17  ;;  %v11782_v62 = vpop.f32.mrf.mxu0  ;;  %v11797_v27 = vpop.f32.mrf.mxu3  ;;  %v4828_v58 = vrot.slane %v4827_v34, 4  ;;  %v3964_v37 = vrot.slane %v3962_v57, 4  ;;  %v3965_v61 = vrot.slane %v11728_v30, 5  ;;  %v3500_v25 = vshll.u32 %v11793_v22, 16  ;;  %v10158_v34 = vld [vmem:[%s14507_s3 + $0x8] sm:$0xff] }
 0x22f   : > { %v3056_v56 = vpop.f32.mrf.mxu2  ;;  %274 = vst.msk [vmem:[#allocation2 + $0xc0] sm:$0xf] %vm224_vm7, %v10338_v52  ;;  %v3487_v24 = vor.u32 %v3486_v44, %v3483_v41  ;;  %v3497_v40 = vor.u32 %v3496_v36, %v11799_v20  ;;  %v3645_v41 = vpack.c.b16 %v11813_v38, %v11804_v63  ;;  %5553 = vmatpush.bf16.msrb.mxu2 %v10158_v34  ;;  %v3505_v44 = vshrl.u32 %v9503_v9, 16 }
 0x230   : > { %v3136_v31 = vadd.f32 %v3056_v56, %v14552_v29  ;;  %275 = vst.msk [vmem:[#allocation2 + $0xc4] sm:$0xf] %vm224_vm7, %v10338_v52  ;;  %v4046_v56 = vpack.c.b16 %v4024_v43, %v4023_v39  ;;  %v3969_v29 = vrot.slane %v11755_v26, 5  ;;  %v3508_v36 = vshll.u32 %v9503_v9, 16 }
 0x231   : > { %277 = vst.msk [vmem:[#allocation2 + $0xcc] sm:$0xf] %vm224_vm7, %v10338_v52  ;;  %v4833_v26 = vsel %vm10463_vm3, %v4828_v58, %v11784_v60  ;;  %v11851_v43 = vrot.slane %v4837_v11, 4  ;;  %v11855_v63 = vsel %vm10677_vm6, %v9563_v49, %v3962_v57  ;;  %v11863_v34 = vsel %vm10677_vm6, %v3964_v37, %v3965_v61  ;;  %v10131_v57 = vld [vmem:[%s10439_s25 + $0x84] sm:$0xff] }
 0x232   : > { %v3794_v18 = vadd.f32 %v11704_v16, %v3136_v31  ;;  %278 = vst.msk [vmem:[#allocation2 + $0xd0] sm:$0xf] %vm224_vm7, %v10338_v52  ;;  %v10162_v16 = vld [vmem:[%s14507_s3 + $0x28] sm:$0xff]  ;;  %v3498_v9 = vrot.slane %v3497_v40, 4  ;;  %v11873_v37 = vunpack.c.l.b16 %v4833_v26  ;;  %v3971_v61 = vrot.slane %v3969_v29, 4 }
 0x233   : > { %231 = vst.msk [vmem:[#allocation2 + $0x14] sm:$0x1] %vm227_vm8, %v10338_v52  ;;  %v11836_v31 = vld [vmem:[%s10439_s25 + $0xac] sm:$0xf]  ;;  %5915 = vmatpush.bf16.msrb.mxu3 %v10162_v16  ;;  %v3488_v16 = vrot.slane %v3487_v24, 4  ;;  %v3510_v24 = vrot.slane %v3508_v36, 5 }
 0x234   : > { %v4196_v30 = vadd.f32 %v11733_v0, %v3794_v18  ;;  %228 = vst.msk [vmem:[#allocation2 + $0x8] sm:$0x1] %vm227_vm8, %v10338_v52  ;;  %v9548_v0 = vld [vmem:[%s10439_s25 + $0x9c] sm:$0xe]  ;;  %v3514_v49 = vshll.u32 %v11836_v31, 16 }
 0x235   : > { %234 = vst.msk [vmem:[#allocation2 + $0x20] sm:$0x1] %vm227_vm8, %v10338_v52  ;;  %v9564_v11 = vrot.slane %v9548_v0, 9  ;;  %v3518_v0 = vshrl.u32 %v11836_v31, 16 }
 0x236   : > { %v11840_v17 = vpop.f32.mrf.mxu0  ;;  %v4231_v39 = vadd.f32 %v11809_v5, %v4196_v30  ;;  %237 = vst.msk [vmem:[#allocation2 + $0x2c] sm:$0x1] %vm227_vm8, %v10338_v52  ;;  %v11859_v18 = vpop.f32.mrf.mxu3  ;;  %v3502_v30 = vrot.slane %v3500_v25, 5  ;;  %v3507_v25 = vrot.slane %v3505_v44, 4  ;;  %v4025_v44 = vunpack.c.l.b16 %v11855_v63 }
 0x237   : > { %v3058_v38 = vpop.f32.mrf.mxu2  ;;  %240 = vst.msk [vmem:[#allocation2 + $0x38] sm:$0x1] %vm227_vm8, %v10338_v52  ;;  %v3970_v63 = vsel %vm10677_vm6, %v9564_v11, %v3969_v29 }
 0x238   : > { %v4263_v60 = vmax.f32 %v4231_v39, 0.0  ;;  %v3137_v58 = vadd.f32 %v3058_v38, %v11073_v53  ;;  %243 = vst.msk [vmem:[#allocation2 + $0x44] sm:$0x1] %vm227_vm8, %v10338_v52  ;;  %v3972_v39 = vrot.slane %v11793_v22, 5  ;;  %v3493_v22 = vsel %vm10463_vm3, %v3488_v16, %v11799_v20 }
 0x239   : > { %9584 = vmatmul.msk.bf16.gmra.mxu0 %vm776_vm0, %v4046_v56  ;;  %246 = vst.msk [vmem:[#allocation2 + $0x50] sm:$0x1] %vm227_vm8, %v10338_v52  ;;  %v11880_v56 = vld [vmem:[%s10439_s25 + $0xb0] sm:$0x1]  ;;  %v3503_v36 = vsel %vm10463_vm3, %v3498_v9, %v3502_v30  ;;  %v3511_v9 = vor.u32 %v3510_v24, %v3507_v25  ;;  %v3520_v30 = vrot.slane %v3518_v0, 4  ;;  %v11929_v0 = vunpack.c.l.b16 %v3493_v22 }
 0x23a   : > { %v4295_v40 = vpack.c.bf16 %v4263_v60, %v4263_v60  ;;  %v3795_v53 = vadd.f32 %v11744_v8, %v3137_v58  ;;  %249 = vst.msk [vmem:[#allocation2 + $0x5c] sm:$0x1] %vm227_vm8, %v10338_v52  ;;  %v4026_v8 = vunpack.c.l.b16 %v11863_v34  ;;  %v11901_v34 = vrot.slane %v3514_v49, 5  ;;  %v4654_v25 = vld [vmem:[#allocation2 + $0xc] sm:$0xf] }
 0x23b   : > { %252 = vst.msk [vmem:[#allocation2 + $0x68] sm:$0x1] %vm227_vm8, %v10338_v52  ;;  %v11885_v26 = vld [vmem:[#allocation2 + $0x8] sm:$0x1]  ;;  %9531 = vmatmul.msk.bf16.gmra.mxu3 %vm776_vm0, %v3645_v41  ;;  %v3524_v41 = vshll.u32 %v11880_v56, 16  ;;  %v3973_v11 = vsel %vm10677_vm6, %v3971_v61, %v3972_v39  ;;  %v4027_v61 = vunpack.c.l.b16 %v3970_v63  ;;  %v11943_v63 = vrot.slane %v3511_v9, 4 }
 0x23c   : > { %v4331_v38 = vshrl.u32 %v4295_v40, 16  ;;  %v4197_v60 = vadd.f32 %v11782_v62, %v3795_v53  ;;  %255 = vst.msk [vmem:[#allocation2 + $0x74] sm:$0x1] %vm227_vm8, %v10338_v52  ;;  %9460 = vmatmul.msk.bf16.gmra.mxu2 %vm776_vm0, %v10131_v57  ;;  %v4840_v16 = vshll.u32 %v11885_v26, 16  ;;  %v10180_v62 = vld [vmem:[%s14507_s3 + $0x38] sm:$0xff]  ;;  %v4334_v29 = vshll.u32 %v4295_v40, 16 }
 0x23d   : > { %258 = vst.msk [vmem:[#allocation2 + $0x80] sm:$0x1] %vm227_vm8, %v10338_v52  ;;  %6213 = vmatpush.bf16.msrb.mxu0 %v10180_v62  ;;  %v3521_v47 = vor.u32 %v3520_v30, %v11901_v34  ;;  %v10206_v49 = vld [vmem:[%s14507_s3 + $0x88] sm:$0xff] }
 0x23e   : > { %v11905_v20 = vpop.f32.mrf.mxu0  ;;  %v11912_v58 = vrot.slane %v4331_v38, 7  ;;  %v4232_v57 = vadd.f32 %v11809_v5, %v4197_v60  ;;  %261 = vst.msk [vmem:[#allocation2 + $0x8c] sm:$0x1] %vm227_vm8, %v10338_v52  ;;  %v11927_v40 = vpop.f32.mrf.mxu3  ;;  %v4842_v53 = vrot.slane %v4840_v16, 5  ;;  %v11931_v38 = vunpack.c.l.b16 %v3503_v36 }
 0x23f   : > { %264 = vst.msk [vmem:[#allocation2 + $0x98] sm:$0x1] %vm227_vm8, %v10338_v52  ;;  %v3061_v24 = vpop.f32.mrf.mxu2  ;;  %v4028_v36 = vunpack.c.l.b16 %v3973_v11  ;;  %v11945_v16 = vrot.slane %v3524_v41, 5  ;;  %v4047_v41 = vpack.c.b16 %v4026_v8, %v4025_v44  ;;  %v10182_v11 = vld [vmem:[%s14507_s3 + $0x48] sm:$0xff] }
 0x240   : > { %v4336_v39 = vor.u32 %v4334_v29, %v11912_v58  ;;  %v4264_v60 = vmax.f32 %v4232_v57, 0.0  ;;  %267 = vst.msk [vmem:[#allocation2 + $0xa4] sm:$0x1] %vm227_vm8, %v10338_v52  ;;  %v3138_v10 = vadd.f32 %v3061_v24, %v14555_v23  ;;  %v4843_v22 = vsel %vm10463_vm3, %v11851_v43, %v4842_v53  ;;  %6879 = vmatpush.bf16.msrb.mxu1 %v10182_v11  ;;  %v9549_v8 = vld [vmem:[%s10439_s25 + $0xa8] sm:$0xe]  ;;  %v10132_v11 = vld [vmem:[%s10439_s25 + $0x90] sm:$0xff] }
 0x241   : > { %270 = vst.msk [vmem:[#allocation2 + $0xb0] sm:$0x1] %vm227_vm8, %v10338_v52  ;;  %v5210_v30 = vunpack.c.l.b16 %v4843_v22  ;;  %v11954_v57 = vadd.f32 %v11175_v1, %v11253_v50  ;;  %v11958_v43 = vadd.f32 %v11226_v12, %v11310_v35  ;;  %v4337_v9 = vrot.slane %v11912_v58, 4 }
 0x242   : > { %v4655_v62 = vsel %vm11921_vm13, %v4336_v39, %v4654_v25  ;;  %v4296_v29 = vpack.c.bf16 %v4264_v60, %v4264_v60  ;;  %273 = vst.msk [vmem:[#allocation2 + $0xbc] sm:$0x1] %vm227_vm8, %v10338_v52  ;;  %v3796_v23 = vadd.f32 %v11797_v27, %v3138_v10  ;;  %v9506_v25 = vld [vmem:[%s10439_s25 + $0xb4] sm:$0xf]  ;;  %v3522_v12 = vrot.slane %v3521_v47, 4 }
 0x243   : > { %4656 = vst [vmem:[#allocation2 + $0xc] sm:$0xf] %v4655_v62  ;;  %v5241_v50 = vpack.c.b16 %v5210_v30, %v11873_v37  ;;  %v3646_v27 = vpack.c.b16 %v11931_v38, %v11929_v0  ;;  %v11975_v44 = vpack.c.b16 %v4028_v36, %v4027_v61  ;;  %v3976_v58 = vrot.slane %v11836_v31, 5  ;;  %v4660_v0 = vld [vmem:[#allocation2 + $0x14] sm:$0x1] }
 0x244   : > { %v4339_v10 = vshrl.u32 %v4296_v29, 16  ;;  %276 = vst.msk [vmem:[#allocation2 + $0xc8] sm:$0x1] %vm227_vm8, %v10338_v52  ;;  %v4198_v1 = vadd.f32 %v11840_v17, %v3796_v23  ;;  %v3529_v24 = vshrl.u32 %v9506_v25, 16  ;;  %v9565_v53 = vrot.slane %v9549_v8, 9 }
 0x245   : > { %279 = vst.msk [vmem:[#allocation2 + $0xd4] sm:$0x1] %vm227_vm8, %v10338_v52  ;;  %v4342_v52 = vshll.u32 %v4296_v29, 16  ;;  %9603 = vmatmul.msk.bf16.vlgmr.msra.gmra.mxu1 %vm5269_vm12, %v5241_v50  ;;  %v3978_v39 = vrot.slane %v3976_v58, 4  ;;  %v3979_v60 = vrot.slane %v11880_v56, 5  ;;  %v3532_v36 = vshll.u32 %v9506_v25, 16 }
 0x246   : > { %v11971_v35 = vpop.f32.mrf.mxu0  ;;  %v4341_v47 = vrot.slane %v4339_v10, 7  ;;  %v4233_v37 = vadd.f32 %v11809_v5, %v4198_v1  ;;  %v11993_v61 = vpop.f32.mrf.mxu3  ;;  %v3531_v22 = vrot.slane %v3529_v24, 4  ;;  %v12000_v10 = vld [vmem:[%s10439_s25 + $0xb8] sm:$0xf]  ;;  %v3517_v1 = vsel %vm10463_vm3, %v11943_v63, %v11901_v34 }
 0x247   : > { %v3063_v38 = vpop.f32.mrf.mxu2  ;;  %v3527_v56 = vsel %vm10463_vm3, %v3522_v12, %v11945_v16  ;;  %v3977_v25 = vsel %vm10677_vm6, %v9565_v53, %v3976_v58  ;;  %v3534_v50 = vrot.slane %v3532_v36, 5  ;;  %v3980_v16 = vsel %vm10677_vm6, %v3978_v39, %v3979_v60 }
 0x248   : > { %v4344_v62 = vor.u32 %v4342_v52, %v4341_v47  ;;  %v4346_v29 = vrot.slane %v4341_v47, 4  ;;  %v4265_v23 = vmax.f32 %v4233_v37, 0.0  ;;  %v3139_v30 = vadd.f32 %v3063_v38, %v11115_v15  ;;  %v12024_v52 = vld [vmem:[%s10439_s25 + $0xbc] sm:$0x1] }
 0x249   : > { %9585 = vmatmul.msk.bf16.gmra.mxu0 %vm776_vm0, %v4047_v41  ;;  %v3538_v12 = vshll.u32 %v12000_v10, 16  ;;  %v12028_v38 = vunpack.c.l.b16 %v3517_v1  ;;  %v12030_v39 = vunpack.c.l.b16 %v3527_v56 }
 0x24a   : > { %v4345_v15 = vsel %vm11981_vm14, %v4337_v9, %v4344_v62  ;;  %v4661_v41 = vsel %vm11989_vm15, %v4346_v29, %v4660_v0  ;;  %v4297_v8 = vpack.c.bf16 %v4265_v23, %v4265_v23  ;;  %v3797_v24 = vadd.f32 %v11859_v18, %v3139_v30  ;;  %v4770_v47 = vld [vmem:[#allocation2 + $0xc] sm:$0xf]  ;;  %v4663_v29 = vld [vmem:[#allocation2 + $0x18] sm:$0xf] }
 0x24b   : > { %4657 = vst.msk [vmem:[#allocation2 + $0x10] sm:$0xf] %vm224_vm7, %v4345_v15  ;;  %v4845_v34 = vshrl.u32 %v4770_v47, 16  ;;  %v4848_v63 = vshll.u32 %v4770_v47, 16  ;;  %9532 = vmatmul.msk.bf16.gmra.mxu3 %vm776_vm0, %v3646_v27  ;;  %v3535_v18 = vor.u32 %v3534_v50, %v3531_v22  ;;  %v3542_v62 = vshrl.u32 %v12000_v10, 16 }
 0x24c   : > { %4662 = vst [vmem:[#allocation2 + $0x14] sm:$0x1] %v4661_v41  ;;  %v4348_v58 = vshrl.u32 %v4297_v8, 16  ;;  %v4199_v9 = vadd.f32 %v11905_v20, %v3797_v24  ;;  %9461 = vmatmul.msk.bf16.gmra.mxu2 %vm776_vm0, %v10132_v11  ;;  %v4351_v36 = vshll.u32 %v4297_v8, 16  ;;  %v4029_v22 = vunpack.c.l.b16 %v3977_v25 }
 0x24d   : > { %v4847_v53 = vrot.slane %v4845_v34, 4  ;;  %v4850_v0 = vrot.slane %v4848_v63, 5  ;;  %v4030_v30 = vunpack.c.l.b16 %v3980_v16  ;;  %v3540_v11 = vrot.slane %v3538_v12, 5 }
 0x24e   : > { %v12026_v37 = vpop.f32.mrf.mxu0  ;;  %v12032_v60 = vrot.slane %v4348_v58, 7  ;;  %v4234_v20 = vadd.f32 %v11809_v5, %v4199_v9  ;;  %v12036_v23 = vpop.f32.mrf.mxu3  ;;  %v3548_v50 = vshll.u32 %v12024_v52, 16  ;;  %v3536_v41 = vrot.slane %v3535_v18, 4 }
 0x24f   : > { %v3066_v27 = vpop.f32.mrf.mxu2  ;;  %v4851_v24 = vor.u32 %v4850_v0, %v4847_v53  ;;  %v3647_v47 = vpack.c.b16 %v12030_v39, %v12028_v38  ;;  %v3544_v34 = vrot.slane %v3542_v62, 4  ;;  %v12053_v53 = vpack.c.b16 %v4030_v30, %v4029_v22 }
 0x250   : > { %v4353_v1 = vor.u32 %v4351_v36, %v12032_v60  ;;  %v4266_v56 = vmax.f32 %v4234_v20, 0.0  ;;  %v3140_v15 = vadd.f32 %v3066_v27, %v11135_v13  ;;  %v4354_v8 = vrot.slane %v12032_v60, 4 }
 0x251   : > { %v3550_v58 = vrot.slane %v3548_v50, 5  ;;  %v3545_v0 = vor.u32 %v3544_v34, %v3540_v11  ;;  %v3983_v27 = vrot.slane %v12000_v10, 5 }
 0x252   : > { %v4664_v25 = vsel %vm11921_vm13, %v4353_v1, %v4663_v29  ;;  %v4298_v63 = vpack.c.bf16 %v4266_v56, %v4266_v56  ;;  %v3798_v16 = vadd.f32 %v11927_v40, %v3140_v15  ;;  %v12047_v12 = vld [vmem:[#allocation2 + $0x10] sm:$0xf]  ;;  %v3541_v40 = vsel %vm10463_vm3, %v3536_v41, %v3540_v11  ;;  %v9550_v56 = vld [vmem:[%s10439_s25 + $0xb4] sm:$0xe] }
 0x253   : > { %4665 = vst [vmem:[#allocation2 + $0x18] sm:$0xf] %v4664_v25  ;;  %v12049_v9 = vld [vmem:[#allocation2 + $0x14] sm:$0x1]  ;;  %v4854_v13 = vshll.u32 %v12047_v12, 16  ;;  %v4858_v18 = vshrl.u32 %v12047_v12, 16 }
 0x254   : > { %v4356_v38 = vshrl.u32 %v4298_v63, 16  ;;  %v4200_v39 = vadd.f32 %v11971_v35, %v3798_v16  ;;  %v4864_v60 = vshll.u32 %v12049_v9, 16  ;;  %v3546_v29 = vrot.slane %v3545_v0, 4  ;;  %v4667_v35 = vld [vmem:[#allocation2 + $0x20] sm:$0x1] }
 0x255   : > { %v4856_v20 = vrot.slane %v4854_v13, 5  ;;  %v4860_v62 = vrot.slane %v4858_v18, 4  ;;  %v4359_v22 = vshll.u32 %v4298_v63, 16  ;;  %v4852_v1 = vrot.slane %v4851_v24, 4  ;;  %v10133_v0 = vld [vmem:[%s10439_s25 + $0x9c] sm:$0xff] }
 0x256   : > { %v12059_v36 = vpop.f32.mrf.mxu0  ;;  %v4358_v50 = vrot.slane %v4356_v38, 7  ;;  %v4235_v30 = vadd.f32 %v11809_v5, %v4200_v39  ;;  %v12064_v34 = vpop.f32.mrf.mxu3  ;;  %v4866_v11 = vrot.slane %v4864_v60, 5  ;;  %v3551_v41 = vsel %vm10463_vm3, %v3546_v29, %v3550_v58 }
 0x257   : > { %v3068_v15 = vpop.f32.mrf.mxu2  ;;  %v4861_v25 = vor.u32 %v4860_v62, %v4856_v20  ;;  %v12068_v16 = vunpack.c.l.b16 %v3541_v40  ;;  %v4857_v24 = vsel %vm10463_vm3, %v4852_v1, %v4856_v20  ;;  %v9566_v39 = vrot.slane %v9550_v56, 9 }
 0x258   : > { %v4361_v13 = vor.u32 %v4359_v22, %v4358_v50  ;;  %v4363_v10 = vrot.slane %v4358_v50, 4  ;;  %v4267_v18 = vmax.f32 %v4235_v30, 0.0  ;;  %v3141_v63 = vadd.f32 %v3068_v15, %v11157_v6  ;;  %v9509_v30 = vld [vmem:[%s10439_s25 + $0xc0] sm:$0xf] }
 0x259   : > { %9586 = vmatmul.msk.bf16.gmra.mxu0 %vm776_vm0, %v11975_v44  ;;  %v4862_v38 = vrot.slane %v4861_v25, 4  ;;  %v3985_v60 = vrot.slane %v3983_v27, 4  ;;  %v12084_v22 = vunpack.c.l.b16 %v3551_v41  ;;  %v5211_v56 = vunpack.c.l.b16 %v4857_v24 }
 0x25a   : > { %v4362_v58 = vsel %vm11981_vm14, %v4354_v8, %v4361_v13  ;;  %v4668_v40 = vsel %vm11989_vm15, %v4363_v10, %v4667_v35  ;;  %v4299_v62 = vpack.c.bf16 %v4267_v18, %v4267_v18  ;;  %v3799_v6 = vadd.f32 %v11993_v61, %v3141_v63  ;;  %v4772_v29 = vld [vmem:[#allocation2 + $0x18] sm:$0xf]  ;;  %v12097_v13 = vld [vmem:[%s10439_s25 + $0xc4] sm:$0xf] }
 0x25b   : > { %4666 = vst.msk [vmem:[#allocation2 + $0x1c] sm:$0xf] %vm224_vm7, %v4362_v58  ;;  %v4867_v44 = vsel %vm10463_vm3, %v4862_v38, %v4866_v11  ;;  %v4869_v50 = vshrl.u32 %v4772_v29, 16  ;;  %v4872_v20 = vshll.u32 %v4772_v29, 16  ;;  %9533 = vmatmul.msk.bf16.gmra.mxu3 %vm776_vm0, %v3647_v47  ;;  %v12094_v41 = vsel %vm10677_vm6, %v9566_v39, %v3983_v27 }
 0x25c   : > { %4669 = vst [vmem:[#allocation2 + $0x20] sm:$0x1] %v4668_v40  ;;  %v4365_v8 = vshrl.u32 %v4299_v62, 16  ;;  %v4201_v1 = vadd.f32 %v12026_v37, %v3799_v6  ;;  %9462 = vmatmul.msk.bf16.gmra.mxu2 %vm776_vm0, %v10133_v0  ;;  %v5212_v61 = vunpack.c.l.b16 %v4867_v44  ;;  %v4368_v35 = vshll.u32 %v4299_v62, 16  ;;  %v4670_v0 = vld [vmem:[#allocation2 + $0x24] sm:$0xf] }
 0x25d   : > { %v4871_v25 = vrot.slane %v4869_v50, 4  ;;  %v4874_v11 = vrot.slane %v4872_v20, 5  ;;  %v3553_v63 = vshrl.u32 %v9509_v30, 16  ;;  %v3986_v40 = vrot.slane %v12024_v52, 5 }
 0x25e   : > { %v12090_v15 = vpop.f32.mrf.mxu0  ;;  %v12099_v10 = vrot.slane %v4365_v8, 7  ;;  %v4236_v37 = vadd.f32 %v11809_v5, %v4201_v1  ;;  %v5242_v18 = vpack.c.b16 %v5212_v61, %v5211_v56  ;;  %v12102_v47 = vpop.f32.mrf.mxu3  ;;  %v3556_v27 = vshll.u32 %v9509_v30, 16 }
 0x25f   : > { %v3071_v24 = vpop.f32.mrf.mxu2  ;;  %v4875_v38 = vor.u32 %v4874_v11, %v4871_v25  ;;  %v3562_v29 = vshll.u32 %v12097_v13, 16  ;;  %v3555_v20 = vrot.slane %v3553_v63, 4 }
 0x260   : > { %v4370_v39 = vor.u32 %v4368_v35, %v12099_v10  ;;  %v4268_v62 = vmax.f32 %v4236_v37, 0.0  ;;  %v3142_v6 = vadd.f32 %v3071_v24, %v11182_v21  ;;  %9604 = vmatmul.msk.bf16.gmra.mxu1 %vm5269_vm12, %v5242_v18  ;;  %v4371_v44 = vrot.slane %v12099_v10, 4  ;;  %v12119_v21 = vld [vmem:[%s10439_s25 + $0xc8] sm:$0x1] }
 0x261   : > { %v3558_v8 = vrot.slane %v3556_v27, 5  ;;  %v4876_v61 = vrot.slane %v4875_v38, 4  ;;  %v12127_v10 = vsel %vm10677_vm6, %v3985_v60, %v3986_v40  ;;  %v3572_v40 = vshll.u32 %v12119_v21, 16 }
 0x262   : > { %v4671_v52 = vsel %vm11921_vm13, %v4370_v39, %v4670_v0  ;;  %v4300_v1 = vpack.c.bf16 %v4268_v62, %v4268_v62  ;;  %v3800_v30 = vadd.f32 %v12036_v23, %v3142_v6  ;;  %v12116_v56 = vld [vmem:[#allocation2 + $0x1c] sm:$0xf]  ;;  %v3564_v0 = vrot.slane %v3562_v29, 5 }
 0x263   : > { %4672 = vst [vmem:[#allocation2 + $0x24] sm:$0xf] %v4671_v52  ;;  %v12121_v35 = vld [vmem:[#allocation2 + $0x20] sm:$0x1]  ;;  %v4878_v25 = vshll.u32 %v12116_v56, 16  ;;  %v4882_v11 = vshrl.u32 %v12116_v56, 16  ;;  %v3559_v37 = vor.u32 %v3558_v8, %v3555_v20 }
 0x264   : > { %v4373_v18 = vshrl.u32 %v4300_v1, 16  ;;  %v4202_v23 = vadd.f32 %v12059_v36, %v3800_v30  ;;  %v4888_v63 = vshll.u32 %v12121_v35, 16  ;;  %v3566_v62 = vshrl.u32 %v12097_v13, 16  ;;  %v4674_v20 = vld [vmem:[#allocation2 + $0x2c] sm:$0x1] }
 0x265   : > { %v4880_v38 = vrot.slane %v4878_v25, 5  ;;  %v4884_v27 = vrot.slane %v4882_v11, 4  ;;  %v3560_v39 = vrot.slane %v3559_v37, 4  ;;  %v4376_v52 = vshll.u32 %v4300_v1, 16  ;;  %v10134_v1 = vld [vmem:[%s10439_s25 + $0xa8] sm:$0xff] }
 0x266   : > { %v12131_v24 = vpop.f32.mrf.mxu0  ;;  %v4375_v6 = vrot.slane %v4373_v18, 7  ;;  %v4237_v60 = vadd.f32 %v11809_v5, %v4202_v23  ;;  %v12136_v36 = vpop.f32.mrf.mxu3  ;;  %v4890_v25 = vrot.slane %v4888_v63, 5  ;;  %v3568_v11 = vrot.slane %v3566_v62, 4 }
 0x267   : > { %v3073_v8 = vpop.f32.mrf.mxu2  ;;  %v4881_v29 = vsel %vm10463_vm3, %v4876_v61, %v4880_v38  ;;  %v4885_v30 = vor.u32 %v4884_v27, %v4880_v38  ;;  %v3565_v7 = vsel %vm10463_vm3, %v3560_v39, %v3564_v0  ;;  %v3574_v55 = vrot.slane %v3572_v40, 5 }
 0x268   : > { %v4378_v37 = vor.u32 %v4376_v52, %v4375_v6  ;;  %v4380_v50 = vrot.slane %v4375_v6, 4  ;;  %v4269_v58 = vmax.f32 %v4237_v60, 0.0  ;;  %v3143_v18 = vadd.f32 %v3073_v8, %v14560_v45  ;;  %v9551_v8 = vld [vmem:[%s10439_s25 + $0xc0] sm:$0xe] }
 0x269   : > { %9587 = vmatmul.msk.bf16.gmra.mxu0 %vm776_vm0, %v12053_v53  ;;  %v4886_v23 = vrot.slane %v4885_v30, 4  ;;  %v3569_v3 = vor.u32 %v3568_v11, %v3564_v0  ;;  %v4032_v60 = vunpack.c.l.b16 %v12127_v10  ;;  %v4677_v11 = vld [vmem:[#allocation2 + $0x30] sm:$0xf] }
 0x26a   : > { %v4379_v61 = vsel %vm11981_vm14, %v4371_v44, %v4378_v37  ;;  %v4675_v63 = vsel %vm11989_vm15, %v4380_v50, %v4674_v20  ;;  %v4301_v38 = vpack.c.bf16 %v4269_v58, %v4269_v58  ;;  %v3801_v27 = vadd.f32 %v12064_v34, %v3143_v18  ;;  %v4774_v45 = vld [vmem:[#allocation2 + $0x24] sm:$0xf] }
 0x26b   : > { %4673 = vst.msk [vmem:[#allocation2 + $0x28] sm:$0xf] %vm224_vm7, %v4379_v61  ;;  %v4891_v53 = vsel %vm10463_vm3, %v4886_v23, %v4890_v25  ;;  %v4893_v62 = vshrl.u32 %v4774_v45, 16  ;;  %v4896_v39 = vshll.u32 %v4774_v45, 16  ;;  %v3570_v0 = vrot.slane %v3569_v3, 4  ;;  %v14562_v61 = vld [vmem:[#allocation15_spill] sm:$0xff] }
 0x26c   : > { %4676 = vst [vmem:[#allocation2 + $0x2c] sm:$0x1] %v4675_v63  ;;  %v4382_v6 = vshrl.u32 %v4301_v38, 16  ;;  %v4203_v44 = vadd.f32 %v12090_v15, %v3801_v27  ;;  %9463 = vmatmul.msk.bf16.gmra.mxu2 %vm776_vm0, %v10134_v1  ;;  %v5213_v50 = vunpack.c.l.b16 %v4881_v29  ;;  %v5214_v58 = vunpack.c.l.b16 %v4891_v53 }
 0x26d   : > { %v14561_v34 = vpack.c.b16 %v12084_v22, %v12068_v16  ;;  %v4895_v40 = vrot.slane %v4893_v62, 4  ;;  %v4898_v20 = vrot.slane %v4896_v39, 5  ;;  %v3575_v3 = vsel %vm10463_vm3, %v3570_v0, %v3574_v55 }
 0x26e   : > { %v12160_v52 = vpop.f32.mrf.mxu0  ;;  %v12166_v15 = vrot.slane %v4382_v6, 7  ;;  %v4385_v30 = vshll.u32 %v4301_v38, 16  ;;  %v4238_v29 = vadd.f32 %v11809_v5, %v4203_v44  ;;  %v5243_v25 = vpack.c.b16 %v5214_v58, %v5213_v50  ;;  %v12169_v22 = vpop.f32.mrf.mxu3  ;;  %v9512_v44 = vld [vmem:[%s10439_s25 + $0xcc] sm:$0xf] }
 0x26f   : > { %9534 = vmatmul.msk.bf16.gmra.mxu3 %vm776_vm0, %v14561_v34  ;;  %v3076_v16 = vpop.f32.mrf.mxu2  ;;  %v4899_v37 = vor.u32 %v4898_v20, %v4895_v40  ;;  %v12171_v18 = vunpack.c.l.b16 %v3565_v7  ;;  %v12173_v10 = vunpack.c.l.b16 %v3575_v3  ;;  %v3990_v1 = vrot.slane %v12097_v13, 5 }
 0x270   : > { %v4387_v55 = vor.u32 %v4385_v30, %v12166_v15  ;;  %v4270_v23 = vmax.f32 %v4238_v29, 0.0  ;;  %v3144_v63 = vadd.f32 %v3076_v16, %v14562_v61  ;;  %9605 = vmatmul.msk.bf16.gmra.mxu1 %vm5269_vm12, %v5243_v25  ;;  %v9567_v38 = vrot.slane %v9551_v8, 9 }
 0x271   : > { %v12181_v27 = vadd.f32 %v11283_v2, %v11361_v54  ;;  %v4388_v7 = vrot.slane %v12166_v15, 4  ;;  %v3992_v45 = vrot.slane %v3990_v1, 4  ;;  %v3993_v53 = vrot.slane %v12119_v21, 5 }
 0x272   : > { %v4678_v13 = vsel %vm11921_vm13, %v4387_v55, %v4677_v11  ;;  %v4302_v62 = vpack.c.bf16 %v4270_v23, %v4270_v23  ;;  %v3802_v39 = vadd.f32 %v12102_v47, %v3144_v63  ;;  %v12188_v0 = vld [vmem:[#allocation2 + $0x28] sm:$0xf]  ;;  %v4900_v6 = vrot.slane %v4899_v37, 4  ;;  %v12213_v11 = vld [vmem:[%s10439_s25 + $0xd0] sm:$0xf] }
 0x273   : > { %4679 = vst [vmem:[#allocation2 + $0x30] sm:$0xf] %v4678_v13  ;;  %v14563_v50 = vunpack.c.l.b16 %v12094_v41  ;;  %v12193_v54 = vld [vmem:[#allocation2 + $0x2c] sm:$0x1]  ;;  %v4902_v58 = vshll.u32 %v12188_v0, 16  ;;  %v4906_v21 = vshrl.u32 %v12188_v0, 16  ;;  %v3649_v34 = vpack.c.b16 %v12173_v10, %v12171_v18 }
 0x274   : > { %v4390_v40 = vshrl.u32 %v4302_v62, 16  ;;  %v4204_v47 = vadd.f32 %v12131_v24, %v3802_v39  ;;  %v4912_v20 = vshll.u32 %v12193_v54, 16  ;;  %v12203_v3 = vsel %vm10677_vm6, %v9567_v38, %v3990_v1  ;;  %v4681_v37 = vld [vmem:[#allocation2 + $0x38] sm:$0x1] }
 0x275   : > { %v4050_v2 = vpack.c.b16 %v4032_v60, %v14563_v50  ;;  %v4904_v60 = vrot.slane %v4902_v58, 5  ;;  %v4908_v8 = vrot.slane %v4906_v21, 4  ;;  %v12209_v15 = vsel %vm10677_vm6, %v3992_v45, %v3993_v53  ;;  %v10135_v13 = vld [vmem:[%s10439_s25 + $0xb4] sm:$0xff] }
 0x276   : > { %v12205_v41 = vpop.f32.mrf.mxu0  ;;  %v3577_v30 = vshrl.u32 %v9512_v44, 16  ;;  %v4392_v29 = vrot.slane %v4390_v40, 7  ;;  %v4393_v25 = vshll.u32 %v4302_v62, 16  ;;  %v4239_v24 = vadd.f32 %v11809_v5, %v4204_v47  ;;  %v12215_v10 = vpop.f32.mrf.mxu3 }
 0x277   : > { %v3580_v16 = vshll.u32 %v9512_v44, 16  ;;  %v3078_v18 = vpop.f32.mrf.mxu2  ;;  %v4905_v1 = vsel %vm10463_vm3, %v4900_v6, %v4904_v60  ;;  %v4909_v55 = vor.u32 %v4908_v8, %v4904_v60  ;;  %v4914_v23 = vrot.slane %v4912_v20, 5  ;;  %v12232_v60 = vld [vmem:[%s10439_s25 + $0xd4] sm:$0x1] }
 0x278   : > { %v3579_v61 = vrot.slane %v3577_v30, 4  ;;  %v4395_v63 = vor.u32 %v4393_v25, %v4392_v29  ;;  %v4397_v38 = vrot.slane %v4392_v29, 4  ;;  %v4271_v45 = vmax.f32 %v4239_v24, 0.0  ;;  %v10161_v25 = vld [vmem:[%s14507_s3 + $0x20] sm:$0xff] }
 0x279   : > { %v3145_v53 = vadd.f32 %v3078_v18, %v11954_v57  ;;  %9588 = vmatmul.msk.bf16.gmra.mxu0 %vm776_vm0, %v4050_v2  ;;  %v4910_v62 = vrot.slane %v4909_v55, 4  ;;  %v5215_v39 = vunpack.c.l.b16 %v4905_v1  ;;  %v3582_v44 = vrot.slane %v3580_v16, 5  ;;  %5916 = vmatpush.bf16.msrb.mxu3 %v10161_v25 }
 0x27a   : > { %v3586_v50 = vshll.u32 %v12213_v11, 16  ;;  %v4396_v6 = vsel %vm11981_vm14, %v4388_v7, %v4395_v63  ;;  %v4682_v58 = vsel %vm11989_vm15, %v4397_v38, %v4681_v37  ;;  %v4303_v21 = vpack.c.bf16 %v4271_v45, %v4271_v45  ;;  %v4776_v47 = vld [vmem:[#allocation2 + $0x30] sm:$0xf]  ;;  %v9552_v63 = vld [vmem:[%s10439_s25 + $0xcc] sm:$0xe] }
 0x27b   : > { %v3803_v40 = vadd.f32 %v12136_v36, %v3145_v53  ;;  %4680 = vst.msk [vmem:[#allocation2 + $0x34] sm:$0xf] %vm224_vm7, %v4396_v6  ;;  %v4915_v57 = vsel %vm10463_vm3, %v4910_v62, %v4914_v23  ;;  %v4917_v2 = vshrl.u32 %v4776_v47, 16  ;;  %v4920_v20 = vshll.u32 %v4776_v47, 16 }
 0x27c   : > { %v3583_v8 = vor.u32 %v3582_v44, %v3579_v61  ;;  %4683 = vst [vmem:[#allocation2 + $0x38] sm:$0x1] %v4682_v58  ;;  %v4399_v30 = vshrl.u32 %v4303_v21, 16  ;;  %v4402_v7 = vshll.u32 %v4303_v21, 16  ;;  %9464 = vmatmul.msk.bf16.gmra.mxu2 %vm776_vm0, %v10135_v13  ;;  %v5216_v36 = vunpack.c.l.b16 %v4915_v57  ;;  %v14564_v58 = vld [vmem:[#allocation16_spill] sm:$0xff] }
 0x27d   : > { %v4205_v29 = vadd.f32 %v12160_v52, %v3803_v40  ;;  %v4919_v16 = vrot.slane %v4917_v2, 4  ;;  %v4922_v37 = vrot.slane %v4920_v20, 5  ;;  %v3588_v1 = vrot.slane %v3586_v50, 5 }
 0x27e   : > { %v12240_v24 = vpop.f32.mrf.mxu0  ;;  %v3584_v18 = vrot.slane %v3583_v8, 4  ;;  %v12242_v55 = vrot.slane %v4399_v30, 7  ;;  %v5244_v52 = vpack.c.b16 %v5216_v36, %v5215_v39  ;;  %v3590_v61 = vshrl.u32 %v12213_v11, 16  ;;  %v12247_v45 = vpop.f32.mrf.mxu3 }
 0x27f   : > { %9535 = vmatmul.msk.bf16.gmra.mxu3 %vm776_vm0, %v3649_v34  ;;  %v4240_v23 = vadd.f32 %v11809_v5, %v4205_v29  ;;  %v4684_v34 = vld [vmem:[#allocation2 + $0x3c] sm:$0xf]  ;;  %v3081_v38 = vpop.f32.mrf.mxu2  ;;  %v4033_v53 = vunpack.c.l.b16 %v12203_v3  ;;  %v4034_v13 = vunpack.c.l.b16 %v12209_v15  ;;  %v4923_v62 = vor.u32 %v4922_v37, %v4919_v16 }
 0x280   : > { %v3596_v44 = vshll.u32 %v12232_v60, 16  ;;  %v4404_v50 = vor.u32 %v4402_v7, %v12242_v55  ;;  %v3146_v39 = vadd.f32 %v3081_v38, %v14564_v58  ;;  %9606 = vmatmul.msk.bf16.gmra.mxu1 %vm5269_vm12, %v5244_v52  ;;  %v3589_v21 = vsel %vm10463_vm3, %v3584_v18, %v3588_v1 }
 0x281   : > { %v4272_v6 = vmax.f32 %v4240_v23, 0.0  ;;  %v4405_v40 = vrot.slane %v12242_v55, 4  ;;  %v3592_v47 = vrot.slane %v3590_v61, 4  ;;  %v9568_v3 = vrot.slane %v9552_v63, 9 }
 0x282   : > { %v3598_v57 = vrot.slane %v3596_v44, 5  ;;  %v4685_v15 = vsel %vm11921_vm13, %v4404_v50, %v4684_v34  ;;  %v3804_v20 = vadd.f32 %v12169_v22, %v3146_v39  ;;  %v12261_v8 = vld [vmem:[#allocation2 + $0x34] sm:$0xf]  ;;  %v3997_v30 = vrot.slane %v12213_v11, 5  ;;  %v4688_v44 = vld [vmem:[#allocation2 + $0x44] sm:$0x1] }
 0x283   : > { %v4304_v2 = vpack.c.bf16 %v4272_v6, %v4272_v6  ;;  %4686 = vst [vmem:[#allocation2 + $0x3c] sm:$0xf] %v4685_v15  ;;  %v4051_v7 = vpack.c.b16 %v4034_v13, %v4033_v53  ;;  %v12264_v29 = vld [vmem:[#allocation2 + $0x38] sm:$0x1]  ;;  %v4926_v36 = vshll.u32 %v12261_v8, 16  ;;  %v4930_v25 = vshrl.u32 %v12261_v8, 16 }
 0x284   : > { %v3593_v16 = vor.u32 %v3592_v47, %v3588_v1  ;;  %v4206_v18 = vadd.f32 %v12205_v41, %v3804_v20  ;;  %v4924_v55 = vrot.slane %v4923_v62, 4  ;;  %v3633_v23 = vunpack.c.l.b16 %v3589_v21 }
 0x285   : > { %v4407_v37 = vshrl.u32 %v4304_v2, 16  ;;  %v4928_v22 = vrot.slane %v4926_v36, 5  ;;  %v4932_v61 = vrot.slane %v4930_v25, 4  ;;  %v4936_v11 = vshll.u32 %v12264_v29, 16 }
 0x286   : > { %v12269_v52 = vpop.f32.mrf.mxu0  ;;  %v3594_v63 = vrot.slane %v3593_v16, 4  ;;  %v4410_v38 = vshll.u32 %v4304_v2, 16  ;;  %v4241_v53 = vadd.f32 %v11809_v5, %v4206_v18  ;;  %v3999_v13 = vrot.slane %v3997_v30, 4  ;;  %v12273_v50 = vpop.f32.mrf.mxu3  ;;  %v10136_v5 = vld [vmem:[%s10439_s25 + $0xc0] sm:$0xff] }
 0x287   : > { %v4409_v34 = vrot.slane %v4407_v37, 7  ;;  %v3083_v1 = vpop.f32.mrf.mxu2  ;;  %v4929_v41 = vsel %vm10463_vm3, %v4924_v55, %v4928_v22  ;;  %v4933_v62 = vor.u32 %v4932_v61, %v4928_v22  ;;  %v4000_v58 = vrot.slane %v12232_v60, 5 }
 0x288   : > { %v3599_v6 = vsel %vm10463_vm3, %v3594_v63, %v3598_v57  ;;  %v4273_v47 = vmax.f32 %v4241_v53, 0.0  ;;  %v3147_v15 = vadd.f32 %v3083_v1, %v11958_v43  ;;  %v4938_v20 = vrot.slane %v4936_v11, 5  ;;  %v5636_v43 = vld [vmem:[#allocation2] sm:$0xe]  ;;  %v12311_v1 = vld [vmem:[%s14506_s2] ss:$0 sm:$0xff] }
 0x289   : > { %v4412_v39 = vor.u32 %v4410_v38, %v4409_v34  ;;  %v4414_v21 = vrot.slane %v4409_v34, 4  ;;  %9589 = vmatmul.msk.bf16.gmra.mxu0 %vm776_vm0, %v4051_v7  ;;  %v4934_v2 = vrot.slane %v4933_v62, 4  ;;  %v3634_v36 = vunpack.c.l.b16 %v3599_v6  ;;  %v10157_v7 = vld [vmem:[%s14507_s3] sm:$0xff] }
 0x28a   : > { %v3998_v25 = vsel %vm10677_vm6, %v9568_v3, %v3997_v30  ;;  %v4305_v57 = vpack.c.bf16 %v4273_v47, %v4273_v47  ;;  %v3805_v37 = vadd.f32 %v12215_v10, %v3147_v15  ;;  %v4778_v18 = vld [vmem:[#allocation2 + $0x3c] sm:$0xf]  ;;  %v5217_v30 = vunpack.c.l.b16 %v4929_v41  ;;  %v10179_v10 = vld [vmem:[%s14507_s3 + $0x30] sm:$0xff]  ;;  %5554 = vmatpush.bf16.msrb.mxu2 %v10157_v7  ;;  %v10272_v62 = vld [vmem:[#allocation2 + $0x4] sm:$0xf] }
 0x28b   : > { %v4413_v16 = vsel %vm11981_vm14, %v4405_v40, %v4412_v39  ;;  %v4689_v60 = vsel %vm11989_vm15, %v4414_v21, %v4688_v44  ;;  %v4939_v3 = vsel %vm10463_vm3, %v4934_v2, %v4938_v20  ;;  %v3650_v55 = vpack.c.b16 %v3634_v36, %v3633_v23  ;;  %6214 = vmatpush.bf16.msrb.mxu0 %v10179_v10  ;;  %v4691_v39 = vld [vmem:[#allocation2 + $0x48] sm:$0xf] }
 0x28c   : > { %4687 = vst.msk [vmem:[#allocation2 + $0x40] sm:$0xf] %vm224_vm7, %v4413_v16  ;;  %v4001_v40 = vsel %vm10677_vm6, %v3999_v13, %v4000_v58  ;;  %v4416_v22 = vshrl.u32 %v4305_v57, 16  ;;  %v4207_v61 = vadd.f32 %v12240_v24, %v3805_v37  ;;  %9465 = vmatmul.msk.bf16.gmra.mxu2 %vm776_vm0, %v10136_v5  ;;  %v5218_v11 = vunpack.c.l.b16 %v4939_v3  ;;  %v5637_v58 = vld [vmem:[#allocation2 + $0xc] sm:$0xe] }
 0x28d   : > { %4690 = vst [vmem:[#allocation2 + $0x44] sm:$0x1] %v4689_v60  ;;  %v4035_v63 = vunpack.c.l.b16 %v3998_v25  ;;  %v4419_v34 = vshll.u32 %v4305_v57, 16  ;;  %v4941_v23 = vshrl.u32 %v4778_v18, 16  ;;  %v4944_v53 = vshll.u32 %v4778_v18, 16 }
 0x28e   : > { %v12304_v38 = vpop.f32.mrf.mxu0  ;;  %v9707_v13 = vrot.slane %v5636_v43, 9  ;;  %v12306_v44 = vrot.slane %v4416_v22, 7  ;;  %v4242_v24 = vadd.f32 %v12311_v1, %v4207_v61  ;;  %v5245_v41 = vpack.c.b16 %v5218_v11, %v5217_v30  ;;  %v12314_v47 = vpop.f32.mrf.mxu3 }
 0x28f   : > { %9536 = vmatmul.msk.bf16.gmra.mxu3 %vm776_vm0, %v3650_v55  ;;  %v5686_v6 = vrot.slane %v10272_v62, 5  ;;  %v3086_v21 = vpop.f32.mrf.mxu2  ;;  %v4036_v15 = vunpack.c.l.b16 %v4001_v40  ;;  %v4943_v5 = vrot.slane %v4941_v23, 4  ;;  %v4946_v2 = vrot.slane %v4944_v53, 5 }
 0x290   : > { %v5689_v20 = vrot.slane %v11885_v26, 5  ;;  %v4421_v36 = vor.u32 %v4419_v34, %v12306_v44  ;;  %v4274_v25 = vmax.f32 %v4242_v24, 0.0  ;;  %v3148_v16 = vadd.f32 %v3086_v21, %v11349_v33  ;;  %9607 = vmatmul.msk.bf16.gmra.mxu1 %vm5269_vm12, %v5245_v41  ;;  %v4695_v41 = vld [vmem:[#allocation2 + $0x50] sm:$0x1] }
 0x291   : > { %v5693_v60 = vrot.slane %v12047_v12, 5  ;;  %v12323_v57 = vadd.f32 %v11346_v28, %v11400_v48  ;;  %v4947_v37 = vor.u32 %v4946_v2, %v4943_v5  ;;  %v5688_v18 = vrot.slane %v5686_v6, 4 }
 0x292   : > { %v9708_v43 = vrot.slane %v5637_v58, 9  ;;  %v4692_v7 = vsel %vm11921_vm13, %v4421_v36, %v4691_v39  ;;  %v4306_v26 = vpack.c.bf16 %v4274_v25, %v4274_v25  ;;  %v3806_v3 = vadd.f32 %v12247_v45, %v3148_v16  ;;  %v10137_v25 = vld [vmem:[%s10439_s25 + $0xcc] sm:$0xff]  ;;  %v5638_v16 = vld [vmem:[#allocation2 + $0x18] sm:$0xe]  ;;  %s10290_s25 = scalar_lea.hbm %s10289_s23, 256 }
 0x293   : > { %v12328_v30 = vld [vmem:[#allocation2 + $0x40] sm:$0xf]  ;;  %v5687_v33 = vsel %vm10677_vm6, %v9707_v13, %v5686_v6  ;;  %v4422_v12 = vrot.slane %v12306_v44, 4  ;;  %4693 = vst [vmem:[#allocation2 + $0x48] sm:$0xf] %v4692_v7  ;;  %v4052_v55 = vpack.c.b16 %v4036_v15, %v4035_v63  ;;  %v5690_v48 = vsel %vm10677_vm6, %v5688_v18, %v5689_v20  ;;  %p10291_p11 = scmp.ne.s32.totalorder %s10289_s23, %s10290_s25  ;;  %p10296_p1 = scmp.lt.s32.totalorder %s10294_s6, %s10290_s25 }
 0x294   : > { %v4950_v28 = vshll.u32 %v12328_v30, 16  ;;  %v4424_v40 = vshrl.u32 %v4306_v26, 16  ;;  %v4208_v10 = vadd.f32 %v12269_v52, %v3806_v3  ;;  %v12337_v22 = vld [vmem:[#allocation2 + $0x44] sm:$0x1]  ;;  %v4954_v45 = vshrl.u32 %v12328_v30, 16 }
 0x295   : > { %v12342_v61 = vsel %vm10677_vm6, %v9708_v43, %v5693_v60  ;;  %v4948_v34 = vrot.slane %v4947_v37, 4  ;;  %v5801_v23 = vunpack.c.l.b16 %v5687_v33  ;;  %v5802_v53 = vunpack.c.l.b16 %v5690_v48  ;;  %p10292_p12 = pnand %p10291_p11, %p10409_p5  ;;  %p10297_p2 = por %p10296_p1, %p10295_p0 }
 0x296   : > { %v12344_v11 = vpop.f32.mrf.mxu0  ;;  %v4952_v63 = vrot.slane %v4950_v28, 5  ;;  %v4426_v13 = vrot.slane %v4424_v40, 7  ;;  %v4427_v44 = vshll.u32 %v4306_v26, 16  ;;  %v4243_v24 = vadd.f32 %v12311_v1, %v4208_v10  ;;  %v12347_v6 = vpop.f32.mrf.mxu3 }
 0x297   : > { %v4956_v52 = vrot.slane %v4954_v45, 4  ;;  %v3088_v62 = vpop.f32.mrf.mxu2  ;;  %v4960_v58 = vshll.u32 %v12337_v22, 16  ;;  %v5695_v39 = vrot.slane %v5693_v60, 4  ;;  %v5696_v21 = vrot.slane %v12049_v9, 5  ;;  %p10293_p13 = pneg %p10292_p12 }
 0x298   : > { %v5803_v15 = vunpack.c.l.b16 %v12342_v61  ;;  %v4429_v5 = vor.u32 %v4427_v44, %v4426_v13  ;;  %v4431_v2 = vrot.slane %v4426_v13, 4  ;;  %v4275_v20 = vmax.f32 %v4243_v24, 0.0  ;;  %v5639_v24 = vld [vmem:[#allocation2 + $0x24] sm:$0xe] }
 0x299   : > { %v3149_v36 = vadd.f32 %v3088_v62, %v12181_v27  ;;  %9590 = vmatmul.msk.bf16.gmra.mxu0 %vm776_vm0, %v4052_v55  ;;  %v4953_v37 = vsel %vm10463_vm3, %v4948_v34, %v4952_v63  ;;  %v4957_v18 = vor.u32 %v4956_v52, %v4952_v63  ;;  %v5833_v43 = vpack.c.b16 %v5802_v53, %v5801_v23  ;;  %v4698_v52 = vld [vmem:[#allocation2 + $0x54] sm:$0xf]  ;;  %p10298_p3 = pnand %p10297_p2, %p10293_p13 }
 0x29a   : > { %v5700_v60 = vrot.slane %v12116_v56, 5  ;;  %v4430_v9 = vsel %vm11981_vm14, %v4422_v12, %v4429_v5  ;;  %v4696_v7 = vsel %vm11989_vm15, %v4431_v2, %v4695_v41  ;;  %v4307_v26 = vpack.c.bf16 %v4275_v20, %v4275_v20  ;;  %v4780_v3 = vld [vmem:[#allocation2 + $0x48] sm:$0xf] }
 0x29b   : > { %v3807_v27 = vadd.f32 %v12273_v50, %v3149_v36  ;;  %4694 = vst.msk [vmem:[#allocation2 + $0x4c] sm:$0xf] %vm224_vm7, %v4430_v9  ;;  %v4958_v33 = vrot.slane %v4957_v18, 4  ;;  %v4962_v55 = vrot.slane %v4960_v58, 5  ;;  %v4965_v28 = vshrl.u32 %v4780_v3, 16 }
 0x29c   : > { %v9709_v48 = vrot.slane %v5638_v16, 9  ;;  %4697 = vst [vmem:[#allocation2 + $0x50] sm:$0x1] %v4696_v7  ;;  %v4433_v40 = vshrl.u32 %v4307_v26, 16  ;;  %9466 = vmatmul.msk.bf16.gmra.mxu2 %vm776_vm0, %v10137_v25  ;;  %v4968_v12 = vshll.u32 %v4780_v3, 16  ;;  %v5697_v10 = vsel %vm10677_vm6, %v5695_v39, %v5696_v21 }
 0x29d   : > { %v4209_v56 = vadd.f32 %v12304_v38, %v3807_v27  ;;  %v4436_v45 = vshll.u32 %v4307_v26, 16  ;;  %v4963_v50 = vsel %vm10463_vm3, %v4958_v33, %v4962_v55  ;;  %v4967_v63 = vrot.slane %v4965_v28, 4 }
 0x29e   : > { %v12370_v34 = vpop.f32.mrf.mxu0  ;;  %v5702_v23 = vrot.slane %v5700_v60, 4  ;;  %v12373_v53 = vrot.slane %v4433_v40, 7  ;;  %v5220_v13 = vunpack.c.l.b16 %v4963_v50  ;;  %v4970_v44 = vrot.slane %v4968_v12, 5  ;;  %v12376_v58 = vpop.f32.mrf.mxu3 }
 0x29f   : > { %9735 = vmatmul.msk.bf16.vlgmr.msrb.gmra.mxu3 %vm5269_vm12, %v5833_v43  ;;  %v4244_v38 = vadd.f32 %v12311_v1, %v4209_v56  ;;  %v3091_v41 = vpop.f32.mrf.mxu2  ;;  %v5219_v62 = vunpack.c.l.b16 %v4953_v37  ;;  %v5804_v39 = vunpack.c.l.b16 %v5697_v10  ;;  %v5701_v21 = vsel %vm10677_vm6, %v9709_v48, %v5700_v60 }
 0x2a0   : > { %v5703_v5 = vrot.slane %v12121_v35, 5  ;;  %v4438_v2 = vor.u32 %v4436_v45, %v12373_v53  ;;  %v3150_v36 = vadd.f32 %v3091_v41, %v11386_v51  ;;  %v5707_v25 = vrot.slane %v12188_v0, 5 }
 0x2a1   : > { %v4276_v20 = vmax.f32 %v4244_v38, 0.0  ;;  %v5246_v16 = vpack.c.b16 %v5220_v13, %v5219_v62  ;;  %v4971_v18 = vor.u32 %v4970_v44, %v4967_v63  ;;  %v9710_v43 = vrot.slane %v5639_v24, 9  ;;  %v10163_v63 = vld [vmem:[#allocation2 + $0xc] sm:$0xff] }
 0x2a2   : > { %v5704_v37 = vsel %vm10677_vm6, %v5702_v23, %v5703_v5  ;;  %v4699_v9 = vsel %vm11921_vm13, %v4438_v2, %v4698_v52  ;;  %v3808_v60 = vadd.f32 %v12314_v47, %v3150_v36  ;;  %v12389_v35 = vld [vmem:[#allocation2 + $0x4c] sm:$0xf]  ;;  %v4439_v27 = vrot.slane %v12373_v53, 4  ;;  %v5640_v23 = vld [vmem:[#allocation2 + $0x30] sm:$0xe]  ;;  %v10141_v2 = vld [vmem:[#allocation2] sm:$0xff] }
 0x2a3   : > { %v4308_v7 = vpack.c.bf16 %v4276_v20, %v4276_v20  ;;  %v5806_v26 = vunpack.c.l.b16 %v5704_v37  ;;  %4700 = vst [vmem:[#allocation2 + $0x54] sm:$0xf] %v4699_v9  ;;  %9608 = vmatmul.msk.bf16.gmra.mxu1 %vm5269_vm12, %v5246_v16  ;;  %v4974_v51 = vshll.u32 %v12389_v35, 16  ;;  %v5834_v0 = vpack.c.b16 %v5804_v39, %v5803_v15  ;;  %v12397_v28 = vld [vmem:[#allocation2 + $0x50] sm:$0x1] }
 0x2a4   : > { %v5805_v3 = vunpack.c.l.b16 %v5701_v21  ;;  %v4210_v55 = vadd.f32 %v12344_v11, %v3808_v60  ;;  %v4978_v47 = vshrl.u32 %v12389_v35, 16  ;;  %v5708_v48 = vsel %vm10677_vm6, %v9710_v43, %v5707_v25  ;;  %v4702_v53 = vld [vmem:[#allocation2 + $0x5c] sm:$0x1] }
 0x2a5   : > { %v4441_v33 = vshrl.u32 %v4308_v7, 16  ;;  %v4972_v56 = vrot.slane %v4971_v18, 4  ;;  %v4976_v12 = vrot.slane %v4974_v51, 5  ;;  %v5709_v45 = vrot.slane %v5707_v25, 4 }
 0x2a6   : > { %v12402_v40 = vpop.f32.mrf.mxu0  ;;  %v12404_v10 = vpack.c.b16 %v5806_v26, %v5805_v3  ;;  %v4444_v15 = vshll.u32 %v4308_v7, 16  ;;  %v4245_v50 = vadd.f32 %v12311_v1, %v4210_v55  ;;  %v4980_v11 = vrot.slane %v4978_v47, 4  ;;  %v12407_v13 = vpop.f32.mrf.mxu3 }
 0x2a7   : > { %v4443_v61 = vrot.slane %v4441_v33, 7  ;;  %v3093_v38 = vpop.f32.mrf.mxu2  ;;  %v4984_v44 = vshll.u32 %v12397_v28, 16  ;;  %v5710_v24 = vrot.slane %v12193_v54, 5  ;;  %v5807_v52 = vunpack.c.l.b16 %v5708_v48 }
 0x2a8   : > { %v5714_v41 = vrot.slane %v12261_v8, 5  ;;  %v4277_v21 = vmax.f32 %v4245_v50, 0.0  ;;  %v3151_v5 = vadd.f32 %v3093_v38, %v12323_v57  ;;  %v4977_v20 = vsel %vm10463_vm3, %v4972_v56, %v4976_v12 }
 0x2a9   : > { %v4446_v62 = vor.u32 %v4444_v15, %v4443_v61  ;;  %v4448_v39 = vrot.slane %v4443_v61, 4  ;;  %9827 = vmatmul.msk.bf16.vlgmr.msrb.gmra.mxu0 %vm5269_vm12, %v10163_v63  ;;  %v4981_v36 = vor.u32 %v4980_v11, %v4976_v12  ;;  %v5711_v25 = vsel %vm10677_vm6, %v5709_v45, %v5710_v24  ;;  %v4705_v12 = vld [vmem:[#allocation2 + $0x60] sm:$0xf] }
 0x2aa   : > { %v9711_v16 = vrot.slane %v5640_v23, 9  ;;  %v4309_v18 = vpack.c.bf16 %v4277_v21, %v4277_v21  ;;  %v3809_v57 = vadd.f32 %v12347_v6, %v3151_v5  ;;  %v4986_v43 = vrot.slane %v4984_v44, 5 }
 0x2ab   : > { %v4447_v54 = vsel %vm11981_vm14, %v4439_v27, %v4446_v62  ;;  %v4703_v8 = vsel %vm11989_vm15, %v4448_v39, %v4702_v53  ;;  %v4982_v37 = vrot.slane %v4981_v36, 4  ;;  %v5808_v9 = vunpack.c.l.b16 %v5711_v25 }
 0x2ac   : > { %4701 = vst.msk [vmem:[#allocation2 + $0x58] sm:$0xf] %vm224_vm7, %v4447_v54  ;;  %v5716_v7 = vrot.slane %v5714_v41, 4  ;;  %v4450_v60 = vshrl.u32 %v4309_v18, 16  ;;  %v4211_v26 = vadd.f32 %v12370_v34, %v3809_v57  ;;  %9691 = vmatmul.msk.bf16.vlgmr.msrb.gmra.mxu2 %vm5269_vm12, %v10141_v2  ;;  %v5715_v27 = vsel %vm10677_vm6, %v9711_v16, %v5714_v41  ;;  %v4782_v41 = vld [vmem:[#allocation2 + $0x54] sm:$0xf] }
 0x2ad   : > { %4704 = vst [vmem:[#allocation2 + $0x5c] sm:$0x1] %v4703_v8  ;;  %v5717_v51 = vrot.slane %v12264_v29, 5  ;;  %v4453_v3 = vshll.u32 %v4309_v18, 16  ;;  %v4987_v6 = vsel %vm10463_vm3, %v4982_v37, %v4986_v43  ;;  %v12434_v55 = vpack.c.b16 %v5808_v9, %v5807_v52  ;;  %v10164_v54 = vld [vmem:[#allocation2 + $0x18] sm:$0xff] }
 0x2ae   : > { %v12431_v33 = vpop.f32.mrf.mxu0  ;;  %v4452_v47 = vrot.slane %v4450_v60, 7  ;;  %v4246_v34 = vadd.f32 %v12311_v1, %v4211_v26  ;;  %v5222_v48 = vunpack.c.l.b16 %v4987_v6  ;;  %v5221_v29 = vunpack.c.l.b16 %v4977_v20  ;;  %v12439_v61 = vpop.f32.mrf.mxu3  ;;  %v5641_v57 = vld [vmem:[#allocation2 + $0x3c] sm:$0xe] }
 0x2af   : > { %9736 = vmatmul.msk.bf16.gmra.mxu3 %vm5269_vm12, %v5834_v0  ;;  %v5718_v56 = vsel %vm10677_vm6, %v5716_v7, %v5717_v51  ;;  %v3096_v45 = vpop.f32.mrf.mxu2  ;;  %v5809_v15 = vunpack.c.l.b16 %v5715_v27  ;;  %v2862_v52 = vadd.f32 %v11380_v19, %v11438_v42  ;;  %v4989_v2 = vshrl.u32 %v4782_v41, 16 }
 0x2b0   : > { %v5810_v50 = vunpack.c.l.b16 %v5718_v56  ;;  %v4455_v63 = vor.u32 %v4453_v3, %v4452_v47  ;;  %v4278_v11 = vmax.f32 %v4246_v34, 0.0  ;;  %v3152_v0 = vadd.f32 %v3096_v45, %v11426_v4 }
 0x2b1   : > { %v5247_v23 = vpack.c.b16 %v5222_v48, %v5221_v29  ;;  %v4456_v39 = vrot.slane %v4452_v47, 4  ;;  %v4991_v8 = vrot.slane %v4989_v2, 4  ;;  %v5721_v26 = vrot.slane %v12328_v30, 5 }
 0x2b2   : > { %v12442_v53 = vpack.c.b16 %v5810_v50, %v5809_v15  ;;  %v4706_v38 = vsel %vm11921_vm13, %v4455_v63, %v4705_v12  ;;  %v4310_v44 = vpack.c.bf16 %v4278_v11, %v4278_v11  ;;  %v3810_v24 = vadd.f32 %v12376_v58, %v3152_v0  ;;  %v10142_v15 = vld [vmem:[#allocation2 + $0xc] sm:$0xff] }
 0x2b3   : > { %4707 = vst [vmem:[#allocation2 + $0x60] sm:$0xf] %v4706_v38  ;;  %9609 = vmatmul.msk.bf16.gmra.mxu1 %vm5269_vm12, %v5247_v23  ;;  %v12450_v62 = vld [vmem:[#allocation2 + $0x58] sm:$0xf]  ;;  %v4992_v58 = vshll.u32 %v4782_v41, 16  ;;  %v9712_v48 = vrot.slane %v5641_v57, 9 }
 0x2b4   : > { %v4458_v4 = vshrl.u32 %v4310_v44, 16  ;;  %v4212_v21 = vadd.f32 %v12402_v40, %v3810_v24  ;;  %v12453_v5 = vld [vmem:[#allocation2 + $0x5c] sm:$0x1]  ;;  %v4461_v20 = vshll.u32 %v4310_v44, 16  ;;  %v4998_v25 = vshll.u32 %v12450_v62, 16 }
 0x2b5   : > { %v5002_v19 = vshrl.u32 %v12450_v62, 16  ;;  %v5008_v18 = vshll.u32 %v12453_v5, 16  ;;  %v4709_v40 = vld [vmem:[#allocation2 + $0x68] sm:$0x1]  ;;  %v4994_v9 = vrot.slane %v4992_v58, 5  ;;  %v5723_v11 = vrot.slane %v5721_v26, 4 }
 0x2b6   : > { %v12455_v36 = vpop.f32.mrf.mxu0  ;;  %v4460_v42 = vrot.slane %v4458_v4, 7  ;;  %v4247_v16 = vadd.f32 %v12311_v1, %v4212_v21  ;;  %v12461_v43 = vpop.f32.mrf.mxu3  ;;  %v5000_v7 = vrot.slane %v4998_v25, 5  ;;  %v5722_v24 = vsel %vm10677_vm6, %v9712_v48, %v5721_v26  ;;  %v4712_v21 = vld [vmem:[#allocation2 + $0x6c] sm:$0xf] }
 0x2b7   : > { %v3098_v37 = vpop.f32.mrf.mxu2  ;;  %v5004_v60 = vrot.slane %v5002_v19, 4  ;;  %v4995_v47 = vor.u32 %v4994_v9, %v4991_v8  ;;  %v5010_v63 = vrot.slane %v5008_v18, 5  ;;  %v12495_v9 = vpop.f32.mrf.mxu1  ;;  %vm8846_vm0 = vcmask 523264  }
 0x2b8   : > { %v4463_v27 = vor.u32 %v4461_v20, %v4460_v42  ;;  %v4465_v51 = vrot.slane %v4460_v42, 4  ;;  %v4279_v3 = vmax.f32 %v4247_v16, 0.0  ;;  %v3153_v6 = vadd.f32 %v3098_v37, %v2862_v52 }
 0x2b9   : > { %9828 = vmatmul.msk.bf16.gmra.mxu0 %vm5269_vm12, %v10164_v54  ;;  %v5005_v34 = vor.u32 %v5004_v60, %v5000_v7  ;;  %v4996_v30 = vrot.slane %v4995_v47, 4  ;;  %v5724_v52 = vrot.slane %v12337_v22, 5  ;;  %v5811_v54 = vunpack.c.l.b16 %v5722_v24 }
 0x2ba   : > { %v4464_v56 = vsel %vm11981_vm14, %v4456_v39, %v4463_v27  ;;  %v4710_v12 = vsel %vm11989_vm15, %v4465_v51, %v4709_v40  ;;  %v4311_v45 = vpack.c.bf16 %v4279_v3, %v4279_v3  ;;  %v3811_v29 = vadd.f32 %v12407_v13, %v3153_v6  ;;  %v14565_v40 = vld [vmem:[#allocation17_spill] sm:$0xff] }
 0x2bb   : > { %4708 = vst.msk [vmem:[#allocation2 + $0x64] sm:$0xf] %vm224_vm7, %v4464_v56  ;;  %v5006_v50 = vrot.slane %v5005_v34, 4  ;;  %v5001_v38 = vsel %vm10463_vm3, %v4996_v30, %v5000_v7  ;;  %v5725_v25 = vsel %vm10677_vm6, %v5723_v11, %v5724_v52  ;;  %v2864_v37 = vadd.f32 %v14565_v40, %v11479_v46  ;;  %v4784_v7 = vld [vmem:[#allocation2 + $0x60] sm:$0xf] }
 0x2bc   : > { %4711 = vst [vmem:[#allocation2 + $0x68] sm:$0x1] %v4710_v12  ;;  %v4467_v0 = vshrl.u32 %v4311_v45, 16  ;;  %v4213_v23 = vadd.f32 %v12431_v33, %v3811_v29  ;;  %9692 = vmatmul.msk.bf16.gmra.mxu2 %vm5269_vm12, %v10142_v15  ;;  %v4470_v33 = vshll.u32 %v4311_v45, 16  ;;  %v5223_v20 = vunpack.c.l.b16 %v5001_v38  ;;  %v10181_v46 = vld [vmem:[%s14507_s3 + $0x40] sm:$0xff] }
 0x2bd   : > { %v5011_v44 = vsel %vm10463_vm3, %v5006_v50, %v5010_v63  ;;  %v5812_v22 = vunpack.c.l.b16 %v5725_v25  ;;  %v5016_v34 = vshll.u32 %v4784_v7, 16  ;;  %v10165_v29 = vld [vmem:[#allocation2 + $0x24] sm:$0xff]  ;;  %6880 = vmatpush.bf16.msrb.mxu1 %v10181_v46  ;;  %v4716_v50 = vld [vmem:[#allocation2 + $0x74] sm:$0x1] }
 0x2be   : > { %v12477_v13 = vpop.f32.mrf.mxu0  ;;  %v4469_v41 = vrot.slane %v4467_v0, 7  ;;  %v4248_v39 = vadd.f32 %v12311_v1, %v4213_v23  ;;  %v5224_v4 = vunpack.c.l.b16 %v5011_v44  ;;  %v12485_v58 = vpop.f32.mrf.mxu3  ;;  %v5642_v30 = vld [vmem:[#allocation2 + $0x48] sm:$0xe]  ;;  %v5728_v44 = vrot.slane %v12389_v35, 5 }
 0x2bf   : > { %9737 = vmatmul.msk.bf16.gmra.mxu3 %vm5269_vm12, %v12404_v10  ;;  %v3101_v2 = vpop.f32.mrf.mxu2  ;;  %v5018_v0 = vrot.slane %v5016_v34, 5 }
 0x2c0   : > { %v4472_v19 = vor.u32 %v4470_v33, %v4469_v41  ;;  %v4280_v10 = vmax.f32 %v4248_v39, 0.0  ;;  %v3154_v42 = vadd.f32 %v3101_v2, %v11465_v59  ;;  %v5248_v16 = vpack.c.b16 %v5224_v4, %v5223_v20 }
 0x2c1   : > { %v12500_v59 = vpack.c.b16 %v5812_v22, %v5811_v54  ;;  %v4473_v26 = vrot.slane %v4469_v41, 4  ;;  %v5730_v22 = vrot.slane %v5728_v44, 4  ;;  %8664 = vmatpush.bf16.msra.mxu1 %v10206_v49 }
 0x2c2   : > { %v4713_v8 = vsel %vm11921_vm13, %v4472_v19, %v4712_v21  ;;  %v4312_v18 = vpack.c.bf16 %v4280_v10, %v4280_v10  ;;  %v3812_v57 = vadd.f32 %v12439_v61, %v3154_v42  ;;  %v12498_v60 = vld [vmem:[#allocation2 + $0x64] sm:$0xf]  ;;  %v5013_v61 = vshrl.u32 %v4784_v7, 16  ;;  %v10143_v10 = vld [vmem:[#allocation2 + $0x18] sm:$0xff]  ;;  %v12524_v35 = vpop.f32.mrf.mxu1 }
 0x2c3   : > { %4714 = vst [vmem:[#allocation2 + $0x6c] sm:$0xf] %v4713_v8  ;;  %9610 = vmatmul.msk.bf16.gmra.mxu1 %vm5269_vm12, %v5248_v16  ;;  %v12503_v3 = vld [vmem:[#allocation2 + $0x68] sm:$0x1]  ;;  %v5022_v48 = vshll.u32 %v12498_v60, 16  ;;  %v5026_v56 = vshrl.u32 %v12498_v60, 16 }
 0x2c4   : > { %v4475_v27 = vshrl.u32 %v4312_v18, 16  ;;  %v4214_v51 = vadd.f32 %v12455_v36, %v3812_v57  ;;  %v4478_v6 = vshll.u32 %v4312_v18, 16  ;;  %v5015_v36 = vrot.slane %v5013_v61, 4  ;;  %v4719_v61 = vld [vmem:[#allocation2 + $0x78] sm:$0xf] }
 0x2c5   : > { %v5032_v15 = vshll.u32 %v12503_v3, 16  ;;  %v5024_v23 = vrot.slane %v5022_v48, 5  ;;  %v5028_v38 = vrot.slane %v5026_v56, 4  ;;  %v9713_v21 = vrot.slane %v5642_v30, 9 }
 0x2c6   : > { %v12508_v47 = vpop.f32.mrf.mxu0  ;;  %v4477_v12 = vrot.slane %v4475_v27, 7  ;;  %v4249_v45 = vadd.f32 %v12311_v1, %v4214_v51  ;;  %v12514_v11 = vpop.f32.mrf.mxu3  ;;  %v5019_v39 = vor.u32 %v5018_v0, %v5015_v36  ;;  %v5731_v7 = vrot.slane %v12397_v28, 5  ;;  %v14568_v0 = vld [vmem:[#allocation18_spill] sm:$0xff] }
 0x2c7   : > { %v3103_v63 = vpop.f32.mrf.mxu2  ;;  %v5029_v4 = vor.u32 %v5028_v38, %v5024_v23  ;;  %v5034_v54 = vrot.slane %v5032_v15, 5 }
 0x2c8   : > { %v4480_v24 = vor.u32 %v4478_v6, %v4477_v12  ;;  %v4482_v52 = vrot.slane %v4477_v12, 4  ;;  %v4281_v41 = vmax.f32 %v4249_v45, 0.0  ;;  %v3155_v33 = vadd.f32 %v3103_v63, %v2864_v37  ;;  %v14566_v12 = vld [vmem:[#allocation19_spill] sm:$0xff]  ;;  %v14567_v63 = vld [vmem:[#allocation20_spill] sm:$0xff] }
 0x2c9   : > { %9829 = vmatmul.msk.bf16.gmra.mxu0 %vm5269_vm12, %v10165_v29  ;;  %v5020_v42 = vrot.slane %v5019_v39, 4  ;;  %v5030_v16 = vrot.slane %v5029_v4, 4  ;;  %v5729_v37 = vsel %vm10677_vm6, %v9713_v21, %v5728_v44  ;;  %v5732_v48 = vsel %vm10677_vm6, %v5730_v22, %v5731_v7  ;;  %v5643_v22 = vld [vmem:[#allocation2 + $0x54] sm:$0xe] }
 0x2ca   : > { %v4481_v2 = vsel %vm11981_vm14, %v4473_v26, %v4480_v24  ;;  %v4717_v20 = vsel %vm11989_vm15, %v4482_v52, %v4716_v50  ;;  %v4313_v25 = vpack.c.bf16 %v4281_v41, %v4281_v41  ;;  %v3813_v19 = vadd.f32 %v12461_v43, %v3155_v33  ;;  %v4786_v38 = vld [vmem:[#allocation2 + $0x6c] sm:$0xf] }
 0x2cb   : > { %4715 = vst.msk [vmem:[#allocation2 + $0x70] sm:$0xf] %vm224_vm7, %v4481_v2  ;;  %v5025_v57 = vsel %vm10463_vm3, %v5020_v42, %v5024_v23  ;;  %v5035_v43 = vsel %vm10463_vm3, %v5030_v16, %v5034_v54  ;;  %v5813_v36 = vunpack.c.l.b16 %v5729_v37  ;;  %v5814_v28 = vunpack.c.l.b16 %v5732_v48  ;;  %v10166_v16 = vld [vmem:[#allocation2 + $0x30] sm:$0xff] }
 0x2cc   : > { %4718 = vst [vmem:[#allocation2 + $0x74] sm:$0x1] %v4717_v20  ;;  %v4484_v8 = vshrl.u32 %v4313_v25, 16  ;;  %v4215_v18 = vadd.f32 %v12477_v13, %v3813_v19  ;;  %9693 = vmatmul.msk.bf16.gmra.mxu2 %vm5269_vm12, %v10143_v10  ;;  %v4487_v13 = vshll.u32 %v4313_v25, 16  ;;  %v5226_v51 = vunpack.c.l.b16 %v5035_v43 }
 0x2cd   : > { %v5225_v6 = vunpack.c.l.b16 %v5025_v57  ;;  %v2866_v23 = vadd.f32 %v14568_v0, %v14567_v63  ;;  %v12553_v24 = vpack.c.b16 %v5814_v28, %v5813_v36  ;;  %v5037_v4 = vshrl.u32 %v4786_v38, 16 }
 0x2ce   : > { %v12532_v40 = vpop.f32.mrf.mxu0  ;;  %v4486_v26 = vrot.slane %v4484_v8, 7  ;;  %v4250_v27 = vadd.f32 %v12311_v1, %v4215_v18  ;;  %v12540_v34 = vpop.f32.mrf.mxu3  ;;  %v5040_v20 = vshll.u32 %v4786_v38, 16  ;;  %v4723_v8 = vld [vmem:[#allocation2 + $0x80] sm:$0x1]  ;;  %v9714_v48 = vrot.slane %v5643_v22, 9 }
 0x2cf   : > { %9738 = vmatmul.msk.bf16.gmra.mxu3 %vm5269_vm12, %v12434_v55  ;;  %v3106_v46 = vpop.f32.mrf.mxu2  ;;  %v5249_v29 = vpack.c.b16 %v5226_v51, %v5225_v6  ;;  %v5039_v54 = vrot.slane %v5037_v4, 4 }
 0x2d0   : > { %v4489_v56 = vor.u32 %v4487_v13, %v4486_v26  ;;  %v4282_v55 = vmax.f32 %v4250_v27, 0.0  ;;  %v3156_v45 = vadd.f32 %v3106_v46, %v14566_v12  ;;  %v4490_v52 = vrot.slane %v4486_v26, 4 }
 0x2d1   : > { %v5042_v43 = vrot.slane %v5040_v20, 5  ;;  %v5735_v26 = vrot.slane %v12450_v62, 5 }
 0x2d2   : > { %v4720_v15 = vsel %vm11921_vm13, %v4489_v56, %v4719_v61  ;;  %v4314_v30 = vpack.c.bf16 %v4282_v55, %v4282_v55  ;;  %v3814_v50 = vadd.f32 %v12485_v58, %v3156_v45  ;;  %v12551_v44 = vld [vmem:[#allocation2 + $0x70] sm:$0xf]  ;;  %v12558_v58 = vpop.f32.mrf.mxu1 }
 0x2d3   : > { %4721 = vst [vmem:[#allocation2 + $0x78] sm:$0xf] %v4720_v15  ;;  %9611 = vmatmul.msk.bf16.gmra.mxu1 %vm5269_vm12, %v5249_v29  ;;  %v12556_v39 = vld [vmem:[#allocation2 + $0x74] sm:$0x1]  ;;  %v5046_v25 = vshll.u32 %v12551_v44, 16  ;;  %v5050_v19 = vshrl.u32 %v12551_v44, 16  ;;  %v5043_v46 = vor.u32 %v5042_v43, %v5039_v54  ;;  %v5736_v38 = vsel %vm10677_vm6, %v9714_v48, %v5735_v26 }
 0x2d4   : > { %v4492_v41 = vshrl.u32 %v4314_v30, 16  ;;  %v4216_v33 = vadd.f32 %v12508_v47, %v3814_v50  ;;  %v4495_v21 = vshll.u32 %v4314_v30, 16  ;;  %v5056_v47 = vshll.u32 %v12556_v39, 16  ;;  %v10144_v29 = vld [vmem:[#allocation2 + $0x24] sm:$0xff] }
 0x2d5   : > { %v5048_v37 = vrot.slane %v5046_v25, 5  ;;  %v5052_v7 = vrot.slane %v5050_v19, 4  ;;  %v5044_v62 = vrot.slane %v5043_v46, 4  ;;  %v5737_v15 = vrot.slane %v5735_v26, 4 }
 0x2d6   : > { %v12560_v2 = vpop.f32.mrf.mxu0  ;;  %v4494_v10 = vrot.slane %v4492_v41, 7  ;;  %v4251_v42 = vadd.f32 %v12311_v1, %v4216_v33  ;;  %v12566_v57 = vpop.f32.mrf.mxu3  ;;  %v5058_v28 = vrot.slane %v5056_v47, 5  ;;  %v5815_v22 = vunpack.c.l.b16 %v5736_v38 }
 0x2d7   : > { %v3108_v18 = vpop.f32.mrf.mxu2  ;;  %v5053_v6 = vor.u32 %v5052_v7, %v5048_v37  ;;  %v5049_v0 = vsel %vm10463_vm3, %v5044_v62, %v5048_v37  ;;  %v14570_v37 = vld [vmem:[#allocation23_spill] sm:$0xff]  ;;  %v14571_v7 = vld [vmem:[#allocation21_spill] sm:$0xff] }
 0x2d8   : > { %v4497_v13 = vor.u32 %v4495_v21, %v4494_v10  ;;  %v4499_v27 = vrot.slane %v4494_v10, 4  ;;  %v4283_v51 = vmax.f32 %v4251_v42, 0.0  ;;  %v3157_v61 = vadd.f32 %v3108_v18, %v2866_v23  ;;  %v4726_v21 = vld [vmem:[#allocation2 + $0x84] sm:$0xf] }
 0x2d9   : > { %9830 = vmatmul.msk.bf16.gmra.mxu0 %vm5269_vm12, %v10166_v16  ;;  %v5054_v36 = vrot.slane %v5053_v6, 4  ;;  %v5227_v25 = vunpack.c.l.b16 %v5049_v0  ;;  %v14569_v16 = vld [vmem:[#allocation22_spill] sm:$0xff]  ;;  %v2868_v26 = vadd.f32 %v14571_v7, %v14570_v37  ;;  %v4730_v0 = vld [vmem:[#allocation2 + $0x8c] sm:$0x1] }
 0x2da   : > { %v4498_v56 = vsel %vm11981_vm14, %v4490_v52, %v4497_v13  ;;  %v4724_v55 = vsel %vm11989_vm15, %v4499_v27, %v4723_v8  ;;  %v4315_v12 = vpack.c.bf16 %v4283_v51, %v4283_v51  ;;  %v3815_v45 = vadd.f32 %v12514_v11, %v3157_v61  ;;  %v4788_v13 = vld [vmem:[#allocation2 + $0x78] sm:$0xf] }
 0x2db   : > { %4722 = vst.msk [vmem:[#allocation2 + $0x7c] sm:$0xf] %vm224_vm7, %v4498_v56  ;;  %v5059_v11 = vsel %vm10463_vm3, %v5054_v36, %v5058_v28  ;;  %v5061_v56 = vshrl.u32 %v4788_v13, 16 }
 0x2dc   : > { %4725 = vst [vmem:[#allocation2 + $0x80] sm:$0x1] %v4724_v55  ;;  %v4501_v30 = vshrl.u32 %v4315_v12, 16  ;;  %v4217_v50 = vadd.f32 %v12532_v40, %v3815_v45  ;;  %9694 = vmatmul.msk.bf16.gmra.mxu2 %vm5269_vm12, %v10144_v29  ;;  %v5738_v40 = vrot.slane %v12453_v5, 5  ;;  %v4504_v41 = vshll.u32 %v4315_v12, 16 }
 0x2dd   : > { %v12578_v63 = vpop.f32.mrf.mxu1  ;;  %v5228_v4 = vunpack.c.l.b16 %v5059_v11  ;;  %v5064_v45 = vshll.u32 %v4788_v13, 16 }
 0x2de   : > { %v12584_v23 = vpop.f32.mrf.mxu0  ;;  %v4503_v52 = vrot.slane %v4501_v30, 7  ;;  %v4252_v33 = vadd.f32 %v12311_v1, %v4217_v50  ;;  %v12592_v19 = vpop.f32.mrf.mxu3  ;;  %v5739_v10 = vsel %vm10677_vm6, %v5737_v15, %v5738_v40  ;;  %v10167_v15 = vld [vmem:[#allocation2 + $0x3c] sm:$0xff]  ;;  %v5063_v30 = vrot.slane %v5061_v56, 4 }
 0x2df   : > { %9739 = vmatmul.msk.bf16.gmra.mxu3 %vm5269_vm12, %v12442_v53  ;;  %v3111_v20 = vpop.f32.mrf.mxu2  ;;  %v5250_v47 = vpack.c.b16 %v5228_v4, %v5227_v25  ;;  %v5816_v5 = vunpack.c.l.b16 %v5739_v10  ;;  %v5644_v50 = vld [vmem:[#allocation2 + $0x60] sm:$0xe]  ;;  %v5066_v40 = vrot.slane %v5064_v45, 5 }
 0x2e0   : > { %v4506_v42 = vor.u32 %v4504_v41, %v4503_v52  ;;  %v4284_v53 = vmax.f32 %v4252_v33, 0.0  ;;  %v3158_v54 = vadd.f32 %v3111_v20, %v14569_v16  ;;  %v4507_v61 = vrot.slane %v4503_v52, 4 }
 0x2e1   : > { %v12605_v51 = vpack.c.b16 %v5816_v5, %v5815_v22  ;;  %v5742_v33 = vrot.slane %v12498_v60, 5  ;;  %v5067_v10 = vor.u32 %v5066_v40, %v5063_v30  ;;  %v10145_v5 = vld [vmem:[#allocation2 + $0x30] sm:$0xff] }
 0x2e2   : > { %v4727_v8 = vsel %vm11921_vm13, %v4506_v42, %v4726_v21  ;;  %v4316_v18 = vpack.c.bf16 %v4284_v53, %v4284_v53  ;;  %v3816_v43 = vadd.f32 %v12540_v34, %v3158_v54  ;;  %v12603_v27 = vld [vmem:[#allocation2 + $0x7c] sm:$0xf]  ;;  %v9715_v53 = vrot.slane %v5644_v50, 9 }
 0x2e3   : > { %4728 = vst [vmem:[#allocation2 + $0x84] sm:$0xf] %v4727_v8  ;;  %9612 = vmatmul.msk.bf16.gmra.mxu1 %vm5269_vm12, %v5250_v47  ;;  %v12608_v48 = vld [vmem:[#allocation2 + $0x80] sm:$0x1]  ;;  %v5070_v29 = vshll.u32 %v12603_v27, 16  ;;  %v5074_v62 = vshrl.u32 %v12603_v27, 16 }
 0x2e4   : > { %v4509_v46 = vshrl.u32 %v4316_v18, 16  ;;  %v4218_v6 = vadd.f32 %v12560_v2, %v3816_v43  ;;  %v4512_v55 = vshll.u32 %v4316_v18, 16  ;;  %v5080_v2 = vshll.u32 %v12608_v48, 16 }
 0x2e5   : > { %v12610_v34 = vpop.f32.mrf.mxu1  ;;  %v5072_v52 = vrot.slane %v5070_v29, 5  ;;  %v5076_v41 = vrot.slane %v5074_v62, 4  ;;  %v5068_v60 = vrot.slane %v5067_v10, 4  ;;  %v5744_v43 = vrot.slane %v5742_v33, 4  ;;  %v4733_v29 = vld [vmem:[#allocation2 + $0x90] sm:$0xf] }
 0x2e6   : > { %v12612_v12 = vpop.f32.mrf.mxu0  ;;  %v4511_v36 = vrot.slane %v4509_v46, 7  ;;  %v4253_v28 = vadd.f32 %v12311_v1, %v4218_v6  ;;  %v12618_v38 = vpop.f32.mrf.mxu3  ;;  %v5082_v18 = vrot.slane %v5080_v2, 5  ;;  %v5743_v46 = vsel %vm10677_vm6, %v9715_v53, %v5742_v33  ;;  %v14572_v2 = vld [vmem:[#allocation25_spill] sm:$0xff]  ;;  %v14574_v33 = vld [vmem:[#allocation24_spill] sm:$0xff] }
 0x2e7   : > { %v3113_v11 = vpop.f32.mrf.mxu2  ;;  %v5077_v42 = vor.u32 %v5076_v41, %v5072_v52  ;;  %v5073_v13 = vsel %vm10463_vm3, %v5068_v60, %v5072_v52  ;;  %v14573_v41 = vld [vmem:[#allocation26_spill] sm:$0xff] }
 0x2e8   : > { %v4514_v4 = vor.u32 %v4512_v55, %v4511_v36  ;;  %v4516_v21 = vrot.slane %v4511_v36, 4  ;;  %v4285_v20 = vmax.f32 %v4253_v28, 0.0  ;;  %v3159_v25 = vadd.f32 %v3113_v11, %v2868_v26 }
 0x2e9   : > { %9831 = vmatmul.msk.bf16.gmra.mxu0 %vm5269_vm12, %v10167_v15  ;;  %v5078_v8 = vrot.slane %v5077_v42, 4  ;;  %v5229_v36 = vunpack.c.l.b16 %v5073_v13  ;;  %v5817_v11 = vunpack.c.l.b16 %v5743_v46  ;;  %v4737_v46 = vld [vmem:[#allocation2 + $0x98] sm:$0x1] }
 0x2ea   : > { %v4515_v16 = vsel %vm11981_vm14, %v4507_v61, %v4514_v4  ;;  %v4731_v54 = vsel %vm11989_vm15, %v4516_v21, %v4730_v0  ;;  %v4317_v47 = vpack.c.bf16 %v4285_v20, %v4285_v20  ;;  %v3817_v22 = vadd.f32 %v12566_v57, %v3159_v25  ;;  %v4790_v21 = vld [vmem:[#allocation2 + $0x84] sm:$0xf] }
 0x2eb   : > { %4729 = vst.msk [vmem:[#allocation2 + $0x88] sm:$0xf] %vm224_vm7, %v4515_v16  ;;  %v5083_v57 = vsel %vm10463_vm3, %v5078_v8, %v5082_v18  ;;  %v2870_v4 = vadd.f32 %v14574_v33, %v14573_v41 }
 0x2ec   : > { %4732 = vst [vmem:[#allocation2 + $0x8c] sm:$0x1] %v4731_v54  ;;  %v4518_v37 = vshrl.u32 %v4317_v47, 16  ;;  %v4219_v7 = vadd.f32 %v12584_v23, %v3817_v22  ;;  %9695 = vmatmul.msk.bf16.gmra.mxu2 %vm5269_vm12, %v10145_v5  ;;  %v5745_v23 = vrot.slane %v12503_v3, 5  ;;  %v4521_v56 = vshll.u32 %v4317_v47, 16 }
 0x2ed   : > { %v12630_v26 = vpop.f32.mrf.mxu1  ;;  %v5230_v45 = vunpack.c.l.b16 %v5083_v57  ;;  %v5085_v54 = vshrl.u32 %v4790_v21, 16  ;;  %v5088_v5 = vshll.u32 %v4790_v21, 16  ;;  %v5645_v57 = vld [vmem:[#allocation2 + $0x6c] sm:$0xe] }
 0x2ee   : > { %v12636_v61 = vpop.f32.mrf.mxu0  ;;  %v4520_v6 = vrot.slane %v4518_v37, 7  ;;  %v4254_v55 = vadd.f32 %v12311_v1, %v4219_v7  ;;  %v5746_v15 = vsel %vm10677_vm6, %v5744_v43, %v5745_v23  ;;  %v12671_v43 = vld [vmem:[%s14506_s2] ss:$0 sm:$0xff]  ;;  %v10168_v37 = vld [vmem:[#allocation2 + $0x48] sm:$0xff] }
 0x2ef   : > { %9740 = vmatmul.msk.bf16.gmra.mxu3 %vm5269_vm12, %v12500_v59  ;;  %v3116_v62 = vpop.f32.mrf.mxu2  ;;  %v5251_v0 = vpack.c.b16 %v5230_v45, %v5229_v36  ;;  %v5818_v3 = vunpack.c.l.b16 %v5746_v15  ;;  %v5087_v7 = vrot.slane %v5085_v54, 4 }
 0x2f0   : > { %v4523_v30 = vor.u32 %v4521_v56, %v4520_v6  ;;  %v4286_v59 = vmax.f32 %v4254_v55, 0.0  ;;  %v3160_v50 = vadd.f32 %v3116_v62, %v14572_v2  ;;  %v4524_v10 = vrot.slane %v4520_v6, 4 }
 0x2f1   : > { %v12657_v25 = vpack.c.b16 %v5818_v3, %v5817_v11  ;;  %v5090_v56 = vrot.slane %v5088_v5, 5 }
 0x2f2   : > { %v12644_v28 = vpop.f32.mrf.mxu3  ;;  %v4734_v40 = vsel %vm11921_vm13, %v4523_v30, %v4733_v29  ;;  %v4318_v1 = vpack.c.bf16 %v4286_v59, %v4286_v59  ;;  %v3818_v52 = vadd.f32 %v12592_v19, %v3160_v50  ;;  %v12655_v20 = vld [vmem:[#allocation2 + $0x88] sm:$0xf]  ;;  %v5749_v29 = vrot.slane %v12551_v44, 5 }
 0x2f3   : > { %4735 = vst [vmem:[#allocation2 + $0x90] sm:$0xf] %v4734_v40  ;;  %9613 = vmatmul.msk.bf16.gmra.mxu1 %vm5269_vm12, %v5251_v0  ;;  %v12660_v16 = vld [vmem:[#allocation2 + $0x8c] sm:$0x1]  ;;  %v5094_v60 = vshll.u32 %v12655_v20, 16  ;;  %v5098_v8 = vshrl.u32 %v12655_v20, 16  ;;  %v5091_v59 = vor.u32 %v5090_v56, %v5087_v7 }
 0x2f4   : > { %v4526_v42 = vshrl.u32 %v4318_v1, 16  ;;  %v4220_v53 = vadd.f32 %v12612_v12, %v3818_v52  ;;  %v4529_v47 = vshll.u32 %v4318_v1, 16  ;;  %v5104_v13 = vshll.u32 %v12660_v16, 16  ;;  %v10146_v1 = vld [vmem:[#allocation2 + $0x3c] sm:$0xff] }
 0x2f5   : > { %v12662_v19 = vpop.f32.mrf.mxu1  ;;  %v5096_v55 = vrot.slane %v5094_v60, 5  ;;  %v5100_v45 = vrot.slane %v5098_v8, 4  ;;  %v9716_v50 = vrot.slane %v5645_v57, 9  ;;  %v5092_v44 = vrot.slane %v5091_v59, 4 }
 0x2f6   : > { %v12664_v22 = vpop.f32.mrf.mxu0  ;;  %v4528_v18 = vrot.slane %v4526_v42, 7  ;;  %v4255_v12 = vadd.f32 %v12671_v43, %v4220_v53  ;;  %v5106_v41 = vrot.slane %v5104_v13, 5  ;;  %v5751_v33 = vrot.slane %v5749_v29, 4 }
 0x2f7   : > { %v3118_v23 = vpop.f32.mrf.mxu2  ;;  %v5101_v2 = vor.u32 %v5100_v45, %v5096_v55  ;;  %v5097_v42 = vsel %vm10463_vm3, %v5092_v44, %v5096_v55  ;;  %v5750_v54 = vsel %vm10677_vm6, %v9716_v50, %v5749_v29  ;;  %v5763_v31 = vrot.slane %v12655_v20, 5  ;;  %v12908_v20 = vld [vmem:[#allocation2 + $0x14] sm:$0x1] }
 0x2f8   : > { %v4531_v62 = vor.u32 %v4529_v47, %v4528_v18  ;;  %v4533_v36 = vrot.slane %v4528_v18, 4  ;;  %v4287_v15 = vmax.f32 %v4255_v12, 0.0  ;;  %v3161_v30 = vadd.f32 %v3118_v23, %v2870_v4  ;;  %v4740_v18 = vld [vmem:[#allocation2 + $0x9c] sm:$0xf] }
 0x2f9   : > { %9832 = vmatmul.msk.bf16.gmra.mxu0 %vm5269_vm12, %v10168_v37  ;;  %v5102_v52 = vrot.slane %v5101_v2, 4  ;;  %v5231_v37 = vunpack.c.l.b16 %v5097_v42  ;;  %v5819_v55 = vunpack.c.l.b16 %v5750_v54 }
 0x2fa   : > { %v12675_v6 = vpop.f32.mrf.mxu3  ;;  %v4532_v0 = vsel %vm11981_vm14, %v4524_v10, %v4531_v62  ;;  %v4738_v11 = vsel %vm11989_vm15, %v4533_v36, %v4737_v46  ;;  %v4319_v3 = vpack.c.bf16 %v4287_v15, %v4287_v15  ;;  %v3819_v40 = vadd.f32 %v12618_v38, %v3161_v30  ;;  %v14575_v46 = vld [vmem:[#allocation28_spill] sm:$0xff]  ;;  %v14576_v36 = vld [vmem:[#allocation7_spill] sm:$0xff]  ;;  %v4792_v59 = vld [vmem:[#allocation2 + $0x90] sm:$0xf] }
 0x2fb   : > { %4736 = vst.msk [vmem:[#allocation2 + $0x94] sm:$0xf] %vm224_vm7, %v4532_v0  ;;  %v5107_v38 = vsel %vm10463_vm3, %v5102_v52, %v5106_v41  ;;  %v14577_v15 = vld [vmem:[#allocation27_spill] sm:$0xff]  ;;  %v5112_v41 = vshll.u32 %v4792_v59, 16 }
 0x2fc   : > { %4739 = vst [vmem:[#allocation2 + $0x98] sm:$0x1] %v4738_v11  ;;  %v4535_v4 = vshrl.u32 %v4319_v3, 16  ;;  %v4221_v21 = vadd.f32 %v12636_v61, %v3819_v40  ;;  %9696 = vmatmul.msk.bf16.gmra.mxu2 %vm5269_vm12, %v10146_v1  ;;  %v5752_v61 = vrot.slane %v12556_v39, 5  ;;  %v4538_v5 = vshll.u32 %v4319_v3, 16 }
 0x2fd   : > { %v12687_v10 = vpop.f32.mrf.mxu1  ;;  %v5232_v8 = vunpack.c.l.b16 %v5107_v38  ;;  %v2872_v30 = vadd.f32 %v14577_v15, %v14576_v36  ;;  %v5109_v1 = vshrl.u32 %v4792_v59, 16  ;;  %v10169_v38 = vld [vmem:[#allocation2 + $0x54] sm:$0xff]  ;;  %v10147_v36 = vld [vmem:[#allocation2 + $0x48] sm:$0xff] }
 0x2fe   : > { %v12693_v53 = vpop.f32.mrf.mxu0  ;;  %v4537_v47 = vrot.slane %v4535_v4, 7  ;;  %v4256_v60 = vadd.f32 %v12671_v43, %v4221_v21  ;;  %v5753_v13 = vsel %vm10677_vm6, %v5751_v33, %v5752_v61  ;;  %v5646_v61 = vld [vmem:[#allocation2 + $0x78] sm:$0xe] }
 0x2ff   : > { %9741 = vmatmul.msk.bf16.gmra.mxu3 %vm5269_vm12, %v12553_v24  ;;  %v3121_v12 = vpop.f32.mrf.mxu2  ;;  %v5252_v56 = vpack.c.b16 %v5232_v8, %v5231_v37  ;;  %v5820_v39 = vunpack.c.l.b16 %v5753_v13  ;;  %v5111_v54 = vrot.slane %v5109_v1, 4  ;;  %v5114_v8 = vrot.slane %v5112_v41, 5 }
 0x300   : > { %v4540_v57 = vor.u32 %v4538_v5, %v4537_v47  ;;  %v4288_v24 = vmax.f32 %v4256_v60, 0.0  ;;  %v3162_v23 = vadd.f32 %v3121_v12, %v14575_v46  ;;  %v4541_v0 = vrot.slane %v4537_v47, 4  ;;  %v4744_v47 = vld [vmem:[#allocation2 + $0xa4] sm:$0x1] }
 0x301   : > { %v12714_v50 = vpack.c.b16 %v5820_v39, %v5819_v55  ;;  %v5756_v37 = vrot.slane %v12603_v27, 5  ;;  %v9717_v55 = vrot.slane %v5646_v61, 9 }
 0x302   : > { %v12701_v7 = vpop.f32.mrf.mxu3  ;;  %v4741_v45 = vsel %vm11921_vm13, %v4540_v57, %v4740_v18  ;;  %v4320_v29 = vpack.c.bf16 %v4288_v24, %v4288_v24  ;;  %v3820_v62 = vadd.f32 %v12644_v28, %v3162_v23  ;;  %v12712_v2 = vld [vmem:[#allocation2 + $0x94] sm:$0xf]  ;;  %v5115_v23 = vor.u32 %v5114_v8, %v5111_v54  ;;  %v14578_v8 = vld [vmem:[#allocation8_spill] sm:$0xff] }
 0x303   : > { %4742 = vst [vmem:[#allocation2 + $0x9c] sm:$0xf] %v4741_v45  ;;  %9614 = vmatmul.msk.bf16.gmra.mxu1 %vm5269_vm12, %v5252_v56  ;;  %v12717_v40 = vld [vmem:[#allocation2 + $0x98] sm:$0x1]  ;;  %v5118_v33 = vshll.u32 %v12712_v2, 16  ;;  %v5122_v4 = vshrl.u32 %v12712_v2, 16  ;;  %v5757_v41 = vsel %vm10677_vm6, %v9717_v55, %v5756_v37 }
 0x304   : > { %v4543_v11 = vshrl.u32 %v4320_v29, 16  ;;  %v4222_v3 = vadd.f32 %v12664_v22, %v3820_v62  ;;  %v4546_v44 = vshll.u32 %v4320_v29, 16  ;;  %v5128_v22 = vshll.u32 %v12717_v40, 16  ;;  %v14579_v55 = vld [vmem:[#allocation29_spill] sm:$0xff] }
 0x305   : > { %v12719_v28 = vpop.f32.mrf.mxu1  ;;  %v5120_v18 = vrot.slane %v5118_v33, 5  ;;  %v5124_v12 = vrot.slane %v5122_v4, 4  ;;  %v5116_v27 = vrot.slane %v5115_v23, 4  ;;  %v5758_v59 = vrot.slane %v5756_v37, 4 }
 0x306   : > { %v12721_v52 = vpop.f32.mrf.mxu0  ;;  %v4545_v21 = vrot.slane %v4543_v11, 7  ;;  %v4257_v42 = vadd.f32 %v12671_v43, %v4222_v3  ;;  %v5821_v37 = vunpack.c.l.b16 %v5757_v41 }
 0x307   : > { %v3123_v5 = vpop.f32.mrf.mxu2  ;;  %v5125_v56 = vor.u32 %v5124_v12, %v5120_v18  ;;  %v5121_v1 = vsel %vm10463_vm3, %v5116_v27, %v5120_v18 }
 0x308   : > { %v4548_v13 = vor.u32 %v4546_v44, %v4545_v21  ;;  %v4550_v57 = vrot.slane %v4545_v21, 4  ;;  %v4289_v24 = vmax.f32 %v4257_v42, 0.0  ;;  %v3163_v46 = vadd.f32 %v3123_v5, %v2872_v30 }
 0x309   : > { %9833 = vmatmul.msk.bf16.gmra.mxu0 %vm5269_vm12, %v10169_v38  ;;  %v5126_v15 = vrot.slane %v5125_v56, 4  ;;  %v5130_v30 = vrot.slane %v5128_v22, 5  ;;  %v4747_v38 = vld [vmem:[#allocation2 + $0xa8] sm:$0xf]  ;;  %v5233_v22 = vunpack.c.l.b16 %v5121_v1 }
 0x30a   : > { %v12727_v60 = vpop.f32.mrf.mxu3  ;;  %v4549_v39 = vsel %vm11981_vm14, %v4541_v0, %v4548_v13  ;;  %v4745_v45 = vsel %vm11989_vm15, %v4550_v57, %v4744_v47  ;;  %v4321_v29 = vpack.c.bf16 %v4289_v24, %v4289_v24  ;;  %v3821_v62 = vadd.f32 %v12675_v6, %v3163_v46  ;;  %v4794_v46 = vld [vmem:[#allocation2 + $0x9c] sm:$0xf] }
 0x30b   : > { %4743 = vst.msk [vmem:[#allocation2 + $0xa0] sm:$0xf] %vm224_vm7, %v4549_v39  ;;  %v5131_v6 = vsel %vm10463_vm3, %v5126_v15, %v5130_v30  ;;  %v14580_v39 = vld [vmem:[#allocation9_spill] sm:$0xff]  ;;  %v5133_v27 = vshrl.u32 %v4794_v46, 16 }
 0x30c   : > { %4746 = vst [vmem:[#allocation2 + $0xa4] sm:$0x1] %v4745_v45  ;;  %v4552_v11 = vshrl.u32 %v4321_v29, 16  ;;  %v4223_v3 = vadd.f32 %v12693_v53, %v3821_v62  ;;  %9697 = vmatmul.msk.bf16.gmra.mxu2 %vm5269_vm12, %v10147_v36  ;;  %v5759_v53 = vrot.slane %v12608_v48, 5  ;;  %v4555_v4 = vshll.u32 %v4321_v29, 16 }
 0x30d   : > { %v12739_v0 = vpop.f32.mrf.mxu1  ;;  %v5234_v42 = vunpack.c.l.b16 %v5131_v6  ;;  %v2874_v45 = vadd.f32 %v14580_v39, %v14579_v55 }
 0x30e   : > { %v12745_v44 = vpop.f32.mrf.mxu0  ;;  %v4554_v33 = vrot.slane %v4552_v11, 7  ;;  %v4258_v21 = vadd.f32 %v12671_v43, %v4223_v3  ;;  %v5760_v61 = vsel %vm10677_vm6, %v5758_v59, %v5759_v53  ;;  %v10170_v53 = vld [vmem:[#allocation2 + $0x60] sm:$0xff] }
 0x30f   : > { %9742 = vmatmul.msk.bf16.gmra.mxu3 %vm5269_vm12, %v12605_v51  ;;  %v3126_v54 = vpop.f32.mrf.mxu2  ;;  %v5253_v12 = vpack.c.b16 %v5234_v42, %v5233_v22  ;;  %v5822_v48 = vunpack.c.l.b16 %v5760_v61 }
 0x310   : > { %v4557_v47 = vor.u32 %v4555_v4, %v4554_v33  ;;  %v4290_v5 = vmax.f32 %v4258_v21, 0.0  ;;  %v3164_v51 = vadd.f32 %v3126_v54, %v14578_v8  ;;  %v4558_v15 = vrot.slane %v4554_v33, 4 }
 0x311   : > { %v12764_v56 = vpack.c.b16 %v5822_v48, %v5821_v37  ;;  %v5135_v4 = vrot.slane %v5133_v27, 4 }
 0x312   : > { %v12756_v18 = vpop.f32.mrf.mxu3  ;;  %v4748_v13 = vsel %vm11921_vm13, %v4557_v47, %v4747_v38  ;;  %v4322_v57 = vpack.c.bf16 %v4290_v5, %v4290_v5  ;;  %v3822_v24 = vadd.f32 %v12701_v7, %v3164_v51  ;;  %v12762_v23 = vld [vmem:[#allocation2 + $0xa0] sm:$0xf]  ;;  %v5136_v7 = vshll.u32 %v4794_v46, 16 }
 0x313   : > { %4749 = vst [vmem:[#allocation2 + $0xa8] sm:$0xf] %v4748_v13  ;;  %9615 = vmatmul.msk.bf16.gmra.mxu1 %vm5269_vm12, %v5253_v12  ;;  %v12769_v36 = vld [vmem:[#allocation2 + $0xa4] sm:$0x1]  ;;  %v5142_v59 = vshll.u32 %v12762_v23, 16  ;;  %v5146_v11 = vshrl.u32 %v12762_v23, 16 }
 0x314   : > { %v4560_v29 = vshrl.u32 %v4322_v57, 16  ;;  %v4224_v62 = vadd.f32 %v12721_v52, %v3822_v24  ;;  %v4563_v1 = vshll.u32 %v4322_v57, 16  ;;  %v4751_v52 = vld [vmem:[#allocation2 + $0xb0] sm:$0x1]  ;;  %v5138_v42 = vrot.slane %v5136_v7, 5  ;;  %v10148_v24 = vld [vmem:[#allocation2 + $0x54] sm:$0xff] }
 0x315   : > { %v12776_v41 = vpop.f32.mrf.mxu1  ;;  %v5144_v38 = vrot.slane %v5142_v59, 5  ;;  %v5148_v33 = vrot.slane %v5146_v11, 4  ;;  %v5152_v54 = vshll.u32 %v12769_v36, 16 }
 0x316   : > { %v12771_v30 = vpop.f32.mrf.mxu0  ;;  %v4562_v3 = vrot.slane %v4560_v29, 7  ;;  %v4259_v6 = vadd.f32 %v12671_v43, %v4224_v62  ;;  %v5139_v51 = vor.u32 %v5138_v42, %v5135_v4 }
 0x317   : > { %v3128_v21 = vpop.f32.mrf.mxu2  ;;  %v5149_v12 = vor.u32 %v5148_v33, %v5144_v38  ;;  %v5154_v39 = vrot.slane %v5152_v54, 5 }
 0x318   : > { %v4565_v22 = vor.u32 %v4563_v1, %v4562_v3  ;;  %v4567_v61 = vrot.slane %v4562_v3, 4  ;;  %v4291_v47 = vmax.f32 %v4259_v6, 0.0  ;;  %v3165_v5 = vadd.f32 %v3128_v21, %v2874_v45  ;;  %v4754_v6 = vld [vmem:[#allocation2 + $0xb4] sm:$0xf] }
 0x319   : > { %9834 = vmatmul.msk.bf16.gmra.mxu0 %vm5269_vm12, %v10170_v53  ;;  %v5140_v46 = vrot.slane %v5139_v51, 4  ;;  %v5150_v55 = vrot.slane %v5149_v12, 4 }
 0x31a   : > { %v12779_v8 = vpop.f32.mrf.mxu3  ;;  %v4566_v37 = vsel %vm11981_vm14, %v4558_v15, %v4565_v22  ;;  %v4752_v48 = vsel %vm11989_vm15, %v4567_v61, %v4751_v52  ;;  %v4323_v13 = vpack.c.bf16 %v4291_v47, %v4291_v47  ;;  %v3823_v57 = vadd.f32 %v12727_v60, %v3165_v5  ;;  %v4796_v62 = vld [vmem:[#allocation2 + $0xa8] sm:$0xf] }
 0x31b   : > { %4750 = vst.msk [vmem:[#allocation2 + $0xac] sm:$0xf] %vm224_vm7, %v4566_v37  ;;  %v5145_v27 = vsel %vm10463_vm3, %v5140_v46, %v5144_v38  ;;  %v5155_v15 = vsel %vm10463_vm3, %v5150_v55, %v5154_v39  ;;  %v5157_v7 = vshrl.u32 %v4796_v62, 16  ;;  %v5160_v59 = vshll.u32 %v4796_v62, 16  ;;  %v14581_v38 = vld [vmem:[#allocation10_spill] sm:$0xff]  ;;  %v14582_v55 = vld [vmem:[#allocation11_spill] sm:$0xff] }
 0x31c   : > { %4753 = vst [vmem:[#allocation2 + $0xb0] sm:$0x1] %v4752_v48  ;;  %v4569_v45 = vshrl.u32 %v4323_v13, 16  ;;  %v4225_v29 = vadd.f32 %v12745_v44, %v3823_v57  ;;  %9698 = vmatmul.msk.bf16.gmra.mxu2 %vm5269_vm12, %v10148_v24  ;;  %v4572_v3 = vshll.u32 %v4323_v13, 16  ;;  %v5236_v1 = vunpack.c.l.b16 %v5155_v15  ;;  %v10184_v46 = vld [vmem:[%s14507_s3 + $0x58] sm:$0xff] }
 0x31d   : > { %v5235_v4 = vunpack.c.l.b16 %v5145_v27  ;;  %v5162_v61 = vrot.slane %v5160_v59, 5  ;;  %7289 = vmatpush.bf16.msra.mxu2 %v10184_v46 }
 0x31e   : > { %v12794_v60 = vpop.f32.mrf.mxu0  ;;  %v4571_v11 = vrot.slane %v4569_v45, 7  ;;  %v4260_v44 = vadd.f32 %v12671_v43, %v4225_v29 }
 0x31f   : > { %9743 = vmatmul.msk.bf16.gmra.mxu3 %vm5269_vm12, %v12657_v25  ;;  %v3131_v53 = vpop.f32.mrf.mxu2  ;;  %v5254_v22 = vpack.c.b16 %v5236_v1, %v5235_v4  ;;  %v5159_v25 = vrot.slane %v5157_v7, 4 }
 0x320   : > { %v4574_v52 = vor.u32 %v4572_v3, %v4571_v11  ;;  %v4292_v21 = vmax.f32 %v4260_v44, 0.0  ;;  %v12799_v42 = vpop.f32.mrf.mxu1  ;;  %v3166_v33 = vadd.f32 %v3131_v53, %v14581_v38  ;;  %v4575_v59 = vrot.slane %v4571_v11, 4  ;;  %v4758_v3 = vld [vmem:[#allocation2 + $0xbc] sm:$0x1]  ;;  %v10202_v38 = vld [vmem:[%s14507_s3 + $0x68] sm:$0xff] }
 0x321   : > { %v5163_v45 = vor.u32 %v5162_v61, %v5159_v25  ;;  %7588 = vmatpush.bf16.msra.mxu3 %v10202_v38 }
 0x322   : > { %v12802_v54 = vpop.f32.mrf.mxu3  ;;  %v4755_v47 = vsel %vm11921_vm13, %v4574_v52, %v4754_v6  ;;  %v4324_v5 = vpack.c.bf16 %v4292_v21, %v4292_v21  ;;  %v3824_v51 = vadd.f32 %v12756_v18, %v3166_v33  ;;  %v12807_v12 = vld [vmem:[#allocation2 + $0xac] sm:$0xf]  ;;  %v2876_v18 = vadd.f32 %v12495_v9, %v14582_v55 }
 0x323   : > { %4756 = vst [vmem:[#allocation2 + $0xb4] sm:$0xf] %v4755_v47  ;;  %9616 = vmatmul.msk.bf16.gmra.mxu1 %vm5269_vm12, %v5254_v22  ;;  %v5166_v37 = vshll.u32 %v12807_v12, 16  ;;  %v12812_v57 = vld [vmem:[#allocation2 + $0xb0] sm:$0x1]  ;;  %v5170_v24 = vshrl.u32 %v12807_v12, 16 }
 0x324   : > { %v4577_v48 = vshrl.u32 %v4324_v5, 16  ;;  %v4226_v13 = vadd.f32 %v12771_v30, %v3824_v51  ;;  %v4580_v27 = vshll.u32 %v4324_v5, 16  ;;  %v10171_v30 = vld [vmem:[#allocation2 + $0x6c] sm:$0xff]  ;;  %v5176_v1 = vshll.u32 %v12812_v57, 16  ;;  %v10149_v5 = vld [vmem:[#allocation2 + $0x60] sm:$0xff] }
 0x325   : > { %v5168_v29 = vrot.slane %v5166_v37, 5  ;;  %v5172_v7 = vrot.slane %v5170_v24, 4  ;;  %v5164_v33 = vrot.slane %v5163_v45, 4 }
 0x326   : > { %v12820_v39 = vpop.f32.mrf.mxu0  ;;  %v4579_v62 = vrot.slane %v4577_v48, 7  ;;  %v4261_v15 = vadd.f32 %v12671_v43, %v4226_v13  ;;  %v5178_v48 = vrot.slane %v5176_v1, 5 }
 0x327   : > { %v3133_v44 = vpop.f32.mrf.mxu2  ;;  %v5173_v11 = vor.u32 %v5172_v7, %v5168_v29  ;;  %v5169_v55 = vsel %vm10463_vm3, %v5164_v33, %v5168_v29 }
 0x328   : > { %v4582_v6 = vor.u32 %v4580_v27, %v4579_v62  ;;  %v4584_v53 = vrot.slane %v4579_v62, 4  ;;  %v4293_v4 = vmax.f32 %v4261_v15, 0.0  ;;  %v12824_v9 = vpop.f32.mrf.mxu1  ;;  %v3167_v52 = vadd.f32 %v3133_v44, %v2876_v18 }
 0x329   : > { %9835 = vmatmul.msk.bf16.gmra.mxu0 %vm5269_vm12, %v10171_v30  ;;  %v5174_v37 = vrot.slane %v5173_v11, 4 }
 0x32a   : > { %v12826_v21 = vpop.f32.mrf.mxu3  ;;  %v4583_v22 = vsel %vm11981_vm14, %v4575_v59, %v4582_v6  ;;  %v4759_v25 = vsel %vm11989_vm15, %v4584_v53, %v4758_v3  ;;  %v4325_v61 = vpack.c.bf16 %v4293_v4, %v4293_v4  ;;  %v3825_v47 = vadd.f32 %v12779_v8, %v3167_v52  ;;  %v4798_v51 = vld [vmem:[#allocation2 + $0xb4] sm:$0xf]  ;;  %v10204_v4 = vld [vmem:[%s14507_s3 + $0x78] sm:$0xff] }
 0x32b   : > { %4757 = vst.msk [vmem:[#allocation2 + $0xb8] sm:$0xf] %vm224_vm7, %v4583_v22  ;;  %v5181_v13 = vshrl.u32 %v4798_v51, 16  ;;  %v5184_v18 = vshll.u32 %v4798_v51, 16  ;;  %v5179_v8 = vsel %vm10463_vm3, %v5174_v37, %v5178_v48  ;;  %v5237_v59 = vunpack.c.l.b16 %v5169_v55  ;;  %8254 = vmatpush.bf16.msra.mxu0 %v10204_v4 }
 0x32c   : > { %4760 = vst [vmem:[#allocation2 + $0xbc] sm:$0x1] %v4759_v25  ;;  %v4586_v24 = vshrl.u32 %v4325_v61, 16  ;;  %v4227_v46 = vadd.f32 %v12794_v60, %v3825_v47  ;;  %9699 = vmatmul.msk.bf16.gmra.mxu2 %vm5269_vm12, %v10149_v5  ;;  %v4589_v27 = vshll.u32 %v4325_v61, 16  ;;  %v5238_v30 = vunpack.c.l.b16 %v5179_v8  ;;  %v4761_v60 = vld [vmem:[#allocation2 + $0xc0] sm:$0xf] }
 0x32d   : > { %v5183_v3 = vrot.slane %v5181_v13, 4 }
 0x32e   : > { %v12846_v45 = vpop.f32.mrf.mxu0  ;;  %v4588_v62 = vrot.slane %v4586_v24, 7  ;;  %v4262_v15 = vadd.f32 %v12671_v43, %v4227_v46  ;;  %v5255_v52 = vpack.c.b16 %v5238_v30, %v5237_v59  ;;  %v10172_v24 = vld [vmem:[#allocation2 + $0x78] sm:$0xff]  ;;  %v12875_v46 = vld [vmem:[#allocation2 + $0x10] sm:$0xf] }
 0x32f   : > { %9744 = vmatmul.msk.bf16.gmra.mxu3 %vm5269_vm12, %v12714_v50  ;;  %v5556_v7 = vpop.f32.mrf.mxu2  ;;  %v5186_v50 = vrot.slane %v5184_v18, 5  ;;  %v4765_v18 = vld [vmem:[#allocation2 + $0xc8] sm:$0x1] }
 0x330   : > { %v4591_v44 = vor.u32 %v4589_v27, %v4588_v62  ;;  %v4294_v29 = vmax.f32 %v4262_v15, 0.0  ;;  %v12849_v1 = vpop.f32.mrf.mxu1  ;;  %v5557_v6 = vadd.f32 %v5556_v7, %v12524_v35  ;;  %v4592_v55 = vrot.slane %v4588_v62, 4 }
 0x331   : > { %v5187_v47 = vor.u32 %v5186_v50, %v5183_v3  ;;  %v6390_v62 = vshrl.u32 %v12875_v46, 16 }
 0x332   : > { %v12852_v53 = vpop.f32.mrf.mxu3  ;;  %v4762_v43 = vsel %vm11921_vm13, %v4591_v44, %v4761_v60  ;;  %v4326_v38 = vpack.c.bf16 %v4294_v29, %v4294_v29  ;;  %v12860_v33 = vadd.f32 %v12802_v54, %v5557_v6  ;;  %v12862_v11 = vld [vmem:[#allocation2 + $0xb8] sm:$0xf]  ;;  %v6386_v6 = vshll.u32 %v12875_v46, 16 }
 0x333   : > { %4763 = vst [vmem:[#allocation2 + $0xc0] sm:$0xf] %v4762_v43  ;;  %9617 = vmatmul.msk.bf16.gmra.mxu1 %vm5269_vm12, %v5255_v52  ;;  %v12865_v35 = vld [vmem:[#allocation2 + $0xbc] sm:$0x1]  ;;  %v5190_v22 = vshll.u32 %v12862_v11, 16  ;;  %v5194_v25 = vshrl.u32 %v12862_v11, 16 }
 0x334   : > { %v4594_v61 = vshrl.u32 %v4326_v38, 16  ;;  %v5200_v37 = vshll.u32 %v12865_v35, 16  ;;  %v4597_v13 = vshll.u32 %v4326_v38, 16  ;;  %v5188_v3 = vrot.slane %v5187_v47, 4  ;;  %v6328_v38 = vld [vmem:[#allocation2 + $0xc] sm:$0xf] }
 0x335   : > { %v5192_v5 = vrot.slane %v5190_v22, 5  ;;  %v5196_v51 = vrot.slane %v5194_v25, 4  ;;  %v6380_v47 = vshll.u32 %v6328_v38, 16  ;;  %v6388_v49 = vrot.slane %v6386_v6, 5  ;;  %v12919_v6 = vld [vmem:[#allocation2 + $0x1c] sm:$0xf] }
 0x336   : > { %v12872_v54 = vpop.f32.mrf.mxu0  ;;  %v4596_v48 = vrot.slane %v4594_v61, 7  ;;  %v5202_v29 = vrot.slane %v5200_v37, 5  ;;  %v6377_v61 = vshrl.u32 %v6328_v38, 16 }
 0x337   : > { %14583 = vst [vmem:[#allocation12_spill] sm:$0xff] %v12872_v54  ;;  %v5558_v8 = vpop.f32.mrf.mxu2  ;;  %v5197_v27 = vor.u32 %v5196_v51, %v5192_v5  ;;  %v5193_v43 = vsel %vm10463_vm3, %v5188_v3, %v5192_v5  ;;  %v6392_v5 = vrot.slane %v6390_v62, 4  ;;  %v5770_v3 = vrot.slane %v12712_v2, 5  ;;  %v8370_v54 = vld [vmem:[#allocation2 + $0x24] sm:$0xe] }
 0x338   : > { %v4599_v15 = vor.u32 %v4597_v13, %v4596_v48  ;;  %v4601_v30 = vrot.slane %v4596_v48, 4  ;;  %v12877_v60 = vpop.f32.mrf.mxu1  ;;  %v5559_v7 = vadd.f32 %v5558_v8, %v12558_v58  ;;  %v10150_v58 = vld [vmem:[#allocation2 + $0x6c] sm:$0xff]  ;;  %v5239_v25 = vunpack.c.l.b16 %v5193_v43 }
 0x339   : > { %9836 = vmatmul.msk.bf16.gmra.mxu0 %vm5269_vm12, %v10172_v24  ;;  %v5198_v44 = vrot.slane %v5197_v27, 4  ;;  %v6382_v8 = vrot.slane %v6380_v47, 5  ;;  %v6414_v47 = vshrl.u32 %v12919_v6, 16 }
 0x33a   : > { %v12880_v59 = vpop.f32.mrf.mxu3  ;;  %v4600_v50 = vsel %vm11981_vm14, %v4592_v55, %v4599_v15  ;;  %v4766_v4 = vsel %vm11989_vm15, %v4601_v30, %v4765_v18  ;;  %v12890_v52 = vadd.f32 %v12826_v21, %v5559_v7  ;;  %v5765_v55 = vrot.slane %v5763_v31, 4  ;;  %v5648_v7 = vld [vmem:[#allocation2 + $0x90] sm:$0xe] }
 0x33b   : > { %4764 = vst.msk [vmem:[#allocation2 + $0xc4] sm:$0xf] %vm224_vm7, %v4600_v50  ;;  %v5203_v22 = vsel %vm10463_vm3, %v5198_v44, %v5202_v29  ;;  %v6379_v18 = vrot.slane %v6377_v61, 4  ;;  %v6393_v15 = vor.u32 %v6392_v5, %v6388_v49  ;;  %v5766_v30 = vrot.slane %v12660_v16, 5 }
 0x33c   : > { %4767 = vst [vmem:[#allocation2 + $0xc8] sm:$0x1] %v4766_v4  ;;  %9700 = vmatmul.msk.bf16.gmra.mxu2 %vm5269_vm12, %v10150_v58  ;;  %v5240_v17 = vunpack.c.l.b16 %v5203_v22  ;;  %v9719_v62 = vrot.slane %v5648_v7, 9  ;;  %v5772_v4 = vrot.slane %v5770_v3, 4  ;;  %v5773_v16 = vrot.slane %v12717_v40, 5  ;;  %v10173_v58 = vld [vmem:[#allocation2 + $0x84] sm:$0xff] }
 0x33d   : > { %v5767_v29 = vsel %vm10677_vm6, %v5765_v55, %v5766_v30  ;;  %v6394_v43 = vrot.slane %v6393_v15, 4  ;;  %v6410_v61 = vshll.u32 %v12919_v6, 16  ;;  %v10151_v15 = vld [vmem:[#allocation2 + $0x78] sm:$0xff] }
 0x33e   : > { %v12901_v21 = vpop.f32.mrf.mxu0  ;;  %v5256_v37 = vpack.c.b16 %v5240_v17, %v5239_v25  ;;  %v5771_v38 = vsel %vm10677_vm6, %v9719_v62, %v5770_v3  ;;  %v5824_v17 = vunpack.c.l.b16 %v5767_v29  ;;  %v6331_v25 = vld [vmem:[#allocation2 + $0x18] sm:$0xf]  ;;  %v5774_v5 = vsel %vm10677_vm6, %v5772_v4, %v5773_v16  ;;  %v12953_v4 = vld [vmem:[#allocation2 + $0x20] sm:$0x1] }
 0x33f   : > { %9745 = vmatmul.msk.bf16.gmra.mxu3 %vm5269_vm12, %v12764_v56  ;;  %14584 = vst [vmem:[#allocation13_spill] sm:$0xff] %v12901_v21  ;;  %v5561_v51 = vpop.f32.mrf.mxu2  ;;  %v5647_v56 = vld [vmem:[#allocation2 + $0x84] sm:$0xe]  ;;  %v5826_v55 = vunpack.c.l.b16 %v5774_v5  ;;  %v6401_v7 = vshrl.u32 %v6331_v25, 16  ;;  %v12945_v29 = vrot.slane %v6410_v61, 5  ;;  %v6416_v62 = vrot.slane %v6414_v47, 4 }
 0x340   : > { %v12903_v48 = vpop.f32.mrf.mxu1  ;;  %v5562_v13 = vadd.f32 %v5561_v51, %v12578_v63  ;;  %v6396_v63 = vshll.u32 %v12908_v20, 16  ;;  %v9718_v44 = vrot.slane %v5647_v56, 9  ;;  %v6334_v61 = vld [vmem:[#allocation2 + $0x24] sm:$0xf]  ;;  %v5784_v21 = vrot.slane %v12807_v12, 5 }
 0x341   : > { %v5787_v12 = vrot.slane %v12812_v57, 5 }
 0x342   : > { %v12906_v24 = vpop.f32.mrf.mxu3  ;;  %v12911_v27 = vadd.f32 %v12852_v53, %v5562_v13  ;;  %v6383_v53 = vor.u32 %v6382_v8, %v6379_v18  ;;  %v5764_v2 = vsel %vm10677_vm6, %v9718_v44, %v5763_v31  ;;  %v6398_v31 = vrot.slane %v6396_v63, 5 }
 0x343   : > { %9618 = vmatmul.msk.bf16.gmra.mxu1 %vm5269_vm12, %v5256_v37  ;;  %v5825_v13 = vunpack.c.l.b16 %v5771_v38  ;;  %v5823_v8 = vunpack.c.l.b16 %v5764_v2  ;;  %v6404_v44 = vshll.u32 %v6331_v25, 16  ;;  %v6417_v38 = vor.u32 %v6416_v62, %v12945_v29 }
 0x344   : > { %14585 = vst [vmem:[#allocation14_spill] sm:$0xff] %v12911_v27  ;;  %v6384_v18 = vrot.slane %v6383_v53, 4  ;;  %v6399_v30 = vsel %vm10463_vm3, %v6394_v43, %v6398_v31  ;;  %v6403_v43 = vrot.slane %v6401_v7, 4  ;;  %v5780_v62 = vrot.slane %v12769_v36, 5  ;;  %v10154_v27 = vld [vmem:[#allocation2 + $0x9c] sm:$0xff] }
 0x345   : > { %v12943_v3 = vpack.c.b16 %v5826_v55, %v5825_v13  ;;  %v6766_v53 = vunpack.c.l.b16 %v6399_v30  ;;  %v6406_v2 = vrot.slane %v6404_v44, 5  ;;  %v6418_v13 = vrot.slane %v6417_v38, 4 }
 0x346   : > { %v12921_v50 = vpop.f32.mrf.mxu0  ;;  %v6389_v63 = vsel %vm10463_vm3, %v6384_v18, %v6388_v49  ;;  %v6420_v49 = vshll.u32 %v12953_v4, 16  ;;  %v6425_v55 = vshrl.u32 %v6334_v61, 16  ;;  %v5649_v18 = vld [vmem:[#allocation2 + $0x9c] sm:$0xe] }
 0x347   : > { %14586 = vst [vmem:[#allocation15_spill] sm:$0xff] %v12921_v50  ;;  %v5563_v22 = vpop.f32.mrf.mxu2  ;;  %v6407_v31 = vor.u32 %v6406_v2, %v6403_v43  ;;  %v9720_v30 = vrot.slane %v5649_v18, 9 }
 0x348   : > { %v12932_v51 = vpop.f32.mrf.mxu1  ;;  %v5564_v40 = vadd.f32 %v5563_v22, %v12610_v34  ;;  %v5844_v34 = vpack.c.b16 %v5824_v17, %v5823_v8  ;;  %v5777_v8 = vrot.slane %v12762_v23, 5  ;;  %v6427_v43 = vrot.slane %v6425_v55, 4 }
 0x349   : > { %9837 = vmatmul.msk.bf16.gmra.mxu0 %vm5269_vm12, %v10173_v58  ;;  %v6765_v58 = vunpack.c.l.b16 %v6389_v63  ;;  %v10174_v63 = vld [vmem:[#allocation2 + $0x90] sm:$0xff] }
 0x34a   : > { %v12935_v37 = vpop.f32.mrf.mxu3  ;;  %v12939_v56 = vadd.f32 %v12880_v59, %v5564_v40  ;;  %v12965_v40 = vld [vmem:[#allocation2 + $0x28] sm:$0xf]  ;;  %v5779_v44 = vrot.slane %v5777_v8, 4 }
 0x34b   : > { %v6797_v47 = vpack.c.b16 %v6766_v53, %v6765_v58  ;;  %v5778_v53 = vsel %vm10677_vm6, %v9720_v30, %v5777_v8  ;;  %v6408_v58 = vrot.slane %v6407_v31, 4  ;;  %v12988_v8 = vld [vmem:[#allocation2 + $0x34] sm:$0xf] }
 0x34c   : > { %14587 = vst [vmem:[#allocation16_spill] sm:$0xff] %v12939_v56  ;;  %9701 = vmatmul.msk.bf16.gmra.mxu2 %vm5269_vm12, %v10151_v15  ;;  %v6428_v15 = vshll.u32 %v6334_v61, 16  ;;  %v5781_v2 = vsel %vm10677_vm6, %v5779_v44, %v5780_v62  ;;  %v5827_v61 = vunpack.c.l.b16 %v5778_v53  ;;  %v13000_v62 = vld [vmem:[#allocation2 + $0x1c] sm:$0xf]  ;;  %v6458_v50 = vshll.u32 %v12988_v8, 16 }
 0x34d   : > { %v10175_v56 = vld [vmem:[#allocation2 + $0x9c] sm:$0xff] }
 0x34e   : > { %v12951_v59 = vpop.f32.mrf.mxu0  ;;  %v6430_v36 = vrot.slane %v6428_v15, 5  ;;  %v12998_v15 = vld [vmem:[#allocation2 + $0x38] sm:$0x1] }
 0x34f   : > { %9746 = vmatmul.msk.bf16.gmra.mxu3 %vm5269_vm12, %v5844_v34  ;;  %14588 = vst [vmem:[#allocation17_spill] sm:$0xff] %v12951_v59  ;;  %v5566_v16 = vpop.f32.mrf.mxu2  ;;  %v6434_v34 = vshll.u32 %v12965_v40, 16 }
 0x350   : > { %v12956_v22 = vpop.f32.mrf.mxu1  ;;  %v5567_v17 = vadd.f32 %v5566_v16, %v12630_v26  ;;  %v6422_v26 = vrot.slane %v6420_v49, 5 }
 0x351   : > { %v12986_v18 = vrot.slane %v6434_v34, 5  ;;  %v13003_v34 = vld [vmem:[#allocation2 + $0x2c] sm:$0x1] }
 0x352   : > { %v12959_v25 = vpop.f32.mrf.mxu3  ;;  %v12963_v5 = vadd.f32 %v12906_v24, %v5567_v17  ;;  %v6438_v24 = vshrl.u32 %v12965_v40, 16  ;;  %v6423_v23 = vsel %vm10463_vm3, %v6418_v13, %v6422_v26  ;;  %v6997_v13 = vld [vmem:[#allocation2 + $0x30] sm:$0xe]  ;;  %v10152_v26 = vld [vmem:[#allocation2 + $0x84] sm:$0xff] }
 0x353   : > { %9855 = vmatmul.msk.bf16.vlgmr.msrb.gmra.mxu1 %vm5269_vm12, %v6797_v47  ;;  %v5828_v47 = vunpack.c.l.b16 %v5781_v2  ;;  %v6768_v44 = vunpack.c.l.b16 %v6423_v23 }
 0x354   : > { %14589 = vst [vmem:[#allocation19_spill] sm:$0xff] %v12963_v5  ;;  %v6440_v31 = vrot.slane %v6438_v24, 4  ;;  %v6431_v24 = vor.u32 %v6430_v36, %v6427_v43  ;;  %v8435_v43 = vrot.slane %v13000_v62, 5 }
 0x355   : > { %v12996_v30 = vpack.c.b16 %v5828_v47, %v5827_v61  ;;  %v6444_v47 = vshll.u32 %v13003_v34, 16 }
 0x356   : > { %v12969_v7 = vpop.f32.mrf.mxu0  ;;  %v8437_v5 = vrot.slane %v8435_v43, 4 }
 0x357   : > { %14590 = vst [vmem:[#allocation20_spill] sm:$0xff] %v12969_v7  ;;  %v5568_v16 = vpop.f32.mrf.mxu2 }
 0x358   : > { %v12980_v38 = vpop.f32.mrf.mxu1  ;;  %v5569_v17 = vadd.f32 %v5568_v16, %v12662_v19  ;;  %v6413_v19 = vsel %vm10463_vm3, %v6408_v58, %v12945_v29  ;;  %v6441_v16 = vor.u32 %v6440_v31, %v12986_v18  ;;  %v6337_v58 = vld [vmem:[#allocation2 + $0x30] sm:$0xf] }
 0x359   : > { %9838 = vmatmul.msk.bf16.gmra.mxu0 %vm5269_vm12, %v10174_v63  ;;  %v9874_v63 = vrot.slane %v6997_v13, 9  ;;  %v6767_v53 = vunpack.c.l.b16 %v6413_v19  ;;  %v13016_v13 = vld [vmem:[#allocation2 + $0x20] sm:$0x1]  ;;  %v13023_v19 = vrot.slane %v6431_v24, 4  ;;  %v6452_v7 = vshll.u32 %v6337_v58, 16 }
 0x35a   : > { %v12983_v49 = vpop.f32.mrf.mxu3  ;;  %v12991_v55 = vadd.f32 %v12935_v37, %v5569_v17  ;;  %v7081_v37 = vrot.slane %v12988_v8, 5  ;;  %v7084_v17 = vrot.slane %v12998_v15, 5  ;;  %v6446_v24 = vrot.slane %v6444_v47, 5 }
 0x35b   : > { %v6798_v61 = vpack.c.b16 %v6768_v44, %v6767_v53  ;;  %v8369_v53 = vld [vmem:[#allocation2 + $0x18] sm:$0xe] }
 0x35c   : > { %14591 = vst [vmem:[#allocation18_spill] sm:$0xff] %v12991_v55  ;;  %9702 = vmatmul.msk.bf16.gmra.mxu2 %vm5269_vm12, %v10152_v26  ;;  %v7082_v23 = vsel %vm10677_vm6, %v9874_v63, %v7081_v37  ;;  %v7083_v2 = vrot.slane %v7081_v37, 4  ;;  %v6449_v63 = vshrl.u32 %v6337_v58, 16  ;;  %v6462_v58 = vshrl.u32 %v12988_v8, 16 }
 0x35d   : > { %v7181_v59 = vunpack.c.l.b16 %v7082_v23 }
 0x35e   : > { %v13008_v29 = vpop.f32.mrf.mxu0  ;;  %v7085_v37 = vsel %vm10677_vm6, %v7083_v2, %v7084_v17  ;;  %v13034_v2 = vld [vmem:[#allocation2 + $0x40] sm:$0xf]  ;;  %v10035_v17 = vrot.slane %v8369_v53, 9  ;;  %v6451_v47 = vrot.slane %v6449_v63, 4  ;;  %v13050_v53 = vld [vmem:[#allocation2 + $0x44] sm:$0x1] }
 0x35f   : > { %9747 = vmatmul.msk.bf16.gmra.mxu3 %vm5269_vm12, %v12943_v3  ;;  %14592 = vst [vmem:[#allocation22_spill] sm:$0xff] %v13008_v29  ;;  %v5571_v36 = vpop.f32.mrf.mxu2  ;;  %v6442_v29 = vrot.slane %v6441_v16, 4  ;;  %v7182_v44 = vunpack.c.l.b16 %v7085_v37 }
 0x360   : > { %v13018_v3 = vpop.f32.mrf.mxu1  ;;  %v5572_v26 = vadd.f32 %v5571_v36, %v12687_v10  ;;  %v8438_v10 = vrot.slane %v13016_v13, 5  ;;  %v5650_v36 = vld [vmem:[#allocation2 + $0xa8] sm:$0xe] }
 0x361   : > { %v13036_v16 = vpack.c.b16 %v7182_v44, %v7181_v59  ;;  %v9721_v23 = vrot.slane %v5650_v36, 9  ;;  %v6454_v59 = vrot.slane %v6452_v7, 5  ;;  %v13046_v44 = vrot.slane %v6458_v50, 5 }
 0x362   : > { %v13021_v31 = vpop.f32.mrf.mxu3  ;;  %v13028_v55 = vadd.f32 %v12959_v25, %v5572_v26  ;;  %v6998_v25 = vld [vmem:[#allocation2 + $0x3c] sm:$0xe]  ;;  %v8439_v26 = vsel %vm10677_vm6, %v8437_v5, %v8438_v10  ;;  %v8436_v5 = vsel %vm10677_vm6, %v10035_v17, %v8435_v43  ;;  %v13063_v43 = vld [vmem:[#allocation2 + $0x28] sm:$0xf]  ;;  %v7091_v17 = vrot.slane %v13050_v53, 5 }
 0x363   : > { %9856 = vmatmul.msk.bf16.gmra.mxu1 %vm5269_vm12, %v6798_v61  ;;  %14594 = vst [vmem:[#allocation21_spill] sm:$0xff] %v13036_v16  ;;  %v6447_v61 = vsel %vm10463_vm3, %v6442_v29, %v6446_v24  ;;  %v5785_v8 = vsel %vm10677_vm6, %v9721_v23, %v5784_v21  ;;  %v9875_v63 = vrot.slane %v6998_v25, 9  ;;  %v7088_v24 = vrot.slane %v13034_v2, 5 }
 0x364   : > { %14593 = vst [vmem:[#allocation23_spill] sm:$0xff] %v13028_v55  ;;  %v5786_v55 = vrot.slane %v5784_v21, 4  ;;  %v8551_v57 = vunpack.c.l.b16 %v8439_v26  ;;  %v6464_v21 = vrot.slane %v6462_v58, 4  ;;  %v5829_v23 = vunpack.c.l.b16 %v5785_v8 }
 0x365   : > { %v7090_v25 = vrot.slane %v7088_v24, 4  ;;  %v8550_v26 = vunpack.c.l.b16 %v8436_v5  ;;  %v6770_v58 = vunpack.c.l.b16 %v6447_v61  ;;  %v6455_v5 = vor.u32 %v6454_v59, %v6451_v47  ;;  %v6340_v61 = vld [vmem:[#allocation2 + $0x3c] sm:$0xf] }
 0x366   : > { %v13041_v37 = vpop.f32.mrf.mxu0  ;;  %v5788_v29 = vsel %vm10677_vm6, %v5786_v55, %v5787_v12  ;;  %v7089_v55 = vsel %vm10677_vm6, %v9875_v63, %v7088_v24  ;;  %v8442_v24 = vrot.slane %v13063_v43, 5 }
 0x367   : > { %14595 = vst [vmem:[#allocation25_spill] sm:$0xff] %v13041_v37  ;;  %v5573_v10 = vpop.f32.mrf.mxu2  ;;  %v5830_v37 = vunpack.c.l.b16 %v5788_v29  ;;  %v7092_v8 = vsel %vm10677_vm6, %v7090_v25, %v7091_v17  ;;  %v13079_v29 = vpack.c.b16 %v8551_v57, %v8550_v26  ;;  %v7183_v63 = vunpack.c.l.b16 %v7089_v55  ;;  %v13091_v25 = vld [vmem:[#allocation2 + $0x34] sm:$0xf] }
 0x368   : > { %v13057_v36 = vpop.f32.mrf.mxu1  ;;  %v5574_v50 = vadd.f32 %v5573_v10, %v12719_v28  ;;  %v10153_v28 = vld [vmem:[#allocation2 + $0x90] sm:$0xff]  ;;  %v10036_v57 = vrot.slane %v8370_v54, 9  ;;  %v8444_v17 = vrot.slane %v8442_v24, 4  ;;  %v13103_v54 = vrot.slane %v6455_v5, 4 }
 0x369   : > { %9839 = vmatmul.msk.bf16.gmra.mxu0 %vm5269_vm12, %v10175_v56  ;;  %v13071_v10 = vpack.c.b16 %v5830_v37, %v5829_v23  ;;  %v6437_v56 = vsel %vm10463_vm3, %v13023_v19, %v12986_v18  ;;  %14597 = vst [vmem:[#allocation24_spill] sm:$0xff] %v13079_v29  ;;  %v7184_v37 = vunpack.c.l.b16 %v7092_v8  ;;  %v6465_v18 = vor.u32 %v6464_v21, %v13046_v44  ;;  %v13105_v8 = vld [vmem:[#allocation2 + $0x38] sm:$0x1]  ;;  %v5651_v5 = vld [vmem:[#allocation2 + $0xb4] sm:$0xe] }
 0x36a   : > { %v13060_v7 = vpop.f32.mrf.mxu3  ;;  %v13069_v12 = vadd.f32 %v12983_v49, %v5574_v50  ;;  %v13082_v49 = vld [vmem:[#allocation2 + $0x2c] sm:$0x1]  ;;  %v6468_v19 = vshll.u32 %v12998_v15, 16  ;;  %v6769_v23 = vunpack.c.l.b16 %v6437_v56  ;;  %v8443_v55 = vsel %vm10677_vm6, %v10036_v57, %v8442_v24 }
 0x36b   : > { %v13093_v47 = vpack.c.b16 %v7184_v37, %v7183_v63  ;;  %v6473_v56 = vshrl.u32 %v6340_v61, 16  ;;  %v8371_v63 = vld [vmem:[#allocation2 + $0x30] sm:$0xe]  ;;  %v13107_v37 = vrot.slane %v6465_v18, 4  ;;  %v8449_v57 = vrot.slane %v13091_v25, 5 }
 0x36c   : > { %14596 = vst [vmem:[#allocation26_spill] sm:$0xff] %v13069_v12  ;;  %9703 = vmatmul.msk.bf16.gmra.mxu2 %vm5269_vm12, %v10153_v28  ;;  %v6799_v28 = vpack.c.b16 %v6770_v58, %v6769_v23  ;;  %v6470_v29 = vrot.slane %v6468_v19, 5  ;;  %v8552_v58 = vunpack.c.l.b16 %v8443_v55  ;;  %v10037_v12 = vrot.slane %v8371_v63, 9  ;;  %v6999_v55 = vld [vmem:[#allocation2 + $0x48] sm:$0xe] }
 0x36d   : > { %14599 = vst [vmem:[#allocation7_spill] sm:$0xff] %v13093_v47  ;;  %v8451_v18 = vrot.slane %v8449_v57, 4  ;;  %v8452_v19 = vrot.slane %v13105_v8, 5  ;;  %v5794_v63 = vrot.slane %v12865_v35, 5 }
 0x36e   : > { %v13087_v50 = vpop.f32.mrf.mxu0 }
 0x36f   : > { %9748 = vmatmul.msk.bf16.gmra.mxu3 %vm5269_vm12, %v12996_v30  ;;  %14598 = vst [vmem:[#allocation28_spill] sm:$0xff] %v13087_v50  ;;  %v5576_v59 = vpop.f32.mrf.mxu2  ;;  %v8445_v30 = vrot.slane %v13082_v49, 5 }
 0x370   : > { %v13098_v26 = vpop.f32.mrf.mxu1  ;;  %v5577_v21 = vadd.f32 %v5576_v59, %v12739_v0  ;;  %v6476_v0 = vshll.u32 %v6340_v61, 16  ;;  %v5791_v59 = vrot.slane %v12862_v11, 5  ;;  %v13124_v61 = vld [vmem:[#allocation2 + $0x4c] sm:$0xf] }
 0x371   : > { %v8446_v24 = vsel %vm10677_vm6, %v8444_v17, %v8445_v30  ;;  %v6461_v17 = vsel %vm10463_vm3, %v13103_v54, %v13046_v44  ;;  %v13122_v30 = vrot.slane %v6473_v56, 4  ;;  %v10176_v44 = vld [vmem:[#allocation2 + $0xa8] sm:$0xff]  ;;  %v6471_v54 = vsel %vm10463_vm3, %v13107_v37, %v6470_v29 }
 0x372   : > { %v13101_v15 = vpop.f32.mrf.mxu3  ;;  %v13113_v50 = vadd.f32 %v13021_v31, %v5577_v21  ;;  %v8553_v23 = vunpack.c.l.b16 %v8446_v24  ;;  %v9722_v31 = vrot.slane %v5651_v5, 9  ;;  %v5793_v11 = vrot.slane %v5791_v59, 4  ;;  %v13142_v5 = vld [vmem:[#allocation2 + $0x50] sm:$0x1] }
 0x373   : > { %9857 = vmatmul.msk.bf16.gmra.mxu1 %vm5269_vm12, %v6799_v28  ;;  %v8450_v24 = vsel %vm10677_vm6, %v10037_v12, %v8449_v57  ;;  %v6482_v56 = vshll.u32 %v13034_v2, 16  ;;  %v9876_v57 = vrot.slane %v6999_v55, 9  ;;  %v7098_v55 = vrot.slane %v13142_v5, 5 }
 0x374   : > { %14600 = vst [vmem:[#allocation27_spill] sm:$0xff] %v13113_v50  ;;  %v13126_v21 = vpack.c.b16 %v8553_v23, %v8552_v58  ;;  %v8453_v50 = vsel %vm10677_vm6, %v8451_v18, %v8452_v19  ;;  %v6486_v58 = vshrl.u32 %v13034_v2, 16  ;;  %v5792_v23 = vsel %vm10677_vm6, %v9722_v31, %v5791_v59  ;;  %v6343_v31 = vld [vmem:[#allocation2 + $0x48] sm:$0xf] }
 0x375   : > { %v5795_v12 = vsel %vm10677_vm6, %v5793_v11, %v5794_v63  ;;  %v7095_v18 = vrot.slane %v13124_v61, 5  ;;  %v5831_v2 = vunpack.c.l.b16 %v5792_v23  ;;  %v8555_v11 = vunpack.c.l.b16 %v8453_v50 }
 0x376   : > { %14601 = vst [vmem:[#allocation8_spill] sm:$0xff] %v13126_v21  ;;  %v13128_v28 = vpop.f32.mrf.mxu0  ;;  %v6478_v21 = vrot.slane %v6476_v0, 5  ;;  %v5832_v59 = vunpack.c.l.b16 %v5795_v12  ;;  %v6497_v23 = vshrl.u32 %v6343_v31, 16  ;;  %v6510_v50 = vshrl.u32 %v13124_v61, 16 }
 0x377   : > { %14602 = vst [vmem:[#allocation29_spill] sm:$0xff] %v13128_v28  ;;  %v5578_v35 = vpop.f32.mrf.mxu2  ;;  %v8554_v28 = vunpack.c.l.b16 %v8450_v24  ;;  %v7096_v0 = vsel %vm10677_vm6, %v9876_v57, %v7095_v18  ;;  %v7097_v47 = vrot.slane %v7095_v18, 4  ;;  %v6500_v24 = vshll.u32 %v6343_v31, 16 }
 0x378   : > { %v13147_v19 = vpop.f32.mrf.mxu1  ;;  %v5579_v29 = vadd.f32 %v5578_v35, %v12776_v41  ;;  %v13159_v41 = vrot.slane %v6482_v56, 5  ;;  %v6488_v35 = vrot.slane %v6486_v58, 4  ;;  %v13161_v16 = vpack.c.b16 %v5832_v59, %v5831_v2 }
 0x379   : > { %9840 = vmatmul.msk.bf16.gmra.mxu0 %vm5269_vm12, %v10176_v44  ;;  %v13163_v44 = vld [vmem:[#allocation2 + $0x40] sm:$0xf]  ;;  %v7099_v12 = vsel %vm10677_vm6, %v7097_v47, %v7098_v55  ;;  %v13167_v57 = vpack.c.b16 %v8555_v11, %v8554_v28  ;;  %v7185_v56 = vunpack.c.l.b16 %v7096_v0  ;;  %v6772_v58 = vunpack.c.l.b16 %v6471_v54  ;;  %v13176_v28 = vld [vmem:[#allocation2 + $0x44] sm:$0x1] }
 0x37a   : > { %v13150_v37 = vpop.f32.mrf.mxu3  ;;  %v13157_v63 = vadd.f32 %v13060_v7, %v5579_v29  ;;  %v6506_v7 = vshll.u32 %v13124_v61, 16  ;;  %v7186_v18 = vunpack.c.l.b16 %v7099_v12  ;;  %v8372_v29 = vld [vmem:[#allocation2 + $0x3c] sm:$0xe]  ;;  %v8456_v2 = vrot.slane %v13163_v44, 5 }
 0x37b   : > { %14604 = vst [vmem:[#allocation10_spill] sm:$0xff] %v13167_v57  ;;  %v6771_v59 = vunpack.c.l.b16 %v6461_v17  ;;  %v6489_v47 = vor.u32 %v6488_v35, %v13159_v41  ;;  %v6479_v61 = vor.u32 %v6478_v21, %v13122_v30  ;;  %v6492_v54 = vshll.u32 %v13050_v53, 16  ;;  %v10201_v35 = vld [vmem:[%s14507_s3 + $0x60] sm:$0xff] }
 0x37c   : > { %14603 = vst [vmem:[#allocation9_spill] sm:$0xff] %v13157_v63  ;;  %9704 = vmatmul.msk.bf16.gmra.mxu2 %vm5269_vm12, %v10154_v27  ;;  %v13178_v31 = vpack.c.b16 %v7186_v18, %v7185_v56  ;;  %v6499_v0 = vrot.slane %v6497_v23, 4  ;;  %v6502_v11 = vrot.slane %v6500_v24, 5  ;;  %v13192_v56 = vrot.slane %v6506_v7, 5  ;;  %7589 = vmatpush.bf16.msra.mxu3 %v10201_v35  ;;  %v13206_v35 = vld [vmem:[#allocation2 + $0x58] sm:$0xf] }
 0x37d   : > { %v6512_v18 = vrot.slane %v6510_v50, 4  ;;  %v10038_v57 = vrot.slane %v8372_v29, 9  ;;  %v8458_v30 = vrot.slane %v8456_v2, 4  ;;  %v8459_v53 = vrot.slane %v13176_v28, 5 }
 0x37e   : > { %14605 = vst [vmem:[#allocation11_spill] sm:$0xff] %v13178_v31  ;;  %v13180_v55 = vpop.f32.mrf.mxu0  ;;  %v6490_v23 = vrot.slane %v6489_v47, 4  ;;  %v6480_v24 = vrot.slane %v6479_v61, 4  ;;  %v6516_v7 = vshll.u32 %v13142_v5, 16  ;;  %v6503_v29 = vor.u32 %v6502_v11, %v6499_v0  ;;  %v13213_v0 = vld [vmem:[#allocation2 + $0x4c] sm:$0xf] }
 0x37f   : > { %9749 = vmatmul.msk.bf16.gmra.mxu3 %vm5269_vm12, %v13071_v10  ;;  %v5581_v27 = vpop.f32.mrf.mxu2  ;;  %14606 = vst [vmem:[#allocation30_spill] sm:$0xff] %v13180_v55  ;;  %v6800_v55 = vpack.c.b16 %v6772_v58, %v6771_v59  ;;  %v8460_v50 = vsel %vm10677_vm6, %v8458_v30, %v8459_v53  ;;  %v6494_v58 = vrot.slane %v6492_v54, 5  ;;  %v6513_v59 = vor.u32 %v6512_v18, %v13192_v56 }
 0x380   : > { %v13184_v10 = vpop.f32.mrf.mxu1  ;;  %v5582_v12 = vadd.f32 %v5581_v27, %v12799_v42  ;;  %v8457_v42 = vsel %vm10677_vm6, %v10038_v57, %v8456_v2  ;;  %v6994_v27 = vld [vmem:[#allocation2 + $0xc] sm:$0xe]  ;;  %v7060_v47 = vrot.slane %v12875_v46, 5  ;;  %v7000_v57 = vld [vmem:[#allocation2 + $0x54] sm:$0xe]  ;;  %v6485_v5 = vsel %vm10463_vm3, %v6480_v24, %v13159_v41 }
 0x381   : > { %14607 = vst [vmem:[#allocation31_spill] sm:$0xff] %v13184_v10  ;;  %v8556_v2 = vunpack.c.l.b16 %v8457_v42  ;;  %v6495_v61 = vsel %vm10463_vm3, %v6490_v23, %v6494_v58  ;;  %v9871_v54 = vrot.slane %v6994_v27, 9  ;;  %v7102_v11 = vrot.slane %v13206_v35, 5 }
 0x382   : > { %v13187_v17 = vpop.f32.mrf.mxu3  ;;  %v13196_v21 = vadd.f32 %v13101_v15, %v5582_v12  ;;  %v7703_v15 = vld [vmem:[#allocation2 + $0x18] sm:$0xf]  ;;  %v8557_v12 = vunpack.c.l.b16 %v8460_v50  ;;  %v6518_v30 = vrot.slane %v6516_v7, 5  ;;  %v13216_v50 = vld [vmem:[#allocation2 + $0x5c] sm:$0x1]  ;;  %v6504_v23 = vrot.slane %v6503_v29, 4 }
 0x383   : > { %9858 = vmatmul.msk.bf16.gmra.mxu1 %vm5269_vm12, %v6800_v55  ;;  %v10177_v55 = vld [vmem:[#allocation2 + $0xb4] sm:$0xff]  ;;  %v7752_v46 = vshrl.u32 %v7703_v15, 16  ;;  %v7755_v53 = vshll.u32 %v7703_v15, 16  ;;  %v6514_v27 = vrot.slane %v6513_v59, 4  ;;  %v9877_v58 = vrot.slane %v7000_v57, 9 }
 0x384   : > { %14608 = vst [vmem:[#allocation32_spill] sm:$0xff] %v13196_v21  ;;  %v13218_v42 = vpack.c.b16 %v8557_v12, %v8556_v2  ;;  %v7062_v7 = vrot.slane %v7060_v47, 4  ;;  %v7761_v15 = vshll.u32 %v13000_v62, 16  ;;  %v7765_v31 = vshrl.u32 %v13000_v62, 16  ;;  %v10203_v29 = vld [vmem:[%s14507_s3 + $0x70] sm:$0xff] }
 0x385   : > { %v8463_v12 = vrot.slane %v13213_v0, 5  ;;  %v7103_v59 = vsel %vm10677_vm6, %v9877_v58, %v7102_v11  ;;  %v7104_v57 = vrot.slane %v7102_v11, 4  ;;  %v7105_v62 = vrot.slane %v13216_v50, 5  ;;  %8255 = vmatpush.bf16.msra.mxu0 %v10203_v29 }
 0x386   : > { %14609 = vst [vmem:[#allocation33_spill] sm:$0xff] %v13218_v42  ;;  %v13226_v63 = vpop.f32.mrf.mxu0  ;;  %v7063_v42 = vrot.slane %v12908_v20, 5  ;;  %v7061_v58 = vsel %vm10677_vm6, %v9871_v54, %v7060_v47  ;;  %v6519_v20 = vsel %vm10463_vm3, %v6514_v27, %v6518_v30 }
 0x387   : > { %v5583_v18 = vpop.f32.mrf.mxu2  ;;  %14611 = vst [vmem:[#allocation35_spill] sm:$0xff] %v13226_v63  ;;  %v8373_v63 = vld [vmem:[#allocation2 + $0x48] sm:$0xe]  ;;  %v7106_v11 = vsel %vm10677_vm6, %v7104_v57, %v7105_v62  ;;  %v8465_v54 = vrot.slane %v8463_v12, 4  ;;  %v7175_v57 = vunpack.c.l.b16 %v7061_v58 }
 0x388   : > { %v13220_v21 = vpop.f32.mrf.mxu1  ;;  %v5584_v41 = vadd.f32 %v5583_v18, %v12824_v9  ;;  %v10155_v9 = vld [vmem:[#allocation2 + $0xa8] sm:$0xff]  ;;  %v6774_v18 = vunpack.c.l.b16 %v6495_v61  ;;  %v13258_v61 = vld [vmem:[#allocation2 + $0x50] sm:$0x1]  ;;  %v10039_v47 = vrot.slane %v8373_v63, 9 }
 0x389   : > { %14610 = vst [vmem:[#allocation34_spill] sm:$0xff] %v13220_v21  ;;  %9841 = vmatmul.msk.bf16.gmra.mxu0 %vm5269_vm12, %v10177_v55  ;;  %v10183_v55 = vld [vmem:[%s14507_s3 + $0x50] sm:$0xff]  ;;  %v6509_v21 = vsel %vm10463_vm3, %v6504_v23, %v13192_v56  ;;  %v7187_v56 = vunpack.c.l.b16 %v7103_v59  ;;  %v7767_v23 = vrot.slane %v7765_v31, 4  ;;  %v8466_v31 = vrot.slane %v13258_v61, 5 }
 0x38a   : > { %v13223_v24 = vpop.f32.mrf.mxu3  ;;  %v13232_v2 = vadd.f32 %v13150_v37, %v5584_v41  ;;  %v7754_v37 = vrot.slane %v7752_v46, 4  ;;  %v7757_v41 = vrot.slane %v7755_v53, 5  ;;  %7290 = vmatpush.bf16.msra.mxu2 %v10183_v55  ;;  %v7188_v46 = vunpack.c.l.b16 %v7106_v11  ;;  %v7706_v55 = vld [vmem:[#allocation2 + $0x24] sm:$0xf] }
 0x38b   : > { %v7763_v53 = vrot.slane %v7761_v15, 5  ;;  %v8464_v63 = vsel %vm10677_vm6, %v10039_v47, %v8463_v12  ;;  %v13271_v15 = vunpack.c.l.b16 %v6509_v21  ;;  %v7776_v58 = vshrl.u32 %v7706_v55, 16 }
 0x38c   : > { %14612 = vst [vmem:[#allocation36_spill] sm:$0xff] %v13232_v2  ;;  %9705 = vmatmul.msk.bf16.gmra.mxu2 %vm5269_vm12, %v10155_v9  ;;  %v6773_v2 = vunpack.c.l.b16 %v6485_v5  ;;  %v7064_v5 = vsel %vm10677_vm6, %v7062_v7, %v7063_v42  ;;  %v7758_v62 = vor.u32 %v7757_v41, %v7754_v37  ;;  %v13260_v10 = vpack.c.b16 %v7188_v46, %v7187_v56 }
 0x38d   : > { %v7067_v7 = vrot.slane %v12919_v6, 5  ;;  %v7176_v59 = vunpack.c.l.b16 %v7064_v5  ;;  %v8467_v6 = vsel %vm10677_vm6, %v8465_v54, %v8466_v31  ;;  %v7779_v21 = vshll.u32 %v7706_v55, 16  ;;  %v13294_v54 = vld [vmem:[#allocation2 + $0x64] sm:$0xf] }
 0x38e   : > { %v6801_v29 = vpack.c.b16 %v6774_v18, %v6773_v2  ;;  %14613 = vst [vmem:[#allocation37_spill] sm:$0xff] %v13260_v10  ;;  %v13273_v2 = vunpack.c.l.b16 %v6519_v20  ;;  %v7771_v18 = vshll.u32 %v13016_v13, 16  ;;  %v13282_v12 = vpop.f32.mrf.mxu0  ;;  %v8558_v11 = vunpack.c.l.b16 %v8464_v63  ;;  %v13301_v63 = vld [vmem:[#allocation2 + $0x58] sm:$0xf] }
 0x38f   : > { %9750 = vmatmul.msk.bf16.gmra.mxu3 %vm5269_vm12, %v13161_v16  ;;  %v5586_v9 = vpop.f32.mrf.mxu2  ;;  %v6995_v16 = vld [vmem:[#allocation2 + $0x18] sm:$0xe]  ;;  %14616 = vst [vmem:[#allocation40_spill] sm:$0xff] %v13282_v12  ;;  %v8559_v20 = vunpack.c.l.b16 %v8467_v6  ;;  %v7759_v56 = vrot.slane %v7758_v62, 4  ;;  %v7789_v5 = vshrl.u32 %v13063_v43, 16  ;;  %v10178_v62 = vld [vmem:[#allocation2 + $0xc0] sm:$0xff] }
 0x390   : > { %v13262_v30 = vpop.f32.mrf.mxu1  ;;  %v5587_v27 = vadd.f32 %v5586_v9, %v12849_v1  ;;  %v7768_v1 = vor.u32 %v7767_v23, %v7763_v53  ;;  %v9872_v41 = vrot.slane %v6995_v16, 9  ;;  %v13292_v23 = vpack.c.b16 %v7176_v59, %v7175_v57  ;;  %v7001_v9 = vld [vmem:[#allocation2 + $0x60] sm:$0xe]  ;;  %v13305_v6 = vld [vmem:[#allocation2 + $0x68] sm:$0x1] }
 0x391   : > { %14614 = vst [vmem:[#allocation38_spill] sm:$0xff] %v13262_v30  ;;  %v7773_v47 = vrot.slane %v7771_v18, 5  ;;  %v7764_v16 = vsel %vm10463_vm3, %v7759_v56, %v7763_v53  ;;  %v7070_v55 = vrot.slane %v12953_v4, 5  ;;  %v7778_v18 = vrot.slane %v7776_v58, 4  ;;  %v6346_v4 = vld [vmem:[#allocation2 + $0x54] sm:$0xf] }
 0x392   : > { %v13265_v42 = vpop.f32.mrf.mxu3  ;;  %v13277_v37 = vadd.f32 %v13187_v17, %v5587_v27  ;;  %v13286_v13 = vsel %vm10677_vm6, %v9872_v41, %v7067_v7  ;;  %v7785_v17 = vshll.u32 %v13063_v43, 16  ;;  %v7069_v27 = vrot.slane %v7067_v7, 4 }
 0x393   : > { %9859 = vmatmul.msk.bf16.gmra.mxu1 %vm5269_vm12, %v6801_v29  ;;  %v13296_v29 = vpack.c.b16 %v8559_v20, %v8558_v11  ;;  %v7109_v43 = vrot.slane %v13294_v54, 5  ;;  %v7769_v57 = vrot.slane %v7768_v1, 4  ;;  %v7781_v41 = vrot.slane %v7779_v21, 5 }
 0x394   : > { %14615 = vst [vmem:[#allocation39_spill] sm:$0xff] %v13277_v37  ;;  %v13313_v7 = vrot.slane %v7785_v17, 5  ;;  %v7791_v56 = vrot.slane %v7789_v5, 4  ;;  %v9878_v46 = vrot.slane %v7001_v9, 9  ;;  %v13315_v1 = vunpack.c.l.b16 %v7764_v16  ;;  %v10185_v5 = vld [vmem:[#allocation2 + $0x18] sm:$0xff] }
 0x395   : > { %14617 = vst [vmem:[#allocation41_spill] sm:$0xff] %v13296_v29  ;;  %v6530_v58 = vshll.u32 %v13206_v35, 16  ;;  %v6534_v21 = vshrl.u32 %v13206_v35, 16  ;;  %v8470_v59 = vrot.slane %v13301_v63, 5  ;;  %v7112_v17 = vrot.slane %v13305_v6, 5 }
 0x396   : > { %v7774_v9 = vsel %vm10463_vm3, %v7769_v57, %v7773_v47  ;;  %v6521_v16 = vshrl.u32 %v6346_v4, 16  ;;  %v13330_v35 = vsel %vm10677_vm6, %v7069_v27, %v7070_v55  ;;  %v7782_v12 = vor.u32 %v7781_v41, %v7778_v18  ;;  %v8374_v37 = vld [vmem:[#allocation2 + $0x54] sm:$0xe]  ;;  %v13337_v10 = vpop.f32.mrf.mxu0  ;;  %v13342_v55 = vld [vmem:[#allocation2 + $0x5c] sm:$0x1] }
 0x397   : > { %v5588_v31 = vpop.f32.mrf.mxu2  ;;  %14620 = vst [vmem:[#allocation44_spill] sm:$0xff] %v13337_v10  ;;  %v13340_v47 = vrot.slane %v6530_v58, 5  ;;  %v6536_v27 = vrot.slane %v6534_v21, 4  ;;  %v8141_v41 = vunpack.c.l.b16 %v7774_v9 }
 0x398   : > { %v13307_v11 = vpop.f32.mrf.mxu1  ;;  %v5589_v20 = vadd.f32 %v5588_v31, %v12877_v60  ;;  %v10156_v60 = vld [vmem:[#allocation2 + $0xb4] sm:$0xff]  ;;  %v7111_v31 = vrot.slane %v7109_v43, 4  ;;  %v7783_v30 = vrot.slane %v7782_v12, 4 }
 0x399   : > { %14618 = vst [vmem:[#allocation42_spill] sm:$0xff] %v13307_v11  ;;  %9842 = vmatmul.msk.bf16.gmra.mxu0 %vm5269_vm12, %v10178_v62  ;;  %v7110_v62 = vsel %vm10677_vm6, %v9878_v46, %v7109_v43  ;;  %v7795_v46 = vshll.u32 %v13082_v49, 16  ;;  %v6996_v43 = vld [vmem:[#allocation2 + $0x24] sm:$0xe]  ;;  %v8472_v49 = vrot.slane %v8470_v59, 4  ;;  %v6523_v11 = vrot.slane %v6521_v16, 4 }
 0x39a   : > { %v13310_v53 = vpop.f32.mrf.mxu3  ;;  %v13321_v29 = vadd.f32 %v13223_v24, %v5589_v20  ;;  %v6524_v24 = vshll.u32 %v6346_v4, 16  ;;  %v7792_v20 = vor.u32 %v7791_v56, %v13313_v7  ;;  %v7189_v57 = vunpack.c.l.b16 %v7110_v62 }
 0x39b   : > { %v7074_v4 = vrot.slane %v12965_v40, 5  ;;  %v10040_v56 = vrot.slane %v8374_v37, 9  ;;  %v8473_v40 = vrot.slane %v13342_v55, 5  ;;  %v6537_v37 = vor.u32 %v6536_v27, %v13340_v47 }
 0x39c   : > { %14619 = vst [vmem:[#allocation43_spill] sm:$0xff] %v13321_v29  ;;  %9706 = vmatmul.msk.bf16.gmra.mxu2 %vm5269_vm12, %v10156_v60  ;;  %v7113_v29 = vsel %vm10677_vm6, %v7111_v31, %v7112_v17  ;;  %v9873_v31 = vrot.slane %v6996_v43, 9  ;;  %v7709_v17 = vld [vmem:[#allocation2 + $0x30] sm:$0xf]  ;;  %v6526_v62 = vrot.slane %v6524_v24, 5  ;;  %v7788_v12 = vsel %vm10463_vm3, %v7783_v30, %v13313_v7 }
 0x39d   : > { %v7190_v18 = vunpack.c.l.b16 %v7113_v29  ;;  %v8471_v29 = vsel %vm10677_vm6, %v10040_v56, %v8470_v59  ;;  %v7793_v9 = vrot.slane %v7792_v20, 4  ;;  %v7797_v16 = vrot.slane %v7795_v46, 5 }
 0x39e   : > { %v8474_v24 = vsel %vm10677_vm6, %v8472_v49, %v8473_v40  ;;  %v14623_v59 = vpack.c.b16 %v13273_v2, %v13271_v15  ;;  %v6540_v27 = vshll.u32 %v13216_v50, 16  ;;  %v8560_v56 = vunpack.c.l.b16 %v8471_v29  ;;  %v13378_v2 = vld [vmem:[#allocation2 + $0x70] sm:$0xf]  ;;  %v7002_v50 = vld [vmem:[#allocation2 + $0x6c] sm:$0xe] }
 0x39f   : > { %9991 = vmatmul.msk.bf16.vlgmr.msra.gmra.mxu3 %vm5269_vm12, %v10185_v5  ;;  %v5591_v60 = vpop.f32.mrf.mxu2  ;;  %v13345_v10 = vpack.c.b16 %v7190_v18, %v7189_v57  ;;  %v7800_v57 = vshrl.u32 %v7709_v17, 16  ;;  %v7803_v18 = vshll.u32 %v7709_v17, 16  ;;  %v8561_v30 = vunpack.c.l.b16 %v8474_v24 }
 0x3a0   : > { %v13347_v5 = vpop.f32.mrf.mxu1  ;;  %v5592_v58 = vadd.f32 %v5591_v60, %v12903_v48  ;;  %v7076_v48 = vrot.slane %v7074_v4, 4  ;;  %v8172_v7 = vpack.c.b16 %v8141_v41, %v13315_v1  ;;  %v6527_v20 = vor.u32 %v6526_v62, %v6523_v11  ;;  %v13390_v1 = vld [vmem:[#allocation2 + $0x64] sm:$0xf]  ;;  %v13393_v62 = vpop.f32.mrf.mxu0 }
 0x3a1   : > { %14621 = vst [vmem:[#allocation45_spill] sm:$0xff] %v13345_v10  ;;  %v7077_v46 = vrot.slane %v13003_v34, 5  ;;  %v6538_v60 = vrot.slane %v6537_v37, 4  ;;  %v7798_v49 = vsel %vm10463_vm3, %v7793_v9, %v7797_v16  ;;  %v13376_v15 = vsel %vm10677_vm6, %v9873_v31, %v7074_v4 }
 0x3a2   : > { %v13350_v21 = vpop.f32.mrf.mxu3  ;;  %v13360_v43 = vadd.f32 %v13265_v42, %v5592_v58  ;;  %v13380_v17 = vpack.c.b16 %v8561_v30, %v8560_v56  ;;  %v13382_v58 = vunpack.c.l.b16 %v7788_v12  ;;  %v13388_v34 = vrot.slane %v7800_v57, 4  ;;  %14625 = vst [vmem:[#allocation48_spill] sm:$0xff] %v13393_v62  ;;  %v13399_v12 = vld [vmem:[#allocation2 + $0x74] sm:$0x1] }
 0x3a3   : > { %9860 = vmatmul.msk.bf16.gmra.mxu1 %vm5269_vm12, %v14623_v59  ;;  %v13386_v11 = vsel %vm10677_vm6, %v7076_v48, %v7077_v46  ;;  %v7116_v41 = vrot.slane %v13378_v2, 5  ;;  %v6542_v31 = vrot.slane %v6540_v27, 5  ;;  %v13395_v29 = vrot.slane %v7803_v18, 5  ;;  %v6349_v59 = vld [vmem:[#allocation2 + $0x60] sm:$0xf] }
 0x3a4   : > { %14622 = vst [vmem:[#allocation46_spill] sm:$0xff] %v13360_v43  ;;  %v7809_v40 = vshll.u32 %v13091_v25, 16  ;;  %v7813_v37 = vshrl.u32 %v13091_v25, 16  ;;  %v6528_v57 = vrot.slane %v6527_v20, 4  ;;  %v13407_v24 = vunpack.c.l.b16 %v7798_v49  ;;  %v7712_v27 = vld [vmem:[#allocation2 + $0x3c] sm:$0xf] }
 0x3a5   : > { %14624 = vst [vmem:[#allocation47_spill] sm:$0xff] %v13380_v17  ;;  %v9879_v18 = vrot.slane %v7002_v50, 9  ;;  %v6543_v56 = vsel %vm10463_vm3, %v6538_v60, %v6542_v31  ;;  %v6554_v25 = vshll.u32 %v13294_v54, 16  ;;  %v6558_v30 = vshrl.u32 %v13294_v54, 16  ;;  %v8375_v17 = vld [vmem:[#allocation2 + $0x60] sm:$0xe] }
 0x3a6   : > { %v8477_v46 = vrot.slane %v13390_v1, 5  ;;  %v7118_v20 = vrot.slane %v7116_v41, 4  ;;  %v7119_v49 = vrot.slane %v13399_v12, 5  ;;  %v6545_v50 = vshrl.u32 %v6349_v59, 16 }
 0x3a7   : > { %v5593_v4 = vpop.f32.mrf.mxu2  ;;  %v13420_v42 = vrot.slane %v7809_v40, 5  ;;  %v7815_v60 = vrot.slane %v7813_v37, 4  ;;  %v7824_v31 = vshrl.u32 %v7712_v27, 16  ;;  %v6533_v54 = vsel %vm10463_vm3, %v6528_v57, %v13340_v47  ;;  %v13432_v37 = vld [vmem:[#allocation2 + $0x68] sm:$0x1] }
 0x3a8   : > { %v13401_v9 = vpop.f32.mrf.mxu1  ;;  %v5594_v16 = vadd.f32 %v5593_v4, %v12932_v51  ;;  %v10186_v4 = vld [vmem:[#allocation2 + $0x24] sm:$0xff]  ;;  %v6560_v40 = vrot.slane %v6558_v30, 4  ;;  %v7827_v43 = vshll.u32 %v7712_v27, 16  ;;  %v10041_v10 = vrot.slane %v8375_v17, 9  ;;  %v13447_v27 = vpop.f32.mrf.mxu0 }
 0x3a9   : > { %14626 = vst [vmem:[#allocation49_spill] sm:$0xff] %v13401_v9  ;;  %10019 = vmatmul.msk.bf16.vlgmr.msra.gmra.mxu0 %vm5269_vm12, %v8172_v7  ;;  %v7117_v7 = vsel %vm10677_vm6, %v9879_v18, %v7116_v41  ;;  %v7120_v41 = vsel %vm10677_vm6, %v7118_v20, %v7119_v49  ;;  %v13430_v18 = vrot.slane %v6554_v25, 5  ;;  %v8479_v9 = vrot.slane %v8477_v46, 4 }
 0x3aa   : > { %v13404_v48 = vpop.f32.mrf.mxu3  ;;  %v13415_v51 = vadd.f32 %v13310_v53, %v5594_v16  ;;  %v6778_v53 = vunpack.c.l.b16 %v6543_v56  ;;  %v6548_v16 = vshll.u32 %v6349_v59, 16  ;;  %v7191_v62 = vunpack.c.l.b16 %v7117_v7 }
 0x3ab   : > { %v6777_v57 = vunpack.c.l.b16 %v6533_v54  ;;  %v6547_v59 = vrot.slane %v6545_v50, 4  ;;  %v7806_v56 = vor.u32 %v13395_v29, %v13388_v34  ;;  %v8480_v17 = vrot.slane %v13432_v37, 5 }
 0x3ac   : > { %14627 = vst [vmem:[#allocation50_spill] sm:$0xff] %v13415_v51  ;;  %9899 = vmatmul.msk.bf16.vlgmr.msra.gmra.mxu2 %vm5269_vm12, %v13292_v23  ;;  %v7192_v51 = vunpack.c.l.b16 %v7120_v41  ;;  %v7819_v23 = vshll.u32 %v13105_v8, 16  ;;  %v6550_v7 = vrot.slane %v6548_v16, 5  ;;  %v8478_v8 = vsel %vm10677_vm6, %v10041_v10, %v8477_v46  ;;  %v10205_v46 = vld [vmem:[%s14507_s3 + $0x80] sm:$0xff] }
 0x3ad   : > { %v6803_v49 = vpack.c.b16 %v6778_v53, %v6777_v57  ;;  %v6561_v50 = vor.u32 %v6560_v40, %v13430_v18  ;;  %v7816_v34 = vor.u32 %v7815_v60, %v13420_v42  ;;  %v8481_v54 = vsel %vm10677_vm6, %v8479_v9, %v8480_v17  ;;  %8665 = vmatpush.bf16.msra.mxu1 %v10205_v46  ;;  %v8376_v57 = vld [vmem:[#allocation2 + $0x6c] sm:$0xe] }
 0x3ae   : > { %v13437_v20 = vpack.c.b16 %v7192_v51, %v7191_v62  ;;  %v7826_v62 = vrot.slane %v7824_v31, 4  ;;  %v7833_v51 = vshll.u32 %v13163_v44, 16  ;;  %v6564_v10 = vshll.u32 %v13305_v6, 16 }
 0x3af   : > { %9992 = vmatmul.msk.bf16.gmra.mxu3 %vm5269_vm12, %v10186_v4  ;;  %v5596_v47 = vpop.f32.mrf.mxu2  ;;  %v7837_v60 = vshrl.u32 %v13163_v44, 16  ;;  %v8562_v31 = vunpack.c.l.b16 %v8478_v8  ;;  %v8563_v53 = vunpack.c.l.b16 %v8481_v54  ;;  %v6551_v41 = vor.u32 %v6550_v7, %v6547_v59  ;;  %v13473_v44 = vld [vmem:[#allocation2 + $0x7c] sm:$0xf]  ;;  %v13486_v54 = vld [vmem:[#allocation2 + $0x80] sm:$0x1] }
 0x3b0   : > { %v13439_v25 = vpop.f32.mrf.mxu1  ;;  %v5597_v30 = vadd.f32 %v5596_v47, %v12956_v22  ;;  %v7829_v22 = vrot.slane %v7827_v43, 5  ;;  %v14629_v43 = vunpack.c.l.b16 %v13330_v35  ;;  %v13468_v40 = vrot.slane %v7806_v56, 4  ;;  %v13481_v56 = vld [vmem:[#allocation2 + $0x70] sm:$0xf] }
 0x3b1   : > { %v8173_v6 = vpack.c.b16 %v13407_v24, %v13382_v58  ;;  %v6562_v47 = vrot.slane %v6561_v50, 4  ;;  %v13475_v8 = vpack.c.b16 %v8563_v53, %v8562_v31  ;;  %v7817_v35 = vrot.slane %v7816_v34, 4  ;;  %v6352_v34 = vld [vmem:[#allocation2 + $0x6c] sm:$0xf] }
 0x3b2   : > { %v13442_v4 = vpop.f32.mrf.mxu3  ;;  %v13452_v29 = vadd.f32 %v13350_v21, %v5597_v30  ;;  %v14628_v21 = vunpack.c.l.b16 %v13286_v13  ;;  %v7003_v30 = vld [vmem:[#allocation2 + $0x78] sm:$0xe]  ;;  %v7821_v59 = vrot.slane %v7819_v23, 5  ;;  %v7123_v58 = vrot.slane %v13473_v44, 5 }
 0x3b3   : > { %9861 = vmatmul.msk.bf16.gmra.mxu1 %vm5269_vm12, %v6803_v49  ;;  %14630 = vst [vmem:[#allocation51_spill] sm:$0xff] %v13475_v8  ;;  %v6566_v7 = vrot.slane %v6564_v10, 5  ;;  %v7830_v17 = vor.u32 %v7829_v22, %v7826_v62  ;;  %v13484_v49 = vrot.slane %v7833_v51, 5  ;;  %v7839_v50 = vrot.slane %v7837_v60, 4  ;;  %v7715_v8 = vld [vmem:[#allocation2 + $0x48] sm:$0xf] }
 0x3b4   : > { %v7208_v16 = vpack.c.b16 %v14629_v43, %v14628_v21  ;;  %v6552_v23 = vrot.slane %v6551_v41, 4  ;;  %v7843_v21 = vshll.u32 %v13176_v28, 16  ;;  %v9880_v43 = vrot.slane %v7003_v30, 9  ;;  %v13506_v28 = vpop.f32.mrf.mxu0  ;;  %v10187_v30 = vld [vmem:[#allocation2 + $0x30] sm:$0xff] }
 0x3b5   : > { %v6567_v62 = vsel %vm10463_vm3, %v6562_v47, %v6566_v7  ;;  %v6578_v22 = vshll.u32 %v13378_v2, 16  ;;  %v6582_v51 = vshrl.u32 %v13378_v2, 16  ;;  %v8484_v10 = vrot.slane %v13481_v56, 5  ;;  %14632 = vst [vmem:[#allocation53_spill] sm:$0xff] %v13506_v28 }
 0x3b6   : > { %v7124_v60 = vsel %vm10677_vm6, %v9880_v43, %v7123_v58  ;;  %v7125_v41 = vrot.slane %v7123_v58, 4  ;;  %v7822_v47 = vsel %vm10463_vm3, %v7817_v35, %v7821_v59  ;;  %v7831_v7 = vrot.slane %v7830_v17, 4  ;;  %v13520_v59 = vld [vmem:[#allocation2 + $0x74] sm:$0x1] }
 0x3b7   : > { %v5598_v24 = vpop.f32.mrf.mxu2  ;;  %v7840_v2 = vor.u32 %v7839_v50, %v13484_v49  ;;  %v6780_v58 = vunpack.c.l.b16 %v6567_v62  ;;  %v13518_v9 = vrot.slane %v6578_v22, 5  ;;  %v6584_v35 = vrot.slane %v6582_v51, 4 }
 0x3b8   : > { %v13488_v46 = vpop.f32.mrf.mxu1  ;;  %v5599_v31 = vadd.f32 %v5598_v24, %v12980_v38  ;;  %v6569_v24 = vshrl.u32 %v6352_v34, 16  ;;  %v7193_v17 = vunpack.c.l.b16 %v7124_v60  ;;  %v8145_v13 = vunpack.c.l.b16 %v7822_v47 }
 0x3b9   : > { %10020 = vmatmul.msk.bf16.gmra.mxu0 %vm5269_vm12, %v8173_v6  ;;  %v7126_v6 = vrot.slane %v13486_v54, 5  ;;  %v10042_v28 = vrot.slane %v8376_v57, 9  ;;  %v7836_v62 = vsel %vm10463_vm3, %v7831_v7, %v13484_v49  ;;  %v6585_v47 = vor.u32 %v6584_v35, %v13518_v9 }
 0x3ba   : > { %v13491_v53 = vpop.f32.mrf.mxu3  ;;  %v13501_v38 = vadd.f32 %v13404_v48, %v5599_v31  ;;  %v6557_v48 = vsel %vm10463_vm3, %v6552_v23, %v13430_v18  ;;  %v6572_v31 = vshll.u32 %v6352_v34, 16  ;;  %v6571_v34 = vrot.slane %v6569_v24, 4 }
 0x3bb   : > { %v7127_v43 = vsel %vm10677_vm6, %v7125_v41, %v7126_v6  ;;  %v6779_v23 = vunpack.c.l.b16 %v6557_v48  ;;  %v8485_v57 = vsel %vm10677_vm6, %v10042_v28, %v8484_v10  ;;  %v7841_v24 = vrot.slane %v7840_v2, 4 }
 0x3bc   : > { %14631 = vst [vmem:[#allocation52_spill] sm:$0xff] %v13501_v38  ;;  %9900 = vmatmul.msk.bf16.gmra.mxu2 %vm5269_vm12, %v7208_v16  ;;  %v7194_v50 = vunpack.c.l.b16 %v7127_v43  ;;  %v7845_v16 = vrot.slane %v7843_v21, 5  ;;  %v8486_v38 = vrot.slane %v8484_v10, 4  ;;  %v6574_v6 = vrot.slane %v6572_v31, 5  ;;  %v13550_v35 = vpop.f32.mrf.mxu0 }
 0x3bd   : > { %v8487_v21 = vrot.slane %v13520_v59, 5  ;;  %v7848_v48 = vshrl.u32 %v7715_v8, 16  ;;  %v7851_v7 = vshll.u32 %v7715_v8, 16  ;;  %v7857_v43 = vshll.u32 %v13213_v0, 16  ;;  %14634 = vst [vmem:[#allocation54_spill] sm:$0xff] %v13550_v35 }
 0x3be   : > { %v13525_v41 = vpack.c.b16 %v7194_v50, %v7193_v17  ;;  %v6588_v10 = vshll.u32 %v13399_v12, 16  ;;  %v7861_v28 = vshrl.u32 %v13213_v0, 16  ;;  %v6575_v8 = vor.u32 %v6574_v6, %v6571_v34  ;;  %v13558_v12 = vld [vmem:[#allocation2 + $0x88] sm:$0xf]  ;;  %v13566_v34 = vld [vmem:[#allocation2 + $0x7c] sm:$0xf] }
 0x3bf   : > { %9993 = vmatmul.msk.bf16.gmra.mxu3 %vm5269_vm12, %v10187_v30  ;;  %v5601_v18 = vpop.f32.mrf.mxu2  ;;  %v6804_v30 = vpack.c.b16 %v6780_v58, %v6779_v23  ;;  %v8564_v58 = vunpack.c.l.b16 %v8485_v57  ;;  %v14635_v17 = vunpack.c.l.b16 %v13376_v15  ;;  %v7846_v0 = vsel %vm10463_vm3, %v7841_v24, %v7845_v16  ;;  %v7004_v23 = vld [vmem:[#allocation2 + $0x84] sm:$0xe] }
 0x3c0   : > { %v13527_v22 = vpop.f32.mrf.mxu1  ;;  %v5602_v51 = vadd.f32 %v5601_v18, %v13018_v3  ;;  %v8488_v3 = vsel %vm10677_vm6, %v8486_v38, %v8487_v21  ;;  %v14636_v38 = vunpack.c.l.b16 %v13386_v11  ;;  %v6586_v18 = vrot.slane %v6585_v47, 4  ;;  %v13573_v47 = vld [vmem:[#allocation2 + $0x8c] sm:$0x1] }
 0x3c1   : > { %v8565_v31 = vunpack.c.l.b16 %v8488_v3  ;;  %v7130_v15 = vrot.slane %v13558_v12, 5  ;;  %v6590_v6 = vrot.slane %v6588_v10, 5  ;;  %v13569_v21 = vrot.slane %v7851_v7, 5 }
 0x3c2   : > { %v13530_v60 = vpop.f32.mrf.mxu3  ;;  %v13537_v49 = vadd.f32 %v13442_v4, %v5602_v51  ;;  %v14633_v4 = vsel %vm10463_vm3, %v13468_v40, %v13420_v42  ;;  %v7209_v50 = vpack.c.b16 %v14636_v38, %v14635_v17  ;;  %v13562_v42 = vunpack.c.l.b16 %v7836_v62  ;;  %v10188_v38 = vld [vmem:[#allocation2 + $0x3c] sm:$0xff] }
 0x3c3   : > { %9862 = vmatmul.msk.bf16.gmra.mxu1 %vm5269_vm12, %v6804_v30  ;;  %v8144_v2 = vunpack.c.l.b16 %v14633_v4  ;;  %v13560_v51 = vpack.c.b16 %v8565_v31, %v8564_v58  ;;  %v13564_v40 = vrot.slane %v7848_v48, 4  ;;  %v13571_v30 = vrot.slane %v7857_v43, 5  ;;  %v6355_v43 = vld [vmem:[#allocation2 + $0x78] sm:$0xf] }
 0x3c4   : > { %v7863_v16 = vrot.slane %v7861_v28, 4  ;;  %v6576_v48 = vrot.slane %v6575_v8, 4  ;;  %v13581_v3 = vunpack.c.l.b16 %v7846_v0  ;;  %v9881_v58 = vrot.slane %v7004_v23, 9  ;;  %v8377_v23 = vld [vmem:[#allocation2 + $0x78] sm:$0xe] }
 0x3c5   : > { %14637 = vst [vmem:[#allocation55_spill] sm:$0xff] %v13560_v51  ;;  %v8174_v57 = vpack.c.b16 %v8145_v13, %v8144_v2  ;;  %v6591_v7 = vsel %vm10463_vm3, %v6586_v18, %v6590_v6  ;;  %v6602_v10 = vshll.u32 %v13473_v44, 16  ;;  %v6606_v28 = vshrl.u32 %v13473_v44, 16 }
 0x3c6   : > { %v8491_v31 = vrot.slane %v13566_v34, 5  ;;  %v7131_v4 = vsel %vm10677_vm6, %v9881_v58, %v7130_v15  ;;  %v7132_v2 = vrot.slane %v7130_v15, 4  ;;  %v7133_v8 = vrot.slane %v13573_v47, 5 }
 0x3c7   : > { %v5603_v11 = vpop.f32.mrf.mxu2  ;;  %v6581_v17 = vsel %vm10463_vm3, %v6576_v48, %v13518_v9  ;;  %v7854_v18 = vor.u32 %v13569_v21, %v13564_v40  ;;  %v7864_v44 = vor.u32 %v7863_v16, %v13571_v30  ;;  %v7867_v0 = vshll.u32 %v13258_v61, 16  ;;  %v13607_v40 = vld [vmem:[#allocation2 + $0x80] sm:$0x1] }
 0x3c8   : > { %v13575_v24 = vpop.f32.mrf.mxu1  ;;  %v5604_v13 = vadd.f32 %v5603_v11, %v13057_v36  ;;  %v6593_v15 = vshrl.u32 %v6355_v43, 16  ;;  %v6596_v11 = vshll.u32 %v6355_v43, 16  ;;  %v7134_v6 = vsel %vm10677_vm6, %v7132_v2, %v7133_v8 }
 0x3c9   : > { %10021 = vmatmul.msk.bf16.gmra.mxu0 %vm5269_vm12, %v8174_v57  ;;  %v6782_v57 = vunpack.c.l.b16 %v6591_v7  ;;  %v13605_v9 = vrot.slane %v6602_v10, 5  ;;  %v7195_v21 = vunpack.c.l.b16 %v7131_v4  ;;  %v7196_v16 = vunpack.c.l.b16 %v7134_v6 }
 0x3ca   : > { %v13578_v62 = vpop.f32.mrf.mxu3  ;;  %v13589_v36 = vadd.f32 %v13491_v53, %v5604_v13  ;;  %v7718_v53 = vld [vmem:[#allocation2 + $0x54] sm:$0xf]  ;;  %v6608_v13 = vrot.slane %v6606_v28, 4  ;;  %v10043_v58 = vrot.slane %v8377_v23, 9  ;;  %v8493_v51 = vrot.slane %v8491_v31, 4 }
 0x3cb   : > { %v7872_v61 = vshrl.u32 %v7718_v53, 16  ;;  %v7875_v48 = vshll.u32 %v7718_v53, 16  ;;  %v6296_v7 = vadd.f32 %v12820_v39, %v12860_v33  ;;  %v6781_v2 = vunpack.c.l.b16 %v6581_v17  ;;  %v13624_v17 = vld [vmem:[#allocation2 + $0x88] sm:$0xf] }
 0x3cc   : > { %14638 = vst [vmem:[#allocation56_spill] sm:$0xff] %v13589_v36  ;;  %9901 = vmatmul.msk.bf16.gmra.mxu2 %vm5269_vm12, %v7209_v50  ;;  %v13609_v50 = vpop.f32.mrf.mxu0  ;;  %v7865_v8 = vrot.slane %v7864_v44, 4  ;;  %v6595_v4 = vrot.slane %v6593_v15, 4  ;;  %v8492_v53 = vsel %vm10677_vm6, %v10043_v58, %v8491_v31  ;;  %v8494_v23 = vrot.slane %v13607_v40, 5 }
 0x3cd   : > { %14639 = vst [vmem:[#allocation57_spill] sm:$0xff] %v13609_v50  ;;  %v6805_v50 = vpack.c.b16 %v6782_v57, %v6781_v2  ;;  %v6598_v39 = vrot.slane %v6596_v11, 5  ;;  %v6609_v33 = vor.u32 %v6608_v13, %v13605_v9  ;;  %v6612_v31 = vshll.u32 %v13486_v54, 16 }
 0x3ce   : > { %v8495_v15 = vsel %vm10677_vm6, %v8493_v51, %v8494_v23  ;;  %v8566_v57 = vunpack.c.l.b16 %v8492_v53  ;;  %v7855_v58 = vrot.slane %v7854_v18, 4  ;;  %v7869_v13 = vrot.slane %v7867_v0, 5  ;;  %v8378_v51 = vld [vmem:[#allocation2 + $0x84] sm:$0xe] }
 0x3cf   : > { %9994 = vmatmul.msk.bf16.gmra.mxu3 %vm5269_vm12, %v10188_v38  ;;  %v5606_v43 = vpop.f32.mrf.mxu2  ;;  %v13613_v38 = vpack.c.b16 %v7196_v16, %v7195_v21  ;;  %v7877_v21 = vrot.slane %v7875_v48, 5  ;;  %v7881_v16 = vshll.u32 %v13301_v63, 16  ;;  %v8567_v11 = vunpack.c.l.b16 %v8495_v15  ;;  %v13636_v48 = vld [vmem:[#allocation2 + $0x8c] sm:$0x1]  ;;  %v6358_v15 = vld [vmem:[#allocation2 + $0x84] sm:$0xf] }
 0x3d0   : > { %v6882_v10 = vpop.f32.mrf.mxu1  ;;  %v5607_v28 = vadd.f32 %v5606_v43, %v13098_v26  ;;  %v7874_v26 = vrot.slane %v7872_v61, 4  ;;  %v6599_v43 = vor.u32 %v6598_v39, %v6595_v4  ;;  %v6610_v61 = vrot.slane %v6609_v33, 4 }
 0x3d1   : > { %v13621_v6 = vadd.f32 %v6882_v10, %v6296_v7  ;;  %v7885_v7 = vshrl.u32 %v13301_v63, 16  ;;  %v13638_v2 = vpack.c.b16 %v8567_v11, %v8566_v57  ;;  %v8175_v54 = vpack.c.b16 %v13581_v3, %v13562_v42  ;;  %v7721_v3 = vld [vmem:[#allocation2 + $0x60] sm:$0xf] }
 0x3d2   : > { %v13616_v36 = vpop.f32.mrf.mxu3  ;;  %v13627_v44 = vadd.f32 %v13530_v60, %v5607_v28  ;;  %v8498_v60 = vrot.slane %v13624_v17, 5  ;;  %v7870_v18 = vsel %vm10463_vm3, %v7865_v8, %v7869_v13  ;;  %v7878_v63 = vor.u32 %v7877_v21, %v7874_v26 }
 0x3d3   : > { %9863 = vmatmul.msk.bf16.gmra.mxu1 %vm5269_vm12, %v6805_v50  ;;  %14641 = vst [vmem:[#allocation59_spill] sm:$0xff] %v13638_v2  ;;  %v7860_v50 = vsel %vm10463_vm3, %v7855_v58, %v13571_v30  ;;  %v6297_v0 = vadd.f32 %v12846_v45, %v12890_v52  ;;  %v6614_v28 = vrot.slane %v6612_v31, 5  ;;  %v13649_v4 = vrot.slane %v7881_v16, 5  ;;  %v10189_v58 = vld [vmem:[#allocation2 + $0x48] sm:$0xff] }
 0x3d4   : > { %14640 = vst [vmem:[#allocation58_spill] sm:$0xff] %v13627_v44  ;;  %v8500_v53 = vrot.slane %v8498_v60, 4  ;;  %v7887_v30 = vrot.slane %v7885_v7, 4  ;;  %v10044_v33 = vrot.slane %v8378_v51, 9  ;;  %v8501_v8 = vrot.slane %v13636_v48, 5  ;;  %v13656_v26 = vpop.f32.mrf.mxu0 }
 0x3d5   : > { %14642 = vst [vmem:[#allocation60_spill] sm:$0xff] %v13656_v26  ;;  %v6600_v52 = vrot.slane %v6599_v43, 4  ;;  %v6615_v21 = vsel %vm10463_vm3, %v6610_v61, %v6614_v28  ;;  %v6630_v16 = vshrl.u32 %v13558_v12, 16  ;;  %v13671_v13 = vunpack.c.l.b16 %v7860_v50  ;;  %v14644_v61 = vld [vmem:[#allocation21_spill] sm:$0xff]  ;;  %v14653_v26 = vld [vmem:[#allocation34_spill] sm:$0xff] }
 0x3d6   : > { %v8499_v57 = vsel %vm10677_vm6, %v10044_v33, %v8498_v60  ;;  %v8502_v11 = vsel %vm10677_vm6, %v8500_v53, %v8501_v8  ;;  %v13673_v7 = vunpack.c.l.b16 %v7870_v18  ;;  %v7896_v43 = vshrl.u32 %v7721_v3, 16  ;;  %v14646_v33 = vld [vmem:[#allocation12_spill] sm:$0xff] }
 0x3d7   : > { %v5608_v10 = vpop.f32.mrf.mxu2  ;;  %v13680_v51 = vrot.slane %v7878_v63, 4  ;;  %v7899_v60 = vshll.u32 %v7721_v3, 16  ;;  %v8568_v50 = vunpack.c.l.b16 %v8499_v57  ;;  %v6632_v28 = vrot.slane %v6630_v16, 4 }
 0x3d8   : > { %v6884_v23 = vpop.f32.mrf.mxu1  ;;  %v5609_v39 = vadd.f32 %v5608_v10, %v13147_v19  ;;  %v6626_v19 = vshll.u32 %v13558_v12, 16  ;;  %v6617_v12 = vshrl.u32 %v6358_v15, 16  ;;  %v8569_v10 = vunpack.c.l.b16 %v8502_v11 }
 0x3d9   : > { %10022 = vmatmul.msk.bf16.gmra.mxu0 %vm5269_vm12, %v8175_v54  ;;  %v13658_v45 = vadd.f32 %v6884_v23, %v6297_v0  ;;  %v6784_v54 = vunpack.c.l.b16 %v6615_v21  ;;  %v6620_v0 = vshll.u32 %v6358_v15, 16  ;;  %v7888_v53 = vor.u32 %v7887_v30, %v13649_v4  ;;  %v14648_v15 = vld [vmem:[#allocation31_spill] sm:$0xff] }
 0x3da   : > { %v13652_v42 = vpop.f32.mrf.mxu3  ;;  %v13664_v31 = vadd.f32 %v13578_v62, %v5609_v39  ;;  %v6605_v62 = vsel %vm10463_vm3, %v6600_v52, %v13605_v9  ;;  %v13683_v18 = vrot.slane %v6626_v19, 5  ;;  %v7891_v23 = vshll.u32 %v13342_v55, 16  ;;  %v14645_v39 = vld [vmem:[#allocation14_spill] sm:$0xff] }
 0x3db   : > { %v6298_v9 = vadd.f32 %v14646_v33, %v14645_v39  ;;  %v6783_v63 = vunpack.c.l.b16 %v6605_v62  ;;  %v13689_v52 = vrot.slane %v7896_v43, 4  ;;  %v13691_v3 = vpack.c.b16 %v8569_v10, %v8568_v50  ;;  %v6362_v43 = vld [vmem:[#allocation2 + $0x94] sm:$0xf]  ;;  %v7005_v33 = vld [vmem:[#allocation2 + $0x90] sm:$0xe] }
 0x3dc   : > { %14643 = vst [vmem:[#allocation61_spill] sm:$0xff] %v13664_v31  ;;  %9902 = vmatmul.msk.bf16.gmra.mxu2 %vm5269_vm12, %v14644_v61  ;;  %v13696_v19 = vrot.slane %v7899_v60, 5  ;;  %v7905_v30 = vshll.u32 %v13390_v1, 16  ;;  %v7909_v55 = vshrl.u32 %v13390_v1, 16  ;;  %v6619_v61 = vrot.slane %v6617_v12, 4 }
 0x3dd   : > { %14647 = vst [vmem:[#allocation21_spill] sm:$0xff] %v13691_v3  ;;  %v6622_v62 = vrot.slane %v6620_v0, 5  ;;  %v13702_v39 = vld [vmem:[#allocation2 + $0x94] sm:$0xf]  ;;  %v6633_v10 = vor.u32 %v6632_v28, %v13683_v18  ;;  %v6636_v60 = vshll.u32 %v13573_v47, 16  ;;  %v8176_v1 = vpack.c.b16 %v13673_v7, %v13671_v13  ;;  %v14651_v7 = vld [vmem:[#allocation16_spill] sm:$0xff] }
 0x3de   : > { %v7884_v12 = vsel %vm10463_vm3, %v13680_v51, %v13649_v4  ;;  %v13718_v0 = vld [vmem:[#allocation2 + $0x98] sm:$0x1]  ;;  %v8379_v28 = vld [vmem:[#allocation2 + $0x90] sm:$0xe]  ;;  %v7902_v47 = vor.u32 %v13696_v19, %v13689_v52  ;;  %v8505_v13 = vrot.slane %v13702_v39, 5  ;;  %v7911_v4 = vrot.slane %v7909_v55, 4 }
 0x3df   : > { %9995 = vmatmul.msk.bf16.gmra.mxu3 %vm5269_vm12, %v10189_v58  ;;  %v5611_v8 = vpop.f32.mrf.mxu2  ;;  %v6806_v58 = vpack.c.b16 %v6784_v54, %v6783_v63  ;;  %v7889_v54 = vrot.slane %v7888_v53, 4  ;;  %v13724_v63 = vld [vmem:[#allocation2 + $0x98] sm:$0x1]  ;;  %v9882_v51 = vrot.slane %v7005_v33, 9  ;;  %v6634_v53 = vrot.slane %v6633_v10, 4 }
 0x3e0   : > { %v6887_v21 = vpop.f32.mrf.mxu1  ;;  %v5612_v57 = vadd.f32 %v5611_v8, %v14648_v15  ;;  %v13709_v8 = vpop.f32.mrf.mxu0  ;;  %v14652_v15 = vld [vmem:[#allocation13_spill] sm:$0xff]  ;;  %v7140_v3 = vrot.slane %v13718_v0, 5  ;;  %v10045_v2 = vrot.slane %v8379_v28, 9  ;;  %v6650_v55 = vshll.u32 %v6362_v43, 16 }
 0x3e1   : > { %v13700_v16 = vadd.f32 %v6887_v21, %v6298_v9  ;;  %14650 = vst [vmem:[#allocation12_spill] sm:$0xff] %v13709_v8  ;;  %v13722_v9 = vrot.slane %v7905_v30, 5  ;;  %v7137_v21 = vrot.slane %v6362_v43, 5  ;;  %v8507_v30 = vrot.slane %v8505_v13, 4 }
 0x3e2   : > { %v13694_v11 = vpop.f32.mrf.mxu3  ;;  %v13705_v50 = vadd.f32 %v13616_v36, %v5612_v57  ;;  %v7893_v36 = vrot.slane %v7891_v23, 5  ;;  %v6299_v57 = vadd.f32 %v14652_v15, %v14651_v7  ;;  %v6638_v23 = vrot.slane %v6636_v60, 5 }
 0x3e3   : > { %9864 = vmatmul.msk.bf16.gmra.mxu1 %vm5269_vm12, %v6806_v58  ;;  %v6623_v58 = vor.u32 %v6622_v62, %v6619_v61  ;;  %v7138_v52 = vsel %vm10677_vm6, %v9882_v51, %v7137_v21  ;;  %v7139_v19 = vrot.slane %v7137_v21, 4  ;;  %v8508_v8 = vrot.slane %v13724_v63, 5  ;;  %v10190_v21 = vld [vmem:[#allocation2 + $0x54] sm:$0xff] }
 0x3e4   : > { %14649 = vst [vmem:[#allocation14_spill] sm:$0xff] %v13705_v50  ;;  %v6654_v61 = vshrl.u32 %v6362_v43, 16  ;;  %v8506_v62 = vsel %vm10677_vm6, %v10045_v2, %v8505_v13  ;;  %v7894_v2 = vsel %vm10463_vm3, %v7889_v54, %v7893_v36  ;;  %v7912_v13 = vor.u32 %v7911_v4, %v13722_v9 }
 0x3e5   : > { %v6624_v60 = vrot.slane %v6623_v58, 4  ;;  %v7141_v33 = vsel %vm10677_vm6, %v7139_v19, %v7140_v3  ;;  %v8509_v28 = vsel %vm10677_vm6, %v8507_v30, %v8508_v8  ;;  %v8570_v15 = vunpack.c.l.b16 %v8506_v62  ;;  %v7724_v19 = vld [vmem:[#allocation2 + $0x6c] sm:$0xf]  ;;  %v14658_v30 = vld [vmem:[#allocation19_spill] sm:$0xff] }
 0x3e6   : > { %v7198_v43 = vunpack.c.l.b16 %v7141_v33  ;;  %v8571_v3 = vunpack.c.l.b16 %v8509_v28  ;;  %v6656_v8 = vrot.slane %v6654_v61, 4  ;;  %v8150_v4 = vunpack.c.l.b16 %v7884_v12  ;;  %v14659_v62 = vld [vmem:[#allocation15_spill] sm:$0xff] }
 0x3e7   : > { %v5613_v50 = vpop.f32.mrf.mxu2  ;;  %v8151_v61 = vunpack.c.l.b16 %v7894_v2  ;;  %v7915_v33 = vshll.u32 %v13432_v37, 16 }
 0x3e8   : > { %v6889_v31 = vpop.f32.mrf.mxu1  ;;  %v5614_v44 = vadd.f32 %v5613_v50, %v14653_v26  ;;  %v6639_v50 = vsel %vm10463_vm3, %v6634_v53, %v6638_v23  ;;  %v13762_v51 = vpop.f32.mrf.mxu0  ;;  %v13765_v36 = vpack.c.b16 %v8571_v3, %v8570_v15  ;;  %v7920_v3 = vshrl.u32 %v7724_v19, 16 }
 0x3e9   : > { %10023 = vmatmul.msk.bf16.gmra.mxu0 %vm5269_vm12, %v8176_v1  ;;  %v13739_v10 = vadd.f32 %v6889_v31, %v6299_v57  ;;  %v7197_v1 = vunpack.c.l.b16 %v7138_v52  ;;  %v6361_v31 = vld [vmem:[#allocation2 + $0x90] sm:$0xf]  ;;  %v14655_v57 = vld [vmem:[#allocation7_spill] sm:$0xff]  ;;  %14656 = vst [vmem:[#allocation16_spill] sm:$0xff] %v13762_v51  ;;  %v6786_v54 = vunpack.c.l.b16 %v6639_v50  ;;  %v7903_v52 = vrot.slane %v7902_v47, 4 }
 0x3ea   : > { %v13734_v7 = vpop.f32.mrf.mxu3  ;;  %v13746_v26 = vadd.f32 %v13652_v42, %v5614_v44  ;;  %v6629_v44 = vsel %vm10463_vm3, %v6624_v60, %v13683_v18  ;;  %v13758_v42 = vrot.slane %v6650_v55, 5  ;;  %14657 = vst [vmem:[#allocation13_spill] sm:$0xff] %v13765_v36  ;;  %v6641_v53 = vshrl.u32 %v6361_v31, 16 }
 0x3eb   : > { %v13760_v58 = vpack.c.b16 %v7198_v43, %v7197_v1  ;;  %v6644_v23 = vshll.u32 %v6361_v31, 16  ;;  %v6300_v18 = vadd.f32 %v14659_v62, %v14658_v30  ;;  %v6785_v60 = vunpack.c.l.b16 %v6629_v44  ;;  %v14660_v1 = vld [vmem:[#allocation38_spill] sm:$0xff]  ;;  %v6365_v62 = vld [vmem:[#allocation2 + $0xa0] sm:$0xf] }
 0x3ec   : > { %14654 = vst [vmem:[#allocation31_spill] sm:$0xff] %v13746_v26  ;;  %9903 = vmatmul.msk.bf16.gmra.mxu2 %vm5269_vm12, %v14655_v57  ;;  %v7908_v12 = vsel %vm10463_vm3, %v7903_v52, %v13722_v9  ;;  %v7913_v47 = vrot.slane %v7912_v13, 4  ;;  %v7923_v57 = vshll.u32 %v7724_v19, 16  ;;  %v6643_v37 = vrot.slane %v6641_v53, 4  ;;  %v13786_v52 = vld [vmem:[#allocation2 + $0xa4] sm:$0x1] }
 0x3ed   : > { %v6807_v15 = vpack.c.b16 %v6786_v54, %v6785_v60  ;;  %v6646_v44 = vrot.slane %v6644_v23, 5  ;;  %v6660_v30 = vshll.u32 %v13718_v0, 16  ;;  %v13784_v13 = vunpack.c.l.b16 %v7908_v12  ;;  %v14676_v26 = vld [vmem:[#allocation22_spill] sm:$0xff] }
 0x3ee   : > { %v7925_v19 = vrot.slane %v7923_v57, 5  ;;  %v7144_v53 = vrot.slane %v6365_v62, 5  ;;  %v7929_v0 = vshll.u32 %v13481_v56, 16 }
 0x3ef   : > { %9996 = vmatmul.msk.bf16.gmra.mxu3 %vm5269_vm12, %v10190_v21  ;;  %v5616_v55 = vpop.f32.mrf.mxu2  ;;  %v6657_v21 = vor.u32 %v6656_v8, %v13758_v42  ;;  %v7917_v8 = vrot.slane %v7915_v33, 5  ;;  %v6647_v23 = vor.u32 %v6646_v44, %v6643_v37  ;;  %v14663_v33 = vld [vmem:[#allocation18_spill] sm:$0xff] }
 0x3f0   : > { %v6892_v28 = vpop.f32.mrf.mxu1  ;;  %v5617_v50 = vadd.f32 %v5616_v55, %v14660_v1  ;;  %v7006_v55 = vld [vmem:[#allocation2 + $0x9c] sm:$0xe]  ;;  %v8177_v1 = vpack.c.b16 %v8151_v61, %v8150_v4  ;;  %v14664_v4 = vld [vmem:[#allocation17_spill] sm:$0xff]  ;;  %v7146_v12 = vrot.slane %v7144_v53, 4 }
 0x3f1   : > { %v13777_v31 = vadd.f32 %v6892_v28, %v6300_v18  ;;  %v6658_v9 = vrot.slane %v6657_v21, 4  ;;  %v7918_v54 = vsel %vm10463_vm3, %v7913_v47, %v7917_v8  ;;  %v6662_v18 = vrot.slane %v6660_v30, 5  ;;  %v13791_v28 = vpop.f32.mrf.mxu0  ;;  %v7727_v30 = vld [vmem:[#allocation2 + $0x78] sm:$0xf] }
 0x3f2   : > { %v13771_v43 = vpop.f32.mrf.mxu3  ;;  %v13780_v2 = vadd.f32 %v13694_v11, %v5617_v50  ;;  %v7922_v11 = vrot.slane %v7920_v3, 4  ;;  %v9883_v60 = vrot.slane %v7006_v55, 9  ;;  %14662 = vst [vmem:[#allocation7_spill] sm:$0xff] %v13791_v28  ;;  %v6301_v61 = vadd.f32 %v14664_v4, %v14663_v33  ;;  %v14665_v3 = vld [vmem:[#allocation42_spill] sm:$0xff] }
 0x3f3   : > { %9865 = vmatmul.msk.bf16.gmra.mxu1 %vm5269_vm12, %v6807_v15  ;;  %v7933_v21 = vshrl.u32 %v13481_v56, 16  ;;  %v7147_v15 = vrot.slane %v13786_v52, 5  ;;  %v6663_v37 = vsel %vm10463_vm3, %v6658_v9, %v6662_v18  ;;  %v13803_v44 = vunpack.c.l.b16 %v7918_v54  ;;  %v13816_v9 = vld [vmem:[#allocation2 + $0xa0] sm:$0xf]  ;;  %v6364_v18 = vld [vmem:[#allocation2 + $0x9c] sm:$0xf] }
 0x3f4   : > { %14661 = vst [vmem:[#allocation34_spill] sm:$0xff] %v13780_v2  ;;  %v7145_v55 = vsel %vm10677_vm6, %v9883_v60, %v7144_v53  ;;  %v6674_v33 = vshll.u32 %v6365_v62, 16  ;;  %v6678_v4 = vshrl.u32 %v6365_v62, 16  ;;  %v7926_v36 = vor.u32 %v7925_v19, %v7922_v11  ;;  %v10191_v54 = vld [vmem:[#allocation2 + $0x60] sm:$0xff] }
 0x3f5   : > { %v13814_v2 = vrot.slane %v7929_v0, 5  ;;  %v7935_v28 = vrot.slane %v7933_v21, 4  ;;  %v7944_v53 = vshrl.u32 %v7727_v30, 16  ;;  %v7199_v60 = vunpack.c.l.b16 %v7145_v55 }
 0x3f6   : > { %v6788_v62 = vunpack.c.l.b16 %v6663_v37  ;;  %v7953_v11 = vshll.u32 %v13566_v34, 16  ;;  %v13825_v19 = vrot.slane %v6674_v33, 5  ;;  %v6680_v0 = vrot.slane %v6678_v4, 4  ;;  %v14670_v37 = vld [vmem:[#allocation20_spill] sm:$0xff] }
 0x3f7   : > { %v5618_v50 = vpop.f32.mrf.mxu2  ;;  %v13830_v55 = vrot.slane %v7926_v36, 4  ;;  %v7939_v33 = vshll.u32 %v13520_v59, 16  ;;  %v14672_v59 = vrot.slane %v13816_v9, 5 }
 0x3f8   : > { %v6894_v47 = vpop.f32.mrf.mxu1  ;;  %v5619_v57 = vadd.f32 %v5618_v50, %v14665_v3  ;;  %v7148_v50 = vsel %vm10677_vm6, %v7146_v12, %v7147_v15  ;;  %v6665_v15 = vshrl.u32 %v6364_v18, 16  ;;  %v13840_v12 = vrot.slane %v7944_v53, 4 }
 0x3f9   : > { %10024 = vmatmul.msk.bf16.gmra.mxu0 %vm5269_vm12, %v8177_v1  ;;  %v13807_v56 = vadd.f32 %v6894_v47, %v6301_v61  ;;  %v6648_v1 = vrot.slane %v6647_v23, 4  ;;  %v7200_v61 = vunpack.c.l.b16 %v7148_v50  ;;  %v14667_v47 = vld [vmem:[#allocation11_spill] sm:$0xff]  ;;  %v7947_v23 = vshll.u32 %v7727_v30, 16 }
 0x3fa   : > { %v13798_v8 = vpop.f32.mrf.mxu3  ;;  %v13812_v3 = vadd.f32 %v13734_v7, %v5619_v57  ;;  %v6668_v57 = vshll.u32 %v6364_v18, 16  ;;  %v7957_v50 = vshrl.u32 %v13566_v34, 16  ;;  %v13844_v18 = vrot.slane %v7953_v11, 5  ;;  %v13846_v34 = vld [vmem:[#allocation2 + $0xa4] sm:$0x1] }
 0x3fb   : > { %v6653_v7 = vsel %vm10463_vm3, %v6648_v1, %v13758_v42  ;;  %v13827_v21 = vpack.c.b16 %v7200_v61, %v7199_v60  ;;  %v14669_v42 = vld [vmem:[#allocation23_spill] sm:$0xff]  ;;  %v13842_v36 = vrot.slane %v7947_v23, 5  ;;  %v6667_v53 = vrot.slane %v6665_v15, 4  ;;  %v13867_v15 = vld [vmem:[#allocation2 + $0xb0] sm:$0x1] }
 0x3fc   : > { %14666 = vst [vmem:[#allocation19_spill] sm:$0xff] %v13812_v3  ;;  %9904 = vmatmul.msk.bf16.gmra.mxu2 %vm5269_vm12, %v14667_v47  ;;  %v6302_v30 = vadd.f32 %v14670_v37, %v14669_v42  ;;  %v6787_v47 = vunpack.c.l.b16 %v6653_v7  ;;  %v8514_v37 = vrot.slane %v14672_v59, 4  ;;  %v13853_v3 = vpop.f32.mrf.mxu0  ;;  %v6670_v23 = vrot.slane %v6668_v57, 5 }
 0x3fd   : > { %14668 = vst [vmem:[#allocation15_spill] sm:$0xff] %v13827_v21  ;;  %v7959_v11 = vrot.slane %v7957_v50, 4  ;;  %v14677_v21 = vld [vmem:[#allocation49_spill] sm:$0xff] }
 0x3fe   : > { %v6808_v7 = vpack.c.b16 %v6788_v62, %v6787_v47  ;;  %14673 = vst [vmem:[#allocation18_spill] sm:$0xff] %v13853_v3  ;;  %v8515_v62 = vrot.slane %v13846_v34, 5  ;;  %v7941_v47 = vrot.slane %v7939_v33, 5  ;;  %v6671_v59 = vor.u32 %v6670_v23, %v6667_v53  ;;  %v14675_v3 = vld [vmem:[#allocation26_spill] sm:$0xff] }
 0x3ff   : > { %9997 = vmatmul.msk.bf16.gmra.mxu3 %vm5269_vm12, %v10191_v54  ;;  %v5621_v1 = vpop.f32.mrf.mxu2  ;;  %v7936_v54 = vor.u32 %v7935_v28, %v13814_v2  ;;  %v6681_v28 = vor.u32 %v6680_v0, %v13825_v19  ;;  %v8178_v0 = vpack.c.b16 %v13803_v44, %v13784_v13  ;;  %v7960_v13 = vor.u32 %v7959_v11, %v13844_v18 }
 0x400   : > { %v6897_v4 = vpop.f32.mrf.mxu1  ;;  %v5622_v60 = vadd.f32 %v5621_v1, %v13347_v5  ;;  %v6368_v1 = vld [vmem:[#allocation2 + $0xac] sm:$0xf]  ;;  %v6672_v11 = vrot.slane %v6671_v59, 4 }
 0x401   : > { %v13848_v42 = vadd.f32 %v6897_v4, %v6302_v30  ;;  %v6684_v30 = vshll.u32 %v13786_v52, 16  ;;  %v7007_v4 = vld [vmem:[#allocation2 + $0xa8] sm:$0xe]  ;;  %v6682_v57 = vrot.slane %v6681_v28, 4  ;;  %v7937_v50 = vrot.slane %v7936_v54, 4 }
 0x402   : > { %v13838_v61 = vpop.f32.mrf.mxu3  ;;  %v13856_v5 = vadd.f32 %v13771_v43, %v5622_v60  ;;  %v7932_v43 = vsel %vm10463_vm3, %v13830_v55, %v13814_v2  ;;  %v7151_v60 = vrot.slane %v6368_v1, 5  ;;  %v8516_v52 = vsel %vm10677_vm6, %v8514_v37, %v8515_v62 }
 0x403   : > { %14671 = vst [vmem:[#allocation38_spill] sm:$0xff] %v13848_v42  ;;  %9866 = vmatmul.msk.bf16.gmra.mxu1 %vm5269_vm12, %v6808_v7  ;;  %v8380_v7 = vld [vmem:[#allocation2 + $0x9c] sm:$0xe]  ;;  %v9884_v44 = vrot.slane %v7007_v4, 9  ;;  %v6303_v2 = vadd.f32 %v14676_v26, %v14675_v3  ;;  %v6686_v33 = vrot.slane %v6684_v30, 5  ;;  %v7154_v54 = vrot.slane %v13867_v15, 5 }
 0x404   : > { %14674 = vst [vmem:[#allocation17_spill] sm:$0xff] %v13856_v5  ;;  %v7950_v5 = vor.u32 %v13842_v36, %v13840_v12  ;;  %v7153_v51 = vrot.slane %v7151_v60, 4  ;;  %v6698_v37 = vshll.u32 %v6368_v1, 16  ;;  %v10046_v36 = vrot.slane %v8380_v7, 9 }
 0x405   : > { %v7152_v12 = vsel %vm10677_vm6, %v9884_v44, %v7151_v60  ;;  %v6687_v26 = vsel %vm10463_vm3, %v6682_v57, %v6686_v33  ;;  %v6702_v3 = vshrl.u32 %v6368_v1, 16  ;;  %v7963_v30 = vshll.u32 %v13607_v40, 16  ;;  %v6367_v1 = vld [vmem:[#allocation2 + $0xa8] sm:$0xf]  ;;  %v13901_v44 = vpop.f32.mrf.mxu0 }
 0x406   : > { %v7155_v23 = vsel %vm10677_vm6, %v7153_v51, %v7154_v54  ;;  %v14679_v4 = vrot.slane %v13816_v9, 5  ;;  %v7942_v60 = vsel %vm10463_vm3, %v7937_v50, %v7941_v47  ;;  %v13899_v57 = vunpack.c.l.b16 %v7932_v43  ;;  %v13911_v47 = vld [vmem:[#allocation2 + $0x84] sm:$0xf] }
 0x407   : > { %v5623_v55 = vpop.f32.mrf.mxu2  ;;  %v7201_v7 = vunpack.c.l.b16 %v7152_v12  ;;  %v7202_v51 = vunpack.c.l.b16 %v7155_v23  ;;  %v6677_v40 = vsel %vm10463_vm3, %v6672_v11, %v13825_v19  ;;  %v13908_v59 = vrot.slane %v6698_v37, 5  ;;  %v14681_v23 = vld [vmem:[#allocation27_spill] sm:$0xff] }
 0x408   : > { %v6899_v28 = vpop.f32.mrf.mxu1  ;;  %v5624_v42 = vadd.f32 %v5623_v55, %v14677_v21  ;;  %v8513_v62 = vsel %vm10677_vm6, %v10046_v36, %v14679_v4  ;;  %v6704_v43 = vrot.slane %v6702_v3, 4  ;;  %v8573_v33 = vunpack.c.l.b16 %v8516_v52  ;;  %v14682_v4 = vld [vmem:[#allocation25_spill] sm:$0xff] }
 0x409   : > { %10025 = vmatmul.msk.bf16.gmra.mxu0 %vm5269_vm12, %v8178_v0  ;;  %v13883_v53 = vadd.f32 %v6899_v28, %v6303_v2  ;;  %v10192_v0 = vld [vmem:[#allocation2 + $0x6c] sm:$0xff]  ;;  %v7961_v2 = vrot.slane %v7960_v13, 4  ;;  %v13913_v50 = vpack.c.b16 %v7202_v51, %v7201_v7  ;;  %v8572_v55 = vunpack.c.l.b16 %v8513_v62 }
 0x40a   : > { %v13878_v35 = vpop.f32.mrf.mxu3  ;;  %v13890_v21 = vadd.f32 %v13798_v8, %v5624_v42  ;;  %v14680_v8 = vld [vmem:[#allocation37_spill] sm:$0xff]  ;;  %v6790_v42 = vunpack.c.l.b16 %v6687_v26  ;;  %v6689_v54 = vshrl.u32 %v6367_v1, 16  ;;  %v6692_v28 = vshll.u32 %v6367_v1, 16 }
 0x40b   : > { %v7951_v12 = vrot.slane %v7950_v5, 4  ;;  %v7965_v36 = vrot.slane %v7963_v30, 5  ;;  %v6304_v19 = vadd.f32 %v14682_v4, %v14681_v23  ;;  %v6789_v37 = vunpack.c.l.b16 %v6677_v40 }
 0x40c   : > { %14678 = vst [vmem:[#allocation42_spill] sm:$0xff] %v13890_v21  ;;  %9905 = vmatmul.msk.bf16.gmra.mxu2 %vm5269_vm12, %v14680_v8  ;;  %v8155_v11 = vunpack.c.l.b16 %v7942_v60  ;;  %v13917_v13 = vpack.c.b16 %v8573_v33, %v8572_v55  ;;  %v7968_v30 = vshrl.u32 %v13911_v47, 16  ;;  %v6705_v60 = vor.u32 %v6704_v43, %v13908_v59  ;;  %v6371_v55 = vld [vmem:[#allocation2 + $0xb8] sm:$0xf]  ;;  %v7008_v33 = vld [vmem:[#allocation2 + $0xb4] sm:$0xe] }
 0x40d   : > { %v7956_v52 = vsel %vm10463_vm3, %v7951_v12, %v13844_v18  ;;  %v7966_v5 = vsel %vm10463_vm3, %v7961_v2, %v7965_v36  ;;  %v6809_v1 = vpack.c.b16 %v6790_v42, %v6789_v37  ;;  %v7977_v7 = vshll.u32 %v13624_v17, 16  ;;  %v13942_v43 = vld [vmem:[#allocation2 + $0xbc] sm:$0x1] }
 0x40e   : > { %14683 = vst [vmem:[#allocation11_spill] sm:$0xff] %v13917_v13  ;;  %v6691_v51 = vrot.slane %v6689_v54, 4  ;;  %v6694_v40 = vrot.slane %v6692_v28, 5  ;;  %v8179_v18 = vpack.c.b16 %v8155_v11, %v13899_v57  ;;  %v6708_v2 = vshll.u32 %v13867_v15, 16  ;;  %v6370_v28 = vld [vmem:[#allocation2 + $0xb4] sm:$0xf] }
 0x40f   : > { %9998 = vmatmul.msk.bf16.gmra.mxu3 %vm5269_vm12, %v10192_v0  ;;  %v5626_v26 = vpop.f32.mrf.mxu2  ;;  %v13938_v12 = vunpack.c.l.b16 %v7956_v52  ;;  %v13940_v42 = vunpack.c.l.b16 %v7966_v5  ;;  %v13944_v36 = vrot.slane %v7968_v30, 4  ;;  %v6706_v54 = vrot.slane %v6705_v60, 4  ;;  %v13952_v11 = vld [vmem:[#allocation2 + $0xac] sm:$0xf] }
 0x410   : > { %v6902_v0 = vpop.f32.mrf.mxu1  ;;  %v5627_v3 = vadd.f32 %v5626_v26, %v13439_v25  ;;  %v13947_v23 = vrot.slane %v7977_v7, 5  ;;  %v7981_v4 = vshrl.u32 %v13624_v17, 16  ;;  %v7158_v57 = vrot.slane %v6371_v55, 5  ;;  %v14688_v52 = vld [vmem:[#allocation28_spill] sm:$0xff] }
 0x411   : > { %v13928_v62 = vadd.f32 %v6902_v0, %v6304_v19  ;;  %v13950_v19 = vpop.f32.mrf.mxu0  ;;  %v6695_v15 = vor.u32 %v6694_v40, %v6691_v51  ;;  %v6722_v26 = vshll.u32 %v6371_v55, 16  ;;  %v6726_v37 = vshrl.u32 %v6371_v55, 16  ;;  %v8381_v55 = vld [vmem:[#allocation2 + $0xa8] sm:$0xe] }
 0x412   : > { %v13920_v8 = vpop.f32.mrf.mxu3  ;;  %v13933_v25 = vadd.f32 %v13838_v61, %v5627_v3  ;;  %v7971_v61 = vshll.u32 %v13911_v47, 16  ;;  %14686 = vst [vmem:[#allocation26_spill] sm:$0xff] %v13950_v19  ;;  %v9885_v0 = vrot.slane %v7008_v33, 9  ;;  %v14687_v3 = vld [vmem:[#allocation9_spill] sm:$0xff]  ;;  %v6710_v47 = vrot.slane %v6708_v2, 5 }
 0x413   : > { %14684 = vst [vmem:[#allocation23_spill] sm:$0xff] %v13928_v62  ;;  %9867 = vmatmul.msk.bf16.gmra.mxu1 %vm5269_vm12, %v6809_v1  ;;  %v6305_v5 = vadd.f32 %v14688_v52, %v14687_v3  ;;  %v7160_v1 = vrot.slane %v7158_v57, 4  ;;  %v7161_v60 = vrot.slane %v13942_v43, 5  ;;  %v6713_v62 = vshrl.u32 %v6370_v28, 16 }
 0x414   : > { %14685 = vst [vmem:[#allocation20_spill] sm:$0xff] %v13933_v25  ;;  %v6716_v51 = vshll.u32 %v6370_v28, 16  ;;  %v7159_v40 = vsel %vm10677_vm6, %v9885_v0, %v7158_v57  ;;  %v6711_v2 = vsel %vm10463_vm3, %v6706_v54, %v6710_v47  ;;  %v6696_v28 = vrot.slane %v6695_v15, 4  ;;  %v13975_v0 = vld [vmem:[#allocation2 + $0xb0] sm:$0x1] }
 0x415   : > { %v7162_v3 = vsel %vm10677_vm6, %v7160_v1, %v7161_v60  ;;  %v13973_v52 = vrot.slane %v6722_v26, 5  ;;  %v6728_v57 = vrot.slane %v6726_v37, 4  ;;  %v10047_v25 = vrot.slane %v8381_v55, 9  ;;  %v14691_v54 = vld [vmem:[#allocation45_spill] sm:$0xff] }
 0x416   : > { %v6701_v47 = vsel %vm10463_vm3, %v6696_v28, %v13908_v59  ;;  %v6715_v1 = vrot.slane %v6713_v62, 4  ;;  %v6718_v15 = vrot.slane %v6716_v51, 5  ;;  %v8522_v60 = vrot.slane %v13975_v0, 5  ;;  %v13994_v62 = vld [vmem:[#allocation2 + $0xb8] sm:$0xf]  ;;  %v14692_v51 = vld [vmem:[#allocation32_spill] sm:$0xff] }
 0x417   : > { %v5628_v30 = vpop.f32.mrf.mxu2  ;;  %v13991_v55 = vrot.slane %v7971_v61, 5  ;;  %v7987_v59 = vshll.u32 %v13636_v48, 16  ;;  %v6791_v28 = vunpack.c.l.b16 %v6701_v47  ;;  %v6732_v48 = vshll.u32 %v13942_v43, 16 }
 0x418   : > { %v6904_v7 = vpop.f32.mrf.mxu1  ;;  %v5629_v17 = vadd.f32 %v5628_v30, %v13488_v46  ;;  %v8519_v46 = vrot.slane %v13952_v11, 5  ;;  %v7983_v30 = vrot.slane %v7981_v4, 4 }
 0x419   : > { %10026 = vmatmul.msk.bf16.gmra.mxu0 %vm5269_vm12, %v8179_v18  ;;  %v13961_v33 = vadd.f32 %v6904_v7, %v6305_v5  ;;  %v10193_v5 = vld [vmem:[#allocation2 + $0x78] sm:$0xff]  ;;  %v7203_v7 = vunpack.c.l.b16 %v7159_v40  ;;  %v6729_v40 = vor.u32 %v6728_v57, %v13973_v52 }
 0x41a   : > { %v13963_v13 = vpop.f32.mrf.mxu3  ;;  %v13971_v18 = vadd.f32 %v13878_v35, %v5629_v17  ;;  %v6792_v35 = vunpack.c.l.b16 %v6711_v2  ;;  %v8520_v4 = vsel %vm10677_vm6, %v10047_v25, %v8519_v46  ;;  %v8521_v37 = vrot.slane %v8519_v46, 4  ;;  %v14005_v57 = vld [vmem:[#allocation2 + $0xbc] sm:$0x1] }
 0x41b   : > { %14689 = vst [vmem:[#allocation22_spill] sm:$0xff] %v13961_v33  ;;  %v7204_v33 = vunpack.c.l.b16 %v7162_v3  ;;  %v8180_v17 = vpack.c.b16 %v13940_v42, %v13938_v12  ;;  %v7984_v25 = vor.u32 %v7983_v30, %v13947_v23  ;;  %v14001_v12 = vpop.f32.mrf.mxu0  ;;  %v14009_v30 = vld [vmem:[#allocation2 + $0xc4] sm:$0xf] }
 0x41c   : > { %14690 = vst [vmem:[#allocation49_spill] sm:$0xff] %v13971_v18  ;;  %9906 = vmatmul.msk.bf16.gmra.mxu2 %vm5269_vm12, %v14691_v54  ;;  %v8523_v46 = vsel %vm10677_vm6, %v8521_v37, %v8522_v60  ;;  %v6810_v47 = vpack.c.b16 %v6792_v35, %v6791_v28  ;;  %v7009_v18 = vld [vmem:[#allocation2 + $0xc0] sm:$0xe]  ;;  %v8526_v37 = vrot.slane %v13994_v62, 5  ;;  %v7974_v35 = vor.u32 %v13991_v55, %v13944_v36  ;;  %v14027_v28 = vld [vmem:[#allocation2 + $0xc8] sm:$0x1] }
 0x41d   : > { %v13983_v26 = vpack.c.b16 %v7204_v33, %v7203_v7  ;;  %v14693_v33 = vld [vmem:[#allocation29_spill] sm:$0xff]  ;;  %14694 = vst [vmem:[#allocation37_spill] sm:$0xff] %v14001_v12  ;;  %v8574_v7 = vunpack.c.l.b16 %v8520_v4  ;;  %v8575_v54 = vunpack.c.l.b16 %v8523_v46  ;;  %v6730_v12 = vrot.slane %v6729_v40, 4 }
 0x41e   : > { %v6306_v2 = vadd.f32 %v14693_v33, %v14692_v51  ;;  %v6719_v33 = vor.u32 %v6718_v15, %v6715_v1  ;;  %v14022_v1 = vrot.slane %v7987_v59, 5  ;;  %v14024_v15 = vld [vmem:[#allocation2 + $0xc4] sm:$0xf]  ;;  %v9886_v40 = vrot.slane %v7009_v18, 9  ;;  %v8383_v59 = vld [vmem:[#allocation2 + $0xc0] sm:$0xe] }
 0x41f   : > { %9999 = vmatmul.msk.bf16.gmra.mxu3 %vm5269_vm12, %v10193_v5  ;;  %v5631_v3 = vpop.f32.mrf.mxu2  ;;  %v8382_v5 = vld [vmem:[#allocation2 + $0xb4] sm:$0xe]  ;;  %v7165_v46 = vrot.slane %v14009_v30, 5  ;;  %v7985_v36 = vrot.slane %v7984_v25, 4  ;;  %v6746_v18 = vshll.u32 %v14009_v30, 16  ;;  %v7168_v25 = vrot.slane %v14027_v28, 5 }
 0x420   : > { %v6907_v42 = vpop.f32.mrf.mxu1  ;;  %v5632_v61 = vadd.f32 %v5631_v3, %v13527_v22  ;;  %v14015_v22 = vpack.c.b16 %v8575_v54, %v8574_v7  ;;  %v10048_v43 = vrot.slane %v8382_v5, 9  ;;  %v8529_v3 = vrot.slane %v14005_v57, 5 }
 0x421   : > { %v14007_v51 = vadd.f32 %v6907_v42, %v6306_v2  ;;  %v8528_v2 = vrot.slane %v8526_v37, 4  ;;  %v14698_v42 = vld [vmem:[#allocation36_spill] sm:$0xff]  ;;  %v8533_v54 = vrot.slane %v14024_v15, 5 }
 0x422   : > { %v14013_v60 = vadd.f32 %v13920_v8, %v5632_v61  ;;  %14697 = vst [vmem:[#allocation9_spill] sm:$0xff] %v14015_v22  ;;  %v14018_v4 = vpop.f32.mrf.mxu3  ;;  %v6734_v8 = vrot.slane %v6732_v48, 5  ;;  %v8527_v5 = vsel %vm10677_vm6, %v10048_v43, %v8526_v37  ;;  %v14699_v61 = vld [vmem:[#allocation30_spill] sm:$0xff]  ;;  %v14042_v43 = vld [vmem:[#allocation2 + $0xc8] sm:$0x1] }
 0x423   : > { %14695 = vst [vmem:[#allocation27_spill] sm:$0xff] %v14007_v51  ;;  %9868 = vmatmul.msk.bf16.gmra.mxu1 %vm5269_vm12, %v6810_v47  ;;  %v6307_v7 = vadd.f32 %v14699_v61, %v14698_v42  ;;  %v8530_v55 = vsel %vm10677_vm6, %v8528_v2, %v8529_v3  ;;  %v6720_v47 = vrot.slane %v6719_v33, 4  ;;  %v7166_v51 = vsel %vm10677_vm6, %v9886_v40, %v7165_v46  ;;  %v14054_v19 = vpop.f32.mrf.mxu0 }
 0x424   : > { %14696 = vst [vmem:[#allocation25_spill] sm:$0xff] %v14013_v60  ;;  %v6735_v48 = vsel %vm10463_vm3, %v6730_v12, %v6734_v8  ;;  %v7167_v42 = vrot.slane %v7165_v46, 4  ;;  %v8576_v61 = vunpack.c.l.b16 %v8527_v5  ;;  %v8577_v2 = vunpack.c.l.b16 %v8530_v55  ;;  %v10194_v55 = vld [vmem:[#allocation2 + $0x84] sm:$0xff] }
 0x425   : > { %v6750_v12 = vshrl.u32 %v14009_v30, 16  ;;  %v10049_v33 = vrot.slane %v8383_v59, 9  ;;  %v8535_v8 = vrot.slane %v8533_v54, 4  ;;  %v7205_v21 = vunpack.c.l.b16 %v7166_v51  ;;  %v6373_v51 = vld [vmem:[#allocation2 + $0xc0] sm:$0xf] }
 0x426   : > { %v7169_v40 = vsel %vm10677_vm6, %v7167_v42, %v7168_v25  ;;  %v14052_v46 = vpack.c.b16 %v8577_v2, %v8576_v61  ;;  %v8536_v30 = vrot.slane %v14042_v43, 5  ;;  %v7990_v59 = vsel %vm10463_vm3, %v7985_v36, %v14022_v1  ;;  %v7733_v1 = vld [vmem:[#allocation2 + $0x90] sm:$0xf] }
 0x427   : > { %v5633_v37 = vpop.f32.mrf.mxu2  ;;  %v6794_v42 = vunpack.c.l.b16 %v6735_v48  ;;  %v8005_v36 = vshrl.u32 %v13702_v39, 16  ;;  %v6737_v61 = vshrl.u32 %v6373_v51, 16  ;;  %v6740_v2 = vshll.u32 %v6373_v51, 16 }
 0x428   : > { %v6909_v3 = vpop.f32.mrf.mxu1  ;;  %v5634_v22 = vadd.f32 %v5633_v37, %v13575_v24  ;;  %14700 = vst [vmem:[#allocation28_spill] sm:$0xff] %v14052_v46  ;;  %v7206_v24 = vunpack.c.l.b16 %v7169_v40 }
 0x429   : > { %10027 = vmatmul.msk.bf16.gmra.mxu0 %vm5269_vm12, %v8180_v17  ;;  %v14048_v60 = vadd.f32 %v6909_v3, %v6307_v7  ;;  %v8534_v17 = vsel %vm10677_vm6, %v10049_v33, %v8533_v54  ;;  %v7975_v7 = vrot.slane %v7974_v35, 4  ;;  %v8537_v54 = vsel %vm10677_vm6, %v8535_v8, %v8536_v30  ;;  %v14702_v33 = vld [vmem:[#allocation35_spill] sm:$0xff] }
 0x42a   : > { %v14057_v5 = vadd.f32 %v13963_v13, %v5634_v22  ;;  %v6725_v13 = vsel %vm10463_vm3, %v6720_v47, %v13973_v52  ;;  %v8001_v22 = vshll.u32 %v13702_v39, 16  ;;  %v14071_v37 = vpack.c.b16 %v7206_v24, %v7205_v21  ;;  %v7593_v35 = vpop.f32.mrf.mxu3  ;;  %v14701_v47 = vld [vmem:[#allocation39_spill] sm:$0xff] }
 0x42b   : > { %v8578_v25 = vunpack.c.l.b16 %v8534_v17  ;;  %v6748_v3 = vrot.slane %v6746_v18, 5  ;;  %v6752_v52 = vrot.slane %v6750_v12, 4  ;;  %v6308_v21 = vadd.f32 %v14702_v33, %v14701_v47 }
 0x42c   : > { %9907 = vmatmul.msk.bf16.gmra.mxu2 %vm5269_vm12, %v13437_v20  ;;  %v8579_v20 = vunpack.c.l.b16 %v8537_v54  ;;  %v6793_v24 = vunpack.c.l.b16 %v6725_v13  ;;  %v7980_v48 = vsel %vm10463_vm3, %v7975_v7, %v13947_v23  ;;  %v8159_v17 = vunpack.c.l.b16 %v7990_v59  ;;  %v14091_v23 = vpop.f32.mrf.mxu0 }
 0x42d   : > { %v7995_v54 = vshll.u32 %v7733_v1, 16  ;;  %v8003_v12 = vrot.slane %v8001_v22, 5  ;;  %v8007_v14 = vrot.slane %v8005_v36, 4  ;;  %v6739_v13 = vrot.slane %v6737_v61, 4 }
 0x42e   : > { %v14082_v8 = vpack.c.b16 %v8579_v20, %v8578_v25  ;;  %v6811_v18 = vpack.c.b16 %v6794_v42, %v6793_v24  ;;  %v6742_v33 = vrot.slane %v6740_v2, 5  ;;  %v6753_v46 = vor.u32 %v6752_v52, %v6748_v3 }
 0x42f   : > { %10000 = vmatmul.msk.bf16.gmra.mxu3 %vm5269_vm12, %v10194_v55  ;;  %v7292_v40 = vpop.f32.mrf.mxu2  ;;  %v7992_v55 = vshrl.u32 %v7733_v1, 16  ;;  %v8158_v7 = vunpack.c.l.b16 %v7980_v48  ;;  %v7997_v1 = vrot.slane %v7995_v54, 5  ;;  %v8008_v22 = vor.u32 %v8007_v14, %v8003_v12 }
 0x430   : > { %v6912_v30 = vpop.f32.mrf.mxu1  ;;  %v7372_v39 = vadd.f32 %v7292_v40, %v13621_v6  ;;  %v6756_v6 = vshll.u32 %v14027_v28, 16  ;;  %v6743_v20 = vor.u32 %v6742_v33, %v6739_v13  ;;  %v6754_v42 = vrot.slane %v6753_v46, 4  ;;  %v14705_v33 = vld [vmem:[#allocation46_spill] sm:$0xff] }
 0x431   : > { %v14085_v51 = vadd.f32 %v6912_v30, %v6308_v21  ;;  %v7994_v59 = vrot.slane %v7992_v55, 4  ;;  %v8181_v25 = vpack.c.b16 %v8159_v17, %v8158_v7  ;;  %v14703_v21 = vld [vmem:[#allocation43_spill] sm:$0xff]  ;;  %v8011_v48 = vshll.u32 %v13724_v63, 16  ;;  %v10195_v55 = vld [vmem:[#allocation2 + $0x90] sm:$0xff]  ;;  %v14706_v7 = vld [vmem:[#allocation44_spill] sm:$0xff] }
 0x432   : > { %v14088_v47 = vadd.f32 %v14018_v4, %v7372_v39  ;;  %v7596_v36 = vpop.f32.mrf.mxu3  ;;  %v14704_v4 = vld [vmem:[#allocation40_spill] sm:$0xff]  ;;  %v6758_v24 = vrot.slane %v6756_v6, 5  ;;  %v6744_v46 = vrot.slane %v6743_v20, 4  ;;  %v8009_v17 = vrot.slane %v8008_v22, 4 }
 0x433   : > { %9869 = vmatmul.msk.bf16.gmra.mxu1 %vm5269_vm12, %v6811_v18  ;;  %v6309_v40 = vadd.f32 %v14704_v4, %v14703_v21  ;;  %v7998_v30 = vor.u32 %v7997_v1, %v7994_v59  ;;  %v8013_v54 = vrot.slane %v8011_v48, 5  ;;  %v6310_v6 = vadd.f32 %v14706_v7, %v14705_v33 }
 0x434   : > { %v6759_v14 = vsel %vm10463_vm3, %v6754_v42, %v6758_v24  ;;  %v14110_v63 = vpop.f32.mrf.mxu0 }
 0x435   : > { %v6796_v18 = vunpack.c.l.b16 %v6759_v14  ;;  %v8014_v13 = vsel %vm10463_vm3, %v8009_v17, %v8013_v54  ;;  %v14707_v17 = vld [vmem:[#allocation50_spill] sm:$0xff] }
 0x437   : > { %v7294_v61 = vpop.f32.mrf.mxu2 }
 0x438   : > { %v6914_v2 = vpop.f32.mrf.mxu1  ;;  %v7373_v52 = vadd.f32 %v7294_v61, %v13658_v45  ;;  %v6749_v45 = vsel %vm10463_vm3, %v6744_v46, %v6748_v3  ;;  %v8029_v3 = vshrl.u32 %v13816_v9, 16 }
 0x439   : > { %10028 = vmatmul.msk.bf16.gmra.mxu0 %vm5269_vm12, %v8181_v25  ;;  %v14099_v28 = vadd.f32 %v6914_v2, %v6309_v40  ;;  %v6795_v1 = vunpack.c.l.b16 %v6749_v45  ;;  %v7736_v25 = vld [vmem:[#allocation2 + $0x9c] sm:$0xf]  ;;  %v8161_v2 = vunpack.c.l.b16 %v8014_v13  ;;  %v8035_v13 = vshll.u32 %v13846_v34, 16 }
 0x43a   : > { %v14101_v39 = vadd.f32 %v7593_v35, %v7373_v52  ;;  %v7999_v35 = vrot.slane %v7998_v30, 4  ;;  %v7598_v22 = vpop.f32.mrf.mxu3  ;;  %v8016_v52 = vshrl.u32 %v7736_v25, 16  ;;  %v8019_v24 = vshll.u32 %v7736_v25, 16 }
 0x43b   : > { %v6812_v4 = vpack.c.b16 %v6796_v18, %v6795_v1  ;;  %v8031_v30 = vrot.slane %v8029_v3, 4  ;;  %v10196_v1 = vld [vmem:[#allocation2 + $0x9c] sm:$0xff] }
 0x43c   : > { %9908 = vmatmul.msk.bf16.gmra.mxu2 %vm5269_vm12, %v13525_v41  ;;  %v8025_v41 = vshll.u32 %v13816_v9, 16  ;;  %v8004_v40 = vsel %vm10463_vm3, %v7999_v35, %v8003_v12  ;;  %v8018_v14 = vrot.slane %v8016_v52, 4  ;;  %v14128_v33 = vpop.f32.mrf.mxu0 }
 0x43d   : > { %v8160_v9 = vunpack.c.l.b16 %v8004_v40 }
 0x43e   : > { %v8027_v48 = vrot.slane %v8025_v41, 5  ;;  %v8037_v41 = vrot.slane %v8035_v13, 5 }
 0x43f   : > { %10001 = vmatmul.msk.bf16.gmra.mxu3 %vm5269_vm12, %v10195_v55  ;;  %v7297_v59 = vpop.f32.mrf.mxu2  ;;  %v8182_v46 = vpack.c.b16 %v8161_v2, %v8160_v9  ;;  %v14708_v55 = vld [vmem:[#allocation48_spill] sm:$0xff] }
 0x440   : > { %v6917_v20 = vpop.f32.mrf.mxu1  ;;  %v7374_v42 = vadd.f32 %v7297_v59, %v13700_v16  ;;  %v8021_v16 = vrot.slane %v8019_v24, 5  ;;  %v6311_v45 = vadd.f32 %v14708_v55, %v14707_v17  ;;  %v8032_v18 = vor.u32 %v8031_v30, %v8027_v48 }
 0x441   : > { %v14119_v21 = vadd.f32 %v6917_v20, %v6310_v6 }
 0x442   : > { %v14123_v61 = vadd.f32 %v7596_v36, %v7374_v42  ;;  %v8022_v6 = vor.u32 %v8021_v16, %v8018_v14  ;;  %v7601_v59 = vpop.f32.mrf.mxu3  ;;  %v8033_v25 = vrot.slane %v8032_v18, 4  ;;  %v7739_v42 = vld [vmem:[#allocation2 + $0xa8] sm:$0xf]  ;;  %v14711_v18 = vld [vmem:[#allocation53_spill] sm:$0xff] }
 0x443   : > { %9870 = vmatmul.msk.bf16.gmra.mxu1 %vm5269_vm12, %v6812_v4  ;;  %v8053_v4 = vshrl.u32 %v13952_v11, 16  ;;  %v8040_v30 = vshrl.u32 %v7739_v42, 16  ;;  %v8043_v9 = vshll.u32 %v7739_v42, 16 }
 0x444   : > { %v8023_v3 = vrot.slane %v8022_v6, 4  ;;  %v8038_v34 = vsel %vm10463_vm3, %v8033_v25, %v8037_v41  ;;  %v14151_v24 = vpop.f32.mrf.mxu0 }
 0x445   : > { %v8042_v55 = vrot.slane %v8040_v30, 4 }
 0x446   : > { %v8028_v52 = vsel %vm10463_vm3, %v8023_v3, %v8027_v48  ;;  %v10197_v3 = vld [vmem:[#allocation2 + $0xa8] sm:$0xff] }
 0x447   : > { %v7299_v54 = vpop.f32.mrf.mxu2  ;;  %v8162_v16 = vunpack.c.l.b16 %v8028_v52  ;;  %v8073_v52 = vshll.u32 %v13994_v62, 16 }
 0x448   : > { %v6919_v12 = vpop.f32.mrf.mxu1  ;;  %v7375_v36 = vadd.f32 %v7299_v54, %v13739_v10  ;;  %v6312_v10 = vadd.f32 %v13447_v27, %v13452_v29  ;;  %v8163_v29 = vunpack.c.l.b16 %v8038_v34  ;;  %v14710_v54 = vld [vmem:[#allocation52_spill] sm:$0xff] }
 0x449   : > { %10029 = vmatmul.msk.bf16.gmra.mxu0 %vm5269_vm12, %v8182_v46  ;;  %v14132_v35 = vadd.f32 %v6919_v12, %v6311_v45  ;;  %v14709_v46 = vld [vmem:[#allocation24_spill] sm:$0xff]  ;;  %v8045_v45 = vrot.slane %v8043_v9, 5  ;;  %v6313_v48 = vadd.f32 %v14711_v18, %v14710_v54  ;;  %v14713_v9 = vld [vmem:[#allocation38_spill] sm:$0xff] }
 0x44a   : > { %v14135_v7 = vadd.f32 %v7598_v22, %v7375_v36  ;;  %v8049_v22 = vshll.u32 %v13952_v11, 16  ;;  %v8055_v11 = vrot.slane %v8053_v4, 4  ;;  %v7603_v17 = vpop.f32.mrf.mxu3 }
 0x44b   : > { %v8046_v41 = vor.u32 %v8045_v45, %v8042_v55  ;;  %v14714_v55 = vld [vmem:[#allocation8_spill] sm:$0xff]  ;;  %v8075_v45 = vrot.slane %v8073_v52, 5 }
 0x44c   : > { %9909 = vmatmul.msk.bf16.gmra.mxu2 %vm5269_vm12, %v13613_v38  ;;  %v8051_v14 = vrot.slane %v8049_v22, 5  ;;  %v14712_v22 = vld [vmem:[#allocation54_spill] sm:$0xff] }
 0x44d   : > { %v6314_v4 = vadd.f32 %v14712_v22, %v13537_v49 }
 0x44e   : > { %v8056_v36 = vor.u32 %v8055_v11, %v8051_v14 }
 0x44f   : > { %10002 = vmatmul.msk.bf16.gmra.mxu3 %vm5269_vm12, %v10196_v1  ;;  %v7302_v20 = vpop.f32.mrf.mxu2  ;;  %v8059_v1 = vshll.u32 %v13975_v0, 16 }
 0x450   : > { %v6922_v40 = vpop.f32.mrf.mxu1  ;;  %v7376_v2 = vadd.f32 %v7302_v20, %v13777_v31  ;;  %v8183_v31 = vpack.c.b16 %v8163_v29, %v8162_v16  ;;  %v14166_v20 = vpop.f32.mrf.mxu0  ;;  %v8077_v29 = vshrl.u32 %v13994_v62, 16 }
 0x451   : > { %v14147_v38 = vadd.f32 %v6922_v40, %v6312_v10  ;;  %v8057_v10 = vrot.slane %v8056_v36, 4  ;;  %v8061_v34 = vrot.slane %v8059_v1, 5 }
 0x452   : > { %v14153_v27 = vadd.f32 %v7601_v59, %v7376_v2  ;;  %v7606_v42 = vpop.f32.mrf.mxu3  ;;  %v7742_v2 = vld [vmem:[#allocation2 + $0xb4] sm:$0xf]  ;;  %v8079_v54 = vrot.slane %v8077_v29, 4 }
 0x453   : > { %10063 = vmatmul.msk.bf16.vlgmr.msra.gmra.mxu1 %vm5269_vm12, %v14709_v46  ;;  %v8062_v0 = vsel %vm10463_vm3, %v8057_v10, %v8061_v34 }
 0x454   : > { %v8165_v49 = vunpack.c.l.b16 %v8062_v0 }
 0x457   : > { %v7304_v12 = vpop.f32.mrf.mxu2 }
 0x458   : > { %v6924_v13 = vpop.f32.mrf.mxu1  ;;  %v7377_v6 = vadd.f32 %v7304_v12, %v13807_v56  ;;  %v8047_v56 = vrot.slane %v8046_v41, 4  ;;  %v14186_v62 = vpop.f32.mrf.mxu0  ;;  %v8080_v41 = vor.u32 %v8079_v54, %v8075_v45 }
 0x459   : > { %10030 = vmatmul.msk.bf16.gmra.mxu0 %vm5269_vm12, %v8183_v31  ;;  %v14161_v59 = vadd.f32 %v6924_v13, %v6313_v48  ;;  %v8067_v31 = vshll.u32 %v7742_v2, 16  ;;  %v14715_v13 = vld [vmem:[#allocation56_spill] sm:$0xff] }
 0x45a   : > { %v14164_v25 = vadd.f32 %v7603_v17, %v7377_v6  ;;  %v8052_v11 = vsel %vm10463_vm3, %v8047_v56, %v8051_v14  ;;  %v8064_v17 = vshrl.u32 %v7742_v2, 16  ;;  %v14716_v6 = vld [vmem:[#allocation57_spill] sm:$0xff]  ;;  %v7608_v34 = vpop.f32.mrf.mxu3  ;;  %v8081_v0 = vrot.slane %v8080_v41, 4  ;;  %v14717_v2 = vld [vmem:[#allocation15_spill] sm:$0xff]  ;;  %v14722_v41 = vld [vmem:[#allocation12_spill] sm:$0xff] }
 0x45b   : > { %v8164_v18 = vunpack.c.l.b16 %v8052_v11  ;;  %v8069_v36 = vrot.slane %v8067_v31, 5  ;;  %v6315_v1 = vadd.f32 %v14716_v6, %v14715_v13  ;;  %v8101_v11 = vshrl.u32 %v14024_v15, 16  ;;  %v7745_v31 = vld [vmem:[#allocation2 + $0xc0] sm:$0xf] }
 0x45c   : > { %9910 = vmatmul.msk.bf16.gmra.mxu2 %vm5269_vm12, %v13760_v58  ;;  %v8066_v12 = vrot.slane %v8064_v17, 4 }
 0x45d   : > { %v8184_v48 = vpack.c.b16 %v8165_v49, %v8164_v18  ;;  %v8103_v6 = vrot.slane %v8101_v11, 4 }
 0x45f   : > { %10003 = vmatmul.msk.bf16.gmra.mxu3 %vm5269_vm12, %v10197_v3  ;;  %v7307_v40 = vpop.f32.mrf.mxu2 }
 0x460   : > { %v6927_v30 = vpop.f32.mrf.mxu1  ;;  %v7378_v58 = vadd.f32 %v7307_v40, %v14713_v9  ;;  %v10198_v40 = vld [vmem:[#allocation2 + $0xb4] sm:$0xff]  ;;  %v14206_v49 = vpop.f32.mrf.mxu0 }
 0x461   : > { %v14178_v46 = vadd.f32 %v6927_v30, %v6314_v4  ;;  %v8070_v4 = vor.u32 %v8069_v36, %v8066_v12  ;;  %v14719_v30 = vld [vmem:[#allocation60_spill] sm:$0xff]  ;;  %v8088_v12 = vshrl.u32 %v7745_v31, 16  ;;  %v8091_v36 = vshll.u32 %v7745_v31, 16 }
 0x462   : > { %v14182_v16 = vadd.f32 %v7606_v42, %v7378_v58  ;;  %v8083_v42 = vshll.u32 %v14005_v57, 16  ;;  %v8097_v57 = vshll.u32 %v14024_v15, 16  ;;  %v14721_v15 = vld [vmem:[#allocation61_spill] sm:$0xff] }
 0x463   : > { %10064 = vmatmul.msk.bf16.gmra.mxu1 %vm5269_vm12, %v14714_v55  ;;  %v8071_v29 = vrot.slane %v8070_v4, 4 }
 0x464   : > { %v8085_v52 = vrot.slane %v8083_v42, 5  ;;  %v8099_v13 = vrot.slane %v8097_v57, 5 }
 0x465   : > { %v8076_v54 = vsel %vm10463_vm3, %v8071_v29, %v8075_v45 }
 0x466   : > { %v8086_v58 = vsel %vm10463_vm3, %v8081_v0, %v8085_v52  ;;  %v8104_v42 = vor.u32 %v8103_v6, %v8099_v13  ;;  %v14727_v6 = vld [vmem:[#allocation7_spill] sm:$0xff] }
 0x467   : > { %v7309_v14 = vpop.f32.mrf.mxu2  ;;  %v8167_v18 = vunpack.c.l.b16 %v8086_v58 }
 0x468   : > { %v6929_v3 = vpop.f32.mrf.mxu1  ;;  %v7379_v10 = vadd.f32 %v7309_v14, %v13883_v53  ;;  %v14718_v53 = vld [vmem:[#allocation58_spill] sm:$0xff]  ;;  %v14220_v0 = vpop.f32.mrf.mxu0  ;;  %v8105_v29 = vrot.slane %v8104_v42, 4 }
 0x469   : > { %10031 = vmatmul.msk.bf16.gmra.mxu0 %vm5269_vm12, %v8184_v48  ;;  %v14192_v56 = vadd.f32 %v6929_v3, %v6315_v1  ;;  %v6316_v9 = vadd.f32 %v14719_v30, %v14718_v53  ;;  %v14720_v48 = vld [vmem:[#allocation10_spill] sm:$0xff]  ;;  %v8166_v1 = vunpack.c.l.b16 %v8076_v54  ;;  %v6317_v3 = vadd.f32 %v14722_v41, %v14721_v15  ;;  %v10200_v15 = vld [vmem:[#allocation2 + $0xcc] sm:$0xff] }
 0x46a   : > { %v14195_v22 = vadd.f32 %v7608_v34, %v7379_v10  ;;  %v8090_v10 = vrot.slane %v8088_v12, 4  ;;  %v8093_v34 = vrot.slane %v8091_v36, 5  ;;  %v14723_v30 = vld [vmem:[#allocation14_spill] sm:$0xff]  ;;  %v14726_v36 = vld [vmem:[#allocation31_spill] sm:$0xff] }
 0x46b   : > { %v8185_v14 = vpack.c.b16 %v8167_v18, %v8166_v1  ;;  %v14725_v18 = vld [vmem:[#allocation33_spill] sm:$0xff]  ;;  %v6319_v1 = vadd.f32 %v14727_v6, %v14726_v36 }
 0x46c   : > { %9911 = vmatmul.msk.bf16.gmra.mxu2 %vm5269_vm12, %v14717_v2  ;;  %v10199_v2 = vld [vmem:[#allocation2 + $0xc0] sm:$0xff]  ;;  %v8094_v52 = vor.u32 %v8093_v34, %v8090_v10  ;;  %v14242_v10 = vld [vmem:[#allocation2 + $0xd0] sm:$0xf] }
 0x46d   : > { %v14730_v6 = vld [vmem:[#allocation41_spill] sm:$0xff] }
 0x46e   : > { %v8095_v57 = vrot.slane %v8094_v52, 4 }
 0x46f   : > { %10004 = vmatmul.msk.bf16.gmra.mxu3 %vm5269_vm12, %v10198_v40  ;;  %v8107_v40 = vshll.u32 %v14042_v43, 16 }
 0x470   : > { %v6932_v17 = vpop.f32.mrf.mxu1  ;;  %v8100_v31 = vsel %vm10463_vm3, %v8095_v57, %v8099_v13  ;;  %v14244_v13 = vld [vmem:[#allocation2 + $0xd4] sm:$0x1]  ;;  %v14728_v57 = vld [vmem:[#allocation34_spill] sm:$0xff] }
 0x471   : > { %v14208_v55 = vadd.f32 %v6932_v17, %v6316_v9  ;;  %v8109_v53 = vrot.slane %v8107_v40, 5  ;;  %v14724_v9 = vld [vmem:[#allocation16_spill] sm:$0xff]  ;;  %v8125_v40 = vshrl.u32 %v14242_v10, 16 }
 0x472   : > { %v6318_v58 = vadd.f32 %v14724_v9, %v14723_v30 }
 0x473   : > { %10065 = vmatmul.msk.bf16.gmra.mxu1 %vm5269_vm12, %v14720_v48  ;;  %v8110_v11 = vsel %vm10463_vm3, %v8105_v29, %v8109_v53  ;;  %v8168_v48 = vunpack.c.l.b16 %v8100_v31  ;;  %v8127_v30 = vrot.slane %v8125_v40, 4 }
 0x474   : > { %v8169_v54 = vunpack.c.l.b16 %v8110_v11  ;;  %v14729_v11 = vld [vmem:[#allocation18_spill] sm:$0xff] }
 0x476   : > { %v8186_v12 = vpack.c.b16 %v8169_v54, %v8168_v48 }
 0x478   : > { %v6934_v4 = vpop.f32.mrf.mxu1 }
 0x479   : > { %10032 = vmatmul.msk.bf16.gmra.mxu0 %vm5269_vm12, %v8185_v14  ;;  %v14217_v45 = vadd.f32 %v6934_v4, %v6317_v3  ;;  %v7748_v3 = vld [vmem:[#allocation2 + $0xcc] sm:$0xf]  ;;  %v8121_v4 = vshll.u32 %v14242_v10, 16 }
 0x47a   : > { %v8112_v34 = vshrl.u32 %v7748_v3, 16  ;;  %v8115_v42 = vshll.u32 %v7748_v3, 16 }
 0x47b   : > { %v8123_v53 = vrot.slane %v8121_v4, 5 }
 0x47c   : > { %9912 = vmatmul.msk.bf16.gmra.mxu2 %vm5269_vm12, %v13913_v50  ;;  %v14235_v50 = vpop.f32.mrf.mxu0  ;;  %v8114_v52 = vrot.slane %v8112_v34, 4  ;;  %v8117_v29 = vrot.slane %v8115_v42, 5  ;;  %v14731_v34 = vld [vmem:[#allocation19_spill] sm:$0xff] }
 0x47d   : > { %v8128_v31 = vor.u32 %v8127_v30, %v8123_v53  ;;  %v6321_v42 = vadd.f32 %v13901_v44, %v14731_v34  ;;  %v14735_v44 = vld [vmem:[#allocation42_spill] sm:$0xff] }
 0x47f   : > { %10005 = vmatmul.msk.bf16.gmra.mxu3 %vm5269_vm12, %v10199_v2  ;;  %v8131_v2 = vshll.u32 %v14244_v13, 16  ;;  %v8129_v36 = vrot.slane %v8128_v31, 4 }
 0x480   : > { %v6937_v17 = vpop.f32.mrf.mxu1 }
 0x481   : > { %v14229_v43 = vadd.f32 %v6937_v17, %v6318_v58  ;;  %v8118_v58 = vor.u32 %v8117_v29, %v8114_v52  ;;  %v6320_v17 = vadd.f32 %v14729_v11, %v14728_v57  ;;  %v8133_v54 = vrot.slane %v8131_v2, 5  ;;  %v14732_v52 = vld [vmem:[#allocation17_spill] sm:$0xff]  ;;  %v14733_v29 = vld [vmem:[#allocation26_spill] sm:$0xff] }
 0x482   : > { %v6322_v32 = vadd.f32 %v14733_v29, %v14732_v52  ;;  %v14736_v57 = vld [vmem:[#allocation37_spill] sm:$0xff] }
 0x483   : > { %10066 = vmatmul.msk.bf16.gmra.mxu1 %vm5269_vm12, %v14725_v18  ;;  %v8119_v48 = vrot.slane %v8118_v58, 4  ;;  %v14734_v58 = vld [vmem:[#allocation47_spill] sm:$0xff]  ;;  %v6323_v11 = vadd.f32 %v14736_v57, %v14735_v44 }
 0x484   : > { %v14252_v9 = vpop.f32.mrf.mxu0  ;;  %v14742_v44 = vld [vmem:[#allocation59_spill] sm:$0xff] }
 0x488   : > { %v6939_v14 = vpop.f32.mrf.mxu1 }
 0x489   : > { %10033 = vmatmul.msk.bf16.gmra.mxu0 %vm5269_vm12, %v8186_v12  ;;  %v14240_v41 = vadd.f32 %v6939_v14, %v6319_v1  ;;  %v8134_v1 = vsel %vm10463_vm3, %v8129_v36, %v8133_v54  ;;  %v14737_v54 = vld [vmem:[#allocation20_spill] sm:$0xff]  ;;  %v14738_v36 = vld [vmem:[#allocation51_spill] sm:$0xff] }
 0x48c   : > { %9913 = vmatmul.msk.bf16.gmra.mxu2 %vm5269_vm12, %v13983_v26  ;;  %v8124_v26 = vsel %vm10463_vm3, %v8119_v48, %v8123_v53  ;;  %v14266_v4 = vpop.f32.mrf.mxu0 }
 0x48d   : > { %v8170_v14 = vunpack.c.l.b16 %v8124_v26  ;;  %v14739_v26 = vld [vmem:[#allocation49_spill] sm:$0xff] }
 0x48f   : > { %10006 = vmatmul.msk.bf16.gmra.mxu3 %vm5269_vm12, %v10200_v15  ;;  %v8171_v15 = vunpack.c.l.b16 %v8134_v1 }
 0x490   : > { %v6942_v18 = vpop.f32.mrf.mxu1 }
 0x491   : > { %v14256_v12 = vadd.f32 %v6942_v18, %v6320_v17  ;;  %v8187_v3 = vpack.c.b16 %v8171_v15, %v8170_v14  ;;  %v6324_v18 = vadd.f32 %v14054_v19, %v14737_v54  ;;  %v14740_v15 = vld [vmem:[#allocation25_spill] sm:$0xff]  ;;  %v14741_v19 = vld [vmem:[#allocation55_spill] sm:$0xff] }
 0x493   : > { %10067 = vmatmul.msk.bf16.gmra.mxu1 %vm5269_vm12, %v14730_v6  ;;  %v6325_v6 = vadd.f32 %v14091_v23, %v14739_v26  ;;  %v8337_v23 = vadd.f32 %v14151_v24, %v14088_v47  ;;  %v8338_v47 = vadd.f32 %v14166_v20, %v14101_v39  ;;  %v14743_v39 = vld [vmem:[#allocation21_spill] sm:$0xff] }
 0x498   : > { %v6944_v40 = vpop.f32.mrf.mxu1 }
 0x499   : > { %10034 = vmatmul.msk.bf16.gmra.mxu0 %vm5269_vm12, %v8187_v3  ;;  %v14269_v2 = vadd.f32 %v6944_v40, %v6321_v42  ;;  %v6326_v3 = vadd.f32 %v14110_v63, %v14740_v15  ;;  %v6327_v40 = vadd.f32 %v14128_v33, %v14057_v5  ;;  %v14309_v63 = vld [vmem:[%s14508_s4] ss:$0 sm:$0xff]  ;;  %v7312_v33 = vpop.f32.mrf.mxu2 }
 0x49c   : > { %9914 = vmatmul.msk.bf16.gmra.mxu2 %vm5269_vm12, %v14071_v37 }
 0x4a0   : > { %v6947_v53 = vpop.f32.mrf.mxu1 }
 0x4a1   : > { %v14275_v30 = vadd.f32 %v6947_v53, %v6322_v32 }
 0x4a3   : > { %10068 = vmatmul.msk.bf16.gmra.mxu1 %vm5269_vm12, %v14734_v58 }
 0x4a8   : > { %v6949_v17 = vpop.f32.mrf.mxu1 }
 0x4a9   : > { %v14281_v31 = vadd.f32 %v6949_v17, %v6323_v11  ;;  %v7611_v17 = vpop.f32.mrf.mxu3 }
 0x4b0   : > { %v6952_v37 = vpop.f32.mrf.mxu1 }
 0x4b1   : > { %v14285_v48 = vadd.f32 %v6952_v37, %v6324_v18  ;;  %v8277_v18 = vpop.f32.mrf.mxu0  ;;  %v8339_v37 = vadd.f32 %v14186_v62, %v14123_v61  ;;  %v7613_v15 = vpop.f32.mrf.mxu3 }
 0x4b3   : > { %10069 = vmatmul.msk.bf16.gmra.mxu1 %vm5269_vm12, %v14738_v36  ;;  %v7314_v36 = vpop.f32.mrf.mxu2 }
 0x4b8   : > { %v6954_v1 = vpop.f32.mrf.mxu1 }
 0x4b9   : > { %v14291_v14 = vadd.f32 %v6954_v1, %v6325_v6 }
 0x4bb   : > { %v7317_v62 = vpop.f32.mrf.mxu2 }
 0x4c0   : > { %v6957_v34 = vpop.f32.mrf.mxu1 }
 0x4c1   : > { %v14295_v42 = vadd.f32 %v6957_v34, %v6326_v3  ;;  %v8340_v3 = vadd.f32 %v14206_v49, %v14135_v7  ;;  %v14744_v49 = vld [vmem:[#allocation13_spill] sm:$0xff] }
 0x4c3   : > { %10070 = vmatmul.msk.bf16.gmra.mxu1 %vm5269_vm12, %v14741_v19  ;;  %v8279_v19 = vpop.f32.mrf.mxu0 }
 0x4c8   : > { %v6959_v52 = vpop.f32.mrf.mxu1 }
 0x4c9   : > { %v14301_v29 = vadd.f32 %v6959_v52, %v6327_v40 }
 0x4d0   : > { %v8667_v32 = vpop.f32.mrf.mxu1 }
 0x4d1   : > { %v8747_v53 = vadd.f32 %v8667_v32, %v8337_v23  ;;  %v8341_v23 = vadd.f32 %v14220_v0, %v14153_v27  ;;  %v7616_v32 = vpop.f32.mrf.mxu3 }
 0x4d3   : > { %v8782_v58 = vadd.f32 %v14309_v63, %v8747_v53  ;;  %10071 = vmatmul.msk.bf16.gmra.mxu1 %vm5269_vm12, %v14742_v44  ;;  %v8282_v44 = vpop.f32.mrf.mxu0 }
 0x4d5   : > { %v8814_v5 = vmax.f32 %v8782_v58, 0.0 }
 0x4d7   : > { %8847 = vst.msk [vmem:[%s14316_s11] sm:$0xff] %vm8846_vm0, %v8814_v5  ;;  %v7319_v5 = vpop.f32.mrf.mxu2 }
 0x4d8   : > { %v8669_v24 = vpop.f32.mrf.mxu1 }
 0x4d9   : > { %v8748_v57 = vadd.f32 %v8669_v24, %v8338_v47  ;;  %v8342_v24 = vadd.f32 %v14235_v50, %v14164_v25  ;;  %v7618_v27 = vpop.f32.mrf.mxu3 }
 0x4db   : > { %v8783_v11 = vadd.f32 %v14309_v63, %v8748_v57 }
 0x4dd   : > { %v8815_v54 = vmax.f32 %v8783_v11, 0.0 }
 0x4df   : > { %8848 = vst.msk [vmem:[%s14316_s11 + $0x8] sm:$0xff] %vm8846_vm0, %v8815_v54  ;;  %v8284_v54 = vpop.f32.mrf.mxu0 }
 0x4e0   : > { %v8672_v26 = vpop.f32.mrf.mxu1 }
 0x4e1   : > { %v8749_v6 = vadd.f32 %v8672_v26, %v8339_v37  ;;  %v7322_v26 = vpop.f32.mrf.mxu2  ;;  %v7621_v25 = vpop.f32.mrf.mxu3 }
 0x4e3   : > { %v8784_v1 = vadd.f32 %v14309_v63, %v8749_v6  ;;  %10072 = vmatmul.msk.bf16.gmra.mxu1 %vm5269_vm12, %v14743_v39  ;;  %v8343_v6 = vadd.f32 %v14252_v9, %v14182_v16 }
 0x4e5   : > { %v8816_v20 = vmax.f32 %v8784_v1, 0.0 }
 0x4e7   : > { %8849 = vst.msk [vmem:[%s14316_s11 + $0x10] sm:$0xff] %vm8846_vm0, %v8816_v20 }
 0x4e8   : > { %v8674_v34 = vpop.f32.mrf.mxu1 }
 0x4e9   : > { %v8750_v61 = vadd.f32 %v8674_v34, %v8340_v3  ;;  %v14745_v3 = vld [vmem:[#allocation11_spill] sm:$0xff] }
 0x4ea   : > { %v14746_v34 = vld [vmem:[#allocation23_spill] sm:$0xff] }
 0x4eb   : > { %v8785_v40 = vadd.f32 %v14309_v63, %v8750_v61  ;;  %v7380_v61 = vadd.f32 %v7312_v33, %v14746_v34 }
 0x4ed   : > { %v8817_v52 = vmax.f32 %v8785_v40, 0.0  ;;  %v8287_v40 = vpop.f32.mrf.mxu0 }
 0x4ef   : > { %8850 = vst.msk [vmem:[%s14316_s11 + $0x18] sm:$0xff] %vm8846_vm0, %v8817_v52  ;;  %v8344_v52 = vadd.f32 %v14266_v4, %v14195_v22  ;;  %v14748_v4 = vld [vmem:[#allocation9_spill] sm:$0xff] }
 0x4f0   : > { %v8677_v53 = vpop.f32.mrf.mxu1 }
 0x4f1   : > { %v8751_v58 = vadd.f32 %v8677_v53, %v8341_v23  ;;  %v7324_v23 = vpop.f32.mrf.mxu2  ;;  %v7679_v53 = vadd.f32 %v7611_v17, %v7380_v61 }
 0x4f3   : > { %v8786_v7 = vadd.f32 %v14309_v63, %v8751_v58  ;;  %10073 = vmatmul.msk.bf16.gmra.mxu1 %vm5269_vm12, %v14744_v49  ;;  %v7623_v49 = vpop.f32.mrf.mxu3  ;;  %v8345_v33 = vadd.f32 %v8277_v18, %v7679_v53 }
 0x4f5   : > { %v8818_v47 = vmax.f32 %v8786_v7, 0.0 }
 0x4f7   : > { %8851 = vst.msk [vmem:[%s14316_s11 + $0x20] sm:$0xff] %vm8846_vm0, %v8818_v47  ;;  %v14747_v47 = vld [vmem:[#allocation22_spill] sm:$0xff] }
 0x4f8   : > { %v8679_v57 = vpop.f32.mrf.mxu1 }
 0x4f9   : > { %v8752_v11 = vadd.f32 %v8679_v57, %v8342_v24  ;;  %v7381_v24 = vadd.f32 %v7314_v36, %v14747_v47  ;;  %v14750_v47 = vld [vmem:[#allocation28_spill] sm:$0xff] }
 0x4fb   : > { %v8787_v0 = vadd.f32 %v14309_v63, %v8752_v11  ;;  %v8289_v11 = vpop.f32.mrf.mxu0 }
 0x4fd   : > { %v8819_v37 = vmax.f32 %v8787_v0, 0.0 }
 0x4ff   : > { %8852 = vst.msk [vmem:[%s14316_s11 + $0x28] sm:$0xff] %vm8846_vm0, %v8819_v37  ;;  %v7327_v37 = vpop.f32.mrf.mxu2 }
 0x500   : > { %v8682_v1 = vpop.f32.mrf.mxu1 }
 0x501   : > { %v8753_v39 = vadd.f32 %v8682_v1, %v8343_v6  ;;  %v7680_v6 = vadd.f32 %v7613_v15, %v7381_v24  ;;  %v14749_v1 = vld [vmem:[#allocation27_spill] sm:$0xff] }
 0x503   : > { %v8788_v20 = vadd.f32 %v14309_v63, %v8753_v39  ;;  %10074 = vmatmul.msk.bf16.gmra.mxu1 %vm5269_vm12, %v14745_v3  ;;  %v7382_v39 = vadd.f32 %v7317_v62, %v14749_v1  ;;  %v8346_v36 = vadd.f32 %v8279_v19, %v7680_v6  ;;  %v8292_v34 = vpop.f32.mrf.mxu0 }
 0x505   : > { %v8820_v50 = vmax.f32 %v8788_v20, 0.0  ;;  %v7626_v20 = vpop.f32.mrf.mxu3 }
 0x507   : > { %8853 = vst.msk [vmem:[%s14316_s11 + $0x30] sm:$0xff] %vm8846_vm0, %v8820_v50  ;;  %v7681_v50 = vadd.f32 %v7616_v32, %v7382_v39  ;;  %v7329_v15 = vpop.f32.mrf.mxu2 }
 0x508   : > { %v8684_v16 = vpop.f32.mrf.mxu1 }
 0x509   : > { %v8754_v9 = vadd.f32 %v8684_v16, %v8344_v52  ;;  %v7383_v16 = vadd.f32 %v7319_v5, %v14048_v60 }
 0x50b   : > { %v8789_v58 = vadd.f32 %v14309_v63, %v8754_v9  ;;  %v8347_v9 = vadd.f32 %v8282_v44, %v7681_v50  ;;  %v8294_v32 = vpop.f32.mrf.mxu0 }
 0x50d   : > { %v8821_v7 = vmax.f32 %v8789_v58, 0.0  ;;  %v7628_v58 = vpop.f32.mrf.mxu3 }
 0x50f   : > { %8854 = vst.msk [vmem:[%s14316_s11 + $0x38] sm:$0xff] %vm8846_vm0, %v8821_v7  ;;  %v7682_v7 = vadd.f32 %v7618_v27, %v7383_v16 }
 0x510   : > { %v8687_v57 = vpop.f32.mrf.mxu1 }
 0x511   : > { %v8755_v0 = vadd.f32 %v8687_v57, %v8345_v33  ;;  %v7332_v33 = vpop.f32.mrf.mxu2  ;;  %v7384_v57 = vadd.f32 %v7322_v26, %v14085_v51  ;;  %v8348_v60 = vadd.f32 %v8284_v54, %v7682_v7  ;;  %v8540_v51 = vrot.slane %v14242_v10, 5  ;;  %v8384_v54 = vld [vmem:[#allocation2 + $0xcc] sm:$0xe] }
 0x513   : > { %v8790_v22 = vadd.f32 %v14309_v63, %v8755_v0  ;;  %10075 = vmatmul.msk.bf16.gmra.mxu1 %vm5269_vm12, %v14748_v4  ;;  %v7683_v0 = vadd.f32 %v7621_v25, %v7384_v57  ;;  %v7385_v4 = vadd.f32 %v7324_v23, %v14099_v28  ;;  %v8542_v50 = vrot.slane %v8540_v51, 4 }
 0x514   : > { %v8543_v28 = vrot.slane %v14244_v13, 5 }
 0x515   : > { %v8822_v17 = vmax.f32 %v8790_v22, 0.0  ;;  %v7631_v27 = vpop.f32.mrf.mxu3  ;;  %v8349_v1 = vadd.f32 %v8287_v40, %v7683_v0  ;;  %v7386_v40 = vadd.f32 %v7327_v37, %v14119_v21  ;;  %v7387_v37 = vadd.f32 %v7329_v15, %v14132_v35 }
 0x517   : > { %8855 = vst.msk [vmem:[%s14316_s11 + $0x40] sm:$0xff] %vm8846_vm0, %v8822_v17  ;;  %v8297_v17 = vpop.f32.mrf.mxu0  ;;  %v7685_v7 = vadd.f32 %v7626_v20, %v7386_v40 }
 0x518   : > { %v8689_v3 = vpop.f32.mrf.mxu1 }
 0x519   : > { %v8756_v18 = vadd.f32 %v8689_v3, %v8346_v36  ;;  %v7334_v39 = vpop.f32.mrf.mxu2  ;;  %v7684_v3 = vadd.f32 %v7623_v49, %v7385_v4  ;;  %v7388_v4 = vadd.f32 %v7332_v33, %v14147_v38 }
 0x51b   : > { %v8791_v61 = vadd.f32 %v14309_v63, %v8756_v18  ;;  %v10050_v18 = vrot.slane %v8384_v54, 9  ;;  %v8350_v10 = vadd.f32 %v8289_v11, %v7684_v3  ;;  %v8351_v11 = vadd.f32 %v8292_v34, %v7685_v7 }
 0x51c   : > { %v7389_v3 = vadd.f32 %v7334_v39, %v14161_v59 }
 0x51d   : > { %v8823_v52 = vmax.f32 %v8791_v61, 0.0  ;;  %v7633_v61 = vpop.f32.mrf.mxu3  ;;  %v8541_v49 = vsel %vm10677_vm6, %v10050_v18, %v8540_v51 }
 0x51e   : > { %v7688_v33 = vadd.f32 %v7633_v61, %v7389_v3 }
 0x51f   : > { %8856 = vst.msk [vmem:[%s14316_s11 + $0x48] sm:$0xff] %vm8846_vm0, %v8823_v52 }
 0x520   : > { %v8692_v53 = vpop.f32.mrf.mxu1 }
 0x521   : > { %v8757_v62 = vadd.f32 %v8692_v53, %v8347_v9  ;;  %v8544_v9 = vsel %vm10677_vm6, %v8542_v50, %v8543_v28 }
 0x523   : > { %v8792_v19 = vadd.f32 %v14309_v63, %v8757_v62  ;;  %10076 = vmatmul.msk.bf16.gmra.mxu1 %vm5269_vm12, %v14750_v47  ;;  %v7337_v62 = vpop.f32.mrf.mxu2  ;;  %v8581_v47 = vunpack.c.l.b16 %v8544_v9 }
 0x525   : > { %v8824_v24 = vmax.f32 %v8792_v19, 0.0  ;;  %v8580_v19 = vunpack.c.l.b16 %v8541_v49  ;;  %v7636_v57 = vpop.f32.mrf.mxu3 }
 0x527   : > { %8857 = vst.msk [vmem:[%s14316_s11 + $0x50] sm:$0xff] %vm8846_vm0, %v8824_v24  ;;  %v8597_v24 = vpack.c.b16 %v8581_v47, %v8580_v19 }
 0x528   : > { %v8694_v5 = vpop.f32.mrf.mxu1 }
 0x529   : > { %v8758_v44 = vadd.f32 %v8694_v5, %v8348_v60 }
 0x52b   : > { %v8793_v6 = vadd.f32 %v14309_v63, %v8758_v44  ;;  %v7686_v44 = vadd.f32 %v7628_v58, %v7387_v37  ;;  %v7339_v20 = vpop.f32.mrf.mxu2 }
 0x52c   : > { %v7391_v49 = vadd.f32 %v7339_v20, %v14192_v56 }
 0x52d   : > { %v8825_v22 = vmax.f32 %v8793_v6, 0.0  ;;  %v8352_v35 = vadd.f32 %v8294_v32, %v7686_v44 }
 0x52f   : > { %8858 = vst.msk [vmem:[%s14316_s11 + $0x58] sm:$0xff] %vm8846_vm0, %v8825_v22 }
 0x530   : > { %v8697_v36 = vpop.f32.mrf.mxu1 }
 0x531   : > { %v8759_v26 = vadd.f32 %v8697_v36, %v8349_v1  ;;  %v7638_v1 = vpop.f32.mrf.mxu3  ;;  %v7687_v36 = vadd.f32 %v7631_v27, %v7388_v4  ;;  %v7390_v27 = vadd.f32 %v7337_v62, %v14178_v46 }
 0x533   : > { %v8794_v25 = vadd.f32 %v14309_v63, %v8759_v26  ;;  %10077 = vmatmul.msk.bf16.gmra.mxu1 %vm5269_vm12, %v14082_v8  ;;  %v8299_v8 = vpop.f32.mrf.mxu0  ;;  %v7342_v54 = vpop.f32.mrf.mxu2  ;;  %v7689_v39 = vadd.f32 %v7636_v57, %v7390_v27 }
 0x534   : > { %v8354_v40 = vadd.f32 %v8299_v8, %v7688_v33  ;;  %v7690_v8 = vadd.f32 %v7638_v1, %v7391_v49  ;;  %v7392_v47 = vadd.f32 %v7342_v54, %v14208_v55 }
 0x535   : > { %v8826_v23 = vmax.f32 %v8794_v25, 0.0  ;;  %v8353_v25 = vadd.f32 %v8297_v17, %v7687_v36 }
 0x537   : > { %8859 = vst.msk [vmem:[%s14316_s11 + $0x60] sm:$0xff] %vm8846_vm0, %v8826_v23 }
 0x538   : > { %v8699_v52 = vpop.f32.mrf.mxu1 }
 0x539   : > { %v8760_v53 = vadd.f32 %v8699_v52, %v8350_v10  ;;  %v7641_v50 = vpop.f32.mrf.mxu3 }
 0x53b   : > { %v8795_v13 = vadd.f32 %v14309_v63, %v8760_v53  ;;  %v8302_v0 = vpop.f32.mrf.mxu0  ;;  %v7344_v10 = vpop.f32.mrf.mxu2 }
 0x53c   : > { %v8355_v9 = vadd.f32 %v8302_v0, %v7689_v39  ;;  %v7393_v0 = vadd.f32 %v7344_v10, %v14217_v45 }
 0x53d   : > { %v8827_v21 = vmax.f32 %v8795_v13, 0.0 }
 0x53f   : > { %8860 = vst.msk [vmem:[%s14316_s11 + $0x68] sm:$0xff] %vm8846_vm0, %v8827_v21 }
 0x540   : > { %v8702_v60 = vpop.f32.mrf.mxu1 }
 0x541   : > { %v8761_v5 = vadd.f32 %v8702_v60, %v8351_v11  ;;  %v7643_v61 = vpop.f32.mrf.mxu3 }
 0x542   : > { %v7692_v4 = vadd.f32 %v7643_v61, %v7393_v0 }
 0x543   : > { %v8796_v6 = vadd.f32 %v14309_v63, %v8761_v5  ;;  %10078 = vmatmul.msk.bf16.gmra.mxu1 %vm5269_vm12, %v8597_v24  ;;  %v8304_v51 = vpop.f32.mrf.mxu0  ;;  %v7347_v7 = vpop.f32.mrf.mxu2  ;;  %v7691_v24 = vadd.f32 %v7641_v50, %v7392_v47 }
 0x544   : > { %v8356_v21 = vadd.f32 %v8304_v51, %v7690_v8  ;;  %v7394_v36 = vadd.f32 %v7347_v7, %v14229_v43 }
 0x545   : > { %v8828_v22 = vmax.f32 %v8796_v6, 0.0 }
 0x547   : > { %8861 = vst.msk [vmem:[%s14316_s11 + $0x70] sm:$0xff] %vm8846_vm0, %v8828_v22 }
 0x548   : > { %v8704_v15 = vpop.f32.mrf.mxu1 }
 0x549   : > { %v8762_v34 = vadd.f32 %v8704_v15, %v8352_v35  ;;  %v7646_v37 = vpop.f32.mrf.mxu3 }
 0x54b   : > { %v8797_v58 = vadd.f32 %v14309_v63, %v8762_v34  ;;  %v8307_v23 = vpop.f32.mrf.mxu0  ;;  %v7349_v5 = vpop.f32.mrf.mxu2 }
 0x54c   : > { %v8357_v6 = vadd.f32 %v8307_v23, %v7691_v24 }
 0x54d   : > { %v8829_v26 = vmax.f32 %v8797_v58, 0.0 }
 0x54f   : > { %8862 = vst.msk [vmem:[%s14316_s11 + $0x78] sm:$0xff] %vm8846_vm0, %v8829_v26  ;;  %v7693_v26 = vadd.f32 %v7646_v37, %v7394_v36 }
 0x550   : > { %v8707_v18 = vpop.f32.mrf.mxu1 }
 0x551   : > { %v8763_v38 = vadd.f32 %v8707_v18, %v8353_v25  ;;  %v7648_v22 = vpop.f32.mrf.mxu3  ;;  %v7395_v18 = vadd.f32 %v7349_v5, %v14240_v41 }
 0x553   : > { %v8798_v32 = vadd.f32 %v14309_v63, %v8763_v38  ;;  %v8309_v46 = vpop.f32.mrf.mxu0  ;;  %v7352_v1 = vpop.f32.mrf.mxu2 }
 0x554   : > { %v8358_v58 = vadd.f32 %v8309_v46, %v7692_v4  ;;  %v7396_v10 = vadd.f32 %v7352_v1, %v14256_v12 }
 0x555   : > { %v8830_v28 = vmax.f32 %v8798_v32, 0.0 }
 0x557   : > { %8863 = vst.msk [vmem:[%s14316_s11 + $0x80] sm:$0xff] %vm8846_vm0, %v8830_v28  ;;  %v7694_v28 = vadd.f32 %v7648_v22, %v7395_v18 }
 0x558   : > { %v8709_v52 = vpop.f32.mrf.mxu1 }
 0x559   : > { %v8764_v59 = vadd.f32 %v8709_v52, %v8354_v40  ;;  %v7651_v3 = vpop.f32.mrf.mxu3 }
 0x55b   : > { %v8799_v17 = vadd.f32 %v14309_v63, %v8764_v59  ;;  %v8312_v57 = vpop.f32.mrf.mxu0  ;;  %v7354_v32 = vpop.f32.mrf.mxu2 }
 0x55c   : > { %v8359_v33 = vadd.f32 %v8312_v57, %v7693_v26 }
 0x55d   : > { %v8831_v16 = vmax.f32 %v8799_v17, 0.0 }
 0x55f   : > { %8864 = vst.msk [vmem:[%s14316_s11 + $0x88] sm:$0xff] %vm8846_vm0, %v8831_v16  ;;  %v7695_v16 = vadd.f32 %v7651_v3, %v7396_v10 }
 0x560   : > { %v8712_v53 = vpop.f32.mrf.mxu1 }
 0x561   : > { %v8765_v62 = vadd.f32 %v8712_v53, %v8355_v9  ;;  %v7653_v40 = vpop.f32.mrf.mxu3  ;;  %v7397_v9 = vadd.f32 %v7354_v32, %v14269_v2 }
 0x563   : > { %v8800_v13 = vadd.f32 %v14309_v63, %v8765_v62  ;;  %v8314_v15 = vpop.f32.mrf.mxu0  ;;  %v7357_v17 = vpop.f32.mrf.mxu2  ;;  %v7696_v7 = vadd.f32 %v7653_v40, %v7397_v9 }
 0x564   : > { %v8360_v52 = vadd.f32 %v8314_v15, %v7694_v28 }
 0x565   : > { %v8832_v19 = vmax.f32 %v8800_v13, 0.0 }
 0x567   : > { %8865 = vst.msk [vmem:[%s14316_s11 + $0x90] sm:$0xff] %vm8846_vm0, %v8832_v19 }
 0x568   : > { %v8714_v11 = vpop.f32.mrf.mxu1 }
 0x569   : > { %v8766_v56 = vadd.f32 %v8714_v11, %v8356_v21  ;;  %v7656_v46 = vpop.f32.mrf.mxu3  ;;  %v7398_v21 = vadd.f32 %v7357_v17, %v14275_v30 }
 0x56b   : > { %v8801_v60 = vadd.f32 %v14309_v63, %v8766_v56  ;;  %v8317_v38 = vpop.f32.mrf.mxu0  ;;  %v7359_v19 = vpop.f32.mrf.mxu2  ;;  %v7697_v24 = vadd.f32 %v7656_v46, %v7398_v21 }
 0x56c   : > { %v8361_v53 = vadd.f32 %v8317_v38, %v7695_v16  ;;  %v7399_v0 = vadd.f32 %v7359_v19, %v14281_v31 }
 0x56d   : > { %v8833_v44 = vmax.f32 %v8801_v60, 0.0 }
 0x56f   : > { %8866 = vst.msk [vmem:[%s14316_s11 + $0x98] sm:$0xff] %vm8846_vm0, %v8833_v44 }
 0x570   : > { %v8717_v20 = vpop.f32.mrf.mxu1 }
 0x571   : > { %v8767_v55 = vadd.f32 %v8717_v20, %v8357_v6  ;;  %v7658_v56 = vpop.f32.mrf.mxu3 }
 0x573   : > { %v8802_v35 = vadd.f32 %v14309_v63, %v8767_v55  ;;  %v8319_v41 = vpop.f32.mrf.mxu0  ;;  %v7362_v44 = vpop.f32.mrf.mxu2  ;;  %v7698_v55 = vadd.f32 %v7658_v56, %v7399_v0 }
 0x574   : > { %v8362_v37 = vadd.f32 %v8319_v41, %v7696_v7 }
 0x575   : > { %v8834_v34 = vmax.f32 %v8802_v35, 0.0 }
 0x577   : > { %8867 = vst.msk [vmem:[%s14316_s11 + $0xa0] sm:$0xff] %vm8846_vm0, %v8834_v34  ;;  %v7400_v34 = vadd.f32 %v7362_v44, %v14285_v48 }
 0x578   : > { %v8719_v51 = vpop.f32.mrf.mxu1 }
 0x579   : > { %v8768_v45 = vadd.f32 %v8719_v51, %v8358_v58  ;;  %v7661_v4 = vpop.f32.mrf.mxu3 }
 0x57a   : > { %v7699_v51 = vadd.f32 %v7661_v4, %v7400_v34 }
 0x57b   : > { %v8803_v54 = vadd.f32 %v14309_v63, %v8768_v45  ;;  %v8322_v8 = vpop.f32.mrf.mxu0  ;;  %v7364_v36 = vpop.f32.mrf.mxu2 }
 0x57c   : > { %v8363_v6 = vadd.f32 %v8322_v8, %v7697_v24  ;;  %v7401_v3 = vadd.f32 %v7364_v36, %v14291_v14 }
 0x57d   : > { %v8835_v25 = vmax.f32 %v8803_v54, 0.0 }
 0x57f   : > { %8868 = vst.msk [vmem:[%s14316_s11 + $0xa8] sm:$0xff] %vm8846_vm0, %v8835_v25 }
 0x580   : > { %v8722_v50 = vpop.f32.mrf.mxu1 }
 0x581   : > { %v8769_v43 = vadd.f32 %v8722_v50, %v8359_v33  ;;  %v7663_v54 = vpop.f32.mrf.mxu3 }
 0x582   : > { %v7700_v32 = vadd.f32 %v7663_v54, %v7401_v3 }
 0x583   : > { %v8804_v27 = vadd.f32 %v14309_v63, %v8769_v43  ;;  %v8324_v60 = vpop.f32.mrf.mxu0  ;;  %v7367_v33 = vpop.f32.mrf.mxu2 }
 0x584   : > { %v8364_v1 = vadd.f32 %v8324_v60, %v7698_v55 }
 0x585   : > { %v8836_v23 = vmax.f32 %v8804_v27, 0.0  ;;  %v7402_v27 = vadd.f32 %v7367_v33, %v14295_v42 }
 0x587   : > { %8869 = vst.msk [vmem:[%s14316_s11 + $0xb0] sm:$0xff] %vm8846_vm0, %v8836_v23 }
 0x588   : > { %v8724_v59 = vpop.f32.mrf.mxu1 }
 0x589   : > { %v8770_v39 = vadd.f32 %v8724_v59, %v8360_v52  ;;  %v7666_v28 = vpop.f32.mrf.mxu3 }
 0x58a   : > { %v7701_v52 = vadd.f32 %v7666_v28, %v7402_v27 }
 0x58b   : > { %v8805_v61 = vadd.f32 %v14309_v63, %v8770_v39  ;;  %v8327_v15 = vpop.f32.mrf.mxu0  ;;  %v7369_v41 = vpop.f32.mrf.mxu2 }
 0x58c   : > { %v8365_v25 = vadd.f32 %v8327_v15, %v7699_v51  ;;  %v7403_v16 = vadd.f32 %v7369_v41, %v14301_v29 }
 0x58d   : > { %v8837_v49 = vmax.f32 %v8805_v61, 0.0 }
 0x58f   : > { %8870 = vst.msk [vmem:[%s14316_s11 + $0xb8] sm:$0xff] %vm8846_vm0, %v8837_v49 }
 0x590   : > { %v8727_v62 = vpop.f32.mrf.mxu1 }
 0x591   : > { %v8771_v12 = vadd.f32 %v8727_v62, %v8361_v53  ;;  %v7668_v42 = vpop.f32.mrf.mxu3 }
 0x592   : > { %v7702_v9 = vadd.f32 %v7668_v42, %v7403_v16 }
 0x593   : > { %v8806_v13 = vadd.f32 %v14309_v63, %v8771_v12  ;;  %v8329_v48 = vpop.f32.mrf.mxu0 }
 0x594   : > { %v8366_v23 = vadd.f32 %v8329_v48, %v7700_v32 }
 0x595   : > { %v8838_v47 = vmax.f32 %v8806_v13, 0.0 }
 0x597   : > { %8871 = vst.msk [vmem:[%s14316_s11 + $0xc0] sm:$0xff] %vm8846_vm0, %v8838_v47 }
 0x598   : > { %v8729_v11 = vpop.f32.mrf.mxu1 }
 0x599   : > { %v8772_v2 = vadd.f32 %v8729_v11, %v8362_v37 }
 0x59b   : > { %v8807_v57 = vadd.f32 %v14309_v63, %v8772_v2  ;;  %v8332_v10 = vpop.f32.mrf.mxu0 }
 0x59c   : > { %v8367_v17 = vadd.f32 %v8332_v10, %v7701_v52 }
 0x59d   : > { %v8839_v5 = vmax.f32 %v8807_v57, 0.0 }
 0x59f   : > { %8872 = vst.msk [vmem:[%s14316_s11 + $0xc8] sm:$0xff] %vm8846_vm0, %v8839_v5 }
 0x5a0   : > { %v8732_v20 = vpop.f32.mrf.mxu1 }
 0x5a1   : > { %v8773_v30 = vadd.f32 %v8732_v20, %v8363_v6 }
 0x5a3   : > { %v8808_v22 = vadd.f32 %v14309_v63, %v8773_v30  ;;  %v8334_v46 = vpop.f32.mrf.mxu0 }
 0x5a4   : > { %v8368_v12 = vadd.f32 %v8334_v46, %v7702_v9 }
 0x5a5   : > { %v8840_v35 = vmax.f32 %v8808_v22, 0.0 }
 0x5a7   : > { %8873 = vst.msk [vmem:[%s14316_s11 + $0xd0] sm:$0xff] %vm8846_vm0, %v8840_v35 }
 0x5a8   : > { %v8734_v58 = vpop.f32.mrf.mxu1 }
 0x5a9   : > { %v8774_v31 = vadd.f32 %v8734_v58, %v8364_v1 }
 0x5ab   : > { %v8809_v45 = vadd.f32 %v14309_v63, %v8774_v31 }
 0x5ad   : > { %v8841_v26 = vmax.f32 %v8809_v45, 0.0 }
 0x5af   : > { %8874 = vst.msk [vmem:[%s14316_s11 + $0xd8] sm:$0xff] %vm8846_vm0, %v8841_v26 }
 0x5b0   : > { %v8737_v18 = vpop.f32.mrf.mxu1 }
 0x5b1   : > { %v8775_v38 = vadd.f32 %v8737_v18, %v8365_v25 }
 0x5b3   : > { %v8810_v50 = vadd.f32 %v14309_v63, %v8775_v38 }
 0x5b5   : > { %v8842_v43 = vmax.f32 %v8810_v50, 0.0 }
 0x5b7   : > { %8875 = vst.msk [vmem:[%s14316_s11 + $0xe0] sm:$0xff] %vm8846_vm0, %v8842_v43 }
 0x5b8   : > { %v8739_v14 = vpop.f32.mrf.mxu1 }
 0x5b9   : > { %v8776_v40 = vadd.f32 %v8739_v14, %v8366_v23 }
 0x5bb   : > { %v8811_v59 = vadd.f32 %v14309_v63, %v8776_v40 }
 0x5bd   : > { %v8843_v39 = vmax.f32 %v8811_v59, 0.0 }
 0x5bf   : > { %8876 = vst.msk [vmem:[%s14316_s11 + $0xe8] sm:$0xff] %vm8846_vm0, %v8843_v39 }
 0x5c0   : > { %v8742_v61 = vpop.f32.mrf.mxu1 }
 0x5c1   : > { %v8777_v49 = vadd.f32 %v8742_v61, %v8367_v17 }
 0x5c3   : > { %v8812_v53 = vadd.f32 %v14309_v63, %v8777_v49 }
 0x5c5   : > { %v8844_v62 = vmax.f32 %v8812_v53, 0.0 }
 0x5c7   : > { %8877 = vst.msk [vmem:[%s14316_s11 + $0xf0] sm:$0xff] %vm8846_vm0, %v8844_v62 }
 0x5c8   : > { %v8744_v29 = vpop.f32.mrf.mxu1 }
 0x5c9   : > { %v8778_v7 = vadd.f32 %v8744_v29, %v8368_v12 }
 0x5cb   : > { %v8813_v8 = vadd.f32 %v14309_v63, %v8778_v7 }
 0x5cd   : > { %v8845_v13 = vmax.f32 %v8813_v8, 0.0 }
 0x5cf   : > { %8878 = vst.msk [vmem:[%s14316_s11 + $0xf8] sm:$0xff] %vm8846_vm0, %v8845_v13 }
 0x5d0   : > { %10301 = shalt.err (!%p10298_p3)
}
 0x5d1   : > { %s10339_s7 = smov 128   ;;  %s10340_s10 = smov 8  }
 0x5d2   : > { %10211 = dma.vmem_to_hbm [thread:$0]  (%p10409_p5), %s8893_s16, 4096, %s8895_s17, %s8880_s22, %s10339_s7, %s10339_s7, %s10340_s10  }
 0x5d3 PF: > { %p10217_p4 = scmp.ge.s32.totalorder %s10336_s21, 2  ;;  %s8909_s11 = sand.u32 1, %s10324_s18  }
 0x5d4   : > { %s8910_s12 = scalar_lea.sflag [#allocation4], %s8909_s11 }
 0x5d5   : > { %p10214_p7 = pnand %p10217_p4, %p10413_p6 }
 0x5d7   : > { %p10215_p8 = pneg %p10214_p7 }
 0x5d9   : > { %10319 = dma.done.wait (%p10215_p8), %s8910_s12, 4096  }
 0x5da   : > { %10321 = vsyncadd (%p10215_p8), %s8910_s12, 4294963200  ;;  %p15_p9 = scmp.ge.s32.totalorder %s10396_s24, 4   ;;  %s14752_s18 = smov %s10328_s19 }
 0x5db   : > { %s14753_s19 = smov %s10332_s20  ;;  %s14754_s20 = smov %s10407_s27 }
 0x5dc   : > { %s14755_s21 = smov %s10396_s24  ;;  %17 = sbr.rel (!%p15_p9) target bundleno = 3 (0x3), region = 95 }
 0x5e1   :  { %8916 = vsyncpa [#allocation4], 1 }
 0x5e2   :  { %8918 = vsyncpa [#allocation4 + $0x1], 1 }

</bundles_post_ra>
